<compile_context>
chip_gen: v7x
topology: tpu7x:2x2x1
jax: 0.10.0
libtpu: 0.0.40
codegen_flags: <defaults>
</compile_context>

<pallas_src>
import functools

import jax
import jax.numpy as jnp
from jax.experimental import pallas as pl
from jax.experimental.pallas import tpu as pltpu


_BN_EPS = 1e-5
# Per-step working set is ~6 MB (weights double-buffered + scratch); 32 MiB is
# comfortably inside every generation's physical VMEM (incl. v7x's 64 MiB).
_VMEM_LIMIT_BYTES = 32 * 1024 * 1024


def _cparams(dimension_semantics):
    return pltpu.CompilerParams(dimension_semantics=dimension_semantics,
                                vmem_limit_bytes=_VMEM_LIMIT_BYTES)


def _round_up(v, m):
    return ((v + m - 1) // m) * m


# ----------------------------------------------------------------------------
# In-kernel helpers
# ----------------------------------------------------------------------------
def _conv3x3(src_ref, col_ref, w_ref, b_ref, *, n, oh, ow, cin, stride):
    """3x3 conv (pad already applied inside src_ref) as ONE big-K MXU matmul.

    Builds the (M, 9*cslot) im2col matrix in a VMEM scratch with one strided
    slab copy per tap (column slots are 128-lane aligned; cslot > cin slots
    rely on the scratch having been zero-initialised), then a single jnp.dot
    against the BN-folded (9*cslot, cout) weight.  M = n*oh*ow (batch folded
    into the matmul rows)."""
    m = n * oh * ow
    cslot = _round_up(cin, 128)
    for di in range(3):
        for dj in range(3):
            if stride == 1:
                patch = src_ref[:, pl.ds(di, oh), pl.ds(dj, ow), :]
            else:
                patch = src_ref[:, pl.ds(di, oh, stride), pl.ds(dj, ow, stride), :]
            col_ref[:, pl.ds((di * 3 + dj) * cslot, cin)] = (
                patch.reshape(m, cin).astype(col_ref.dtype))
    lhs = col_ref[:, pl.ds(0, 9 * cslot)]
    return jnp.dot(lhs, w_ref[...], preferred_element_type=jnp.float32) + b_ref[...]


def _conv1x1_down(src_ref, w_ref, b_ref, *, n, oh, ow, cin, stride):
    """1x1/stride-s downsample conv + BN-bias on the (padded) block input."""
    if stride == 1:
        patch = src_ref[:, pl.ds(1, oh), pl.ds(1, ow), :]
    else:
        patch = src_ref[:, pl.ds(1, oh, stride), pl.ds(1, ow, stride), :]
    lhs = patch.reshape(n * oh * ow, cin).astype(w_ref.dtype)
    return jnp.dot(lhs, w_ref[...], preferred_element_type=jnp.float32) + b_ref[...]


# ----------------------------------------------------------------------------
# The fully fused forward kernel (one batch-chunk per grid step)
# ----------------------------------------------------------------------------
def _resnet_fused_kernel(
        # inputs
        a1_ref, w1_ref, b1_ref,
        wl1a_ref, bl1a_ref, wl1b_ref, bl1b_ref,
        wl2a_ref, bl2a_ref, wl2b_ref, bl2b_ref, wl2d_ref, bl2d_ref,
        wl3a_ref, bl3a_ref, wl3b_ref, bl3b_ref, wl3d_ref, bl3d_ref,
        wfc_ref, bfc_ref,
        # output
        out_ref,
        # VMEM scratch
        pool_ref, a1p_ref, m1p_ref, col1_ref,
        a2p_ref, m2p_ref, col2_ref,
        a3p_ref, m3p_ref, col3_ref,
        *, n, h1, w1, hp, wp, h2, w2, h3, w3):
    c0 = w1_ref.shape[1]          # 64
    c1 = wl1a_ref.shape[1]        # 64
    c2 = wl2a_ref.shape[1]        # 128
    c3 = wl3a_ref.shape[1]        # 256

    # Zero-initialise the padded buffers and the im2col scratches whose column
    # slots are wider than Cin.  Done once per grid step (<=2 steps total), so
    # whole-buffer memsets beat border-only bookkeeping at this size; per-step
    # init also stays correct when the grid axis is megacore-sharded.
    pool_ref[...] = jnp.zeros_like(pool_ref)
    a1p_ref[...] = jnp.zeros_like(a1p_ref)
    m1p_ref[...] = jnp.zeros_like(m1p_ref)
    a2p_ref[...] = jnp.zeros_like(a2p_ref)
    m2p_ref[...] = jnp.zeros_like(m2p_ref)
    a3p_ref[...] = jnp.zeros_like(a3p_ref)
    m3p_ref[...] = jnp.zeros_like(m3p_ref)
    col1_ref[...] = jnp.zeros_like(col1_ref)
    col2_ref[...] = jnp.zeros_like(col2_ref)

    # ---- conv1 (7x7/s2/p3) + BN + ReLU: one im2col matmul, M = n*h1*w1 ----
    act = jnp.dot(a1_ref[0], w1_ref[...], preferred_element_type=jnp.float32)
    act = jnp.maximum(act + b1_ref[...], 0.0)            # (n*h1*w1, c0) f32

    # ---- maxpool 3x3/s2/p1 (zero padding == -inf padding: input >= 0) ----
    pool_ref[:, pl.ds(1, h1), pl.ds(1, w1), :] = act.reshape(n, h1, w1, c0)
    pooled = pool_ref[:, pl.ds(0, hp, 2), pl.ds(0, wp, 2), :]
    for di in range(3):
        for dj in range(3):
            if di == 0 and dj == 0:
                continue
            pooled = jnp.maximum(
                pooled, pool_ref[:, pl.ds(di, hp, 2), pl.ds(dj, wp, 2), :])
    # pooled: (n, hp, wp, c0) f32

    # ---- layer1: identity BasicBlock (64 -> 64, stride 1) ----
    a1p_ref[:, pl.ds(1, hp), pl.ds(1, wp), :] = pooled
    y = _conv3x3(a1p_ref, col1_ref, wl1a_ref, bl1a_ref,
                 n=n, oh=hp, ow=wp, cin=c0, stride=1)
    y = jnp.maximum(y, 0.0)
    m1p_ref[:, pl.ds(1, hp), pl.ds(1, wp), :] = y.reshape(n, hp, wp, c1)
    y = _conv3x3(m1p_ref, col1_ref, wl1b_ref, bl1b_ref,
                 n=n, oh=hp, ow=wp, cin=c1, stride=1)
    y_l1 = jnp.maximum(y + pooled.reshape(n * hp * wp, c0), 0.0)

    # ---- layer2: downsampling BasicBlock (64 -> 128, stride 2) ----
    a2p_ref[:, pl.ds(1, hp), pl.ds(1, wp), :] = y_l1.reshape(n, hp, wp, c1)
    y = _conv3x3(a2p_ref, col2_ref, wl2a_ref, bl2a_ref,
                 n=n, oh=h2, ow=w2, cin=c1, stride=2)
    y = jnp.maximum(y, 0.0)
    m2p_ref[:, pl.ds(1, h2), pl.ds(1, w2), :] = y.reshape(n, h2, w2, c2)
    y = _conv3x3(m2p_ref, col2_ref, wl2b_ref, bl2b_ref,
                 n=n, oh=h2, ow=w2, cin=c2, stride=1)
    res = _conv1x1_down(a2p_ref, wl2d_ref, bl2d_ref,
                        n=n, oh=h2, ow=w2, cin=c1, stride=2)
    y_l2 = jnp.maximum(y + res, 0.0)

    # ---- layer3: downsampling BasicBlock (128 -> 256, stride 2) ----
    a3p_ref[:, pl.ds(1, h2), pl.ds(1, w2), :] = y_l2.reshape(n, h2, w2, c2)
    y = _conv3x3(a3p_ref, col3_ref, wl3a_ref, bl3a_ref,
                 n=n, oh=h3, ow=w3, cin=c2, stride=2)
    y = jnp.maximum(y, 0.0)
    m3p_ref[:, pl.ds(1, h3), pl.ds(1, w3), :] = y.reshape(n, h3, w3, c3)
    y = _conv3x3(m3p_ref, col3_ref, wl3b_ref, bl3b_ref,
                 n=n, oh=h3, ow=w3, cin=c3, stride=1)
    res = _conv1x1_down(a3p_ref, wl3d_ref, bl3d_ref,
                        n=n, oh=h3, ow=w3, cin=c2, stride=2)
    y_l3 = jnp.maximum(y + res, 0.0)                      # (n*h3*w3, c3) f32

    # ---- global average pool + fully connected (fused epilogue) ----
    feat = jnp.mean(y_l3.reshape(n, h3 * w3, c3), axis=1)           # (n, c3)
    logits = jnp.dot(feat.astype(wfc_ref.dtype), wfc_ref[...],
                     preferred_element_type=jnp.float32) + bfc_ref[...]
    out_ref[...] = logits.reshape(out_ref.shape)


# ----------------------------------------------------------------------------
# Wrapper: weight folding / layout prep + the single pallas_call
# ----------------------------------------------------------------------------
def _fold_bn(w, bn):
    # Fold inference-mode BN scale into the conv weight.  Returns the weight
    # as (kh*kw*cin, cout) bf16 (tap-major rows) and the BN bias as (1, cout).
    gamma, beta, mean, var = bn
    scale = gamma / jnp.sqrt(var + _BN_EPS)
    bias = (beta - mean * scale).reshape(1, -1).astype(jnp.float32)
    kh, kw, cin, cout = w.shape
    wf = (w * scale).reshape(kh * kw * cin, cout).astype(jnp.bfloat16)
    return wf, bias


def _pad_tap_slots(wf, cin, taps=9):
    # Re-lay a (taps*cin, cout) tap-major weight into (taps*cslot, cout) with
    # zero rows so every in-kernel im2col column slot is 128-lane aligned.
    cslot = _round_up(cin, 128)
    if cslot == cin:
        return wf
    cout = wf.shape[1]
    w3 = wf.reshape(taps, cin, cout)
    w3 = jnp.pad(w3, ((0, 0), (0, cslot - cin), (0, 0)))
    return w3.reshape(taps * cslot, cout)


def _im2col(x, kh, kw, stride, pad):
    # Only used for conv1 (Cin == 1): tiny input-side glue before the fused call.
    if pad:
        x = jnp.pad(x, ((0, 0), (pad, pad), (pad, pad), (0, 0)))
    n, h, w, c = x.shape
    oh = (h - kh) // stride + 1
    ow = (w - kw) // stride + 1
    cols = []
    for i in range(kh):
        for j in range(kw):
            cols.append(jax.lax.slice(
                x, (0, i, j, 0),
                (n, i + stride * (oh - 1) + 1, j + stride * (ow - 1) + 1, c),
                (1, stride, stride, 1)))
    patches = jnp.stack(cols, axis=3)                  # (N, OH, OW, kh*kw, C)
    return patches.reshape(n, oh * ow, kh * kw * c), (oh, ow)


def _full_spec(shape):
    nd = len(shape)
    return pl.BlockSpec(shape, lambda i: (0,) * nd)


def resnet_forward(params, x_nchw, *, num_chunks=None):
    # Accepts NCHW like the PyTorch module; the kernel runs in NHWC.
    x = jnp.transpose(x_nchw, (0, 2, 3, 1)).astype(jnp.float32)
    n = x.shape[0]
    if num_chunks is None:
        # Keep a small "parallel" batch-chunk axis so v7x megacore can split
        # work across its two TensorCores; each chunk folds its images into
        # the matmul M dimension.  v5e/v6e just iterate the chunks serially.
        num_chunks = 2 if (n % 2 == 0 and n >= 2) else 1
    assert n % num_chunks == 0
    chunk = n // num_chunks

    for li in (1, 2, 3):
        if len(params[f"layer{li}"]) != 1:
            # TODO(synk): fused kernel is specialized to layers=(1,1,1).
            raise NotImplementedError("fused kernel assumes one block per layer")

    # conv1 weights + im2col patches (Cin == 1; K padded 49 -> 64).
    w1m, b1 = _fold_bn(params["conv1"], params["bn1"])
    k1 = w1m.shape[0]
    kp = _round_up(k1, 64)
    w1m = jnp.pad(w1m, ((0, kp - k1), (0, 0)))
    a1, (h1, w1s) = _im2col(x, 7, 7, stride=2, pad=3)
    a1 = jnp.pad(a1, ((0, 0), (0, 0), (0, kp - k1))).astype(jnp.bfloat16)
    a1 = a1.reshape(num_chunks, chunk * h1 * w1s, kp)

    c0 = w1m.shape[1]                                   # 64
    hp = (h1 - 1) // 2 + 1                              # maxpool 3x3/s2/p1
    wp = (w1s - 1) // 2 + 1
    h2 = (hp - 1) // 2 + 1                              # layer2 stride-2 conv
    w2 = (wp - 1) // 2 + 1
    h3 = (h2 - 1) // 2 + 1                              # layer3 stride-2 conv
    w3 = (w2 - 1) // 2 + 1

    blk1 = params["layer1"][0]
    blk2 = params["layer2"][0]
    blk3 = params["layer3"][0]
    c1 = blk1["conv1"].shape[3]                         # 64
    c2 = blk2["conv1"].shape[3]                         # 128
    c3 = blk3["conv1"].shape[3]                         # 256

    wl1a, bl1a = _fold_bn(blk1["conv1"], blk1["bn1"])
    wl1a = _pad_tap_slots(wl1a, c0)
    wl1b, bl1b = _fold_bn(blk1["conv2"], blk1["bn2"])
    wl1b = _pad_tap_slots(wl1b, c1)
    wl2a, bl2a = _fold_bn(blk2["conv1"], blk2["bn1"])
    wl2a = _pad_tap_slots(wl2a, c1)
    wl2b, bl2b = _fold_bn(blk2["conv2"], blk2["bn2"])
    wl2b = _pad_tap_slots(wl2b, c2)
    wl2d, bl2d = _fold_bn(blk2["down_conv"], blk2["down_bn"])
    wl3a, bl3a = _fold_bn(blk3["conv1"], blk3["bn1"])
    wl3a = _pad_tap_slots(wl3a, c2)
    wl3b, bl3b = _fold_bn(blk3["conv2"], blk3["bn2"])
    wl3b = _pad_tap_slots(wl3b, c3)
    wl3d, bl3d = _fold_bn(blk3["down_conv"], blk3["down_bn"])
    wfc = params["fc_w"].astype(jnp.bfloat16)
    nc = wfc.shape[1]
    bfc = params["fc_b"].reshape(1, nc).astype(jnp.float32)

    s1 = _round_up(c1, 128)
    s2 = _round_up(c2, 128)
    s3 = _round_up(c3, 128)
    scratch_shapes = [
        pltpu.VMEM((chunk, h1 + 2, w1s + 2, c0), jnp.float32),         # pool in
        pltpu.VMEM((chunk, hp + 2, wp + 2, c0), jnp.float32),          # l1 in
        pltpu.VMEM((chunk, hp + 2, wp + 2, c1), jnp.float32),          # l1 mid
        pltpu.VMEM((chunk * hp * wp, 9 * s1), jnp.bfloat16),           # l1 im2col
        pltpu.VMEM((chunk, hp + 2, wp + 2, c1), jnp.float32),          # l2 in
        pltpu.VMEM((chunk, h2 + 2, w2 + 2, c2), jnp.float32),          # l2 mid
        pltpu.VMEM((chunk * h2 * w2, 9 * max(s1, s2)), jnp.bfloat16),  # l2 im2col
        pltpu.VMEM((chunk, h2 + 2, w2 + 2, c2), jnp.float32),          # l3 in
        pltpu.VMEM((chunk, h3 + 2, w3 + 2, c3), jnp.float32),          # l3 mid
        pltpu.VMEM((chunk * h3 * w3, 9 * max(s2, s3)), jnp.bfloat16),  # l3 im2col
    ]

    weight_args = (w1m, b1, wl1a, bl1a, wl1b, bl1b,
                   wl2a, bl2a, wl2b, bl2b, wl2d, bl2d,
                   wl3a, bl3a, wl3b, bl3b, wl3d, bl3d, wfc, bfc)
    in_specs = [pl.BlockSpec((1, chunk * h1 * w1s, kp), lambda i: (i, 0, 0))]
    in_specs += [_full_spec(arr.shape) for arr in weight_args]

    kern = functools.partial(_resnet_fused_kernel,
                             n=chunk, h1=h1, w1=w1s, hp=hp, wp=wp,
                             h2=h2, w2=w2, h3=h3, w3=w3)
    out = pl.pallas_call(
        kern,
        out_shape=jax.ShapeDtypeStruct((num_chunks, chunk, nc), jnp.float32),
        grid=(num_chunks,),
        in_specs=in_specs,
        out_specs=pl.BlockSpec((1, chunk, nc), lambda i: (i, 0, 0)),
        scratch_shapes=scratch_shapes,
        compiler_params=_cparams(("parallel",)),
    )(a1, *weight_args)
    return out.reshape(n, nc)


# ----------------------------------------------------------------------------
# Parameters (matching the PyTorch module's initializers)
# ----------------------------------------------------------------------------
def kaiming_conv(key, kh, kw, cin, cout):
    # kaiming_normal_(mode='fan_out', nonlinearity='relu'): std = sqrt(2/fan_out)
    fan_out = kh * kw * cout
    std = (2.0 / fan_out) ** 0.5
    return jax.random.normal(key, (kh, kw, cin, cout), jnp.float32) * std


def bn_params(c):
    # (weight, bias, running_mean, running_var) at their PyTorch defaults.
    return (jnp.ones((c,), jnp.float32), jnp.zeros((c,), jnp.float32),
            jnp.zeros((c,), jnp.float32), jnp.ones((c,), jnp.float32))


def make_resnet_params(key, layers=(1, 1, 1), num_classes=2):
    params = {}
    keys = iter(jax.random.split(key, 64))
    params["conv1"] = kaiming_conv(next(keys), 7, 7, 1, 64)
    params["bn1"] = bn_params(64)
    inplanes = 64
    for li, (planes, blocks, stride) in enumerate(
            zip((64, 128, 256), layers, (1, 2, 2)), start=1):
        layer = []
        for b in range(blocks):
            s = stride if b == 0 else 1
            blk = {
                "conv1": kaiming_conv(next(keys), 3, 3, inplanes, planes),
                "bn1": bn_params(planes),
                "conv2": kaiming_conv(next(keys), 3, 3, planes, planes),
                "bn2": bn_params(planes),
            }
            if s != 1 or inplanes != planes:
                blk["down_conv"] = kaiming_conv(next(keys), 1, 1, inplanes, planes)
                blk["down_bn"] = bn_params(planes)
            inplanes = planes
            layer.append(blk)
        params[f"layer{li}"] = layer
    # nn.Linear default init: U(-1/sqrt(fan_in), 1/sqrt(fan_in)), fan_in = 256.
    kfc1, kfc2 = jax.random.split(next(keys))
    bound = 1.0 / (256 ** 0.5)
    params["fc_w"] = jax.random.uniform(kfc1, (256, num_classes), jnp.float32,
                                        -bound, bound)
    params["fc_b"] = jax.random.uniform(kfc2, (num_classes,), jnp.float32,
                                        -bound, bound)
    return params


# ----------------------------------------------------------------------------
if __name__ == "__main__":
    key = jax.random.PRNGKey(0)
    kp_, kx_ = jax.random.split(key)
    params = make_resnet_params(kp_, layers=(1, 1, 1), num_classes=2)
    # Input matches the PyTorch module: NCHW with 1 input channel.
    x = jax.random.normal(kx_, (2, 1, 32, 32), jnp.float32)
    fwd = jax.jit(resnet_forward)
    out = jax.block_until_ready(fwd(params, x))
    assert out.shape == (2, 2) and out.dtype == jnp.float32
    assert bool(jnp.all(jnp.isfinite(out)))
    print("KERNEL_OK")
</pallas_src>

<mosaic_0001>
module attributes {stable_mosaic.version = 11 : i64} {
  func.func @_resnet_fused_kernel(%arg0: i32, %arg1: memref<1x256x64xbf16, #tpu.memory_space<vmem>>, %arg2: memref<64x64xbf16, #tpu.memory_space<vmem>>, %arg3: memref<1x64xf32, #tpu.memory_space<vmem>>, %arg4: memref<1152x64xbf16, #tpu.memory_space<vmem>>, %arg5: memref<1x64xf32, #tpu.memory_space<vmem>>, %arg6: memref<1152x64xbf16, #tpu.memory_space<vmem>>, %arg7: memref<1x64xf32, #tpu.memory_space<vmem>>, %arg8: memref<1152x128xbf16, #tpu.memory_space<vmem>>, %arg9: memref<1x128xf32, #tpu.memory_space<vmem>>, %arg10: memref<1152x128xbf16, #tpu.memory_space<vmem>>, %arg11: memref<1x128xf32, #tpu.memory_space<vmem>>, %arg12: memref<64x128xbf16, #tpu.memory_space<vmem>>, %arg13: memref<1x128xf32, #tpu.memory_space<vmem>>, %arg14: memref<1152x256xbf16, #tpu.memory_space<vmem>>, %arg15: memref<1x256xf32, #tpu.memory_space<vmem>>, %arg16: memref<2304x256xbf16, #tpu.memory_space<vmem>>, %arg17: memref<1x256xf32, #tpu.memory_space<vmem>>, %arg18: memref<128x256xbf16, #tpu.memory_space<vmem>>, %arg19: memref<1x256xf32, #tpu.memory_space<vmem>>, %arg20: memref<256x2xbf16, #tpu.memory_space<vmem>>, %arg21: memref<1x2xf32, #tpu.memory_space<vmem>>, %arg22: memref<1x1x2xf32, #tpu.memory_space<vmem>>, %arg23: memref<1x18x18x64xf32, #tpu.memory_space<vmem>>, %arg24: memref<1x10x10x64xf32, #tpu.memory_space<vmem>>, %arg25: memref<1x10x10x64xf32, #tpu.memory_space<vmem>>, %arg26: memref<64x1152xbf16, #tpu.memory_space<vmem>>, %arg27: memref<1x10x10x64xf32, #tpu.memory_space<vmem>>, %arg28: memref<1x6x6x128xf32, #tpu.memory_space<vmem>>, %arg29: memref<16x1152xbf16, #tpu.memory_space<vmem>>, %arg30: memref<1x6x6x128xf32, #tpu.memory_space<vmem>>, %arg31: memref<1x4x4x256xf32, #tpu.memory_space<vmem>>, %arg32: memref<4x2304xbf16, #tpu.memory_space<vmem>>) attributes {dimension_semantics = [#tpu.dimension_semantics<parallel>], iteration_bounds = array<i64: 2>, scalar_prefetch = 0 : i64, scratch_operands = 10 : i64, tpu.core_type = #tpu.core_type<tc>, window_params = [{transform_indices = @transform_0, window_bounds = array<i64: 1, 256, 64>}, {pipeline_mode = #tpu.pipeline_mode<synchronous>, transform_indices = @transform_1, window_bounds = array<i64: 64, 64>}, {pipeline_mode = #tpu.pipeline_mode<synchronous>, transform_indices = @transform_2, window_bounds = array<i64: 1, 64>}, {pipeline_mode = #tpu.pipeline_mode<synchronous>, transform_indices = @transform_3, window_bounds = array<i64: 1152, 64>}, {pipeline_mode = #tpu.pipeline_mode<synchronous>, transform_indices = @transform_4, window_bounds = array<i64: 1, 64>}, {pipeline_mode = #tpu.pipeline_mode<synchronous>, transform_indices = @transform_5, window_bounds = array<i64: 1152, 64>}, {pipeline_mode = #tpu.pipeline_mode<synchronous>, transform_indices = @transform_6, window_bounds = array<i64: 1, 64>}, {pipeline_mode = #tpu.pipeline_mode<synchronous>, transform_indices = @transform_7, window_bounds = array<i64: 1152, 128>}, {pipeline_mode = #tpu.pipeline_mode<synchronous>, transform_indices = @transform_8, window_bounds = array<i64: 1, 128>}, {pipeline_mode = #tpu.pipeline_mode<synchronous>, transform_indices = @transform_9, window_bounds = array<i64: 1152, 128>}, {pipeline_mode = #tpu.pipeline_mode<synchronous>, transform_indices = @transform_10, window_bounds = array<i64: 1, 128>}, {pipeline_mode = #tpu.pipeline_mode<synchronous>, transform_indices = @transform_11, window_bounds = array<i64: 64, 128>}, {pipeline_mode = #tpu.pipeline_mode<synchronous>, transform_indices = @transform_12, window_bounds = array<i64: 1, 128>}, {pipeline_mode = #tpu.pipeline_mode<synchronous>, transform_indices = @transform_13, window_bounds = array<i64: 1152, 256>}, {pipeline_mode = #tpu.pipeline_mode<synchronous>, transform_indices = @transform_14, window_bounds = array<i64: 1, 256>}, {pipeline_mode = #tpu.pipeline_mode<synchronous>, transform_indices = @transform_15, window_bounds = array<i64: 2304, 256>}, {pipeline_mode = #tpu.pipeline_mode<synchronous>, transform_indices = @transform_16, window_bounds = array<i64: 1, 256>}, {pipeline_mode = #tpu.pipeline_mode<synchronous>, transform_indices = @transform_17, window_bounds = array<i64: 128, 256>}, {pipeline_mode = #tpu.pipeline_mode<synchronous>, transform_indices = @transform_18, window_bounds = array<i64: 1, 256>}, {pipeline_mode = #tpu.pipeline_mode<synchronous>, transform_indices = @transform_19, window_bounds = array<i64: 256, 2>}, {pipeline_mode = #tpu.pipeline_mode<synchronous>, transform_indices = @transform_20, window_bounds = array<i64: 1, 2>}, {transform_indices = @transform_21, window_bounds = array<i64: 1, 1, 2>}]} {
    %cst = arith.constant 0.000000e+00 : f32
    %0 = vector.broadcast %cst : f32 to vector<1x18x18x64xf32>
    %c0 = arith.constant 0 : index
    %c0_0 = arith.constant 0 : index
    %c0_1 = arith.constant 0 : index
    %c0_2 = arith.constant 0 : index
    %1 = vector.load %arg23[%c0, %c0_0, %c0_1, %c0_2] : memref<1x18x18x64xf32, #tpu.memory_space<vmem>>, vector<1x18x18x64xf32>
    tpu.vector_store %arg23[%c0, %c0_0, %c0_1, %c0_2], %0 {strides = array<i32>} : memref<1x18x18x64xf32, #tpu.memory_space<vmem>>, vector<1x18x18x64xf32>,
    %cst_3 = arith.constant 0.000000e+00 : f32
    %2 = vector.broadcast %cst_3 : f32 to vector<1x10x10x64xf32>
    %c0_4 = arith.constant 0 : index
    %c0_5 = arith.constant 0 : index
    %c0_6 = arith.constant 0 : index
    %c0_7 = arith.constant 0 : index
    %3 = vector.load %arg24[%c0_4, %c0_5, %c0_6, %c0_7] : memref<1x10x10x64xf32, #tpu.memory_space<vmem>>, vector<1x10x10x64xf32>
    tpu.vector_store %arg24[%c0_4, %c0_5, %c0_6, %c0_7], %2 {strides = array<i32>} : memref<1x10x10x64xf32, #tpu.memory_space<vmem>>, vector<1x10x10x64xf32>,
    %cst_8 = arith.constant 0.000000e+00 : f32
    %4 = vector.broadcast %cst_8 : f32 to vector<1x10x10x64xf32>
    %c0_9 = arith.constant 0 : index
    %c0_10 = arith.constant 0 : index
    %c0_11 = arith.constant 0 : index
    %c0_12 = arith.constant 0 : index
    %5 = vector.load %arg25[%c0_9, %c0_10, %c0_11, %c0_12] : memref<1x10x10x64xf32, #tpu.memory_space<vmem>>, vector<1x10x10x64xf32>
    tpu.vector_store %arg25[%c0_9, %c0_10, %c0_11, %c0_12], %4 {strides = array<i32>} : memref<1x10x10x64xf32, #tpu.memory_space<vmem>>, vector<1x10x10x64xf32>,
    %cst_13 = arith.constant 0.000000e+00 : f32
    %6 = vector.broadcast %cst_13 : f32 to vector<1x10x10x64xf32>
    %c0_14 = arith.constant 0 : index
    %c0_15 = arith.constant 0 : index
    %c0_16 = arith.constant 0 : index
    %c0_17 = arith.constant 0 : index
    %7 = vector.load %arg27[%c0_14, %c0_15, %c0_16, %c0_17] : memref<1x10x10x64xf32, #tpu.memory_space<vmem>>, vector<1x10x10x64xf32>
    tpu.vector_store %arg27[%c0_14, %c0_15, %c0_16, %c0_17], %6 {strides = array<i32>} : memref<1x10x10x64xf32, #tpu.memory_space<vmem>>, vector<1x10x10x64xf32>,
    %cst_18 = arith.constant 0.000000e+00 : f32
    %8 = vector.broadcast %cst_18 : f32 to vector<1x6x6x128xf32>
    %c0_19 = arith.constant 0 : index
    %c0_20 = arith.constant 0 : index
    %c0_21 = arith.constant 0 : index
    %c0_22 = arith.constant 0 : index
    %9 = vector.load %arg28[%c0_19, %c0_20, %c0_21, %c0_22] : memref<1x6x6x128xf32, #tpu.memory_space<vmem>>, vector<1x6x6x128xf32>
    tpu.vector_store %arg28[%c0_19, %c0_20, %c0_21, %c0_22], %8 {strides = array<i32>} : memref<1x6x6x128xf32, #tpu.memory_space<vmem>>, vector<1x6x6x128xf32>,
    %cst_23 = arith.constant 0.000000e+00 : f32
    %10 = vector.broadcast %cst_23 : f32 to vector<1x6x6x128xf32>
    %c0_24 = arith.constant 0 : index
    %c0_25 = arith.constant 0 : index
    %c0_26 = arith.constant 0 : index
    %c0_27 = arith.constant 0 : index
    %11 = vector.load %arg30[%c0_24, %c0_25, %c0_26, %c0_27] : memref<1x6x6x128xf32, #tpu.memory_space<vmem>>, vector<1x6x6x128xf32>
    tpu.vector_store %arg30[%c0_24, %c0_25, %c0_26, %c0_27], %10 {strides = array<i32>} : memref<1x6x6x128xf32, #tpu.memory_space<vmem>>, vector<1x6x6x128xf32>,
    %cst_28 = arith.constant 0.000000e+00 : f32
    %12 = vector.broadcast %cst_28 : f32 to vector<1x4x4x256xf32>
    %c0_29 = arith.constant 0 : index
    %c0_30 = arith.constant 0 : index
    %c0_31 = arith.constant 0 : index
    %c0_32 = arith.constant 0 : index
    %13 = vector.load %arg31[%c0_29, %c0_30, %c0_31, %c0_32] : memref<1x4x4x256xf32, #tpu.memory_space<vmem>>, vector<1x4x4x256xf32>
    tpu.vector_store %arg31[%c0_29, %c0_30, %c0_31, %c0_32], %12 {strides = array<i32>} : memref<1x4x4x256xf32, #tpu.memory_space<vmem>>, vector<1x4x4x256xf32>,
    %cst_33 = arith.constant 0.000000e+00 : bf16
    %14 = vector.broadcast %cst_33 : bf16 to vector<64x1152xbf16>
    %c0_34 = arith.constant 0 : index
    %c0_35 = arith.constant 0 : index
    %15 = vector.load %arg26[%c0_34, %c0_35] : memref<64x1152xbf16, #tpu.memory_space<vmem>>, vector<64x1152xbf16>
    tpu.vector_store %arg26[%c0_34, %c0_35], %14 {strides = array<i32>} : memref<64x1152xbf16, #tpu.memory_space<vmem>>, vector<64x1152xbf16>,
    %cst_36 = arith.constant 0.000000e+00 : bf16
    %16 = vector.broadcast %cst_36 : bf16 to vector<16x1152xbf16>
    %c0_37 = arith.constant 0 : index
    %c0_38 = arith.constant 0 : index
    %17 = vector.load %arg29[%c0_37, %c0_38] : memref<16x1152xbf16, #tpu.memory_space<vmem>>, vector<16x1152xbf16>
    tpu.vector_store %arg29[%c0_37, %c0_38], %16 {strides = array<i32>} : memref<16x1152xbf16, #tpu.memory_space<vmem>>, vector<16x1152xbf16>,
    %c0_39 = arith.constant 0 : index
    %c0_40 = arith.constant 0 : index
    %c0_41 = arith.constant 0 : index
    %18 = vector.load %arg1[%c0_39, %c0_40, %c0_41] : memref<1x256x64xbf16, #tpu.memory_space<vmem>>, vector<1x256x64xbf16>
    %19 = vector.shape_cast %18 : vector<1x256x64xbf16> to vector<256x64xbf16>
    %c0_42 = arith.constant 0 : index
    %c0_43 = arith.constant 0 : index
    %20 = vector.load %arg2[%c0_42, %c0_43] : memref<64x64xbf16, #tpu.memory_space<vmem>>, vector<64x64xbf16>
    %cst_44 = arith.constant dense<0.000000e+00> : vector<256x64xf32>
    %21 = tpu.matmul %19, %20, %cst_44 {dimension_numbers = #tpu.dot_dimension_numbers<[1], [0], [0], [1], [0, 0, 1, 1], [], []>} : vector<256x64xbf16>, vector<64x64xbf16>, vector<256x64xf32> -> vector<256x64xf32>
    %c0_45 = arith.constant 0 : index
    %c0_46 = arith.constant 0 : index
    %22 = vector.load %arg3[%c0_45, %c0_46] : memref<1x64xf32, #tpu.memory_space<vmem>>, vector<1x64xf32>
    %23 = vector.broadcast %22 : vector<1x64xf32> to vector<256x64xf32>
    %24 = arith.addf %21, %23 : vector<256x64xf32>
    %cst_47 = arith.constant 0.000000e+00 : f32
    %25 = vector.broadcast %cst_47 : f32 to vector<256x64xf32>
    %26 = arith.maximumf %24, %25 : vector<256x64xf32>
    %27 = vector.shape_cast %26 : vector<256x64xf32> to vector<1x16x16x64xf32>
    %c0_48 = arith.constant 0 : index
    %c1 = arith.constant 1 : index
    %c1_49 = arith.constant 1 : index
    %c0_50 = arith.constant 0 : index
    %28 = vector.load %arg23[%c0_48, %c1, %c1_49, %c0_50] : memref<1x18x18x64xf32, #tpu.memory_space<vmem>>, vector<1x16x16x64xf32>
    tpu.vector_store %arg23[%c0_48, %c1, %c1_49, %c0_50], %27 {strides = array<i32>} : memref<1x18x18x64xf32, #tpu.memory_space<vmem>>, vector<1x16x16x64xf32>,
    %c0_51 = arith.constant 0 : index
    %c0_52 = arith.constant 0 : index
    %c0_53 = arith.constant 0 : index
    %c0_54 = arith.constant 0 : index
    %29 = tpu.strided_load %arg23[%c0_51, %c0_52, %c0_53, %c0_54] {strides = array<i32: 1, 2, 2, 1>} : memref<1x18x18x64xf32, #tpu.memory_space<vmem>>, vector<1x8x8x64xf32>
    %c0_55 = arith.constant 0 : index
    %c0_56 = arith.constant 0 : index
    %c1_57 = arith.constant 1 : index
    %c0_58 = arith.constant 0 : index
    %30 = tpu.strided_load %arg23[%c0_55, %c0_56, %c1_57, %c0_58] {strides = array<i32: 1, 2, 2, 1>} : memref<1x18x18x64xf32, #tpu.memory_space<vmem>>, vector<1x8x8x64xf32>
    %31 = arith.maximumf %29, %30 : vector<1x8x8x64xf32>
    %c0_59 = arith.constant 0 : index
    %c0_60 = arith.constant 0 : index
    %c2 = arith.constant 2 : index
    %c0_61 = arith.constant 0 : index
    %32 = tpu.strided_load %arg23[%c0_59, %c0_60, %c2, %c0_61] {strides = array<i32: 1, 2, 2, 1>} : memref<1x18x18x64xf32, #tpu.memory_space<vmem>>, vector<1x8x8x64xf32>
    %33 = arith.maximumf %31, %32 : vector<1x8x8x64xf32>
    %c0_62 = arith.constant 0 : index
    %c1_63 = arith.constant 1 : index
    %c0_64 = arith.constant 0 : index
    %c0_65 = arith.constant 0 : index
    %34 = tpu.strided_load %arg23[%c0_62, %c1_63, %c0_64, %c0_65] {strides = array<i32: 1, 2, 2, 1>} : memref<1x18x18x64xf32, #tpu.memory_space<vmem>>, vector<1x8x8x64xf32>
    %35 = arith.maximumf %33, %34 : vector<1x8x8x64xf32>
    %c0_66 = arith.constant 0 : index
    %c1_67 = arith.constant 1 : index
    %c1_68 = arith.constant 1 : index
    %c0_69 = arith.constant 0 : index
    %36 = tpu.strided_load %arg23[%c0_66, %c1_67, %c1_68, %c0_69] {strides = array<i32: 1, 2, 2, 1>} : memref<1x18x18x64xf32, #tpu.memory_space<vmem>>, vector<1x8x8x64xf32>
    %37 = arith.maximumf %35, %36 : vector<1x8x8x64xf32>
    %c0_70 = arith.constant 0 : index
    %c1_71 = arith.constant 1 : index
    %c2_72 = arith.constant 2 : index
    %c0_73 = arith.constant 0 : index
    %38 = tpu.strided_load %arg23[%c0_70, %c1_71, %c2_72, %c0_73] {strides = array<i32: 1, 2, 2, 1>} : memref<1x18x18x64xf32, #tpu.memory_space<vmem>>, vector<1x8x8x64xf32>
    %39 = arith.maximumf %37, %38 : vector<1x8x8x64xf32>
    %c0_74 = arith.constant 0 : index
    %c2_75 = arith.constant 2 : index
    %c0_76 = arith.constant 0 : index
    %c0_77 = arith.constant 0 : index
    %40 = tpu.strided_load %arg23[%c0_74, %c2_75, %c0_76, %c0_77] {strides = array<i32: 1, 2, 2, 1>} : memref<1x18x18x64xf32, #tpu.memory_space<vmem>>, vector<1x8x8x64xf32>
    %41 = arith.maximumf %39, %40 : vector<1x8x8x64xf32>
    %c0_78 = arith.constant 0 : index
    %c2_79 = arith.constant 2 : index
    %c1_80 = arith.constant 1 : index
    %c0_81 = arith.constant 0 : index
    %42 = tpu.strided_load %arg23[%c0_78, %c2_79, %c1_80, %c0_81] {strides = array<i32: 1, 2, 2, 1>} : memref<1x18x18x64xf32, #tpu.memory_space<vmem>>, vector<1x8x8x64xf32>
    %43 = arith.maximumf %41, %42 : vector<1x8x8x64xf32>
    %c0_82 = arith.constant 0 : index
    %c2_83 = arith.constant 2 : index
    %c2_84 = arith.constant 2 : index
    %c0_85 = arith.constant 0 : index
    %44 = tpu.strided_load %arg23[%c0_82, %c2_83, %c2_84, %c0_85] {strides = array<i32: 1, 2, 2, 1>} : memref<1x18x18x64xf32, #tpu.memory_space<vmem>>, vector<1x8x8x64xf32>
    %45 = arith.maximumf %43, %44 : vector<1x8x8x64xf32>
    %c0_86 = arith.constant 0 : index
    %c1_87 = arith.constant 1 : index
    %c1_88 = arith.constant 1 : index
    %c0_89 = arith.constant 0 : index
    %46 = vector.load %arg24[%c0_86, %c1_87, %c1_88, %c0_89] : memref<1x10x10x64xf32, #tpu.memory_space<vmem>>, vector<1x8x8x64xf32>
    tpu.vector_store %arg24[%c0_86, %c1_87, %c1_88, %c0_89], %45 {strides = array<i32>} : memref<1x10x10x64xf32, #tpu.memory_space<vmem>>, vector<1x8x8x64xf32>,
    %c0_90 = arith.constant 0 : index
    %c0_91 = arith.constant 0 : index
    %c0_92 = arith.constant 0 : index
    %c0_93 = arith.constant 0 : index
    %47 = vector.load %arg24[%c0_90, %c0_91, %c0_92, %c0_93] : memref<1x10x10x64xf32, #tpu.memory_space<vmem>>, vector<1x8x8x64xf32>
    %48 = vector.shape_cast %47 : vector<1x8x8x64xf32> to vector<64x64xf32>
    %49 = arith.truncf %48 : vector<64x64xf32> to vector<64x64xbf16>
    %c0_94 = arith.constant 0 : index
    %c0_95 = arith.constant 0 : index
    %50 = vector.load %arg26[%c0_94, %c0_95] : memref<64x1152xbf16, #tpu.memory_space<vmem>>, vector<64x64xbf16>
    tpu.vector_store %arg26[%c0_94, %c0_95], %49 {strides = array<i32>} : memref<64x1152xbf16, #tpu.memory_space<vmem>>, vector<64x64xbf16>,
    %c0_96 = arith.constant 0 : index
    %c0_97 = arith.constant 0 : index
    %c1_98 = arith.constant 1 : index
    %c0_99 = arith.constant 0 : index
    %51 = vector.load %arg24[%c0_96, %c0_97, %c1_98, %c0_99] : memref<1x10x10x64xf32, #tpu.memory_space<vmem>>, vector<1x8x8x64xf32>
    %52 = vector.shape_cast %51 : vector<1x8x8x64xf32> to vector<64x64xf32>
    %53 = arith.truncf %52 : vector<64x64xf32> to vector<64x64xbf16>
    %c0_100 = arith.constant 0 : index
    %c128 = arith.constant 128 : index
    %54 = vector.load %arg26[%c0_100, %c128] : memref<64x1152xbf16, #tpu.memory_space<vmem>>, vector<64x64xbf16>
    tpu.vector_store %arg26[%c0_100, %c128], %53 {strides = array<i32>} : memref<64x1152xbf16, #tpu.memory_space<vmem>>, vector<64x64xbf16>,
    %c0_101 = arith.constant 0 : index
    %c0_102 = arith.constant 0 : index
    %c2_103 = arith.constant 2 : index
    %c0_104 = arith.constant 0 : index
    %55 = vector.load %arg24[%c0_101, %c0_102, %c2_103, %c0_104] : memref<1x10x10x64xf32, #tpu.memory_space<vmem>>, vector<1x8x8x64xf32>
    %56 = vector.shape_cast %55 : vector<1x8x8x64xf32> to vector<64x64xf32>
    %57 = arith.truncf %56 : vector<64x64xf32> to vector<64x64xbf16>
    %c0_105 = arith.constant 0 : index
    %c256 = arith.constant 256 : index
    %58 = vector.load %arg26[%c0_105, %c256] : memref<64x1152xbf16, #tpu.memory_space<vmem>>, vector<64x64xbf16>
    tpu.vector_store %arg26[%c0_105, %c256], %57 {strides = array<i32>} : memref<64x1152xbf16, #tpu.memory_space<vmem>>, vector<64x64xbf16>,
    %c0_106 = arith.constant 0 : index
    %c1_107 = arith.constant 1 : index
    %c0_108 = arith.constant 0 : index
    %c0_109 = arith.constant 0 : index
    %59 = vector.load %arg24[%c0_106, %c1_107, %c0_108, %c0_109] : memref<1x10x10x64xf32, #tpu.memory_space<vmem>>, vector<1x8x8x64xf32>
    %60 = vector.shape_cast %59 : vector<1x8x8x64xf32> to vector<64x64xf32>
    %61 = arith.truncf %60 : vector<64x64xf32> to vector<64x64xbf16>
    %c0_110 = arith.constant 0 : index
    %c384 = arith.constant 384 : index
    %62 = vector.load %arg26[%c0_110, %c384] : memref<64x1152xbf16, #tpu.memory_space<vmem>>, vector<64x64xbf16>
    tpu.vector_store %arg26[%c0_110, %c384], %61 {strides = array<i32>} : memref<64x1152xbf16, #tpu.memory_space<vmem>>, vector<64x64xbf16>,
    %c0_111 = arith.constant 0 : index
    %c1_112 = arith.constant 1 : index
    %c1_113 = arith.constant 1 : index
    %c0_114 = arith.constant 0 : index
    %63 = vector.load %arg24[%c0_111, %c1_112, %c1_113, %c0_114] : memref<1x10x10x64xf32, #tpu.memory_space<vmem>>, vector<1x8x8x64xf32>
    %64 = vector.shape_cast %63 : vector<1x8x8x64xf32> to vector<64x64xf32>
    %65 = arith.truncf %64 : vector<64x64xf32> to vector<64x64xbf16>
    %c0_115 = arith.constant 0 : index
    %c512 = arith.constant 512 : index
    %66 = vector.load %arg26[%c0_115, %c512] : memref<64x1152xbf16, #tpu.memory_space<vmem>>, vector<64x64xbf16>
    tpu.vector_store %arg26[%c0_115, %c512], %65 {strides = array<i32>} : memref<64x1152xbf16, #tpu.memory_space<vmem>>, vector<64x64xbf16>,
    %c0_116 = arith.constant 0 : index
    %c1_117 = arith.constant 1 : index
    %c2_118 = arith.constant 2 : index
    %c0_119 = arith.constant 0 : index
    %67 = vector.load %arg24[%c0_116, %c1_117, %c2_118, %c0_119] : memref<1x10x10x64xf32, #tpu.memory_space<vmem>>, vector<1x8x8x64xf32>
    %68 = vector.shape_cast %67 : vector<1x8x8x64xf32> to vector<64x64xf32>
    %69 = arith.truncf %68 : vector<64x64xf32> to vector<64x64xbf16>
    %c0_120 = arith.constant 0 : index
    %c640 = arith.constant 640 : index
    %70 = vector.load %arg26[%c0_120, %c640] : memref<64x1152xbf16, #tpu.memory_space<vmem>>, vector<64x64xbf16>
    tpu.vector_store %arg26[%c0_120, %c640], %69 {strides = array<i32>} : memref<64x1152xbf16, #tpu.memory_space<vmem>>, vector<64x64xbf16>,
    %c0_121 = arith.constant 0 : index
    %c2_122 = arith.constant 2 : index
    %c0_123 = arith.constant 0 : index
    %c0_124 = arith.constant 0 : index
    %71 = vector.load %arg24[%c0_121, %c2_122, %c0_123, %c0_124] : memref<1x10x10x64xf32, #tpu.memory_space<vmem>>, vector<1x8x8x64xf32>
    %72 = vector.shape_cast %71 : vector<1x8x8x64xf32> to vector<64x64xf32>
    %73 = arith.truncf %72 : vector<64x64xf32> to vector<64x64xbf16>
    %c0_125 = arith.constant 0 : index
    %c768 = arith.constant 768 : index
    %74 = vector.load %arg26[%c0_125, %c768] : memref<64x1152xbf16, #tpu.memory_space<vmem>>, vector<64x64xbf16>
    tpu.vector_store %arg26[%c0_125, %c768], %73 {strides = array<i32>} : memref<64x1152xbf16, #tpu.memory_space<vmem>>, vector<64x64xbf16>,
    %c0_126 = arith.constant 0 : index
    %c2_127 = arith.constant 2 : index
    %c1_128 = arith.constant 1 : index
    %c0_129 = arith.constant 0 : index
    %75 = vector.load %arg24[%c0_126, %c2_127, %c1_128, %c0_129] : memref<1x10x10x64xf32, #tpu.memory_space<vmem>>, vector<1x8x8x64xf32>
    %76 = vector.shape_cast %75 : vector<1x8x8x64xf32> to vector<64x64xf32>
    %77 = arith.truncf %76 : vector<64x64xf32> to vector<64x64xbf16>
    %c0_130 = arith.constant 0 : index
    %c896 = arith.constant 896 : index
    %78 = vector.load %arg26[%c0_130, %c896] : memref<64x1152xbf16, #tpu.memory_space<vmem>>, vector<64x64xbf16>
    tpu.vector_store %arg26[%c0_130, %c896], %77 {strides = array<i32>} : memref<64x1152xbf16, #tpu.memory_space<vmem>>, vector<64x64xbf16>,
    %c0_131 = arith.constant 0 : index
    %c2_132 = arith.constant 2 : index
    %c2_133 = arith.constant 2 : index
    %c0_134 = arith.constant 0 : index
    %79 = vector.load %arg24[%c0_131, %c2_132, %c2_133, %c0_134] : memref<1x10x10x64xf32, #tpu.memory_space<vmem>>, vector<1x8x8x64xf32>
    %80 = vector.shape_cast %79 : vector<1x8x8x64xf32> to vector<64x64xf32>
    %81 = arith.truncf %80 : vector<64x64xf32> to vector<64x64xbf16>
    %c0_135 = arith.constant 0 : index
    %c1024 = arith.constant 1024 : index
    %82 = vector.load %arg26[%c0_135, %c1024] : memref<64x1152xbf16, #tpu.memory_space<vmem>>, vector<64x64xbf16>
    tpu.vector_store %arg26[%c0_135, %c1024], %81 {strides = array<i32>} : memref<64x1152xbf16, #tpu.memory_space<vmem>>, vector<64x64xbf16>,
    %c0_136 = arith.constant 0 : index
    %c0_137 = arith.constant 0 : index
    %83 = vector.load %arg26[%c0_136, %c0_137] : memref<64x1152xbf16, #tpu.memory_space<vmem>>, vector<64x1152xbf16>
    %c0_138 = arith.constant 0 : index
    %c0_139 = arith.constant 0 : index
    %84 = vector.load %arg4[%c0_138, %c0_139] : memref<1152x64xbf16, #tpu.memory_space<vmem>>, vector<1152x64xbf16>
    %cst_140 = arith.constant dense<0.000000e+00> : vector<64x64xf32>
    %85 = tpu.matmul %83, %84, %cst_140 {dimension_numbers = #tpu.dot_dimension_numbers<[1], [0], [0], [1], [0, 0, 1, 1], [], []>} : vector<64x1152xbf16>, vector<1152x64xbf16>, vector<64x64xf32> -> vector<64x64xf32>
    %c0_141 = arith.constant 0 : index
    %c0_142 = arith.constant 0 : index
    %86 = vector.load %arg5[%c0_141, %c0_142] : memref<1x64xf32, #tpu.memory_space<vmem>>, vector<1x64xf32>
    %87 = vector.broadcast %86 : vector<1x64xf32> to vector<64x64xf32>
    %88 = arith.addf %85, %87 : vector<64x64xf32>
    %cst_143 = arith.constant 0.000000e+00 : f32
    %89 = vector.broadcast %cst_143 : f32 to vector<64x64xf32>
    %90 = arith.maximumf %88, %89 : vector<64x64xf32>
    %91 = vector.shape_cast %90 : vector<64x64xf32> to vector<1x8x8x64xf32>
    %c0_144 = arith.constant 0 : index
    %c1_145 = arith.constant 1 : index
    %c1_146 = arith.constant 1 : index
    %c0_147 = arith.constant 0 : index
    %92 = vector.load %arg25[%c0_144, %c1_145, %c1_146, %c0_147] : memref<1x10x10x64xf32, #tpu.memory_space<vmem>>, vector<1x8x8x64xf32>
    tpu.vector_store %arg25[%c0_144, %c1_145, %c1_146, %c0_147], %91 {strides = array<i32>} : memref<1x10x10x64xf32, #tpu.memory_space<vmem>>, vector<1x8x8x64xf32>,
    %c0_148 = arith.constant 0 : index
    %c0_149 = arith.constant 0 : index
    %c0_150 = arith.constant 0 : index
    %c0_151 = arith.constant 0 : index
    %93 = vector.load %arg25[%c0_148, %c0_149, %c0_150, %c0_151] : memref<1x10x10x64xf32, #tpu.memory_space<vmem>>, vector<1x8x8x64xf32>
    %94 = vector.shape_cast %93 : vector<1x8x8x64xf32> to vector<64x64xf32>
    %95 = arith.truncf %94 : vector<64x64xf32> to vector<64x64xbf16>
    %c0_152 = arith.constant 0 : index
    %c0_153 = arith.constant 0 : index
    %96 = vector.load %arg26[%c0_152, %c0_153] : memref<64x1152xbf16, #tpu.memory_space<vmem>>, vector<64x64xbf16>
    tpu.vector_store %arg26[%c0_152, %c0_153], %95 {strides = array<i32>} : memref<64x1152xbf16, #tpu.memory_space<vmem>>, vector<64x64xbf16>,
    %c0_154 = arith.constant 0 : index
    %c0_155 = arith.constant 0 : index
    %c1_156 = arith.constant 1 : index
    %c0_157 = arith.constant 0 : index
    %97 = vector.load %arg25[%c0_154, %c0_155, %c1_156, %c0_157] : memref<1x10x10x64xf32, #tpu.memory_space<vmem>>, vector<1x8x8x64xf32>
    %98 = vector.shape_cast %97 : vector<1x8x8x64xf32> to vector<64x64xf32>
    %99 = arith.truncf %98 : vector<64x64xf32> to vector<64x64xbf16>
    %c0_158 = arith.constant 0 : index
    %c128_159 = arith.constant 128 : index
    %100 = vector.load %arg26[%c0_158, %c128_159] : memref<64x1152xbf16, #tpu.memory_space<vmem>>, vector<64x64xbf16>
    tpu.vector_store %arg26[%c0_158, %c128_159], %99 {strides = array<i32>} : memref<64x1152xbf16, #tpu.memory_space<vmem>>, vector<64x64xbf16>,
    %c0_160 = arith.constant 0 : index
    %c0_161 = arith.constant 0 : index
    %c2_162 = arith.constant 2 : index
    %c0_163 = arith.constant 0 : index
    %101 = vector.load %arg25[%c0_160, %c0_161, %c2_162, %c0_163] : memref<1x10x10x64xf32, #tpu.memory_space<vmem>>, vector<1x8x8x64xf32>
    %102 = vector.shape_cast %101 : vector<1x8x8x64xf32> to vector<64x64xf32>
    %103 = arith.truncf %102 : vector<64x64xf32> to vector<64x64xbf16>
    %c0_164 = arith.constant 0 : index
    %c256_165 = arith.constant 256 : index
    %104 = vector.load %arg26[%c0_164, %c256_165] : memref<64x1152xbf16, #tpu.memory_space<vmem>>, vector<64x64xbf16>
    tpu.vector_store %arg26[%c0_164, %c256_165], %103 {strides = array<i32>} : memref<64x1152xbf16, #tpu.memory_space<vmem>>, vector<64x64xbf16>,
    %c0_166 = arith.constant 0 : index
    %c1_167 = arith.constant 1 : index
    %c0_168 = arith.constant 0 : index
    %c0_169 = arith.constant 0 : index
    %105 = vector.load %arg25[%c0_166, %c1_167, %c0_168, %c0_169] : memref<1x10x10x64xf32, #tpu.memory_space<vmem>>, vector<1x8x8x64xf32>
    %106 = vector.shape_cast %105 : vector<1x8x8x64xf32> to vector<64x64xf32>
    %107 = arith.truncf %106 : vector<64x64xf32> to vector<64x64xbf16>
    %c0_170 = arith.constant 0 : index
    %c384_171 = arith.constant 384 : index
    %108 = vector.load %arg26[%c0_170, %c384_171] : memref<64x1152xbf16, #tpu.memory_space<vmem>>, vector<64x64xbf16>
    tpu.vector_store %arg26[%c0_170, %c384_171], %107 {strides = array<i32>} : memref<64x1152xbf16, #tpu.memory_space<vmem>>, vector<64x64xbf16>,
    %c0_172 = arith.constant 0 : index
    %c1_173 = arith.constant 1 : index
    %c1_174 = arith.constant 1 : index
    %c0_175 = arith.constant 0 : index
    %109 = vector.load %arg25[%c0_172, %c1_173, %c1_174, %c0_175] : memref<1x10x10x64xf32, #tpu.memory_space<vmem>>, vector<1x8x8x64xf32>
    %110 = vector.shape_cast %109 : vector<1x8x8x64xf32> to vector<64x64xf32>
    %111 = arith.truncf %110 : vector<64x64xf32> to vector<64x64xbf16>
    %c0_176 = arith.constant 0 : index
    %c512_177 = arith.constant 512 : index
    %112 = vector.load %arg26[%c0_176, %c512_177] : memref<64x1152xbf16, #tpu.memory_space<vmem>>, vector<64x64xbf16>
    tpu.vector_store %arg26[%c0_176, %c512_177], %111 {strides = array<i32>} : memref<64x1152xbf16, #tpu.memory_space<vmem>>, vector<64x64xbf16>,
    %c0_178 = arith.constant 0 : index
    %c1_179 = arith.constant 1 : index
    %c2_180 = arith.constant 2 : index
    %c0_181 = arith.constant 0 : index
    %113 = vector.load %arg25[%c0_178, %c1_179, %c2_180, %c0_181] : memref<1x10x10x64xf32, #tpu.memory_space<vmem>>, vector<1x8x8x64xf32>
    %114 = vector.shape_cast %113 : vector<1x8x8x64xf32> to vector<64x64xf32>
    %115 = arith.truncf %114 : vector<64x64xf32> to vector<64x64xbf16>
    %c0_182 = arith.constant 0 : index
    %c640_183 = arith.constant 640 : index
    %116 = vector.load %arg26[%c0_182, %c640_183] : memref<64x1152xbf16, #tpu.memory_space<vmem>>, vector<64x64xbf16>
    tpu.vector_store %arg26[%c0_182, %c640_183], %115 {strides = array<i32>} : memref<64x1152xbf16, #tpu.memory_space<vmem>>, vector<64x64xbf16>,
    %c0_184 = arith.constant 0 : index
    %c2_185 = arith.constant 2 : index
    %c0_186 = arith.constant 0 : index
    %c0_187 = arith.constant 0 : index
    %117 = vector.load %arg25[%c0_184, %c2_185, %c0_186, %c0_187] : memref<1x10x10x64xf32, #tpu.memory_space<vmem>>, vector<1x8x8x64xf32>
    %118 = vector.shape_cast %117 : vector<1x8x8x64xf32> to vector<64x64xf32>
    %119 = arith.truncf %118 : vector<64x64xf32> to vector<64x64xbf16>
    %c0_188 = arith.constant 0 : index
    %c768_189 = arith.constant 768 : index
    %120 = vector.load %arg26[%c0_188, %c768_189] : memref<64x1152xbf16, #tpu.memory_space<vmem>>, vector<64x64xbf16>
    tpu.vector_store %arg26[%c0_188, %c768_189], %119 {strides = array<i32>} : memref<64x1152xbf16, #tpu.memory_space<vmem>>, vector<64x64xbf16>,
    %c0_190 = arith.constant 0 : index
    %c2_191 = arith.constant 2 : index
    %c1_192 = arith.constant 1 : index
    %c0_193 = arith.constant 0 : index
    %121 = vector.load %arg25[%c0_190, %c2_191, %c1_192, %c0_193] : memref<1x10x10x64xf32, #tpu.memory_space<vmem>>, vector<1x8x8x64xf32>
    %122 = vector.shape_cast %121 : vector<1x8x8x64xf32> to vector<64x64xf32>
    %123 = arith.truncf %122 : vector<64x64xf32> to vector<64x64xbf16>
    %c0_194 = arith.constant 0 : index
    %c896_195 = arith.constant 896 : index
    %124 = vector.load %arg26[%c0_194, %c896_195] : memref<64x1152xbf16, #tpu.memory_space<vmem>>, vector<64x64xbf16>
    tpu.vector_store %arg26[%c0_194, %c896_195], %123 {strides = array<i32>} : memref<64x1152xbf16, #tpu.memory_space<vmem>>, vector<64x64xbf16>,
    %c0_196 = arith.constant 0 : index
    %c2_197 = arith.constant 2 : index
    %c2_198 = arith.constant 2 : index
    %c0_199 = arith.constant 0 : index
    %125 = vector.load %arg25[%c0_196, %c2_197, %c2_198, %c0_199] : memref<1x10x10x64xf32, #tpu.memory_space<vmem>>, vector<1x8x8x64xf32>
    %126 = vector.shape_cast %125 : vector<1x8x8x64xf32> to vector<64x64xf32>
    %127 = arith.truncf %126 : vector<64x64xf32> to vector<64x64xbf16>
    %c0_200 = arith.constant 0 : index
    %c1024_201 = arith.constant 1024 : index
    %128 = vector.load %arg26[%c0_200, %c1024_201] : memref<64x1152xbf16, #tpu.memory_space<vmem>>, vector<64x64xbf16>
    tpu.vector_store %arg26[%c0_200, %c1024_201], %127 {strides = array<i32>} : memref<64x1152xbf16, #tpu.memory_space<vmem>>, vector<64x64xbf16>,
    %c0_202 = arith.constant 0 : index
    %c0_203 = arith.constant 0 : index
    %129 = vector.load %arg26[%c0_202, %c0_203] : memref<64x1152xbf16, #tpu.memory_space<vmem>>, vector<64x1152xbf16>
    %c0_204 = arith.constant 0 : index
    %c0_205 = arith.constant 0 : index
    %130 = vector.load %arg6[%c0_204, %c0_205] : memref<1152x64xbf16, #tpu.memory_space<vmem>>, vector<1152x64xbf16>
    %cst_206 = arith.constant dense<0.000000e+00> : vector<64x64xf32>
    %131 = tpu.matmul %129, %130, %cst_206 {dimension_numbers = #tpu.dot_dimension_numbers<[1], [0], [0], [1], [0, 0, 1, 1], [], []>} : vector<64x1152xbf16>, vector<1152x64xbf16>, vector<64x64xf32> -> vector<64x64xf32>
    %c0_207 = arith.constant 0 : index
    %c0_208 = arith.constant 0 : index
    %132 = vector.load %arg7[%c0_207, %c0_208] : memref<1x64xf32, #tpu.memory_space<vmem>>, vector<1x64xf32>
    %133 = vector.broadcast %132 : vector<1x64xf32> to vector<64x64xf32>
    %134 = arith.addf %131, %133 : vector<64x64xf32>
    %135 = vector.shape_cast %45 : vector<1x8x8x64xf32> to vector<64x64xf32>
    %136 = arith.addf %134, %135 : vector<64x64xf32>
    %cst_209 = arith.constant 0.000000e+00 : f32
    %137 = vector.broadcast %cst_209 : f32 to vector<64x64xf32>
    %138 = arith.maximumf %136, %137 : vector<64x64xf32>
    %139 = vector.shape_cast %138 : vector<64x64xf32> to vector<1x8x8x64xf32>
    %c0_210 = arith.constant 0 : index
    %c1_211 = arith.constant 1 : index
    %c1_212 = arith.constant 1 : index
    %c0_213 = arith.constant 0 : index
    %140 = vector.load %arg27[%c0_210, %c1_211, %c1_212, %c0_213] : memref<1x10x10x64xf32, #tpu.memory_space<vmem>>, vector<1x8x8x64xf32>
    tpu.vector_store %arg27[%c0_210, %c1_211, %c1_212, %c0_213], %139 {strides = array<i32>} : memref<1x10x10x64xf32, #tpu.memory_space<vmem>>, vector<1x8x8x64xf32>,
    %c0_214 = arith.constant 0 : index
    %c0_215 = arith.constant 0 : index
    %c0_216 = arith.constant 0 : index
    %c0_217 = arith.constant 0 : index
    %141 = tpu.strided_load %arg27[%c0_214, %c0_215, %c0_216, %c0_217] {strides = array<i32: 1, 2, 2, 1>} : memref<1x10x10x64xf32, #tpu.memory_space<vmem>>, vector<1x4x4x64xf32>
    %142 = vector.shape_cast %141 : vector<1x4x4x64xf32> to vector<16x64xf32>
    %143 = arith.truncf %142 : vector<16x64xf32> to vector<16x64xbf16>
    %c0_218 = arith.constant 0 : index
    %c0_219 = arith.constant 0 : index
    %144 = vector.load %arg29[%c0_218, %c0_219] : memref<16x1152xbf16, #tpu.memory_space<vmem>>, vector<16x64xbf16>
    tpu.vector_store %arg29[%c0_218, %c0_219], %143 {strides = array<i32>} : memref<16x1152xbf16, #tpu.memory_space<vmem>>, vector<16x64xbf16>,
    %c0_220 = arith.constant 0 : index
    %c0_221 = arith.constant 0 : index
    %c1_222 = arith.constant 1 : index
    %c0_223 = arith.constant 0 : index
    %145 = tpu.strided_load %arg27[%c0_220, %c0_221, %c1_222, %c0_223] {strides = array<i32: 1, 2, 2, 1>} : memref<1x10x10x64xf32, #tpu.memory_space<vmem>>, vector<1x4x4x64xf32>
    %146 = vector.shape_cast %145 : vector<1x4x4x64xf32> to vector<16x64xf32>
    %147 = arith.truncf %146 : vector<16x64xf32> to vector<16x64xbf16>
    %c0_224 = arith.constant 0 : index
    %c128_225 = arith.constant 128 : index
    %148 = vector.load %arg29[%c0_224, %c128_225] : memref<16x1152xbf16, #tpu.memory_space<vmem>>, vector<16x64xbf16>
    tpu.vector_store %arg29[%c0_224, %c128_225], %147 {strides = array<i32>} : memref<16x1152xbf16, #tpu.memory_space<vmem>>, vector<16x64xbf16>,
    %c0_226 = arith.constant 0 : index
    %c0_227 = arith.constant 0 : index
    %c2_228 = arith.constant 2 : index
    %c0_229 = arith.constant 0 : index
    %149 = tpu.strided_load %arg27[%c0_226, %c0_227, %c2_228, %c0_229] {strides = array<i32: 1, 2, 2, 1>} : memref<1x10x10x64xf32, #tpu.memory_space<vmem>>, vector<1x4x4x64xf32>
    %150 = vector.shape_cast %149 : vector<1x4x4x64xf32> to vector<16x64xf32>
    %151 = arith.truncf %150 : vector<16x64xf32> to vector<16x64xbf16>
    %c0_230 = arith.constant 0 : index
    %c256_231 = arith.constant 256 : index
    %152 = vector.load %arg29[%c0_230, %c256_231] : memref<16x1152xbf16, #tpu.memory_space<vmem>>, vector<16x64xbf16>
    tpu.vector_store %arg29[%c0_230, %c256_231], %151 {strides = array<i32>} : memref<16x1152xbf16, #tpu.memory_space<vmem>>, vector<16x64xbf16>,
    %c0_232 = arith.constant 0 : index
    %c1_233 = arith.constant 1 : index
    %c0_234 = arith.constant 0 : index
    %c0_235 = arith.constant 0 : index
    %153 = tpu.strided_load %arg27[%c0_232, %c1_233, %c0_234, %c0_235] {strides = array<i32: 1, 2, 2, 1>} : memref<1x10x10x64xf32, #tpu.memory_space<vmem>>, vector<1x4x4x64xf32>
    %154 = vector.shape_cast %153 : vector<1x4x4x64xf32> to vector<16x64xf32>
    %155 = arith.truncf %154 : vector<16x64xf32> to vector<16x64xbf16>
    %c0_236 = arith.constant 0 : index
    %c384_237 = arith.constant 384 : index
    %156 = vector.load %arg29[%c0_236, %c384_237] : memref<16x1152xbf16, #tpu.memory_space<vmem>>, vector<16x64xbf16>
    tpu.vector_store %arg29[%c0_236, %c384_237], %155 {strides = array<i32>} : memref<16x1152xbf16, #tpu.memory_space<vmem>>, vector<16x64xbf16>,
    %c0_238 = arith.constant 0 : index
    %c1_239 = arith.constant 1 : index
    %c1_240 = arith.constant 1 : index
    %c0_241 = arith.constant 0 : index
    %157 = tpu.strided_load %arg27[%c0_238, %c1_239, %c1_240, %c0_241] {strides = array<i32: 1, 2, 2, 1>} : memref<1x10x10x64xf32, #tpu.memory_space<vmem>>, vector<1x4x4x64xf32>
    %158 = vector.shape_cast %157 : vector<1x4x4x64xf32> to vector<16x64xf32>
    %159 = arith.truncf %158 : vector<16x64xf32> to vector<16x64xbf16>
    %c0_242 = arith.constant 0 : index
    %c512_243 = arith.constant 512 : index
    %160 = vector.load %arg29[%c0_242, %c512_243] : memref<16x1152xbf16, #tpu.memory_space<vmem>>, vector<16x64xbf16>
    tpu.vector_store %arg29[%c0_242, %c512_243], %159 {strides = array<i32>} : memref<16x1152xbf16, #tpu.memory_space<vmem>>, vector<16x64xbf16>,
    %c0_244 = arith.constant 0 : index
    %c1_245 = arith.constant 1 : index
    %c2_246 = arith.constant 2 : index
    %c0_247 = arith.constant 0 : index
    %161 = tpu.strided_load %arg27[%c0_244, %c1_245, %c2_246, %c0_247] {strides = array<i32: 1, 2, 2, 1>} : memref<1x10x10x64xf32, #tpu.memory_space<vmem>>, vector<1x4x4x64xf32>
    %162 = vector.shape_cast %161 : vector<1x4x4x64xf32> to vector<16x64xf32>
    %163 = arith.truncf %162 : vector<16x64xf32> to vector<16x64xbf16>
    %c0_248 = arith.constant 0 : index
    %c640_249 = arith.constant 640 : index
    %164 = vector.load %arg29[%c0_248, %c640_249] : memref<16x1152xbf16, #tpu.memory_space<vmem>>, vector<16x64xbf16>
    tpu.vector_store %arg29[%c0_248, %c640_249], %163 {strides = array<i32>} : memref<16x1152xbf16, #tpu.memory_space<vmem>>, vector<16x64xbf16>,
    %c0_250 = arith.constant 0 : index
    %c2_251 = arith.constant 2 : index
    %c0_252 = arith.constant 0 : index
    %c0_253 = arith.constant 0 : index
    %165 = tpu.strided_load %arg27[%c0_250, %c2_251, %c0_252, %c0_253] {strides = array<i32: 1, 2, 2, 1>} : memref<1x10x10x64xf32, #tpu.memory_space<vmem>>, vector<1x4x4x64xf32>
    %166 = vector.shape_cast %165 : vector<1x4x4x64xf32> to vector<16x64xf32>
    %167 = arith.truncf %166 : vector<16x64xf32> to vector<16x64xbf16>
    %c0_254 = arith.constant 0 : index
    %c768_255 = arith.constant 768 : index
    %168 = vector.load %arg29[%c0_254, %c768_255] : memref<16x1152xbf16, #tpu.memory_space<vmem>>, vector<16x64xbf16>
    tpu.vector_store %arg29[%c0_254, %c768_255], %167 {strides = array<i32>} : memref<16x1152xbf16, #tpu.memory_space<vmem>>, vector<16x64xbf16>,
    %c0_256 = arith.constant 0 : index
    %c2_257 = arith.constant 2 : index
    %c1_258 = arith.constant 1 : index
    %c0_259 = arith.constant 0 : index
    %169 = tpu.strided_load %arg27[%c0_256, %c2_257, %c1_258, %c0_259] {strides = array<i32: 1, 2, 2, 1>} : memref<1x10x10x64xf32, #tpu.memory_space<vmem>>, vector<1x4x4x64xf32>
    %170 = vector.shape_cast %169 : vector<1x4x4x64xf32> to vector<16x64xf32>
    %171 = arith.truncf %170 : vector<16x64xf32> to vector<16x64xbf16>
    %c0_260 = arith.constant 0 : index
    %c896_261 = arith.constant 896 : index
    %172 = vector.load %arg29[%c0_260, %c896_261] : memref<16x1152xbf16, #tpu.memory_space<vmem>>, vector<16x64xbf16>
    tpu.vector_store %arg29[%c0_260, %c896_261], %171 {strides = array<i32>} : memref<16x1152xbf16, #tpu.memory_space<vmem>>, vector<16x64xbf16>,
    %c0_262 = arith.constant 0 : index
    %c2_263 = arith.constant 2 : index
    %c2_264 = arith.constant 2 : index
    %c0_265 = arith.constant 0 : index
    %173 = tpu.strided_load %arg27[%c0_262, %c2_263, %c2_264, %c0_265] {strides = array<i32: 1, 2, 2, 1>} : memref<1x10x10x64xf32, #tpu.memory_space<vmem>>, vector<1x4x4x64xf32>
    %174 = vector.shape_cast %173 : vector<1x4x4x64xf32> to vector<16x64xf32>
    %175 = arith.truncf %174 : vector<16x64xf32> to vector<16x64xbf16>
    %c0_266 = arith.constant 0 : index
    %c1024_267 = arith.constant 1024 : index
    %176 = vector.load %arg29[%c0_266, %c1024_267] : memref<16x1152xbf16, #tpu.memory_space<vmem>>, vector<16x64xbf16>
    tpu.vector_store %arg29[%c0_266, %c1024_267], %175 {strides = array<i32>} : memref<16x1152xbf16, #tpu.memory_space<vmem>>, vector<16x64xbf16>,
    %c0_268 = arith.constant 0 : index
    %c0_269 = arith.constant 0 : index
    %177 = vector.load %arg29[%c0_268, %c0_269] : memref<16x1152xbf16, #tpu.memory_space<vmem>>, vector<16x1152xbf16>
    %c0_270 = arith.constant 0 : index
    %c0_271 = arith.constant 0 : index
    %178 = vector.load %arg8[%c0_270, %c0_271] : memref<1152x128xbf16, #tpu.memory_space<vmem>>, vector<1152x128xbf16>
    %cst_272 = arith.constant dense<0.000000e+00> : vector<16x128xf32>
    %179 = tpu.matmul %177, %178, %cst_272 {dimension_numbers = #tpu.dot_dimension_numbers<[1], [0], [0], [1], [0, 0, 1, 1], [], []>} : vector<16x1152xbf16>, vector<1152x128xbf16>, vector<16x128xf32> -> vector<16x128xf32>
    %c0_273 = arith.constant 0 : index
    %c0_274 = arith.constant 0 : index
    %180 = vector.load %arg9[%c0_273, %c0_274] : memref<1x128xf32, #tpu.memory_space<vmem>>, vector<1x128xf32>
    %181 = vector.broadcast %180 : vector<1x128xf32> to vector<16x128xf32>
    %182 = arith.addf %179, %181 : vector<16x128xf32>
    %cst_275 = arith.constant 0.000000e+00 : f32
    %183 = vector.broadcast %cst_275 : f32 to vector<16x128xf32>
    %184 = arith.maximumf %182, %183 : vector<16x128xf32>
    %185 = vector.shape_cast %184 : vector<16x128xf32> to vector<1x4x4x128xf32>
    %c0_276 = arith.constant 0 : index
    %c1_277 = arith.constant 1 : index
    %c1_278 = arith.constant 1 : index
    %c0_279 = arith.constant 0 : index
    %186 = vector.load %arg28[%c0_276, %c1_277, %c1_278, %c0_279] : memref<1x6x6x128xf32, #tpu.memory_space<vmem>>, vector<1x4x4x128xf32>
    tpu.vector_store %arg28[%c0_276, %c1_277, %c1_278, %c0_279], %185 {strides = array<i32>} : memref<1x6x6x128xf32, #tpu.memory_space<vmem>>, vector<1x4x4x128xf32>,
    %c0_280 = arith.constant 0 : index
    %c0_281 = arith.constant 0 : index
    %c0_282 = arith.constant 0 : index
    %c0_283 = arith.constant 0 : index
    %187 = vector.load %arg28[%c0_280, %c0_281, %c0_282, %c0_283] : memref<1x6x6x128xf32, #tpu.memory_space<vmem>>, vector<1x4x4x128xf32>
    %188 = vector.shape_cast %187 : vector<1x4x4x128xf32> to vector<16x128xf32>
    %189 = arith.truncf %188 : vector<16x128xf32> to vector<16x128xbf16>
    %c0_284 = arith.constant 0 : index
    %c0_285 = arith.constant 0 : index
    %190 = vector.load %arg29[%c0_284, %c0_285] : memref<16x1152xbf16, #tpu.memory_space<vmem>>, vector<16x128xbf16>
    tpu.vector_store %arg29[%c0_284, %c0_285], %189 {strides = array<i32>} : memref<16x1152xbf16, #tpu.memory_space<vmem>>, vector<16x128xbf16>,
    %c0_286 = arith.constant 0 : index
    %c0_287 = arith.constant 0 : index
    %c1_288 = arith.constant 1 : index
    %c0_289 = arith.constant 0 : index
    %191 = vector.load %arg28[%c0_286, %c0_287, %c1_288, %c0_289] : memref<1x6x6x128xf32, #tpu.memory_space<vmem>>, vector<1x4x4x128xf32>
    %192 = vector.shape_cast %191 : vector<1x4x4x128xf32> to vector<16x128xf32>
    %193 = arith.truncf %192 : vector<16x128xf32> to vector<16x128xbf16>
    %c0_290 = arith.constant 0 : index
    %c128_291 = arith.constant 128 : index
    %194 = vector.load %arg29[%c0_290, %c128_291] : memref<16x1152xbf16, #tpu.memory_space<vmem>>, vector<16x128xbf16>
    tpu.vector_store %arg29[%c0_290, %c128_291], %193 {strides = array<i32>} : memref<16x1152xbf16, #tpu.memory_space<vmem>>, vector<16x128xbf16>,
    %c0_292 = arith.constant 0 : index
    %c0_293 = arith.constant 0 : index
    %c2_294 = arith.constant 2 : index
    %c0_295 = arith.constant 0 : index
    %195 = vector.load %arg28[%c0_292, %c0_293, %c2_294, %c0_295] : memref<1x6x6x128xf32, #tpu.memory_space<vmem>>, vector<1x4x4x128xf32>
    %196 = vector.shape_cast %195 : vector<1x4x4x128xf32> to vector<16x128xf32>
    %197 = arith.truncf %196 : vector<16x128xf32> to vector<16x128xbf16>
    %c0_296 = arith.constant 0 : index
    %c256_297 = arith.constant 256 : index
    %198 = vector.load %arg29[%c0_296, %c256_297] : memref<16x1152xbf16, #tpu.memory_space<vmem>>, vector<16x128xbf16>
    tpu.vector_store %arg29[%c0_296, %c256_297], %197 {strides = array<i32>} : memref<16x1152xbf16, #tpu.memory_space<vmem>>, vector<16x128xbf16>,
    %c0_298 = arith.constant 0 : index
    %c1_299 = arith.constant 1 : index
    %c0_300 = arith.constant 0 : index
    %c0_301 = arith.constant 0 : index
    %199 = vector.load %arg28[%c0_298, %c1_299, %c0_300, %c0_301] : memref<1x6x6x128xf32, #tpu.memory_space<vmem>>, vector<1x4x4x128xf32>
    %200 = vector.shape_cast %199 : vector<1x4x4x128xf32> to vector<16x128xf32>
    %201 = arith.truncf %200 : vector<16x128xf32> to vector<16x128xbf16>
    %c0_302 = arith.constant 0 : index
    %c384_303 = arith.constant 384 : index
    %202 = vector.load %arg29[%c0_302, %c384_303] : memref<16x1152xbf16, #tpu.memory_space<vmem>>, vector<16x128xbf16>
    tpu.vector_store %arg29[%c0_302, %c384_303], %201 {strides = array<i32>} : memref<16x1152xbf16, #tpu.memory_space<vmem>>, vector<16x128xbf16>,
    %c0_304 = arith.constant 0 : index
    %c1_305 = arith.constant 1 : index
    %c1_306 = arith.constant 1 : index
    %c0_307 = arith.constant 0 : index
    %203 = vector.load %arg28[%c0_304, %c1_305, %c1_306, %c0_307] : memref<1x6x6x128xf32, #tpu.memory_space<vmem>>, vector<1x4x4x128xf32>
    %204 = vector.shape_cast %203 : vector<1x4x4x128xf32> to vector<16x128xf32>
    %205 = arith.truncf %204 : vector<16x128xf32> to vector<16x128xbf16>
    %c0_308 = arith.constant 0 : index
    %c512_309 = arith.constant 512 : index
    %206 = vector.load %arg29[%c0_308, %c512_309] : memref<16x1152xbf16, #tpu.memory_space<vmem>>, vector<16x128xbf16>
    tpu.vector_store %arg29[%c0_308, %c512_309], %205 {strides = array<i32>} : memref<16x1152xbf16, #tpu.memory_space<vmem>>, vector<16x128xbf16>,
    %c0_310 = arith.constant 0 : index
    %c1_311 = arith.constant 1 : index
    %c2_312 = arith.constant 2 : index
    %c0_313 = arith.constant 0 : index
    %207 = vector.load %arg28[%c0_310, %c1_311, %c2_312, %c0_313] : memref<1x6x6x128xf32, #tpu.memory_space<vmem>>, vector<1x4x4x128xf32>
    %208 = vector.shape_cast %207 : vector<1x4x4x128xf32> to vector<16x128xf32>
    %209 = arith.truncf %208 : vector<16x128xf32> to vector<16x128xbf16>
    %c0_314 = arith.constant 0 : index
    %c640_315 = arith.constant 640 : index
    %210 = vector.load %arg29[%c0_314, %c640_315] : memref<16x1152xbf16, #tpu.memory_space<vmem>>, vector<16x128xbf16>
    tpu.vector_store %arg29[%c0_314, %c640_315], %209 {strides = array<i32>} : memref<16x1152xbf16, #tpu.memory_space<vmem>>, vector<16x128xbf16>,
    %c0_316 = arith.constant 0 : index
    %c2_317 = arith.constant 2 : index
    %c0_318 = arith.constant 0 : index
    %c0_319 = arith.constant 0 : index
    %211 = vector.load %arg28[%c0_316, %c2_317, %c0_318, %c0_319] : memref<1x6x6x128xf32, #tpu.memory_space<vmem>>, vector<1x4x4x128xf32>
    %212 = vector.shape_cast %211 : vector<1x4x4x128xf32> to vector<16x128xf32>
    %213 = arith.truncf %212 : vector<16x128xf32> to vector<16x128xbf16>
    %c0_320 = arith.constant 0 : index
    %c768_321 = arith.constant 768 : index
    %214 = vector.load %arg29[%c0_320, %c768_321] : memref<16x1152xbf16, #tpu.memory_space<vmem>>, vector<16x128xbf16>
    tpu.vector_store %arg29[%c0_320, %c768_321], %213 {strides = array<i32>} : memref<16x1152xbf16, #tpu.memory_space<vmem>>, vector<16x128xbf16>,
    %c0_322 = arith.constant 0 : index
    %c2_323 = arith.constant 2 : index
    %c1_324 = arith.constant 1 : index
    %c0_325 = arith.constant 0 : index
    %215 = vector.load %arg28[%c0_322, %c2_323, %c1_324, %c0_325] : memref<1x6x6x128xf32, #tpu.memory_space<vmem>>, vector<1x4x4x128xf32>
    %216 = vector.shape_cast %215 : vector<1x4x4x128xf32> to vector<16x128xf32>
    %217 = arith.truncf %216 : vector<16x128xf32> to vector<16x128xbf16>
    %c0_326 = arith.constant 0 : index
    %c896_327 = arith.constant 896 : index
    %218 = vector.load %arg29[%c0_326, %c896_327] : memref<16x1152xbf16, #tpu.memory_space<vmem>>, vector<16x128xbf16>
    tpu.vector_store %arg29[%c0_326, %c896_327], %217 {strides = array<i32>} : memref<16x1152xbf16, #tpu.memory_space<vmem>>, vector<16x128xbf16>,
    %c0_328 = arith.constant 0 : index
    %c2_329 = arith.constant 2 : index
    %c2_330 = arith.constant 2 : index
    %c0_331 = arith.constant 0 : index
    %219 = vector.load %arg28[%c0_328, %c2_329, %c2_330, %c0_331] : memref<1x6x6x128xf32, #tpu.memory_space<vmem>>, vector<1x4x4x128xf32>
    %220 = vector.shape_cast %219 : vector<1x4x4x128xf32> to vector<16x128xf32>
    %221 = arith.truncf %220 : vector<16x128xf32> to vector<16x128xbf16>
    %c0_332 = arith.constant 0 : index
    %c1024_333 = arith.constant 1024 : index
    %222 = vector.load %arg29[%c0_332, %c1024_333] : memref<16x1152xbf16, #tpu.memory_space<vmem>>, vector<16x128xbf16>
    tpu.vector_store %arg29[%c0_332, %c1024_333], %221 {strides = array<i32>} : memref<16x1152xbf16, #tpu.memory_space<vmem>>, vector<16x128xbf16>,
    %c0_334 = arith.constant 0 : index
    %c0_335 = arith.constant 0 : index
    %223 = vector.load %arg29[%c0_334, %c0_335] : memref<16x1152xbf16, #tpu.memory_space<vmem>>, vector<16x1152xbf16>
    %c0_336 = arith.constant 0 : index
    %c0_337 = arith.constant 0 : index
    %224 = vector.load %arg10[%c0_336, %c0_337] : memref<1152x128xbf16, #tpu.memory_space<vmem>>, vector<1152x128xbf16>
    %cst_338 = arith.constant dense<0.000000e+00> : vector<16x128xf32>
    %225 = tpu.matmul %223, %224, %cst_338 {dimension_numbers = #tpu.dot_dimension_numbers<[1], [0], [0], [1], [0, 0, 1, 1], [], []>} : vector<16x1152xbf16>, vector<1152x128xbf16>, vector<16x128xf32> -> vector<16x128xf32>
    %c0_339 = arith.constant 0 : index
    %c0_340 = arith.constant 0 : index
    %226 = vector.load %arg11[%c0_339, %c0_340] : memref<1x128xf32, #tpu.memory_space<vmem>>, vector<1x128xf32>
    %227 = vector.broadcast %226 : vector<1x128xf32> to vector<16x128xf32>
    %228 = arith.addf %225, %227 : vector<16x128xf32>
    %c0_341 = arith.constant 0 : index
    %c1_342 = arith.constant 1 : index
    %c1_343 = arith.constant 1 : index
    %c0_344 = arith.constant 0 : index
    %229 = tpu.strided_load %arg27[%c0_341, %c1_342, %c1_343, %c0_344] {strides = array<i32: 1, 2, 2, 1>} : memref<1x10x10x64xf32, #tpu.memory_space<vmem>>, vector<1x4x4x64xf32>
    %230 = vector.shape_cast %229 : vector<1x4x4x64xf32> to vector<16x64xf32>
    %231 = arith.truncf %230 : vector<16x64xf32> to vector<16x64xbf16>
    %c0_345 = arith.constant 0 : index
    %c0_346 = arith.constant 0 : index
    %232 = vector.load %arg12[%c0_345, %c0_346] : memref<64x128xbf16, #tpu.memory_space<vmem>>, vector<64x128xbf16>
    %cst_347 = arith.constant dense<0.000000e+00> : vector<16x128xf32>
    %233 = tpu.matmul %231, %232, %cst_347 {dimension_numbers = #tpu.dot_dimension_numbers<[1], [0], [0], [1], [0, 0, 1, 1], [], []>} : vector<16x64xbf16>, vector<64x128xbf16>, vector<16x128xf32> -> vector<16x128xf32>
    %c0_348 = arith.constant 0 : index
    %c0_349 = arith.constant 0 : index
    %234 = vector.load %arg13[%c0_348, %c0_349] : memref<1x128xf32, #tpu.memory_space<vmem>>, vector<1x128xf32>
    %235 = vector.broadcast %234 : vector<1x128xf32> to vector<16x128xf32>
    %236 = arith.addf %233, %235 : vector<16x128xf32>
    %237 = arith.addf %228, %236 : vector<16x128xf32>
    %cst_350 = arith.constant 0.000000e+00 : f32
    %238 = vector.broadcast %cst_350 : f32 to vector<16x128xf32>
    %239 = arith.maximumf %237, %238 : vector<16x128xf32>
    %240 = vector.shape_cast %239 : vector<16x128xf32> to vector<1x4x4x128xf32>
    %c0_351 = arith.constant 0 : index
    %c1_352 = arith.constant 1 : index
    %c1_353 = arith.constant 1 : index
    %c0_354 = arith.constant 0 : index
    %241 = vector.load %arg30[%c0_351, %c1_352, %c1_353, %c0_354] : memref<1x6x6x128xf32, #tpu.memory_space<vmem>>, vector<1x4x4x128xf32>
    tpu.vector_store %arg30[%c0_351, %c1_352, %c1_353, %c0_354], %240 {strides = array<i32>} : memref<1x6x6x128xf32, #tpu.memory_space<vmem>>, vector<1x4x4x128xf32>,
    %c0_355 = arith.constant 0 : index
    %c0_356 = arith.constant 0 : index
    %c0_357 = arith.constant 0 : index
    %c0_358 = arith.constant 0 : index
    %242 = tpu.strided_load %arg30[%c0_355, %c0_356, %c0_357, %c0_358] {strides = array<i32: 1, 2, 2, 1>} : memref<1x6x6x128xf32, #tpu.memory_space<vmem>>, vector<1x2x2x128xf32>
    %243 = vector.shape_cast %242 : vector<1x2x2x128xf32> to vector<4x128xf32>
    %244 = arith.truncf %243 : vector<4x128xf32> to vector<4x128xbf16>
    %c0_359 = arith.constant 0 : index
    %c0_360 = arith.constant 0 : index
    %245 = vector.load %arg32[%c0_359, %c0_360] : memref<4x2304xbf16, #tpu.memory_space<vmem>>, vector<4x128xbf16>
    tpu.vector_store %arg32[%c0_359, %c0_360], %244 {strides = array<i32>} : memref<4x2304xbf16, #tpu.memory_space<vmem>>, vector<4x128xbf16>,
    %c0_361 = arith.constant 0 : index
    %c0_362 = arith.constant 0 : index
    %c1_363 = arith.constant 1 : index
    %c0_364 = arith.constant 0 : index
    %246 = tpu.strided_load %arg30[%c0_361, %c0_362, %c1_363, %c0_364] {strides = array<i32: 1, 2, 2, 1>} : memref<1x6x6x128xf32, #tpu.memory_space<vmem>>, vector<1x2x2x128xf32>
    %247 = vector.shape_cast %246 : vector<1x2x2x128xf32> to vector<4x128xf32>
    %248 = arith.truncf %247 : vector<4x128xf32> to vector<4x128xbf16>
    %c0_365 = arith.constant 0 : index
    %c128_366 = arith.constant 128 : index
    %249 = vector.load %arg32[%c0_365, %c128_366] : memref<4x2304xbf16, #tpu.memory_space<vmem>>, vector<4x128xbf16>
    tpu.vector_store %arg32[%c0_365, %c128_366], %248 {strides = array<i32>} : memref<4x2304xbf16, #tpu.memory_space<vmem>>, vector<4x128xbf16>,
    %c0_367 = arith.constant 0 : index
    %c0_368 = arith.constant 0 : index
    %c2_369 = arith.constant 2 : index
    %c0_370 = arith.constant 0 : index
    %250 = tpu.strided_load %arg30[%c0_367, %c0_368, %c2_369, %c0_370] {strides = array<i32: 1, 2, 2, 1>} : memref<1x6x6x128xf32, #tpu.memory_space<vmem>>, vector<1x2x2x128xf32>
    %251 = vector.shape_cast %250 : vector<1x2x2x128xf32> to vector<4x128xf32>
    %252 = arith.truncf %251 : vector<4x128xf32> to vector<4x128xbf16>
    %c0_371 = arith.constant 0 : index
    %c256_372 = arith.constant 256 : index
    %253 = vector.load %arg32[%c0_371, %c256_372] : memref<4x2304xbf16, #tpu.memory_space<vmem>>, vector<4x128xbf16>
    tpu.vector_store %arg32[%c0_371, %c256_372], %252 {strides = array<i32>} : memref<4x2304xbf16, #tpu.memory_space<vmem>>, vector<4x128xbf16>,
    %c0_373 = arith.constant 0 : index
    %c1_374 = arith.constant 1 : index
    %c0_375 = arith.constant 0 : index
    %c0_376 = arith.constant 0 : index
    %254 = tpu.strided_load %arg30[%c0_373, %c1_374, %c0_375, %c0_376] {strides = array<i32: 1, 2, 2, 1>} : memref<1x6x6x128xf32, #tpu.memory_space<vmem>>, vector<1x2x2x128xf32>
    %255 = vector.shape_cast %254 : vector<1x2x2x128xf32> to vector<4x128xf32>
    %256 = arith.truncf %255 : vector<4x128xf32> to vector<4x128xbf16>
    %c0_377 = arith.constant 0 : index
    %c384_378 = arith.constant 384 : index
    %257 = vector.load %arg32[%c0_377, %c384_378] : memref<4x2304xbf16, #tpu.memory_space<vmem>>, vector<4x128xbf16>
    tpu.vector_store %arg32[%c0_377, %c384_378], %256 {strides = array<i32>} : memref<4x2304xbf16, #tpu.memory_space<vmem>>, vector<4x128xbf16>,
    %c0_379 = arith.constant 0 : index
    %c1_380 = arith.constant 1 : index
    %c1_381 = arith.constant 1 : index
    %c0_382 = arith.constant 0 : index
    %258 = tpu.strided_load %arg30[%c0_379, %c1_380, %c1_381, %c0_382] {strides = array<i32: 1, 2, 2, 1>} : memref<1x6x6x128xf32, #tpu.memory_space<vmem>>, vector<1x2x2x128xf32>
    %259 = vector.shape_cast %258 : vector<1x2x2x128xf32> to vector<4x128xf32>
    %260 = arith.truncf %259 : vector<4x128xf32> to vector<4x128xbf16>
    %c0_383 = arith.constant 0 : index
    %c512_384 = arith.constant 512 : index
    %261 = vector.load %arg32[%c0_383, %c512_384] : memref<4x2304xbf16, #tpu.memory_space<vmem>>, vector<4x128xbf16>
    tpu.vector_store %arg32[%c0_383, %c512_384], %260 {strides = array<i32>} : memref<4x2304xbf16, #tpu.memory_space<vmem>>, vector<4x128xbf16>,
    %c0_385 = arith.constant 0 : index
    %c1_386 = arith.constant 1 : index
    %c2_387 = arith.constant 2 : index
    %c0_388 = arith.constant 0 : index
    %262 = tpu.strided_load %arg30[%c0_385, %c1_386, %c2_387, %c0_388] {strides = array<i32: 1, 2, 2, 1>} : memref<1x6x6x128xf32, #tpu.memory_space<vmem>>, vector<1x2x2x128xf32>
    %263 = vector.shape_cast %262 : vector<1x2x2x128xf32> to vector<4x128xf32>
    %264 = arith.truncf %263 : vector<4x128xf32> to vector<4x128xbf16>
    %c0_389 = arith.constant 0 : index
    %c640_390 = arith.constant 640 : index
    %265 = vector.load %arg32[%c0_389, %c640_390] : memref<4x2304xbf16, #tpu.memory_space<vmem>>, vector<4x128xbf16>
    tpu.vector_store %arg32[%c0_389, %c640_390], %264 {strides = array<i32>} : memref<4x2304xbf16, #tpu.memory_space<vmem>>, vector<4x128xbf16>,
    %c0_391 = arith.constant 0 : index
    %c2_392 = arith.constant 2 : index
    %c0_393 = arith.constant 0 : index
    %c0_394 = arith.constant 0 : index
    %266 = tpu.strided_load %arg30[%c0_391, %c2_392, %c0_393, %c0_394] {strides = array<i32: 1, 2, 2, 1>} : memref<1x6x6x128xf32, #tpu.memory_space<vmem>>, vector<1x2x2x128xf32>
    %267 = vector.shape_cast %266 : vector<1x2x2x128xf32> to vector<4x128xf32>
    %268 = arith.truncf %267 : vector<4x128xf32> to vector<4x128xbf16>
    %c0_395 = arith.constant 0 : index
    %c768_396 = arith.constant 768 : index
    %269 = vector.load %arg32[%c0_395, %c768_396] : memref<4x2304xbf16, #tpu.memory_space<vmem>>, vector<4x128xbf16>
    tpu.vector_store %arg32[%c0_395, %c768_396], %268 {strides = array<i32>} : memref<4x2304xbf16, #tpu.memory_space<vmem>>, vector<4x128xbf16>,
    %c0_397 = arith.constant 0 : index
    %c2_398 = arith.constant 2 : index
    %c1_399 = arith.constant 1 : index
    %c0_400 = arith.constant 0 : index
    %270 = tpu.strided_load %arg30[%c0_397, %c2_398, %c1_399, %c0_400] {strides = array<i32: 1, 2, 2, 1>} : memref<1x6x6x128xf32, #tpu.memory_space<vmem>>, vector<1x2x2x128xf32>
    %271 = vector.shape_cast %270 : vector<1x2x2x128xf32> to vector<4x128xf32>
    %272 = arith.truncf %271 : vector<4x128xf32> to vector<4x128xbf16>
    %c0_401 = arith.constant 0 : index
    %c896_402 = arith.constant 896 : index
    %273 = vector.load %arg32[%c0_401, %c896_402] : memref<4x2304xbf16, #tpu.memory_space<vmem>>, vector<4x128xbf16>
    tpu.vector_store %arg32[%c0_401, %c896_402], %272 {strides = array<i32>} : memref<4x2304xbf16, #tpu.memory_space<vmem>>, vector<4x128xbf16>,
    %c0_403 = arith.constant 0 : index
    %c2_404 = arith.constant 2 : index
    %c2_405 = arith.constant 2 : index
    %c0_406 = arith.constant 0 : index
    %274 = tpu.strided_load %arg30[%c0_403, %c2_404, %c2_405, %c0_406] {strides = array<i32: 1, 2, 2, 1>} : memref<1x6x6x128xf32, #tpu.memory_space<vmem>>, vector<1x2x2x128xf32>
    %275 = vector.shape_cast %274 : vector<1x2x2x128xf32> to vector<4x128xf32>
    %276 = arith.truncf %275 : vector<4x128xf32> to vector<4x128xbf16>
    %c0_407 = arith.constant 0 : index
    %c1024_408 = arith.constant 1024 : index
    %277 = vector.load %arg32[%c0_407, %c1024_408] : memref<4x2304xbf16, #tpu.memory_space<vmem>>, vector<4x128xbf16>
    tpu.vector_store %arg32[%c0_407, %c1024_408], %276 {strides = array<i32>} : memref<4x2304xbf16, #tpu.memory_space<vmem>>, vector<4x128xbf16>,
    %c0_409 = arith.constant 0 : index
    %c0_410 = arith.constant 0 : index
    %278 = vector.load %arg32[%c0_409, %c0_410] : memref<4x2304xbf16, #tpu.memory_space<vmem>>, vector<4x1152xbf16>
    %c0_411 = arith.constant 0 : index
    %c0_412 = arith.constant 0 : index
    %279 = vector.load %arg14[%c0_411, %c0_412] : memref<1152x256xbf16, #tpu.memory_space<vmem>>, vector<1152x256xbf16>
    %cst_413 = arith.constant dense<0.000000e+00> : vector<4x256xf32>
    %280 = tpu.matmul %278, %279, %cst_413 {dimension_numbers = #tpu.dot_dimension_numbers<[1], [0], [0], [1], [0, 0, 1, 1], [], []>} : vector<4x1152xbf16>, vector<1152x256xbf16>, vector<4x256xf32> -> vector<4x256xf32>
    %c0_414 = arith.constant 0 : index
    %c0_415 = arith.constant 0 : index
    %281 = vector.load %arg15[%c0_414, %c0_415] : memref<1x256xf32, #tpu.memory_space<vmem>>, vector<1x256xf32>
    %282 = vector.broadcast %281 : vector<1x256xf32> to vector<4x256xf32>
    %283 = arith.addf %280, %282 : vector<4x256xf32>
    %cst_416 = arith.constant 0.000000e+00 : f32
    %284 = vector.broadcast %cst_416 : f32 to vector<4x256xf32>
    %285 = arith.maximumf %283, %284 : vector<4x256xf32>
    %286 = vector.shape_cast %285 : vector<4x256xf32> to vector<1x2x2x256xf32>
    %c0_417 = arith.constant 0 : index
    %c1_418 = arith.constant 1 : index
    %c1_419 = arith.constant 1 : index
    %c0_420 = arith.constant 0 : index
    %287 = vector.load %arg31[%c0_417, %c1_418, %c1_419, %c0_420] : memref<1x4x4x256xf32, #tpu.memory_space<vmem>>, vector<1x2x2x256xf32>
    tpu.vector_store %arg31[%c0_417, %c1_418, %c1_419, %c0_420], %286 {strides = array<i32>} : memref<1x4x4x256xf32, #tpu.memory_space<vmem>>, vector<1x2x2x256xf32>,
    %c0_421 = arith.constant 0 : index
    %c0_422 = arith.constant 0 : index
    %c0_423 = arith.constant 0 : index
    %c0_424 = arith.constant 0 : index
    %288 = vector.load %arg31[%c0_421, %c0_422, %c0_423, %c0_424] : memref<1x4x4x256xf32, #tpu.memory_space<vmem>>, vector<1x2x2x256xf32>
    %289 = vector.shape_cast %288 : vector<1x2x2x256xf32> to vector<4x256xf32>
    %290 = arith.truncf %289 : vector<4x256xf32> to vector<4x256xbf16>
    %c0_425 = arith.constant 0 : index
    %c0_426 = arith.constant 0 : index
    %291 = vector.load %arg32[%c0_425, %c0_426] : memref<4x2304xbf16, #tpu.memory_space<vmem>>, vector<4x256xbf16>
    tpu.vector_store %arg32[%c0_425, %c0_426], %290 {strides = array<i32>} : memref<4x2304xbf16, #tpu.memory_space<vmem>>, vector<4x256xbf16>,
    %c0_427 = arith.constant 0 : index
    %c0_428 = arith.constant 0 : index
    %c1_429 = arith.constant 1 : index
    %c0_430 = arith.constant 0 : index
    %292 = vector.load %arg31[%c0_427, %c0_428, %c1_429, %c0_430] : memref<1x4x4x256xf32, #tpu.memory_space<vmem>>, vector<1x2x2x256xf32>
    %293 = vector.shape_cast %292 : vector<1x2x2x256xf32> to vector<4x256xf32>
    %294 = arith.truncf %293 : vector<4x256xf32> to vector<4x256xbf16>
    %c0_431 = arith.constant 0 : index
    %c256_432 = arith.constant 256 : index
    %295 = vector.load %arg32[%c0_431, %c256_432] : memref<4x2304xbf16, #tpu.memory_space<vmem>>, vector<4x256xbf16>
    tpu.vector_store %arg32[%c0_431, %c256_432], %294 {strides = array<i32>} : memref<4x2304xbf16, #tpu.memory_space<vmem>>, vector<4x256xbf16>,
    %c0_433 = arith.constant 0 : index
    %c0_434 = arith.constant 0 : index
    %c2_435 = arith.constant 2 : index
    %c0_436 = arith.constant 0 : index
    %296 = vector.load %arg31[%c0_433, %c0_434, %c2_435, %c0_436] : memref<1x4x4x256xf32, #tpu.memory_space<vmem>>, vector<1x2x2x256xf32>
    %297 = vector.shape_cast %296 : vector<1x2x2x256xf32> to vector<4x256xf32>
    %298 = arith.truncf %297 : vector<4x256xf32> to vector<4x256xbf16>
    %c0_437 = arith.constant 0 : index
    %c512_438 = arith.constant 512 : index
    %299 = vector.load %arg32[%c0_437, %c512_438] : memref<4x2304xbf16, #tpu.memory_space<vmem>>, vector<4x256xbf16>
    tpu.vector_store %arg32[%c0_437, %c512_438], %298 {strides = array<i32>} : memref<4x2304xbf16, #tpu.memory_space<vmem>>, vector<4x256xbf16>,
    %c0_439 = arith.constant 0 : index
    %c1_440 = arith.constant 1 : index
    %c0_441 = arith.constant 0 : index
    %c0_442 = arith.constant 0 : index
    %300 = vector.load %arg31[%c0_439, %c1_440, %c0_441, %c0_442] : memref<1x4x4x256xf32, #tpu.memory_space<vmem>>, vector<1x2x2x256xf32>
    %301 = vector.shape_cast %300 : vector<1x2x2x256xf32> to vector<4x256xf32>
    %302 = arith.truncf %301 : vector<4x256xf32> to vector<4x256xbf16>
    %c0_443 = arith.constant 0 : index
    %c768_444 = arith.constant 768 : index
    %303 = vector.load %arg32[%c0_443, %c768_444] : memref<4x2304xbf16, #tpu.memory_space<vmem>>, vector<4x256xbf16>
    tpu.vector_store %arg32[%c0_443, %c768_444], %302 {strides = array<i32>} : memref<4x2304xbf16, #tpu.memory_space<vmem>>, vector<4x256xbf16>,
    %c0_445 = arith.constant 0 : index
    %c1_446 = arith.constant 1 : index
    %c1_447 = arith.constant 1 : index
    %c0_448 = arith.constant 0 : index
    %304 = vector.load %arg31[%c0_445, %c1_446, %c1_447, %c0_448] : memref<1x4x4x256xf32, #tpu.memory_space<vmem>>, vector<1x2x2x256xf32>
    %305 = vector.shape_cast %304 : vector<1x2x2x256xf32> to vector<4x256xf32>
    %306 = arith.truncf %305 : vector<4x256xf32> to vector<4x256xbf16>
    %c0_449 = arith.constant 0 : index
    %c1024_450 = arith.constant 1024 : index
    %307 = vector.load %arg32[%c0_449, %c1024_450] : memref<4x2304xbf16, #tpu.memory_space<vmem>>, vector<4x256xbf16>
    tpu.vector_store %arg32[%c0_449, %c1024_450], %306 {strides = array<i32>} : memref<4x2304xbf16, #tpu.memory_space<vmem>>, vector<4x256xbf16>,
    %c0_451 = arith.constant 0 : index
    %c1_452 = arith.constant 1 : index
    %c2_453 = arith.constant 2 : index
    %c0_454 = arith.constant 0 : index
    %308 = vector.load %arg31[%c0_451, %c1_452, %c2_453, %c0_454] : memref<1x4x4x256xf32, #tpu.memory_space<vmem>>, vector<1x2x2x256xf32>
    %309 = vector.shape_cast %308 : vector<1x2x2x256xf32> to vector<4x256xf32>
    %310 = arith.truncf %309 : vector<4x256xf32> to vector<4x256xbf16>
    %c0_455 = arith.constant 0 : index
    %c1280 = arith.constant 1280 : index
    %311 = vector.load %arg32[%c0_455, %c1280] : memref<4x2304xbf16, #tpu.memory_space<vmem>>, vector<4x256xbf16>
    tpu.vector_store %arg32[%c0_455, %c1280], %310 {strides = array<i32>} : memref<4x2304xbf16, #tpu.memory_space<vmem>>, vector<4x256xbf16>,
    %c0_456 = arith.constant 0 : index
    %c2_457 = arith.constant 2 : index
    %c0_458 = arith.constant 0 : index
    %c0_459 = arith.constant 0 : index
    %312 = vector.load %arg31[%c0_456, %c2_457, %c0_458, %c0_459] : memref<1x4x4x256xf32, #tpu.memory_space<vmem>>, vector<1x2x2x256xf32>
    %313 = vector.shape_cast %312 : vector<1x2x2x256xf32> to vector<4x256xf32>
    %314 = arith.truncf %313 : vector<4x256xf32> to vector<4x256xbf16>
    %c0_460 = arith.constant 0 : index
    %c1536 = arith.constant 1536 : index
    %315 = vector.load %arg32[%c0_460, %c1536] : memref<4x2304xbf16, #tpu.memory_space<vmem>>, vector<4x256xbf16>
    tpu.vector_store %arg32[%c0_460, %c1536], %314 {strides = array<i32>} : memref<4x2304xbf16, #tpu.memory_space<vmem>>, vector<4x256xbf16>,
    %c0_461 = arith.constant 0 : index
    %c2_462 = arith.constant 2 : index
    %c1_463 = arith.constant 1 : index
    %c0_464 = arith.constant 0 : index
    %316 = vector.load %arg31[%c0_461, %c2_462, %c1_463, %c0_464] : memref<1x4x4x256xf32, #tpu.memory_space<vmem>>, vector<1x2x2x256xf32>
    %317 = vector.shape_cast %316 : vector<1x2x2x256xf32> to vector<4x256xf32>
    %318 = arith.truncf %317 : vector<4x256xf32> to vector<4x256xbf16>
    %c0_465 = arith.constant 0 : index
    %c1792 = arith.constant 1792 : index
    %319 = vector.load %arg32[%c0_465, %c1792] : memref<4x2304xbf16, #tpu.memory_space<vmem>>, vector<4x256xbf16>
    tpu.vector_store %arg32[%c0_465, %c1792], %318 {strides = array<i32>} : memref<4x2304xbf16, #tpu.memory_space<vmem>>, vector<4x256xbf16>,
    %c0_466 = arith.constant 0 : index
    %c2_467 = arith.constant 2 : index
    %c2_468 = arith.constant 2 : index
    %c0_469 = arith.constant 0 : index
    %320 = vector.load %arg31[%c0_466, %c2_467, %c2_468, %c0_469] : memref<1x4x4x256xf32, #tpu.memory_space<vmem>>, vector<1x2x2x256xf32>
    %321 = vector.shape_cast %320 : vector<1x2x2x256xf32> to vector<4x256xf32>
    %322 = arith.truncf %321 : vector<4x256xf32> to vector<4x256xbf16>
    %c0_470 = arith.constant 0 : index
    %c2048 = arith.constant 2048 : index
    %323 = vector.load %arg32[%c0_470, %c2048] : memref<4x2304xbf16, #tpu.memory_space<vmem>>, vector<4x256xbf16>
    tpu.vector_store %arg32[%c0_470, %c2048], %322 {strides = array<i32>} : memref<4x2304xbf16, #tpu.memory_space<vmem>>, vector<4x256xbf16>,
    %c0_471 = arith.constant 0 : index
    %c0_472 = arith.constant 0 : index
    %324 = vector.load %arg32[%c0_471, %c0_472] : memref<4x2304xbf16, #tpu.memory_space<vmem>>, vector<4x2304xbf16>
    %c0_473 = arith.constant 0 : index
    %c0_474 = arith.constant 0 : index
    %325 = vector.load %arg16[%c0_473, %c0_474] : memref<2304x256xbf16, #tpu.memory_space<vmem>>, vector<2304x256xbf16>
    %cst_475 = arith.constant dense<0.000000e+00> : vector<4x256xf32>
    %326 = tpu.matmul %324, %325, %cst_475 {dimension_numbers = #tpu.dot_dimension_numbers<[1], [0], [0], [1], [0, 0, 1, 1], [], []>} : vector<4x2304xbf16>, vector<2304x256xbf16>, vector<4x256xf32> -> vector<4x256xf32>
    %c0_476 = arith.constant 0 : index
    %c0_477 = arith.constant 0 : index
    %327 = vector.load %arg17[%c0_476, %c0_477] : memref<1x256xf32, #tpu.memory_space<vmem>>, vector<1x256xf32>
    %328 = vector.broadcast %327 : vector<1x256xf32> to vector<4x256xf32>
    %329 = arith.addf %326, %328 : vector<4x256xf32>
    %c0_478 = arith.constant 0 : index
    %c1_479 = arith.constant 1 : index
    %c1_480 = arith.constant 1 : index
    %c0_481 = arith.constant 0 : index
    %330 = tpu.strided_load %arg30[%c0_478, %c1_479, %c1_480, %c0_481] {strides = array<i32: 1, 2, 2, 1>} : memref<1x6x6x128xf32, #tpu.memory_space<vmem>>, vector<1x2x2x128xf32>
    %331 = vector.shape_cast %330 : vector<1x2x2x128xf32> to vector<4x128xf32>
    %332 = arith.truncf %331 : vector<4x128xf32> to vector<4x128xbf16>
    %c0_482 = arith.constant 0 : index
    %c0_483 = arith.constant 0 : index
    %333 = vector.load %arg18[%c0_482, %c0_483] : memref<128x256xbf16, #tpu.memory_space<vmem>>, vector<128x256xbf16>
    %cst_484 = arith.constant dense<0.000000e+00> : vector<4x256xf32>
    %334 = tpu.matmul %332, %333, %cst_484 {dimension_numbers = #tpu.dot_dimension_numbers<[1], [0], [0], [1], [0, 0, 1, 1], [], []>} : vector<4x128xbf16>, vector<128x256xbf16>, vector<4x256xf32> -> vector<4x256xf32>
    %c0_485 = arith.constant 0 : index
    %c0_486 = arith.constant 0 : index
    %335 = vector.load %arg19[%c0_485, %c0_486] : memref<1x256xf32, #tpu.memory_space<vmem>>, vector<1x256xf32>
    %336 = vector.broadcast %335 : vector<1x256xf32> to vector<4x256xf32>
    %337 = arith.addf %334, %336 : vector<4x256xf32>
    %338 = arith.addf %329, %337 : vector<4x256xf32>
    %cst_487 = arith.constant 0.000000e+00 : f32
    %339 = vector.broadcast %cst_487 : f32 to vector<4x256xf32>
    %340 = arith.maximumf %338, %339 : vector<4x256xf32>
    %341 = vector.shape_cast %340 : vector<4x256xf32> to vector<1x4x256xf32>
    %cst_488 = arith.constant dense<0.000000e+00> : vector<1x256xf32>
    %342 = vector.multi_reduction <add>, %341, %cst_488 [1] : vector<1x4x256xf32> to vector<1x256xf32>
    %cst_489 = arith.constant 4.000000e+00 : f32
    %343 = vector.broadcast %cst_489 : f32 to vector<1x256xf32>
    %344 = arith.divf %342, %343 : vector<1x256xf32>
    %345 = arith.truncf %344 : vector<1x256xf32> to vector<1x256xbf16>
    %c0_490 = arith.constant 0 : index
    %c0_491 = arith.constant 0 : index
    %346 = vector.load %arg20[%c0_490, %c0_491] : memref<256x2xbf16, #tpu.memory_space<vmem>>, vector<256x2xbf16>
    %cst_492 = arith.constant dense<0.000000e+00> : vector<1x2xf32>
    %347 = tpu.matmul %345, %346, %cst_492 {dimension_numbers = #tpu.dot_dimension_numbers<[1], [0], [0], [1], [0, 0, 1, 1], [], []>} : vector<1x256xbf16>, vector<256x2xbf16>, vector<1x2xf32> -> vector<1x2xf32>
    %c0_493 = arith.constant 0 : index
    %c0_494 = arith.constant 0 : index
    %348 = vector.load %arg21[%c0_493, %c0_494] : memref<1x2xf32, #tpu.memory_space<vmem>>, vector<1x2xf32>
    %349 = arith.addf %347, %348 : vector<1x2xf32>
    %350 = vector.shape_cast %349 : vector<1x2xf32> to vector<1x1x2xf32>
    %c0_495 = arith.constant 0 : index
    %c0_496 = arith.constant 0 : index
    %c0_497 = arith.constant 0 : index
    %351 = vector.load %arg22[%c0_495, %c0_496, %c0_497] : memref<1x1x2xf32, #tpu.memory_space<vmem>>, vector<1x1x2xf32>
    tpu.vector_store %arg22[%c0_495, %c0_496, %c0_497], %350 {strides = array<i32>} : memref<1x1x2xf32, #tpu.memory_space<vmem>>, vector<1x1x2xf32>,
    return
  }
  func.func @transform_0(%arg0: i32) -> (i32, i32, i32) {
    %c0_i32 = arith.constant 0 : i32
    %c0_i32_0 = arith.constant 0 : i32
    %c0_i32_1 = arith.constant 0 : i32
    return %arg0, %c0_i32, %c0_i32_0 : i32, i32, i32
  }
  func.func @transform_1(%arg0: i32) -> (i32, i32) {
    %c0_i32 = arith.constant 0 : i32
    %c0_i32_0 = arith.constant 0 : i32
    %c0_i32_1 = arith.constant 0 : i32
    return %c0_i32, %c0_i32_0 : i32, i32
  }
  func.func @transform_2(%arg0: i32) -> (i32, i32) {
    %c0_i32 = arith.constant 0 : i32
    %c0_i32_0 = arith.constant 0 : i32
    %c0_i32_1 = arith.constant 0 : i32
    return %c0_i32, %c0_i32_0 : i32, i32
  }
  func.func @transform_3(%arg0: i32) -> (i32, i32) {
    %c0_i32 = arith.constant 0 : i32
    %c0_i32_0 = arith.constant 0 : i32
    %c0_i32_1 = arith.constant 0 : i32
    return %c0_i32, %c0_i32_0 : i32, i32
  }
  func.func @transform_4(%arg0: i32) -> (i32, i32) {
    %c0_i32 = arith.constant 0 : i32
    %c0_i32_0 = arith.constant 0 : i32
    %c0_i32_1 = arith.constant 0 : i32
    return %c0_i32, %c0_i32_0 : i32, i32
  }
  func.func @transform_5(%arg0: i32) -> (i32, i32) {
    %c0_i32 = arith.constant 0 : i32
    %c0_i32_0 = arith.constant 0 : i32
    %c0_i32_1 = arith.constant 0 : i32
    return %c0_i32, %c0_i32_0 : i32, i32
  }
  func.func @transform_6(%arg0: i32) -> (i32, i32) {
    %c0_i32 = arith.constant 0 : i32
    %c0_i32_0 = arith.constant 0 : i32
    %c0_i32_1 = arith.constant 0 : i32
    return %c0_i32, %c0_i32_0 : i32, i32
  }
  func.func @transform_7(%arg0: i32) -> (i32, i32) {
    %c0_i32 = arith.constant 0 : i32
    %c0_i32_0 = arith.constant 0 : i32
    %c0_i32_1 = arith.constant 0 : i32
    return %c0_i32, %c0_i32_0 : i32, i32
  }
  func.func @transform_8(%arg0: i32) -> (i32, i32) {
    %c0_i32 = arith.constant 0 : i32
    %c0_i32_0 = arith.constant 0 : i32
    %c0_i32_1 = arith.constant 0 : i32
    return %c0_i32, %c0_i32_0 : i32, i32
  }
  func.func @transform_9(%arg0: i32) -> (i32, i32) {
    %c0_i32 = arith.constant 0 : i32
    %c0_i32_0 = arith.constant 0 : i32
    %c0_i32_1 = arith.constant 0 : i32
    return %c0_i32, %c0_i32_0 : i32, i32
  }
  func.func @transform_10(%arg0: i32) -> (i32, i32) {
    %c0_i32 = arith.constant 0 : i32
    %c0_i32_0 = arith.constant 0 : i32
    %c0_i32_1 = arith.constant 0 : i32
    return %c0_i32, %c0_i32_0 : i32, i32
  }
  func.func @transform_11(%arg0: i32) -> (i32, i32) {
    %c0_i32 = arith.constant 0 : i32
    %c0_i32_0 = arith.constant 0 : i32
    %c0_i32_1 = arith.constant 0 : i32
    return %c0_i32, %c0_i32_0 : i32, i32
  }
  func.func @transform_12(%arg0: i32) -> (i32, i32) {
    %c0_i32 = arith.constant 0 : i32
    %c0_i32_0 = arith.constant 0 : i32
    %c0_i32_1 = arith.constant 0 : i32
    return %c0_i32, %c0_i32_0 : i32, i32
  }
  func.func @transform_13(%arg0: i32) -> (i32, i32) {
    %c0_i32 = arith.constant 0 : i32
    %c0_i32_0 = arith.constant 0 : i32
    %c0_i32_1 = arith.constant 0 : i32
    return %c0_i32, %c0_i32_0 : i32, i32
  }
  func.func @transform_14(%arg0: i32) -> (i32, i32) {
    %c0_i32 = arith.constant 0 : i32
    %c0_i32_0 = arith.constant 0 : i32
    %c0_i32_1 = arith.constant 0 : i32
    return %c0_i32, %c0_i32_0 : i32, i32
  }
  func.func @transform_15(%arg0: i32) -> (i32, i32) {
    %c0_i32 = arith.constant 0 : i32
    %c0_i32_0 = arith.constant 0 : i32
    %c0_i32_1 = arith.constant 0 : i32
    return %c0_i32, %c0_i32_0 : i32, i32
  }
  func.func @transform_16(%arg0: i32) -> (i32, i32) {
    %c0_i32 = arith.constant 0 : i32
    %c0_i32_0 = arith.constant 0 : i32
    %c0_i32_1 = arith.constant 0 : i32
    return %c0_i32, %c0_i32_0 : i32, i32
  }
  func.func @transform_17(%arg0: i32) -> (i32, i32) {
    %c0_i32 = arith.constant 0 : i32
    %c0_i32_0 = arith.constant 0 : i32
    %c0_i32_1 = arith.constant 0 : i32
    return %c0_i32, %c0_i32_0 : i32, i32
  }
  func.func @transform_18(%arg0: i32) -> (i32, i32) {
    %c0_i32 = arith.constant 0 : i32
    %c0_i32_0 = arith.constant 0 : i32
    %c0_i32_1 = arith.constant 0 : i32
    return %c0_i32, %c0_i32_0 : i32, i32
  }
  func.func @transform_19(%arg0: i32) -> (i32, i32) {
    %c0_i32 = arith.constant 0 : i32
    %c0_i32_0 = arith.constant 0 : i32
    %c0_i32_1 = arith.constant 0 : i32
    return %c0_i32, %c0_i32_0 : i32, i32
  }
  func.func @transform_20(%arg0: i32) -> (i32, i32) {
    %c0_i32 = arith.constant 0 : i32
    %c0_i32_0 = arith.constant 0 : i32
    %c0_i32_1 = arith.constant 0 : i32
    return %c0_i32, %c0_i32_0 : i32, i32
  }
  func.func @transform_21(%arg0: i32) -> (i32, i32, i32) {
    %c0_i32 = arith.constant 0 : i32
    %c0_i32_0 = arith.constant 0 : i32
    %c0_i32_1 = arith.constant 0 : i32
    return %arg0, %c0_i32, %c0_i32_0 : i32, i32, i32
  }
}

</mosaic_0001>

<bundles_post_ra>
// kernel: resnet_forward.1
= control target key start
LH: loop header
LB: loop body
LE: loop exit
PB: predicated region body
PF: predicated region fallthrough
CT: control target
= control target key end

     0   :  { %s16220_s0 = inlined_call_operand.vmem [shape: bf16[2,256,64], index: 0, kind: input, shape index: {}]   ;;  %s16221_s1 = inlined_call_operand.vmem [shape: bf16[64,64], index: 1, kind: input, shape index: {}]   ;;  %s16222_s2 = inlined_call_operand.vmem [shape: f32[1,64], index: 2, kind: input, shape index: {}]   ;;  %s16223_s3 = inlined_call_operand.vmem [shape: bf16[1152,64], index: 3, kind: input, shape index: {}]   ;;  %s16224_s4 = inlined_call_operand.vmem [shape: f32[1,64], index: 4, kind: input, shape index: {}]   ;;  %s16225_s5 = inlined_call_operand.vmem [shape: bf16[1152,64], index: 5, kind: input, shape index: {}]   ;;  %s16226_s6 = inlined_call_operand.vmem [shape: f32[1,64], index: 6, kind: input, shape index: {}]   ;;  %s16227_s7 = inlined_call_operand.vmem [shape: bf16[1152,128], index: 7, kind: input, shape index: {}]   ;;  %s16228_s8 = inlined_call_operand.vmem [shape: f32[1,128], index: 8, kind: input, shape index: {}]   ;;  %s16229_s9 = inlined_call_operand.vmem [shape: bf16[1152,128], index: 9, kind: input, shape index: {}]   ;;  %s16230_s10 = inlined_call_operand.vmem [shape: f32[1,128], index: 10, kind: input, shape index: {}]   ;;  %s16231_s11 = inlined_call_operand.vmem [shape: bf16[64,128], index: 11, kind: input, shape index: {}]   ;;  %s16232_s12 = inlined_call_operand.vmem [shape: f32[1,128], index: 12, kind: input, shape index: {}]   ;;  %s16233_s13 = inlined_call_operand.vmem [shape: bf16[1152,256], index: 13, kind: input, shape index: {}]   ;;  %s16234_s14 = inlined_call_operand.vmem [shape: f32[1,256], index: 14, kind: input, shape index: {}]   ;;  %s16235_s15 = inlined_call_operand.vmem [shape: bf16[2304,256], index: 15, kind: input, shape index: {}]   ;;  %s16236_s16 = inlined_call_operand.vmem [shape: f32[1,256], index: 16, kind: input, shape index: {}]   ;;  %s16237_s17 = inlined_call_operand.vmem [shape: bf16[128,256], index: 17, kind: input, shape index: {}]   ;;  %s16238_s18 = inlined_call_operand.vmem [shape: f32[1,256], index: 18, kind: input, shape index: {}]   ;;  %s16239_s19 = inlined_call_operand.vmem [shape: bf16[256,2], index: 19, kind: input, shape index: {}]   ;;  %s16240_s20 = inlined_call_operand.vmem [shape: f32[1,2], index: 20, kind: input, shape index: {}]   ;;  %s16241_s21 = inlined_call_operand.hbm [shape: f32[2,1,2], index: 21, kind: output, shape index: {}]  }
   0x1   :  { %16254 = sst [smem:[#allocation21_spill]] %s16220_s0 }
   0x2   :  { %16255 = sst [smem:[#allocation22_spill]] %s16221_s1 }
   0x3   :  { %16256 = sst [smem:[#allocation23_spill]] %s16222_s2 }
   0x4   :  { %16257 = sst [smem:[#allocation24_spill]] %s16223_s3 }
   0x5   :  { %16258 = sst [smem:[#allocation25_spill]] %s16224_s4 }
   0x6   :  { %16259 = sst [smem:[#allocation26_spill]] %s16225_s5 }
   0x7   :  { %26 = vsyncpa [#allocation13], 0 }
   0x8   :  { %28 = vsyncpa [#allocation13 + $0x1], 0  ;;  %s13059_s2 = smov 0   ;;  %s13061_s25 = smov 0  }
   0x9   :  { %s13063_s26 = smov 0   ;;  %s13065_s27 = smov 0  }
   0xa LB: > { %16260 = sst [smem:[#allocation15_spill]] %s12930_s2  ;;  %s13080_s3 = sadd.s32 4294967295, %s12942_s27   ;;  %s12942_s27 = sphi %s13065_s27, %s16279_s27   ;;  %s12938_s26 = sphi %s13063_s26, %s16281_s26   ;;  %s12934_s25 = sphi %s13061_s25, %s16283_s25   ;;  %s12930_s2 = sphi %s13059_s2, %s16282_s2  }
   0xb   : > { %16261 = sst [smem:[#allocation16_spill]] %s12938_s26  ;;  %s10167_s28 = sadd.s32 4294967294, %s12942_s27  }
   0xc   : > { %16262 = sst [smem:[#allocation17_spill]] %s12942_s27  ;;  %s13084_s29 = sadd.s32 1, %s12942_s27  }
   0xd   : > { %16263 = sst [smem:[#allocation18_spill]] %s13084_s29  ;;  %s487_s0 = sadd.s32 1, %s12938_s26 }
   0xe   : > { %s484_s4 = ssub.s32 %s12942_s27, %s13084_s29  ;;  %p497_p0 = scmp.ne.s32.totalorder %s12938_s26, %s12934_s25 }
   0xf   : > { %p485_p1 = scmp.eq.s32.totalorder %s484_s4, 0  ;;  %p498_p2 = scmp.eq.s32.totalorder %s13080_s3, 1 }
  0x10   : > { %p503_p3 = scmp.ne.s32.totalorder %s12934_s25, %s12930_s2  ;;  %p504_p4 = scmp.eq.s32.totalorder %s10167_s28, 1 }
  0x11   : > { %s13095_s30 = scalar_select %p485_p1, %s12938_s26, %s487_s0  }
  0x12   : > { %p13097_p5 = por %p498_p2, %p497_p0  ;;  %p13101_p6 = por %p504_p4, %p503_p3 }
  0x13   : > { %16264 = sst [smem:[#allocation19_spill]] %s13095_s30  ;;  %p10170_p7 = scmp.ge.s32.totalorder %s12942_s27, 1 }
  0x14   : > { %s16266_s22 = scalar_select %p13101_p6, 1, 0 }
  0x15   : > { %p590_p8 = scmp.lt.s32.totalorder %s12942_s27, 3 }
  0x16   : > { %16267 = sst [smem:[#allocation20_spill]] %s16266_s22 }
  0x17   : > { %p591_p9 = pnand %p10170_p7, %p590_p8 }
  0x18   : > { %s16268_s24 = sld [smem:[#allocation22_spill]] (!%p591_p9)  ;;  %p649_p10 = scmp.lt.s32.totalorder (!%p591_p9), %s13080_s3, 1  ;;  %vm655_vm0 = vcmask (!%p591_p9), 523264   ;;  %v12944_v3 = vmov (!%p591_p9), 0.0   ;;  %vm658_vm1 = vcmask (!%p591_p9), 517120   ;;  %v12945_v43 = vmov (!%p591_p9), 0  }
  0x19   : > { %594 = sbr.rel (%p591_p9) target bundleno = 2940 (0xb7c), region = 104  ;;  %663 = vst.msk [vmem:[#allocation2 + $0x30] sm:$0xff] (!%p591_p9), %vm655_vm0, %v12944_v3  ;;  %664 = vst.msk [vmem:[#allocation2 + $0x38] sm:$0xff] (!%p591_p9), %vm655_vm0, %v12944_v3  ;;  %s16269_s1 = sld [smem:[#allocation21_spill]] (!%p591_p9)  ;;  %vm12946_vm2 = vmmov (!%p591_p9), 0   ;;  %vm7082_vm3 = vcmask (!%p591_p9), 1040384  }
  0x1a   : > { %656 = vst.msk [vmem:[#allocation2] sm:$0xff] (!%p591_p9), %vm655_vm0, %v12944_v3  ;;  %657 = vst.msk [vmem:[#allocation2 + $0x8] sm:$0xff] (!%p591_p9), %vm655_vm0, %v12944_v3  ;;  %s16271_s29 = sld [smem:[#allocation23_spill]] (!%p591_p9)  ;;  %s16272_s22 = sld [smem:[#allocation26_spill]] (!%p591_p9)  ;;  %vm7083_vm4 = vcmask (!%p591_p9), 1042434   ;;  %vm7085_vm6 = vcmask (!%p591_p9), 1044484  }
  0x1b   : > { %660 = vst.msk [vmem:[#allocation2 + $0x18] sm:$0xff] (!%p591_p9), %vm655_vm0, %v12944_v3  ;;  %661 = vst.msk [vmem:[#allocation2 + $0x20] sm:$0xff] (!%p591_p9), %vm655_vm0, %v12944_v3  ;;  %s16273_s0 = sld [smem:[#allocation25_spill]] (!%p591_p9)  ;;  %vm7087_vm8 = vcmask (!%p591_p9), 1046534   ;;  %vm9830_vm10 = vcmask (!%p591_p9), 1043456   ;;  %s647_s30 = sand.u32 (!%p591_p9), 1, %s12934_s25  }
  0x1c   : > { %666 = vst.msk [vmem:[#allocation2 + $0x48] sm:$0xff] (!%p591_p9), %vm655_vm0, %v12944_v3  ;;  %667 = vst.msk [vmem:[#allocation2 + $0x50] sm:$0xff] (!%p591_p9), %vm655_vm0, %v12944_v3  ;;  %vm10019_vm11 = vcmask (!%p591_p9), 8192  }
  0x1d   : > { %669 = vst.msk [vmem:[#allocation2 + $0x60] sm:$0xff] (!%p591_p9), %vm655_vm0, %v12944_v3  ;;  %670 = vst.msk [vmem:[#allocation2 + $0x68] sm:$0xff] (!%p591_p9), %vm655_vm0, %v12944_v3 }
  0x1e   : > { %v11855_v0 = vld [vmem:[%s16268_s24] sm:$0xff] (!%p591_p9)   ;;  %v13114_v1 = vld [vmem:[%s16268_s24 + $0x8] sm:$0xff] (!%p591_p9)   ;;  %v13122_v2 = vld [vmem:[%s16268_s24 + $0x10] sm:$0xff] (!%p591_p9)   ;;  %672 = vst.msk [vmem:[#allocation2 + $0x78] sm:$0xff] (!%p591_p9), %vm655_vm0, %v12944_v3 }
  0x1f   : > { %11608 = vmatprep.subr.bf16.mxu0 (!%p591_p9), %v11855_v0  ;;  %673 = vst.msk [vmem:[#allocation2 + $0x80] sm:$0xff] (!%p591_p9), %vm655_vm0, %v12944_v3  ;;  %675 = vst.msk [vmem:[#allocation2 + $0x90] sm:$0xff] (!%p591_p9), %vm655_vm0, %v12944_v3  ;;  %v11858_v5 = vld [vmem:[%s16268_s24 + $0x18] sm:$0xff] (!%p591_p9)   ;;  %s648_s24 = scalar_lea.vmem (!%p591_p9), [#allocation12], %s647_s30 }
  0x20   : > { %s13117_s4 = scalar_select %p649_p10, %s13080_s3, 1  ;;  %11609 = vmatpush3.bf16.msra.mxu0 %v11855_v0  ;;  %676 = vst.msk [vmem:[#allocation2 + $0x98] sm:$0xff] %vm655_vm0, %v12944_v3  ;;  %678 = vst.msk [vmem:[#allocation2 + $0xa8] sm:$0xff] %vm655_vm0, %v12944_v3  ;;  %v13554_v56 = vld [vmem:[%s16271_s29] ss:$0 sm:$0xff] }
  0x21   : > { %11610 = vmatprep.subr.bf16.mxu0 %v13114_v1  ;;  %679 = vst.msk [vmem:[#allocation2 + $0xb0] sm:$0xff] %vm655_vm0, %v12944_v3  ;;  %681 = vst.msk [vmem:[#allocation2 + $0xc0] sm:$0xff] %vm655_vm0, %v12944_v3 }
  0x22   : > { %s11022_s23 = sshll.u32 %s13117_s4, 7  ;;  %682 = vst.msk [vmem:[#allocation2 + $0xc8] sm:$0xff] %vm655_vm0, %v12944_v3  ;;  %684 = vst.msk [vmem:[#allocation2 + $0xd8] sm:$0xff] %vm655_vm0, %v12944_v3  ;;  %s12948_s4 = smov [#allocation12]  }
  0x23   : > { %685 = vst.msk [vmem:[#allocation2 + $0xe0] sm:$0xff] %vm655_vm0, %v12944_v3  ;;  %687 = vst.msk [vmem:[#allocation2 + $0xf0] sm:$0xff] %vm655_vm0, %v12944_v3  ;;  %s13272_s28 = scalar_lea.vmem %s16269_s1, %s11022_s23  ;;  %s16270_s23 = sld [smem:[#allocation24_spill]] }
  0x24   : > { %688 = vst.msk [vmem:[#allocation2 + $0xf8] sm:$0xff] %vm655_vm0, %v12944_v3  ;;  %690 = vst.msk [vmem:[#allocation2 + $0x108] sm:$0xff] %vm655_vm0, %v12944_v3  ;;  %v11859_v4 = vld [vmem:[%s13272_s28] sm:$0xff]   ;;  %11611 = vmatpush3.bf16.msra.mxu0 %v13114_v1  ;;  %v11860_v6 = vld [vmem:[%s13272_s28 + $0x8] sm:$0xff]   ;;  %s12884_s26 = sshll.u32 %s12948_s4, 4  ;;  %s12885_s26 = int_to_ptr.vmem [resolvable:$false] %s12884_s26 }
  0x25   : > { %691 = vst.msk [vmem:[#allocation2 + $0x110] sm:$0xff] %vm655_vm0, %v12944_v3  ;;  %693 = vst.msk [vmem:[#allocation2 + $0x120] sm:$0xff] %vm655_vm0, %v12944_v3  ;;  %11612 = vmatprep.subr.bf16.mxu0 %v13122_v2  ;;  %11616 = vmatprep.mubr.msk.bf16.mxu0 %vm655_vm0, %v11859_v4  ;;  %v11861_v7 = vld [vmem:[%s13272_s28 + $0x10] sm:$0xff]   ;;  %v11862_v8 = vld [vmem:[%s13272_s28 + $0x18] sm:$0xff]   ;;  %s12886_s1 = scalar_lea.vmem %s12885_s26, 32 }
  0x26   : > { %694 = vst.msk [vmem:[#allocation2 + $0x128] sm:$0xff] %vm655_vm0, %v12944_v3  ;;  %696 = vst.msk [vmem:[#allocation2 + $0x138] sm:$0xff] %vm655_vm0, %v12944_v3  ;;  %v11863_v9 = vld [vmem:[%s13272_s28 + $0x20] sm:$0xff]   ;;  %v11864_v10 = vld [vmem:[%s13272_s28 + $0x28] sm:$0xff]  }
  0x27   : > { %697 = vst.msk [vmem:[#allocation2 + $0x140] sm:$0xff] %vm655_vm0, %v12944_v3  ;;  %699 = vst.msk [vmem:[#allocation2 + $0x150] sm:$0xff] %vm655_vm0, %v12944_v3  ;;  %v11865_v11 = vld [vmem:[%s13272_s28 + $0x30] sm:$0xff]   ;;  %v11866_v12 = vld [vmem:[%s13272_s28 + $0x38] sm:$0xff]  }
  0x28   : > { %700 = vst.msk [vmem:[#allocation2 + $0x158] sm:$0xff] %vm655_vm0, %v12944_v3  ;;  %702 = vst.msk [vmem:[#allocation2 + $0x168] sm:$0xff] %vm655_vm0, %v12944_v3  ;;  %11613 = vmatpush3.bf16.msra.mxu0 %v13122_v2  ;;  %v11867_v13 = vld [vmem:[%s13272_s28 + $0x40] sm:$0xff]   ;;  %v11868_v14 = vld [vmem:[%s13272_s28 + $0x48] sm:$0xff]  }
  0x29   : > { %703 = vst.msk [vmem:[#allocation2 + $0x170] sm:$0xff] %vm655_vm0, %v12944_v3  ;;  %705 = vst.msk [vmem:[#allocation2 + $0x180] sm:$0xff] %vm655_vm0, %v12944_v3  ;;  %11614 = vmatprep.subr.bf16.mxu0 %v11858_v5  ;;  %v11869_v15 = vld [vmem:[%s13272_s28 + $0x50] sm:$0xff]   ;;  %v11870_v16 = vld [vmem:[%s13272_s28 + $0x58] sm:$0xff]  }
  0x2a   : > { %706 = vst.msk [vmem:[#allocation2 + $0x188] sm:$0xff] %vm655_vm0, %v12944_v3  ;;  %711 = vst.msk [vmem:[#allocation3] sm:$0xff] %vm655_vm0, %v12944_v3  ;;  %v11871_v17 = vld [vmem:[%s13272_s28 + $0x60] sm:$0xff]   ;;  %v11872_v18 = vld [vmem:[%s13272_s28 + $0x68] sm:$0xff]  }
  0x2b   : > { %713 = vst.msk [vmem:[#allocation3 + $0x10] sm:$0xff] %vm655_vm0, %v12944_v3  ;;  %715 = vst.msk [vmem:[#allocation3 + $0x20] sm:$0xff] %vm655_vm0, %v12944_v3  ;;  %v11873_v19 = vld [vmem:[%s13272_s28 + $0x70] sm:$0xff]   ;;  %v11874_v20 = vld [vmem:[%s13272_s28 + $0x78] sm:$0xff]  }
  0x2c   : > { %717 = vst.msk [vmem:[#allocation3 + $0x30] sm:$0xff] %vm655_vm0, %v12944_v3  ;;  %719 = vst.msk [vmem:[#allocation3 + $0x40] sm:$0xff] %vm655_vm0, %v12944_v3  ;;  %11615 = vmatpush3.bf16.msra.mxu0 %v11858_v5  ;;  %v11875_v21 = vld [vmem:[%s16270_s23 + $0x40] sm:$0xff]   ;;  %v11877_v23 = vld [vmem:[%s16270_s23 + $0x48] sm:$0xff]  }
  0x2d   : > { %721 = vst.msk [vmem:[#allocation3 + $0x50] sm:$0xff] %vm655_vm0, %v12944_v3  ;;  %723 = vst.msk [vmem:[#allocation3 + $0x60] sm:$0xff] %vm655_vm0, %v12944_v3  ;;  %v11876_v22 = vld [vmem:[%s16270_s23] sm:$0xff]   ;;  %11043 = vmatprep.subr.bf16.mxu0 %v11875_v21  ;;  %v11878_v24 = vld [vmem:[%s16270_s23 + $0x8] sm:$0xff]  }
  0x2e   : > { %725 = vst.msk [vmem:[#allocation3 + $0x70] sm:$0xff] %vm655_vm0, %v12944_v3  ;;  %727 = vst.msk [vmem:[#allocation3 + $0x80] sm:$0xff] %vm655_vm0, %v12944_v3  ;;  %v11879_v25 = vld [vmem:[%s16270_s23 + $0x50] sm:$0xff]   ;;  %v11881_v26 = vld [vmem:[%s16270_s23 + $0xc0] sm:$0xff]  }
  0x2f   : > { %729 = vst.msk [vmem:[#allocation3 + $0x90] sm:$0xff] %vm655_vm0, %v12944_v3  ;;  %731 = vst.msk [vmem:[#allocation4] sm:$0xff] %vm655_vm0, %v12944_v3  ;;  %11617 = vmatmul.mubr.msk.bf16.vlgmr.msra.gmra.mrb[0].mxu0 %vm655_vm0, %v11860_v6  ;;  %v11880_v27 = vld [vmem:[%s16270_s23 + $0x10] sm:$0xff]   ;;  %v11882_v28 = vld [vmem:[%s16270_s23 + $0x80] sm:$0xff]   ;;  %11083 = vmatprep.subr.bf16.mxu1 %v11881_v26 }
  0x30   : > { %733 = vst.msk [vmem:[#allocation4 + $0x10] sm:$0xff] %vm655_vm0, %v12944_v3  ;;  %735 = vst.msk [vmem:[#allocation4 + $0x20] sm:$0xff] %vm655_vm0, %v12944_v3  ;;  %11620 = vmatprep.mubr.msk.bf16.mxu0 %vm655_vm0, %v11861_v7  ;;  %11044 = vmatpush3.bf16.msra.mxu0 %v11876_v22  ;;  %v11883_v29 = vld [vmem:[%s16270_s23 + $0x58] sm:$0xff]   ;;  %v11884_v30 = vld [vmem:[%s16270_s23 + $0xc8] sm:$0xff]  }
  0x31   : > { %737 = vst.msk [vmem:[#allocation4 + $0x30] sm:$0xff] %vm655_vm0, %v12944_v3  ;;  %739 = vst.msk [vmem:[#allocation4 + $0x40] sm:$0xff] %vm655_vm0, %v12944_v3  ;;  %11045 = vmatprep.subr.bf16.mxu0 %v11877_v23  ;;  %11084 = vmatpush3.bf16.msra.mxu1 %v11882_v28  ;;  %v11885_v31 = vld [vmem:[%s16270_s23 + $0x18] sm:$0xff]   ;;  %v11886_v32 = vld [vmem:[%s16270_s23 + $0x88] sm:$0xff]  }
  0x32   : > { %741 = vst.msk [vmem:[#allocation4 + $0x50] sm:$0xff] %vm655_vm0, %v12944_v3  ;;  %743 = vst.msk [vmem:[#allocation4 + $0x60] sm:$0xff] %vm655_vm0, %v12944_v3  ;;  %11085 = vmatprep.subr.bf16.mxu1 %v11884_v30  ;;  %v11887_v33 = vld [vmem:[%s16270_s23 + $0x60] sm:$0xff]   ;;  %v11888_v34 = vld [vmem:[%s16270_s23 + $0xd0] sm:$0xff]  }
  0x33   : > { %745 = vst.msk [vmem:[#allocation4 + $0x70] sm:$0xff] %vm655_vm0, %v12944_v3  ;;  %747 = vst.msk [vmem:[#allocation4 + $0x80] sm:$0xff] %vm655_vm0, %v12944_v3  ;;  %v11889_v35 = vld [vmem:[%s16270_s23 + $0x20] sm:$0xff]   ;;  %v11890_v36 = vld [vmem:[%s16270_s23 + $0x90] sm:$0xff]  }
  0x34   : > { %749 = vst.msk [vmem:[#allocation4 + $0x90] sm:$0xff] %vm655_vm0, %v12944_v3  ;;  %751 = vst.msk [vmem:[#allocation6] sm:$0xff] %vm655_vm0, %v12944_v3  ;;  %11046 = vmatpush3.bf16.msra.mxu0 %v11878_v24  ;;  %v11891_v37 = vld [vmem:[%s16270_s23 + $0x68] sm:$0xff]   ;;  %v11892_v38 = vld [vmem:[%s16270_s23 + $0xd8] sm:$0xff]  }
  0x35   : > { %753 = vst.msk [vmem:[#allocation6 + $0x10] sm:$0xff] %vm655_vm0, %v12944_v3  ;;  %755 = vst.msk [vmem:[#allocation6 + $0x20] sm:$0xff] %vm655_vm0, %v12944_v3  ;;  %11047 = vmatprep.subr.bf16.mxu0 %v11879_v25  ;;  %11086 = vmatpush3.bf16.msra.mxu1 %v11886_v32  ;;  %v11893_v39 = vld [vmem:[%s16270_s23 + $0x28] sm:$0xff]   ;;  %v11894_v40 = vld [vmem:[%s16270_s23 + $0x98] sm:$0xff]  }
  0x36   : > { %757 = vst.msk [vmem:[#allocation6 + $0x30] sm:$0xff] %vm655_vm0, %v12944_v3  ;;  %759 = vst.msk [vmem:[#allocation6 + $0x40] sm:$0xff] %vm655_vm0, %v12944_v3  ;;  %11087 = vmatprep.subr.bf16.mxu1 %v11888_v34  ;;  %v11895_v41 = vld [vmem:[%s16270_s23 + $0x70] sm:$0xff]   ;;  %v11896_v42 = vld [vmem:[%s16270_s23 + $0xe0] sm:$0xff]  }
  0x37   : > { %761 = vst.msk [vmem:[#allocation6 + $0x50] sm:$0xff] %vm655_vm0, %v12944_v3  ;;  %763 = vst.msk [vmem:[#allocation6 + $0x60] sm:$0xff] %vm655_vm0, %v12944_v3  ;;  %11621 = vmatmul.mubr.msk.bf16.gmra.mrb[4].mxu0 %vm655_vm0, %v11862_v8  ;;  %v11897_v44 = vld [vmem:[%s16270_s23 + $0x30] sm:$0xff]   ;;  %v11898_v45 = vld [vmem:[%s16270_s23 + $0xa0] sm:$0xff]  }
  0x38   : > { %765 = vst.msk [vmem:[#allocation6 + $0x70] sm:$0xff] %vm655_vm0, %v12944_v3  ;;  %767 = vst.msk [vmem:[#allocation6 + $0x80] sm:$0xff] %vm655_vm0, %v12944_v3  ;;  %11624 = vmatprep.mubr.msk.bf16.mxu0 %vm655_vm0, %v11863_v9  ;;  %11048 = vmatpush3.bf16.msra.mxu0 %v11880_v27  ;;  %v11899_v46 = vld [vmem:[%s16270_s23 + $0x78] sm:$0xff]   ;;  %v11900_v47 = vld [vmem:[%s16270_s23 + $0xe8] sm:$0xff]  }
  0x39   : > { %771 = vst [vmem:[#allocation7] sm:$0x3f] %v12944_v3  ;;  %772 = vst [vmem:[#allocation7 + $0x8] sm:$0x3f] %v12944_v3  ;;  %11049 = vmatprep.subr.bf16.mxu0 %v11883_v29  ;;  %11088 = vmatpush3.bf16.msra.mxu1 %v11890_v36  ;;  %v11901_v48 = vld [vmem:[%s16270_s23 + $0x38] sm:$0xff]   ;;  %v11902_v49 = vld [vmem:[%s16270_s23 + $0xa8] sm:$0xff]  }
  0x3a   : > { %773 = vst [vmem:[#allocation7 + $0x10] sm:$0x3f] %v12944_v3  ;;  %774 = vst [vmem:[#allocation7 + $0x18] sm:$0x3f] %v12944_v3  ;;  %11089 = vmatprep.subr.bf16.mxu1 %v11892_v38  ;;  %v11903_v50 = vld [vmem:[%s16270_s23 + $0xf0] sm:$0xff]   ;;  %v11905_v52 = vld [vmem:[%s16270_s23 + $0xf8] sm:$0xff]  }
  0x3b   : > { %775 = vst [vmem:[#allocation7 + $0x20] sm:$0x3f] %v12944_v3  ;;  %776 = vst [vmem:[#allocation7 + $0x28] sm:$0x3f] %v12944_v3  ;;  %v11904_v51 = vld [vmem:[%s16270_s23 + $0xb0] sm:$0xff]   ;;  %v11906_v53 = vld [vmem:[%s16270_s23 + $0xb8] sm:$0xff]  }
  0x3c   : > { %777 = vst [vmem:[#allocation9] sm:$0x3f] %v12944_v3  ;;  %778 = vst [vmem:[#allocation9 + $0x8] sm:$0x3f] %v12944_v3  ;;  %11050 = vmatpush3.bf16.msra.mxu0 %v11885_v31  ;;  %v11907_v54 = vld [vmem:[%s16270_s23 + $0x140] sm:$0xff]  }
  0x3d   : > { %779 = vst [vmem:[#allocation9 + $0x10] sm:$0x3f] %v12944_v3  ;;  %780 = vst [vmem:[#allocation9 + $0x18] sm:$0x3f] %v12944_v3  ;;  %11051 = vmatprep.subr.bf16.mxu0 %v11887_v33  ;;  %11090 = vmatpush3.bf16.msra.mxu1 %v11894_v40  ;;  %v11913_v55 = vld [vmem:[%s16270_s23 + $0x1c0] sm:$0xff]  }
  0x3e   : > { %781 = vst [vmem:[#allocation9 + $0x20] sm:$0x3f] %v12944_v3  ;;  %783 = vst [vmem:[#allocation10] sm:$0xff] %v12944_v3  ;;  %11091 = vmatprep.subr.bf16.mxu1 %v11896_v42  ;;  %v1273_v4 = vld [vmem:[#allocation2 + $0x1] ss:$2 sm:$0xff] }
  0x3f   : > { %784 = vst [vmem:[#allocation10 + $0x8] sm:$0xff] %v12944_v3  ;;  %785 = vst [vmem:[#allocation10 + $0x10] sm:$0xff] %v12944_v3  ;;  %11625 = vmatmul.mubr.msk.bf16.gmra.mrb[8].mxu0 %vm655_vm0, %v11864_v10 }
  0x40   : > { %786 = vst [vmem:[#allocation10 + $0x18] sm:$0xff] %v12944_v3  ;;  %11628 = vmatprep.mubr.msk.bf16.mxu0 %vm655_vm0, %v11865_v11  ;;  %665 = vst.msk [vmem:[#allocation2 + $0x40] sm:$0x3] %vm658_vm1, %v12944_v3  ;;  %11052 = vmatpush3.bf16.msra.mxu0 %v11889_v35 }
  0x41   : > { %659 = vst.msk [vmem:[#allocation2 + $0x10] sm:$0x3] %vm658_vm1, %v12944_v3  ;;  %662 = vst.msk [vmem:[#allocation2 + $0x28] sm:$0x3] %vm658_vm1, %v12944_v3  ;;  %11053 = vmatprep.subr.bf16.mxu0 %v11891_v37  ;;  %11092 = vmatpush3.bf16.msra.mxu1 %v11898_v45 }
  0x42   : > { %668 = vst.msk [vmem:[#allocation2 + $0x58] sm:$0x3] %vm658_vm1, %v12944_v3  ;;  %671 = vst.msk [vmem:[#allocation2 + $0x70] sm:$0x3] %vm658_vm1, %v12944_v3  ;;  %11093 = vmatprep.subr.bf16.mxu1 %v11900_v47 }
  0x43   : > { %674 = vst.msk [vmem:[#allocation2 + $0x88] sm:$0x3] %vm658_vm1, %v12944_v3  ;;  %677 = vst.msk [vmem:[#allocation2 + $0xa0] sm:$0x3] %vm658_vm1, %v12944_v3 }
  0x44   : > { %680 = vst.msk [vmem:[#allocation2 + $0xb8] sm:$0x3] %vm658_vm1, %v12944_v3  ;;  %683 = vst.msk [vmem:[#allocation2 + $0xd0] sm:$0x3] %vm658_vm1, %v12944_v3  ;;  %11054 = vmatpush3.bf16.msra.mxu0 %v11893_v39 }
  0x45   : > { %686 = vst.msk [vmem:[#allocation2 + $0xe8] sm:$0x3] %vm658_vm1, %v12944_v3  ;;  %689 = vst.msk [vmem:[#allocation2 + $0x100] sm:$0x3] %vm658_vm1, %v12944_v3  ;;  %11055 = vmatprep.subr.bf16.mxu0 %v11895_v41  ;;  %11094 = vmatpush3.bf16.msra.mxu1 %v11902_v49 }
  0x46   : > { %692 = vst.msk [vmem:[#allocation2 + $0x118] sm:$0x3] %vm658_vm1, %v12944_v3  ;;  %695 = vst.msk [vmem:[#allocation2 + $0x130] sm:$0x3] %vm658_vm1, %v12944_v3  ;;  %11095 = vmatprep.subr.bf16.mxu1 %v11903_v50 }
  0x47   : > { %11629 = vmatmul.mubr.msk.bf16.gmra.mrb[12].mxu0 %vm655_vm0, %v11866_v12  ;;  %698 = vst.msk [vmem:[#allocation2 + $0x148] sm:$0x3] %vm658_vm1, %v12944_v3  ;;  %701 = vst.msk [vmem:[#allocation2 + $0x160] sm:$0x3] %vm658_vm1, %v12944_v3 }
  0x48   : > { %11632 = vmatprep.mubr.msk.bf16.mxu0 %vm655_vm0, %v11867_v13  ;;  %704 = vst.msk [vmem:[#allocation2 + $0x178] sm:$0x3] %vm658_vm1, %v12944_v3  ;;  %707 = vst.msk [vmem:[#allocation2 + $0x190] sm:$0x3] %vm658_vm1, %v12944_v3  ;;  %11056 = vmatpush3.bf16.msra.mxu0 %v11897_v44  ;;  %v1297_v7 = vld [vmem:[#allocation2 + $0x2] ss:$2 sm:$0xff] }
  0x49   : > { %712 = vst.msk [vmem:[#allocation3 + $0x8] sm:$0x3] %vm658_vm1, %v12944_v3  ;;  %714 = vst.msk [vmem:[#allocation3 + $0x18] sm:$0x3] %vm658_vm1, %v12944_v3  ;;  %11057 = vmatprep.subr.bf16.mxu0 %v11899_v46  ;;  %11096 = vmatpush3.bf16.msra.mxu1 %v11904_v51 }
  0x4a   : > { %716 = vst.msk [vmem:[#allocation3 + $0x28] sm:$0x3] %vm658_vm1, %v12944_v3  ;;  %718 = vst.msk [vmem:[#allocation3 + $0x38] sm:$0x3] %vm658_vm1, %v12944_v3  ;;  %11097 = vmatprep.subr.bf16.mxu1 %v11905_v52 }
  0x4b   : > { %720 = vst.msk [vmem:[#allocation3 + $0x48] sm:$0x3] %vm658_vm1, %v12944_v3  ;;  %722 = vst.msk [vmem:[#allocation3 + $0x58] sm:$0x3] %vm658_vm1, %v12944_v3 }
  0x4c   : > { %724 = vst.msk [vmem:[#allocation3 + $0x68] sm:$0x3] %vm658_vm1, %v12944_v3  ;;  %726 = vst.msk [vmem:[#allocation3 + $0x78] sm:$0x3] %vm658_vm1, %v12944_v3  ;;  %11058 = vmatpush3.bf16.msra.mxu0 %v11901_v48 }
  0x4d   : > { %728 = vst.msk [vmem:[#allocation3 + $0x88] sm:$0x3] %vm658_vm1, %v12944_v3  ;;  %730 = vst.msk [vmem:[#allocation3 + $0x98] sm:$0x3] %vm658_vm1, %v12944_v3  ;;  %11098 = vmatpush3.bf16.msra.mxu1 %v11906_v53  ;;  %11123 = vmatprep.subr.bf16.mxu0 %v11907_v54 }
  0x4e   : > { %732 = vst.msk [vmem:[#allocation4 + $0x8] sm:$0x3] %vm658_vm1, %v12944_v3  ;;  %734 = vst.msk [vmem:[#allocation4 + $0x18] sm:$0x3] %vm658_vm1, %v12944_v3  ;;  %11163 = vmatprep.subr.bf16.mxu1 %v11913_v55 }
  0x4f   : > { %11633 = vmatmul.mubr.msk.bf16.gmra.mrb[16].mxu0 %vm655_vm0, %v11868_v14  ;;  %736 = vst.msk [vmem:[#allocation4 + $0x28] sm:$0x3] %vm658_vm1, %v12944_v3  ;;  %738 = vst.msk [vmem:[#allocation4 + $0x38] sm:$0x3] %vm658_vm1, %v12944_v3 }
  0x50   : > { %11636 = vmatprep.mubr.msk.bf16.mxu0 %vm655_vm0, %v11869_v15  ;;  %740 = vst.msk [vmem:[#allocation4 + $0x48] sm:$0x3] %vm658_vm1, %v12944_v3  ;;  %742 = vst.msk [vmem:[#allocation4 + $0x58] sm:$0x3] %vm658_vm1, %v12944_v3 }
  0x51   : > { %744 = vst.msk [vmem:[#allocation4 + $0x68] sm:$0x3] %vm658_vm1, %v12944_v3  ;;  %746 = vst.msk [vmem:[#allocation4 + $0x78] sm:$0x3] %vm658_vm1, %v12944_v3 }
  0x52   : > { %748 = vst.msk [vmem:[#allocation4 + $0x88] sm:$0x3] %vm658_vm1, %v12944_v3  ;;  %750 = vst.msk [vmem:[#allocation4 + $0x98] sm:$0x3] %vm658_vm1, %v12944_v3 }
  0x53   : > { %752 = vst.msk [vmem:[#allocation6 + $0x8] sm:$0x3] %vm658_vm1, %v12944_v3  ;;  %754 = vst.msk [vmem:[#allocation6 + $0x18] sm:$0x3] %vm658_vm1, %v12944_v3 }
  0x54   : > { %756 = vst.msk [vmem:[#allocation6 + $0x28] sm:$0x3] %vm658_vm1, %v12944_v3  ;;  %758 = vst.msk [vmem:[#allocation6 + $0x38] sm:$0x3] %vm658_vm1, %v12944_v3 }
  0x55   : > { %760 = vst.msk [vmem:[#allocation6 + $0x48] sm:$0x3] %vm658_vm1, %v12944_v3  ;;  %762 = vst.msk [vmem:[#allocation6 + $0x58] sm:$0x3] %vm658_vm1, %v12944_v3 }
  0x56   : > { %764 = vst.msk [vmem:[#allocation6 + $0x68] sm:$0x3] %vm658_vm1, %v12944_v3  ;;  %766 = vst.msk [vmem:[#allocation6 + $0x78] sm:$0x3] %vm658_vm1, %v12944_v3 }
  0x57   : > { %11637 = vmatmul.mubr.msk.bf16.gmra.mrb[20].mxu0 %vm655_vm0, %v11870_v16  ;;  %768 = vst.msk [vmem:[#allocation6 + $0x88] sm:$0x3] %vm658_vm1, %v12944_v3  ;;  %788 = vst [vmem:[#allocation5 + $0x8] sm:$0xff] %v12945_v43  ;;  %v1257_v3 = vld [vmem:[#allocation2] ss:$2 sm:$0xff] }
  0x58   : > { %11640 = vmatprep.mubr.msk.bf16.mxu0 %vm655_vm0, %v11871_v17  ;;  %787 = vst [vmem:[#allocation5] sm:$0xff] %v12945_v43  ;;  %789 = vst [vmem:[#allocation5 + $0x10] sm:$0xff] %v12945_v43  ;;  %v1288_v9 = vmax.f32 %v1257_v3, %v1273_v4 }
  0x59   : > { %790 = vst [vmem:[#allocation5 + $0x18] sm:$0xff] %v12945_v43  ;;  %791 = vst [vmem:[#allocation5 + $0x20] sm:$0xff] %v12945_v43 }
  0x5a   : > { %792 = vst [vmem:[#allocation5 + $0x28] sm:$0xff] %v12945_v43  ;;  %793 = vst [vmem:[#allocation5 + $0x30] sm:$0xff] %v12945_v43 }
  0x5b   : > { %794 = vst [vmem:[#allocation5 + $0x38] sm:$0xff] %v12945_v43  ;;  %795 = vst [vmem:[#allocation5 + $0x40] sm:$0xff] %v12945_v43 }
  0x5c   : > { %796 = vst [vmem:[#allocation5 + $0x48] sm:$0xff] %v12945_v43  ;;  %797 = vst [vmem:[#allocation5 + $0x50] sm:$0xff] %v12945_v43 }
  0x5d   : > { %798 = vst [vmem:[#allocation5 + $0x58] sm:$0xff] %v12945_v43  ;;  %799 = vst [vmem:[#allocation5 + $0x60] sm:$0xff] %v12945_v43 }
  0x5e   : > { %800 = vst [vmem:[#allocation5 + $0x68] sm:$0xff] %v12945_v43  ;;  %801 = vst [vmem:[#allocation5 + $0x70] sm:$0xff] %v12945_v43 }
  0x5f   : > { %11641 = vmatmul.mubr.msk.bf16.gmra.mrb[24].mxu0 %vm655_vm0, %v11872_v18  ;;  %802 = vst [vmem:[#allocation5 + $0x78] sm:$0xff] %v12945_v43  ;;  %803 = vst [vmem:[#allocation5 + $0x80] sm:$0xff] %v12945_v43  ;;  %v1312_v18 = vmax.f32 %v1288_v9, %v1297_v7 }
  0x60   : > { %11644 = vmatprep.mubr.msk.bf16.mxu0 %vm655_vm0, %v11873_v19  ;;  %804 = vst [vmem:[#allocation5 + $0x88] sm:$0xff] %v12945_v43  ;;  %805 = vst [vmem:[#allocation5 + $0x90] sm:$0xff] %v12945_v43 }
  0x61   : > { %806 = vst [vmem:[#allocation5 + $0x98] sm:$0xff] %v12945_v43  ;;  %807 = vst [vmem:[#allocation5 + $0xa0] sm:$0xff] %v12945_v43 }
  0x62   : > { %808 = vst [vmem:[#allocation5 + $0xa8] sm:$0xff] %v12945_v43  ;;  %809 = vst [vmem:[#allocation5 + $0xb0] sm:$0xff] %v12945_v43 }
  0x63   : > { %810 = vst [vmem:[#allocation5 + $0xb8] sm:$0xff] %v12945_v43  ;;  %811 = vst [vmem:[#allocation5 + $0xc0] sm:$0xff] %v12945_v43 }
  0x64   : > { %812 = vst [vmem:[#allocation5 + $0xc8] sm:$0xff] %v12945_v43  ;;  %813 = vst [vmem:[#allocation5 + $0xd0] sm:$0xff] %v12945_v43 }
  0x65   : > { %814 = vst [vmem:[#allocation5 + $0xd8] sm:$0xff] %v12945_v43  ;;  %815 = vst [vmem:[#allocation5 + $0xe0] sm:$0xff] %v12945_v43 }
  0x66   : > { %816 = vst [vmem:[#allocation5 + $0xe8] sm:$0xff] %v12945_v43  ;;  %817 = vst [vmem:[#allocation5 + $0xf0] sm:$0xff] %v12945_v43 }
  0x67   : > { %11645 = vmatmul.mubr.msk.bf16.gmra.mrb[28].mxu0 %vm655_vm0, %v11874_v20  ;;  %818 = vst [vmem:[#allocation5 + $0xf8] sm:$0xff] %v12945_v43  ;;  %819 = vst [vmem:[#allocation5 + $0x100] sm:$0xff] %v12945_v43 }
  0x68   : > { %820 = vst [vmem:[#allocation5 + $0x108] sm:$0xff] %v12945_v43  ;;  %821 = vst [vmem:[#allocation5 + $0x110] sm:$0xff] %v12945_v43 }
  0x69   : > { %822 = vst [vmem:[#allocation5 + $0x118] sm:$0xff] %v12945_v43  ;;  %823 = vst [vmem:[#allocation8] sm:$0xff] %v12945_v43 }
  0x6a   : > { %824 = vst [vmem:[#allocation8 + $0x8] sm:$0xff] %v12945_v43  ;;  %825 = vst [vmem:[#allocation8 + $0x10] sm:$0xff] %v12945_v43 }
  0x6b   : > { %826 = vst [vmem:[#allocation8 + $0x18] sm:$0xff] %v12945_v43  ;;  %827 = vst [vmem:[#allocation8 + $0x20] sm:$0xff] %v12945_v43 }
  0x6c   : > { %828 = vst [vmem:[#allocation8 + $0x28] sm:$0xff] %v12945_v43  ;;  %829 = vst [vmem:[#allocation8 + $0x30] sm:$0xff] %v12945_v43 }
  0x6d   : > { %830 = vst [vmem:[#allocation8 + $0x38] sm:$0xff] %v12945_v43  ;;  %831 = vst [vmem:[#allocation8 + $0x40] sm:$0xff] %v12945_v43 }
  0x6e   : > { %vm7084_vm5 = vmor %vm7082_vm3, %vm7083_vm4 }
  0x6f   : > { %vm7086_vm7 = vmor %vm7084_vm5, %vm7085_vm6 }
  0x70   : > { %vm15316_vm9 = vmor %vm7086_vm7, %vm7087_vm8 }
 0x102   : > { %v11618_v57 = vpop.f32.mrb[0].mxu0 }
 0x103   : > { %v1074_v58 = vadd.f32 %v11618_v57, %v13554_v56  ;;  %v1065_v59 = vpop.f32.mrb[1].mxu0 }
 0x104   : > { %v1066_v60 = vadd.f32 %v13554_v56, %v1065_v59  ;;  %v11619_v61 = vpop.f32.mrb[2].mxu0 }
 0x105   : > { %v1194_v62 = vmax.f32 %v1074_v58, 0.0  ;;  %v1077_v63 = vadd.f32 %v11619_v61, %v13554_v56  ;;  %v1068_v0 = vpop.f32.mrb[3].mxu0 }
 0x106   : > { %v1192_v1 = vmax.f32 %v1066_v60, 0.0  ;;  %v1069_v2 = vadd.f32 %v13554_v56, %v1068_v0 }
 0x107   : > { %1227 = vst.msk [vmem:[#allocation2 + $0x31] sm:$0xff] %vm655_vm0, %v1194_v62  ;;  %v1195_v5 = vmax.f32 %v1077_v63, 0.0 }
 0x108   : > { %1225 = vst.msk [vmem:[#allocation2 + $0x19] sm:$0xff] %vm655_vm0, %v1192_v1  ;;  %v1193_v6 = vmax.f32 %v1069_v2, 0.0 }
 0x109   : > { %1228 = vst.msk [vmem:[#allocation2 + $0x39] sm:$0xff] %vm655_vm0, %v1195_v5 }
 0x10a   : > { %1226 = vst.msk [vmem:[#allocation2 + $0x21] sm:$0xff] %vm655_vm0, %v1193_v6  ;;  %v11622_v8 = vpop.f32.mrb[4].mxu0 }
 0x10b   : > { %v1090_v10 = vadd.f32 %v11622_v8, %v13554_v56  ;;  %v1081_v11 = vpop.f32.mrb[5].mxu0 }
 0x10c   : > { %v1082_v12 = vadd.f32 %v13554_v56, %v1081_v11  ;;  %v11623_v13 = vpop.f32.mrb[6].mxu0 }
 0x10d   : > { %v1198_v14 = vmax.f32 %v1090_v10, 0.0  ;;  %v1093_v15 = vadd.f32 %v11623_v13, %v13554_v56  ;;  %v1084_v16 = vpop.f32.mrb[7].mxu0 }
 0x10e   : > { %v1196_v17 = vmax.f32 %v1082_v12, 0.0  ;;  %v1085_v20 = vadd.f32 %v13554_v56, %v1084_v16  ;;  %v1488_v12 = vld [vmem:[#allocation3 + $0x1] sm:$0xff] }
 0x10f   : > { %1231 = vst.msk [vmem:[#allocation2 + $0x61] sm:$0xff] %vm655_vm0, %v1198_v14  ;;  %v1199_v19 = vmax.f32 %v1093_v15, 0.0 }
 0x110   : > { %1229 = vst.msk [vmem:[#allocation2 + $0x49] sm:$0xff] %vm655_vm0, %v1196_v17  ;;  %v1259_v21 = vld [vmem:[#allocation2 + $0x30] ss:$2 sm:$0xff]  ;;  %v1275_v22 = vld [vmem:[#allocation2 + $0x31] ss:$2 sm:$0xff]  ;;  %v1197_v26 = vmax.f32 %v1085_v20, 0.0 }
 0x111   : > { %1232 = vst.msk [vmem:[#allocation2 + $0x69] sm:$0xff] %vm655_vm0, %v1199_v19  ;;  %v1320_v23 = vld [vmem:[#allocation2 + $0x18] ss:$2 sm:$0xff]  ;;  %v1344_v24 = vld [vmem:[#allocation2 + $0x19] ss:$2 sm:$0xff]  ;;  %v1289_v37 = vmax.f32 %v1259_v21, %v1275_v22  ;;  %v1472_v20 = vld [vmem:[#allocation3] sm:$0xff] }
 0x112   : > { %v1335_v25 = vmax.f32 %v1312_v18, %v1320_v23  ;;  %v11626_v27 = vpop.f32.mrb[8].mxu0  ;;  %v1368_v28 = vld [vmem:[#allocation2 + $0x1a] ss:$2 sm:$0xff]  ;;  %1230 = vst.msk [vmem:[#allocation2 + $0x51] sm:$0xff] %vm655_vm0, %v1197_v26  ;;  %v1416_v44 = vld [vmem:[#allocation2 + $0x31] ss:$2 sm:$0xff] }
 0x113   : > { %v1106_v29 = vadd.f32 %v11626_v27, %v13554_v56  ;;  %v1097_v30 = vpop.f32.mrb[9].mxu0  ;;  %v1392_v41 = vld [vmem:[#allocation2 + $0x30] ss:$2 sm:$0xff] }
 0x114   : > { %v1359_v31 = vmax.f32 %v1335_v25, %v1344_v24  ;;  %v1098_v32 = vadd.f32 %v13554_v56, %v1097_v30  ;;  %v11627_v33 = vpop.f32.mrb[10].mxu0  ;;  %v1299_v42 = vld [vmem:[#allocation2 + $0x32] ss:$2 sm:$0xff] }
 0x115   : > { %v1202_v34 = vmax.f32 %v1106_v29, 0.0  ;;  %v1109_v35 = vadd.f32 %v11627_v33, %v13554_v56  ;;  %v1100_v36 = vpop.f32.mrb[11].mxu0  ;;  %v1440_v46 = vld [vmem:[#allocation2 + $0x32] ss:$2 sm:$0xff]  ;;  %v1313_v50 = vmax.f32 %v1289_v37, %v1299_v42 }
 0x116   : > { %v1383_v38 = vmax.f32 %v1359_v31, %v1368_v28  ;;  %v1200_v39 = vmax.f32 %v1098_v32, 0.0  ;;  %v1101_v40 = vadd.f32 %v13554_v56, %v1100_v36  ;;  %v1504_v21 = vld [vmem:[#allocation3 + $0x2] sm:$0xff] }
 0x117   : > { %1235 = vst.msk [vmem:[#allocation2 + $0x91] sm:$0xff] %vm655_vm0, %v1202_v34  ;;  %v1203_v47 = vmax.f32 %v1109_v35, 0.0 }
 0x118   : > { %v1407_v45 = vmax.f32 %v1383_v38, %v1392_v41  ;;  %1233 = vst.msk [vmem:[#allocation2 + $0x79] sm:$0xff] %vm655_vm0, %v1200_v39  ;;  %v1201_v48 = vmax.f32 %v1101_v40, 0.0  ;;  %v1261_v52 = vld [vmem:[#allocation2 + $0x60] ss:$2 sm:$0xff]  ;;  %v1277_v55 = vld [vmem:[#allocation2 + $0x61] ss:$2 sm:$0xff] }
 0x119   : > { %v1322_v57 = vld [vmem:[#allocation2 + $0x48] ss:$2 sm:$0xff]  ;;  %v1346_v58 = vld [vmem:[#allocation2 + $0x49] ss:$2 sm:$0xff]  ;;  %1236 = vst.msk [vmem:[#allocation2 + $0x99] sm:$0xff] %vm655_vm0, %v1203_v47  ;;  %v1290_v6 = vmax.f32 %v1261_v52, %v1277_v55 }
 0x11a   : > { %v11630_v49 = vpop.f32.mrb[12].mxu0  ;;  %v1431_v51 = vmax.f32 %v1407_v45, %v1416_v44  ;;  %1234 = vst.msk [vmem:[#allocation2 + $0x81] sm:$0xff] %vm655_vm0, %v1201_v48  ;;  %v1336_v61 = vmax.f32 %v1313_v50, %v1322_v57  ;;  %v1370_v0 = vld [vmem:[#allocation2 + $0x4a] ss:$2 sm:$0xff]  ;;  %v1418_v19 = vld [vmem:[#allocation2 + $0x61] ss:$2 sm:$0xff] }
 0x11b   : > { %v1122_v53 = vadd.f32 %v11630_v49, %v13554_v56  ;;  %v1113_v54 = vpop.f32.mrb[13].mxu0  ;;  %v1394_v7 = vld [vmem:[#allocation2 + $0x60] ss:$2 sm:$0xff] }
 0x11c   : > { %v1114_v59 = vadd.f32 %v13554_v56, %v1113_v54  ;;  %v13582_v60 = vmax.f32 %v1431_v51, %v1440_v46  ;;  %v11631_v63 = vpop.f32.mrb[14].mxu0  ;;  %v1360_v4 = vmax.f32 %v1336_v61, %v1346_v58  ;;  %v1301_v13 = vld [vmem:[#allocation2 + $0x62] ss:$2 sm:$0xff] }
 0x11d   : > { %v1206_v62 = vmax.f32 %v1122_v53, 0.0  ;;  %v1125_v2 = vadd.f32 %v11631_v63, %v13554_v56  ;;  %v1116_v3 = vpop.f32.mrb[15].mxu0  ;;  %v1314_v18 = vmax.f32 %v1290_v6, %v1301_v13  ;;  %v1442_v22 = vld [vmem:[#allocation2 + $0x62] ss:$2 sm:$0xff] }
 0x11e   : > { %v1204_v1 = vmax.f32 %v1114_v59, 0.0  ;;  %1464 = vst.msk [vmem:[#allocation3 + $0x11] sm:$0xff] %vm655_vm0, %v13582_v60  ;;  %v1117_v5 = vadd.f32 %v13554_v56, %v1116_v3  ;;  %v1384_v9 = vmax.f32 %v1360_v4, %v1370_v0  ;;  %v11908_v0 = vld [vmem:[%s16270_s23 + $0x100] sm:$0xff]  }
 0x11f   : > { %1239 = vst.msk [vmem:[#allocation2 + $0xc1] sm:$0xff] %vm655_vm0, %v1206_v62  ;;  %v1207_v8 = vmax.f32 %v1125_v2, 0.0 }
 0x120   : > { %1237 = vst.msk [vmem:[#allocation2 + $0xa9] sm:$0xff] %vm655_vm0, %v1204_v1  ;;  %v1205_v10 = vmax.f32 %v1117_v5, 0.0  ;;  %v1408_v14 = vmax.f32 %v1384_v9, %v1394_v7  ;;  %v1263_v15 = vld [vmem:[#allocation2 + $0x90] ss:$2 sm:$0xff]  ;;  %v1279_v16 = vld [vmem:[#allocation2 + $0x91] ss:$2 sm:$0xff] }
 0x121   : > { %1240 = vst.msk [vmem:[#allocation2 + $0xc9] sm:$0xff] %vm655_vm0, %v1207_v8  ;;  %v1324_v24 = vld [vmem:[#allocation2 + $0x78] ss:$2 sm:$0xff]  ;;  %v1348_v25 = vld [vmem:[#allocation2 + $0x79] ss:$2 sm:$0xff]  ;;  %v1291_v26 = vmax.f32 %v1263_v15, %v1279_v16  ;;  %v11909_v7 = vld [vmem:[%s16270_s23 + $0x148] sm:$0xff]  }
 0x122   : > { %v11634_v11 = vpop.f32.mrb[16].mxu0  ;;  %1238 = vst.msk [vmem:[#allocation2 + $0xb1] sm:$0xff] %vm655_vm0, %v1205_v10  ;;  %v1432_v23 = vmax.f32 %v1408_v14, %v1418_v19  ;;  %v1337_v27 = vmax.f32 %v1314_v18, %v1324_v24  ;;  %v1303_v41 = vld [vmem:[#allocation2 + $0x92] ss:$2 sm:$0xff]  ;;  %v1420_v49 = vld [vmem:[#allocation2 + $0x91] ss:$2 sm:$0xff] }
 0x123   : > { %v1138_v17 = vadd.f32 %v11634_v11, %v13554_v56  ;;  %v1129_v29 = vpop.f32.mrb[17].mxu0  ;;  %v1372_v42 = vld [vmem:[#allocation2 + $0x7a] ss:$2 sm:$0xff]  ;;  %v1315_v46 = vmax.f32 %v1291_v26, %v1303_v41 }
 0x124   : > { %v13599_v33 = vmax.f32 %v1432_v23, %v1442_v22  ;;  %v11635_v34 = vpop.f32.mrb[18].mxu0  ;;  %v1361_v37 = vmax.f32 %v1337_v27, %v1348_v25  ;;  %v1130_v38 = vadd.f32 %v13554_v56, %v1129_v29  ;;  %v1396_v47 = vld [vmem:[#allocation2 + $0x90] ss:$2 sm:$0xff]  ;;  %v11910_v24 = vld [vmem:[%s16270_s23 + $0x108] sm:$0xff]  }
 0x125   : > { %v1210_v28 = vmax.f32 %v1138_v17, 0.0  ;;  %v13593_v30 = vld [vmem:[#allocation3 + $0x11] sm:$0xff]  ;;  %v1132_v39 = vpop.f32.mrb[19].mxu0  ;;  %v1141_v44 = vadd.f32 %v11635_v34, %v13554_v56  ;;  %v1444_v57 = vld [vmem:[#allocation2 + $0x92] ss:$2 sm:$0xff] }
 0x126   : > { %v13595_v31 = vld [vmem:[#allocation3 + $0x10] sm:$0xff]  ;;  %v1496_v35 = vpack.c.bf16 %v13593_v30, %v1488_v12  ;;  %1465 = vst.msk [vmem:[#allocation3 + $0x21] sm:$0xff] %vm655_vm0, %v13599_v33  ;;  %v1133_v45 = vadd.f32 %v13554_v56, %v1132_v39  ;;  %v1385_v48 = vmax.f32 %v1361_v37, %v1372_v42  ;;  %v1208_v54 = vmax.f32 %v1130_v38, 0.0 }
 0x127   : > { %v13597_v32 = vld [vmem:[#allocation3 + $0x12] sm:$0xff]  ;;  %v1480_v36 = vpack.c.bf16 %v13595_v31, %v1472_v20  ;;  %1243 = vst.msk [vmem:[#allocation2 + $0xf1] sm:$0xff] %vm655_vm0, %v1210_v28  ;;  %v1211_v59 = vmax.f32 %v1141_v44, 0.0  ;;  %v11911_v28 = vld [vmem:[%s16270_s23 + $0x150] sm:$0xff]  }
 0x128   : > { %v1512_v40 = vpack.c.bf16 %v13597_v32, %v1504_v21  ;;  %1500 = vst.msk [vmem:[#allocation5 + $0x8] sm:$0xff] %vm655_vm0, %v1496_v35  ;;  %v1409_v52 = vmax.f32 %v1385_v48, %v1396_v47  ;;  %v1209_v61 = vmax.f32 %v1133_v45, 0.0  ;;  %v1265_v2 = vld [vmem:[#allocation2 + $0xc0] ss:$2 sm:$0xff]  ;;  %v1281_v3 = vld [vmem:[#allocation2 + $0xc1] ss:$2 sm:$0xff] }
 0x129   : > { %1484 = vst.msk [vmem:[#allocation5] sm:$0xff] %vm655_vm0, %v1480_v36  ;;  %v1326_v50 = vld [vmem:[#allocation2 + $0xa8] ss:$2 sm:$0xff]  ;;  %v1350_v51 = vld [vmem:[#allocation2 + $0xa9] ss:$2 sm:$0xff]  ;;  %1241 = vst.msk [vmem:[#allocation2 + $0xd9] sm:$0xff] %vm655_vm0, %v1208_v54  ;;  %v1292_v34 = vmax.f32 %v1265_v2, %v1281_v3 }
 0x12a   : > { %1516 = vst.msk [vmem:[#allocation5 + $0x10] sm:$0xff] %vm655_vm0, %v1512_v40  ;;  %v1338_v53 = vmax.f32 %v1315_v46, %v1326_v50  ;;  %v11638_v55 = vpop.f32.mrb[20].mxu0  ;;  %v1374_v58 = vld [vmem:[#allocation2 + $0xaa] ss:$2 sm:$0xff]  ;;  %v1433_v1 = vmax.f32 %v1409_v52, %v1420_v49  ;;  %1244 = vst.msk [vmem:[#allocation2 + $0xf9] sm:$0xff] %vm655_vm0, %v1211_v59  ;;  %v11914_v2 = vld [vmem:[%s16270_s23 + $0x180] sm:$0xff]  }
 0x12b   : > { %v1154_v62 = vadd.f32 %v11638_v55, %v13554_v56  ;;  %v1145_v63 = vpop.f32.mrb[21].mxu0  ;;  %v1398_v8 = vld [vmem:[#allocation2 + $0xc0] ss:$2 sm:$0xff]  ;;  %1242 = vst.msk [vmem:[#allocation2 + $0xe1] sm:$0xff] %vm655_vm0, %v1209_v61  ;;  %v1422_v19 = vld [vmem:[#allocation2 + $0xc1] ss:$2 sm:$0xff] }
 0x12c   : > { %v1362_v4 = vmax.f32 %v1338_v53, %v1350_v51  ;;  %v1146_v5 = vadd.f32 %v13554_v56, %v1145_v63  ;;  %v11639_v6 = vpop.f32.mrb[22].mxu0  ;;  %v13625_v12 = vmax.f32 %v1433_v1, %v1444_v57  ;;  %v1446_v35 = vld [vmem:[#allocation2 + $0xc2] ss:$2 sm:$0xff]  ;;  %v11915_v51 = vld [vmem:[%s16270_s23 + $0x158] sm:$0xff]  }
 0x12d   : > { %v1214_v9 = vmax.f32 %v1154_v62, 0.0  ;;  %v1157_v10 = vadd.f32 %v11639_v6, %v13554_v56  ;;  %v1148_v11 = vpop.f32.mrb[23].mxu0  ;;  %v1521_v18 = vld [vmem:[#allocation3 + $0x20] sm:$0xff]  ;;  %v11916_v3 = vld [vmem:[%s16270_s23 + $0x118] sm:$0xff]  }
 0x12e   : > { %v1386_v13 = vmax.f32 %v1362_v4, %v1374_v58  ;;  %v1212_v14 = vmax.f32 %v1146_v5, 0.0  ;;  %v1149_v15 = vadd.f32 %v13554_v56, %v1148_v11  ;;  %v1528_v21 = vpack.c.bf16 %v1521_v18, %v13595_v31  ;;  %v1490_v22 = vld [vmem:[#allocation3 + $0x21] sm:$0xff]  ;;  %1466 = vst.msk [vmem:[#allocation3 + $0x31] sm:$0xff] %vm655_vm0, %v13625_v12  ;;  %v1305_v42 = vld [vmem:[#allocation2 + $0xc2] ss:$2 sm:$0xff] }
 0x12f   : > { %v1618_v16 = vld [vmem:[#allocation5 + $0x8] sm:$0xff]  ;;  %1247 = vst.msk [vmem:[#allocation2 + $0x121] sm:$0xff] %vm655_vm0, %v1214_v9  ;;  %v1215_v20 = vmax.f32 %v1157_v10, 0.0  ;;  %v1544_v31 = vpack.c.bf16 %v1490_v22, %v13593_v30  ;;  %v1316_v47 = vmax.f32 %v1292_v34, %v1305_v42  ;;  %v11912_v49 = vld [vmem:[%s16270_s23 + $0x110] sm:$0xff]   ;;  %v11919_v9 = vld [vmem:[%s16270_s23 + $0x160] sm:$0xff]  }
 0x130   : > { %v1617_v17 = vld [vmem:[#allocation5] sm:$0xff]  ;;  %2268 = vmatprep.mubr.bf16.mxu0 %v1618_v16  ;;  %v1410_v25 = vmax.f32 %v1386_v13, %v1398_v8  ;;  %1245 = vst.msk [vmem:[#allocation2 + $0x109] sm:$0xff] %vm655_vm0, %v1212_v14  ;;  %v1213_v26 = vmax.f32 %v1149_v15, 0.0  ;;  %1532 = vst.msk [vmem:[#allocation5 + $0x18] sm:$0xff] %vm655_vm0, %v1528_v21  ;;  %v11917_v8 = vld [vmem:[%s16270_s23 + $0x1c8] sm:$0xff]  }
 0x131   : > { %v1506_v23 = vld [vmem:[#allocation3 + $0x22] sm:$0xff]  ;;  %2269 = vmatmul.mubr.bf16.vlgmr.msra.gmra.mrb[32].mxu0 %v1617_v17  ;;  %1248 = vst.msk [vmem:[#allocation2 + $0x129] sm:$0xff] %vm655_vm0, %v1215_v20  ;;  %1548 = vst.msk [vmem:[#allocation5 + $0x20] sm:$0xff] %vm655_vm0, %v1544_v31  ;;  %v11920_v21 = vld [vmem:[%s16270_s23 + $0x120] sm:$0xff]  }
 0x132   : > { %v11642_v27 = vpop.f32.mrb[24].mxu0  ;;  %v1560_v29 = vpack.c.bf16 %v1506_v23, %v13597_v32  ;;  %11124 = vmatpush3.bf16.msra.mxu0 %v11908_v0  ;;  %v1434_v38 = vmax.f32 %v1410_v25, %v1422_v19  ;;  %1246 = vst.msk [vmem:[#allocation2 + $0x111] sm:$0xff] %vm655_vm0, %v1213_v26  ;;  %v1267_v45 = vld [vmem:[#allocation2 + $0xf0] ss:$2 sm:$0xff]  ;;  %v1283_v46 = vld [vmem:[#allocation2 + $0xf1] ss:$2 sm:$0xff] }
 0x133   : > { %v1170_v36 = vadd.f32 %v11642_v27, %v13554_v56  ;;  %v1161_v37 = vpop.f32.mrb[25].mxu0  ;;  %11125 = vmatprep.subr.bf16.mxu0 %v11909_v7  ;;  %v1293_v48 = vmax.f32 %v1267_v45, %v1283_v46  ;;  %v1328_v50 = vld [vmem:[#allocation2 + $0xd8] ss:$2 sm:$0xff]  ;;  %v1352_v62 = vld [vmem:[#allocation2 + $0xd9] ss:$2 sm:$0xff]  ;;  %v11918_v27 = vld [vmem:[%s16270_s23 + $0x188] sm:$0xff]  }
 0x134   : > { %v11643_v39 = vpop.f32.mrb[26].mxu0  ;;  %1564 = vst.msk [vmem:[#allocation5 + $0x28] sm:$0xff] %vm655_vm0, %v1560_v29  ;;  %v1162_v32 = vadd.f32 %v13554_v56, %v1161_v37  ;;  %v13649_v44 = vmax.f32 %v1434_v38, %v1446_v35  ;;  %v1339_v52 = vmax.f32 %v1316_v47, %v1328_v50  ;;  %v1307_v61 = vld [vmem:[#allocation2 + $0xf2] ss:$2 sm:$0xff] }
 0x135   : > { %v1218_v30 = vmax.f32 %v1170_v36, 0.0  ;;  %v1173_v40 = vadd.f32 %v11643_v39, %v13554_v56  ;;  %v1164_v41 = vpop.f32.mrb[27].mxu0  ;;  %v13661_v57 = vld [vmem:[#allocation3 + $0x31] sm:$0xff]  ;;  %v1317_v4 = vmax.f32 %v1293_v48, %v1307_v61  ;;  %v1400_v10 = vld [vmem:[#allocation2 + $0xf0] ss:$2 sm:$0xff] }
 0x136   : > { %11126 = vmatpush3.bf16.msra.mxu0 %v11910_v24  ;;  %1467 = vst.msk [vmem:[#allocation3 + $0x41] sm:$0xff] %vm655_vm0, %v13649_v44  ;;  %v1216_v53 = vmax.f32 %v1162_v32, 0.0  ;;  %v1165_v55 = vadd.f32 %v13554_v56, %v1164_v41  ;;  %v13663_v58 = vld [vmem:[#allocation3 + $0x30] sm:$0xff]  ;;  %v1497_v63 = vpack.c.bf16 %v13661_v57, %v1490_v22  ;;  %v1363_v5 = vmax.f32 %v1339_v52, %v1352_v62  ;;  %v1424_v22 = vld [vmem:[#allocation2 + $0xf1] ss:$2 sm:$0xff]  ;;  %v11924_v52 = vld [vmem:[%s16270_s23 + $0x128] sm:$0xff]  }
 0x137   : > { %1251 = vst.msk [vmem:[#allocation2 + $0x151] sm:$0xff] %vm655_vm0, %v1218_v30  ;;  %11127 = vmatprep.subr.bf16.mxu0 %v11911_v28  ;;  %v1219_v54 = vmax.f32 %v1173_v40, 0.0  ;;  %v13665_v59 = vld [vmem:[#allocation3 + $0x32] sm:$0xff]  ;;  %v1481_v0 = vpack.c.bf16 %v13663_v58, %v1521_v18  ;;  %v11921_v39 = vld [vmem:[%s16270_s23 + $0x1d0] sm:$0xff]  }
 0x138   : > { %v1513_v1 = vpack.c.bf16 %v13665_v59, %v1506_v23  ;;  %v13676_v6 = vld [vmem:[#allocation2 + $0x120] ss:$2 sm:$0xff]  ;;  %v13678_v7 = vld [vmem:[#allocation2 + $0x121] ss:$2 sm:$0xff]  ;;  %1249 = vst.msk [vmem:[#allocation2 + $0x139] sm:$0xff] %vm655_vm0, %v1216_v53  ;;  %1501 = vst.msk [vmem:[#allocation5 + $0x50] sm:$0xff] %vm655_vm0, %v1497_v63 }
 0x139   : > { %1252 = vst.msk [vmem:[#allocation2 + $0x159] sm:$0xff] %vm655_vm0, %v1219_v54  ;;  %v1376_v11 = vld [vmem:[#allocation2 + $0xda] ss:$2 sm:$0xff]  ;;  %1485 = vst.msk [vmem:[#allocation5 + $0x48] sm:$0xff] %vm655_vm0, %v1481_v0  ;;  %v1354_v16 = vld [vmem:[#allocation2 + $0x109] ss:$2 sm:$0xff]  ;;  %v1294_v23 = vmax.f32 %v13676_v6, %v13678_v7 }
 0x13a   : > { %11128 = vmatpush3.bf16.msra.mxu0 %v11912_v49  ;;  %v1330_v13 = vld [vmem:[#allocation2 + $0x108] ss:$2 sm:$0xff]  ;;  %1517 = vst.msk [vmem:[#allocation5 + $0x58] sm:$0xff] %vm655_vm0, %v1513_v1  ;;  %1597 = vst.msk [vmem:[#allocation5 + $0x38] sm:$0xff] %vm655_vm0, %v1497_v63  ;;  %v1387_v14 = vmax.f32 %v1363_v5, %v1376_v11  ;;  %v1217_v17 = vmax.f32 %v1165_v55, 0.0  ;;  %v1619_v19 = vld [vmem:[#allocation5 + $0x10] sm:$0xff] }
 0x13b   : > { %11129 = vmatprep.subr.bf16.mxu0 %v11915_v51  ;;  %1581 = vst.msk [vmem:[#allocation5 + $0x30] sm:$0xff] %vm655_vm0, %v1481_v0  ;;  %1613 = vst.msk [vmem:[#allocation5 + $0x40] sm:$0xff] %vm655_vm0, %v1513_v1  ;;  %v1340_v15 = vmax.f32 %v1317_v4, %v1330_v13  ;;  %v1620_v18 = vld [vmem:[#allocation5 + $0x18] sm:$0xff]  ;;  %v11646_v20 = vpop.f32.mrb[28].mxu0  ;;  %v1448_v49 = vld [vmem:[#allocation2 + $0xf2] ss:$2 sm:$0xff] }
 0x13c   : > { %v1378_v24 = vld [vmem:[#allocation2 + $0x10a] ss:$2 sm:$0xff]  ;;  %2333 = vmatprep.mubr.bf16.mxu1 %v1620_v18  ;;  %v1186_v25 = vadd.f32 %v11646_v20, %v13554_v56  ;;  %v1177_v26 = vpop.f32.mrb[29].mxu0  ;;  %v1411_v29 = vmax.f32 %v1387_v14, %v1400_v10  ;;  %1250 = vst.msk [vmem:[#allocation2 + $0x141] sm:$0xff] %vm655_vm0, %v1217_v17  ;;  %v1426_v61 = vld [vmem:[#allocation2 + $0x121] ss:$2 sm:$0xff] }
 0x13d   : > { %v11923_v28 = vld [vmem:[%s16270_s23 + $0x168] sm:$0xff]   ;;  %v1364_v31 = vmax.f32 %v1340_v15, %v1354_v16  ;;  %2334 = vmatmul.mubr.bf16.vlgmr.msra.gmra.mrb[0].mxu1 %v1619_v19  ;;  %v1178_v34 = vadd.f32 %v13554_v56, %v1177_v26  ;;  %v11647_v35 = vpop.f32.mrb[30].mxu0  ;;  %v13708_v36 = vld [vmem:[#allocation3 + $0x40] sm:$0xff]  ;;  %v11931_v10 = vld [vmem:[%s16270_s23 + $0x178] sm:$0xff]  }
 0x13e   : > { %v13710_v37 = vld [vmem:[#allocation3 + $0x41] sm:$0xff]  ;;  %11130 = vmatpush3.bf16.msra.mxu0 %v11916_v3  ;;  %v1222_v30 = vmax.f32 %v1186_v25, 0.0  ;;  %v1189_v32 = vadd.f32 %v11647_v35, %v13554_v56  ;;  %v1180_v40 = vpop.f32.mrb[31].mxu0  ;;  %v1529_v41 = vpack.c.bf16 %v13708_v36, %v13663_v58  ;;  %11164 = vmatpush3.bf16.msra.mxu1 %v11914_v2  ;;  %v1435_v45 = vmax.f32 %v1411_v29, %v1424_v22  ;;  %v1402_v50 = vld [vmem:[#allocation2 + $0x120] ss:$2 sm:$0xff] }
 0x13f   : > { %v13712_v38 = vld [vmem:[#allocation3 + $0x42] sm:$0xff]  ;;  %11131 = vmatprep.subr.bf16.mxu0 %v11919_v9  ;;  %v1388_v46 = vmax.f32 %v1364_v31, %v1378_v24  ;;  %v1220_v47 = vmax.f32 %v1178_v34, 0.0  ;;  %v1181_v48 = vadd.f32 %v13554_v56, %v1180_v40  ;;  %11165 = vmatprep.subr.bf16.mxu1 %v11917_v8  ;;  %v1545_v56 = vpack.c.bf16 %v13710_v37, %v13661_v57  ;;  %v1309_v54 = vld [vmem:[#allocation2 + $0x122] ss:$2 sm:$0xff] }
 0x140   : > { %v1561_v42 = vpack.c.bf16 %v13712_v38, %v13665_v59  ;;  %1255 = vst.msk [vmem:[#allocation2 + $0x181] sm:$0xff] %vm655_vm0, %v1222_v30  ;;  %1533 = vst.msk [vmem:[#allocation5 + $0x60] sm:$0xff] %vm655_vm0, %v1529_v41  ;;  %v11922_v51 = vld [vmem:[%s16270_s23 + $0x190] sm:$0xff]   ;;  %v13734_v53 = vmax.f32 %v1435_v45, %v1448_v49  ;;  %v11925_v58 = vld [vmem:[%s16270_s23 + $0x1d8] sm:$0xff]   ;;  %v1223_v62 = vmax.f32 %v1189_v32, 0.0  ;;  %v1318_v1 = vmax.f32 %v1294_v23, %v1309_v54 }
 0x141   : > { %v1412_v55 = vmax.f32 %v1388_v46, %v1402_v50  ;;  %1253 = vst.msk [vmem:[#allocation2 + $0x169] sm:$0xff] %vm655_vm0, %v1220_v47  ;;  %v11927_v59 = vld [vmem:[%s16270_s23 + $0x170] sm:$0xff]   ;;  %v1221_v63 = vmax.f32 %v1181_v48, 0.0  ;;  %v1627_v0 = vld [vmem:[#allocation5 + $0x50] sm:$0xff]  ;;  %v1626_v57 = vld [vmem:[#allocation5 + $0x48] sm:$0xff] }
 0x142   : > { %1565 = vst.msk [vmem:[#allocation5 + $0x70] sm:$0xff] %vm655_vm0, %v1561_v42  ;;  %11132 = vmatpush3.bf16.msra.mxu0 %v11920_v21  ;;  %11166 = vmatpush3.bf16.msra.mxu1 %v11918_v27  ;;  %1549 = vst.msk [vmem:[#allocation5 + $0x68] sm:$0xff] %vm655_vm0, %v1545_v56  ;;  %v1271_v3 = vld [vmem:[#allocation2 + $0x150] ss:$2 sm:$0xff]  ;;  %v1287_v4 = vld [vmem:[#allocation2 + $0x151] ss:$2 sm:$0xff] }
 0x143   : > { %11133 = vmatprep.subr.bf16.mxu0 %v11923_v28  ;;  %1468 = vst.msk [vmem:[#allocation3 + $0x51] sm:$0xff] %vm655_vm0, %v13734_v53  ;;  %v1436_v2 = vmax.f32 %v1412_v55, %v1426_v61  ;;  %2276 = vmatprep.mubr.bf16.mxu0 %v1627_v0  ;;  %v11928_v5 = vld [vmem:[%s16270_s23 + $0x130] sm:$0xff]   ;;  %v1332_v7 = vld [vmem:[#allocation2 + $0x138] ss:$2 sm:$0xff]  ;;  %v1356_v8 = vld [vmem:[#allocation2 + $0x139] ss:$2 sm:$0xff]  ;;  %v1295_v15 = vmax.f32 %v1271_v3, %v1287_v4 }
 0x144   : > { %11167 = vmatprep.subr.bf16.mxu1 %v11921_v39  ;;  %v1450_v6 = vld [vmem:[#allocation2 + $0x122] ss:$2 sm:$0xff]  ;;  %1256 = vst.msk [vmem:[#allocation2 + $0x189] sm:$0xff] %vm655_vm0, %v1223_v62  ;;  %1254 = vst.msk [vmem:[#allocation2 + $0x171] sm:$0xff] %vm655_vm0, %v1221_v63  ;;  %2277 = vmatmul.mubr.bf16.gmra.mrb[36].mxu0 %v1626_v57  ;;  %v11926_v9 = vld [vmem:[%s16270_s23 + $0x198] sm:$0xff]   ;;  %v1341_v13 = vmax.f32 %v1318_v1, %v1332_v7 }
 0x145   : > { %v13757_v11 = vmax.f32 %v1436_v2, %v1450_v6  ;;  %v11929_v14 = vld [vmem:[%s16270_s23 + $0x1e0] sm:$0xff]   ;;  %v1628_v16 = vld [vmem:[#allocation5 + $0x58] sm:$0xff]  ;;  %v11932_v21 = vld [vmem:[%s16270_s23 + $0x138] sm:$0xff]  }
 0x146   : > { %11134 = vmatpush3.bf16.msra.mxu0 %v11924_v52  ;;  %11168 = vmatpush3.bf16.msra.mxu1 %v11922_v51  ;;  %v1311_v17 = vld [vmem:[#allocation2 + $0x152] ss:$2 sm:$0xff]  ;;  %v1365_v18 = vmax.f32 %v1341_v13, %v1356_v8  ;;  %v1428_v31 = vld [vmem:[#allocation2 + $0x151] ss:$2 sm:$0xff]  ;;  %v11933_v32 = vld [vmem:[%s16270_s23 + $0x1e8] sm:$0xff]  }
 0x147   : > { %11135 = vmatprep.subr.bf16.mxu0 %v11927_v59  ;;  %1469 = vst.msk [vmem:[#allocation3 + $0x61] sm:$0xff] %vm655_vm0, %v13757_v11  ;;  %v1380_v19 = vld [vmem:[#allocation2 + $0x13a] ss:$2 sm:$0xff]  ;;  %v1629_v20 = vld [vmem:[#allocation5 + $0x60] sm:$0xff]  ;;  %11169 = vmatprep.subr.bf16.mxu1 %v11925_v58  ;;  %v1319_v26 = vmax.f32 %v1295_v15, %v1311_v17 }
 0x148   : > { %2341 = vmatprep.mubr.bf16.mxu1 %v1629_v20  ;;  %v11930_v22 = vld [vmem:[%s16270_s23 + $0x1a0] sm:$0xff]   ;;  %v1404_v24 = vld [vmem:[#allocation2 + $0x150] ss:$2 sm:$0xff]  ;;  %v1389_v25 = vmax.f32 %v1365_v18, %v1380_v19  ;;  %v11934_v46 = vld [vmem:[%s16270_s23 + $0x1a8] sm:$0xff]  }
 0x149   : > { %v13773_v23 = vld [vmem:[%s16270_s23 + $0x200] sm:$0xff]   ;;  %2342 = vmatmul.mubr.bf16.gmra.mrb[4].mxu1 %v1628_v16  ;;  %v11937_v58 = vld [vmem:[%s16270_s23 + $0x1b0] sm:$0xff]   ;;  %v11939_v62 = vld [vmem:[%s16270_s23 + $0x1f8] sm:$0xff]  }
 0x14a   : > { %11136 = vmatpush3.bf16.msra.mxu0 %v11928_v5  ;;  %v1493_v27 = vld [vmem:[#allocation3 + $0x51] sm:$0xff]  ;;  %11170 = vmatpush3.bf16.msra.mxu1 %v11926_v9  ;;  %v1413_v34 = vmax.f32 %v1389_v25, %v1404_v24  ;;  %v1452_v40 = vld [vmem:[#allocation2 + $0x152] ss:$2 sm:$0xff] }
 0x14b   : > { %v1477_v28 = vld [vmem:[#allocation3 + $0x50] sm:$0xff]  ;;  %11137 = vmatprep.subr.bf16.mxu0 %v11931_v10  ;;  %v1498_v35 = vpack.c.bf16 %v1493_v27, %v13710_v37  ;;  %11171 = vmatprep.subr.bf16.mxu1 %v11929_v14  ;;  %v1334_v41 = vld [vmem:[#allocation2 + $0x168] ss:$2 sm:$0xff]  ;;  %v1358_v42 = vld [vmem:[#allocation2 + $0x169] ss:$2 sm:$0xff] }
 0x14c   : > { %v1509_v29 = vld [vmem:[#allocation3 + $0x52] sm:$0xff]  ;;  %v1482_v39 = vpack.c.bf16 %v1477_v28, %v13708_v36  ;;  %v1382_v45 = vld [vmem:[#allocation2 + $0x16a] ss:$2 sm:$0xff]  ;;  %v1437_v47 = vmax.f32 %v1413_v34, %v1428_v31  ;;  %v1342_v48 = vmax.f32 %v1319_v26, %v1334_v41 }
 0x14d   : > { %v1514_v30 = vpack.c.bf16 %v1509_v29, %v13712_v38  ;;  %1502 = vst.msk [vmem:[#allocation5 + $0x98] sm:$0xff] %vm655_vm0, %v1498_v35  ;;  %v11936_v36 = vld [vmem:[%s16270_s23 + $0x1f0] sm:$0xff]   ;;  %1598 = vst.msk [vmem:[#allocation5 + $0x80] sm:$0xff] %vm655_vm0, %v1498_v35  ;;  %v1406_v37 = vld [vmem:[#allocation2 + $0x180] ss:$2 sm:$0xff] }
 0x14e   : > { %1486 = vst.msk [vmem:[#allocation5 + $0x90] sm:$0xff] %vm655_vm0, %v1482_v39  ;;  %11138 = vmatpush3.bf16.msra.mxu0 %v11932_v21  ;;  %1582 = vst.msk [vmem:[#allocation5 + $0x78] sm:$0xff] %vm655_vm0, %v1482_v39  ;;  %v1525_v38 = vld [vmem:[#allocation3 + $0x60] sm:$0xff]  ;;  %11172 = vmatpush3.bf16.msra.mxu1 %v11930_v22  ;;  %v13794_v51 = vmax.f32 %v1437_v47, %v1452_v40  ;;  %v1366_v52 = vmax.f32 %v1342_v48, %v1358_v42  ;;  %v1430_v55 = vld [vmem:[#allocation2 + $0x181] ss:$2 sm:$0xff] }
 0x14f   : > { %1518 = vst.msk [vmem:[#allocation5 + $0xa0] sm:$0xff] %vm655_vm0, %v1514_v30  ;;  %1614 = vst.msk [vmem:[#allocation5 + $0x88] sm:$0xff] %vm655_vm0, %v1514_v30  ;;  %v1494_v49 = vld [vmem:[#allocation3 + $0x61] sm:$0xff]  ;;  %11648 = vmatprep.subr.bf16.mxu0 %v13773_v23  ;;  %v1530_v56 = vpack.c.bf16 %v1525_v38, %v1477_v28  ;;  %11173 = vmatprep.subr.bf16.mxu1 %v11933_v32  ;;  %v1454_v0 = vld [vmem:[#allocation2 + $0x182] ss:$2 sm:$0xff] }
 0x150   : > { %v1510_v50 = vld [vmem:[#allocation3 + $0x62] sm:$0xff]  ;;  %v1546_v59 = vpack.c.bf16 %v1494_v49, %v1493_v27  ;;  %1470 = vst.msk [vmem:[#allocation3 + $0x71] sm:$0xff] %vm655_vm0, %v13794_v51  ;;  %v1390_v61 = vmax.f32 %v1366_v52, %v1382_v45  ;;  %v1592_v15 = vld [vmem:[#allocation3 + $0x91] sm:$0xff] }
 0x151   : > { %v1562_v54 = vpack.c.bf16 %v1510_v50, %v1509_v29  ;;  %1534 = vst.msk [vmem:[#allocation5 + $0xa8] sm:$0xff] %vm655_vm0, %v1530_v56  ;;  %v11940_v3 = vld [vmem:[%s16270_s23 + $0x1b8] sm:$0xff]   ;;  %v1576_v16 = vld [vmem:[#allocation3 + $0x90] sm:$0xff]  ;;  %v1621_v35 = vld [vmem:[#allocation5 + $0x20] sm:$0xff] }
 0x152   : > { %11174 = vmatpush3.bf16.msra.mxu1 %v11934_v46  ;;  %1550 = vst.msk [vmem:[#allocation5 + $0xb0] sm:$0xff] %vm655_vm0, %v1546_v59  ;;  %v1414_v63 = vmax.f32 %v1390_v61, %v1406_v37  ;;  %v1608_v17 = vld [vmem:[#allocation3 + $0x92] sm:$0xff]  ;;  %v1622_v31 = vld [vmem:[#allocation5 + $0x28] sm:$0xff]  ;;  %v11941_v41 = vld [vmem:[%s16270_s23 + $0x210] sm:$0xff]  }
 0x153   : > { %1566 = vst.msk [vmem:[#allocation5 + $0xb8] sm:$0xff] %vm655_vm0, %v1562_v54  ;;  %11175 = vmatprep.subr.bf16.mxu1 %v11936_v36  ;;  %v11938_v39 = vld [vmem:[%s16270_s23 + $0x208] sm:$0xff]   ;;  %v1631_v32 = vld [vmem:[#allocation5 + $0x70] sm:$0xff]  ;;  %v11942_v42 = vld [vmem:[%s16270_s23 + $0x218] sm:$0xff]  }
 0x154   : > { %v1636_v57 = vld [vmem:[#allocation5 + $0x98] sm:$0xff]  ;;  %v1438_v2 = vmax.f32 %v1414_v63, %v1430_v55  ;;  %v1630_v45 = vld [vmem:[#allocation5 + $0x68] sm:$0xff]  ;;  %v1623_v46 = vld [vmem:[#allocation5 + $0x30] sm:$0xff] }
 0x155   : > { %v1635_v1 = vld [vmem:[#allocation5 + $0x90] sm:$0xff]  ;;  %2284 = vmatprep.mubr.bf16.mxu0 %v1636_v57  ;;  %v1624_v40 = vld [vmem:[#allocation5 + $0x38] sm:$0xff]  ;;  %v1633_v48 = vld [vmem:[#allocation5 + $0x80] sm:$0xff] }
 0x156   : > { %2285 = vmatmul.mubr.bf16.gmra.mrb[40].mxu0 %v1635_v1  ;;  %11176 = vmatpush3.bf16.msra.mxu1 %v11937_v58  ;;  %v13810_v4 = vmax.f32 %v1438_v2, %v1454_v0  ;;  %v1637_v8 = vld [vmem:[#allocation5 + $0xa0] sm:$0xff]  ;;  %v11943_v36 = vld [vmem:[%s16270_s23 + $0x220] sm:$0xff]   ;;  %v11946_v56 = vld [vmem:[%s16270_s23 + $0x238] sm:$0xff]  }
 0x157   : > { %11177 = vmatprep.subr.bf16.mxu1 %v11939_v62  ;;  %v1495_v6 = vld [vmem:[#allocation3 + $0x71] sm:$0xff]  ;;  %v11945_v52 = vld [vmem:[%s16270_s23 + $0x230] sm:$0xff]   ;;  %v1634_v62 = vld [vmem:[#allocation5 + $0x88] sm:$0xff] }
 0x158   : > { %v1638_v5 = vld [vmem:[#allocation5 + $0xa8] sm:$0xff]  ;;  %v1479_v7 = vld [vmem:[#allocation3 + $0x70] sm:$0xff]  ;;  %1471 = vst.msk [vmem:[#allocation3 + $0x81] sm:$0xff] %vm655_vm0, %v13810_v4  ;;  %v1499_v9 = vpack.c.bf16 %v1495_v6, %v1494_v49  ;;  %v1625_v59 = vld [vmem:[#allocation5 + $0x40] sm:$0xff] }
 0x159   : > { %2349 = vmatprep.mubr.bf16.mxu1 %v1638_v5  ;;  %v1483_v10 = vpack.c.bf16 %v1479_v7, %v1525_v38  ;;  %v1511_v13 = vld [vmem:[#allocation3 + $0x72] sm:$0xff] }
 0x15a   : > { %2350 = vmatmul.mubr.bf16.gmra.mrb[8].mxu1 %v1637_v8  ;;  %v1515_v14 = vpack.c.bf16 %v1511_v13, %v1510_v50  ;;  %1503 = vst.msk [vmem:[#allocation5 + $0xe0] sm:$0xff] %vm655_vm0, %v1499_v9  ;;  %1599 = vst.msk [vmem:[#allocation5 + $0xc8] sm:$0xff] %vm655_vm0, %v1499_v9  ;;  %v1640_v47 = vld [vmem:[#allocation5 + $0xb8] sm:$0xff]  ;;  %v1639_v37 = vld [vmem:[#allocation5 + $0xb0] sm:$0xff] }
 0x15b   : > { %1487 = vst.msk [vmem:[#allocation5 + $0xd8] sm:$0xff] %vm655_vm0, %v1483_v10  ;;  %11178 = vmatpush3.bf16.msra.mxu1 %v11940_v3  ;;  %1583 = vst.msk [vmem:[#allocation5 + $0xc0] sm:$0xff] %vm655_vm0, %v1483_v10  ;;  %v1632_v38 = vld [vmem:[#allocation5 + $0x78] sm:$0xff]  ;;  %v11947_v57 = vld [vmem:[%s16272_s22 + $0x40] sm:$0xff]  }
 0x15c   : > { %1519 = vst.msk [vmem:[#allocation5 + $0xe8] sm:$0xff] %vm655_vm0, %v1515_v14  ;;  %1615 = vst.msk [vmem:[#allocation5 + $0xd0] sm:$0xff] %vm655_vm0, %v1515_v14  ;;  %11215 = vmatprep.subr.bf16.mxu1 %v11947_v57  ;;  %v11948_v1 = vld [vmem:[%s16272_s22] sm:$0xff]   ;;  %v11950_v5 = vld [vmem:[%s16272_s22 + $0x48] sm:$0xff]  }
 0x15d   : > { %v11949_v2 = vld [vmem:[%s16272_s22 + $0xc0] sm:$0xff]   ;;  %v11955_v8 = vld [vmem:[%s16272_s22 + $0x88] sm:$0xff]   ;;  %v11954_v9 = vld [vmem:[%s16272_s22 + $0x50] sm:$0xff]  }
 0x15e   : > { %v11951_v3 = vld [vmem:[%s16272_s22 + $0x80] sm:$0xff]   ;;  %v11956_v10 = vld [vmem:[%s16272_s22 + $0x10] sm:$0xff]  }
 0x15f   : > { %v1527_v18 = vld [vmem:[#allocation3 + $0x80] sm:$0xff] }
 0x160   : > { %v1559_v19 = vld [vmem:[#allocation3 + $0x82] sm:$0xff]  ;;  %v1531_v21 = vpack.c.bf16 %v1527_v18, %v1479_v7  ;;  %v1580_v28 = vpack.c.bf16 %v1576_v16, %v1527_v18  ;;  %v11953_v7 = vld [vmem:[%s16272_s22 + $0xc8] sm:$0xff]  }
 0x161   : > { %v1543_v20 = vld [vmem:[#allocation3 + $0x81] sm:$0xff]  ;;  %v1563_v22 = vpack.c.bf16 %v1559_v19, %v1511_v13  ;;  %v1612_v29 = vpack.c.bf16 %v1608_v17, %v1559_v19  ;;  %v11962_v19 = vld [vmem:[%s16272_s22 + $0x60] sm:$0xff]  }
 0x162   : > { %v1547_v24 = vpack.c.bf16 %v1543_v20, %v1495_v6  ;;  %v1596_v25 = vpack.c.bf16 %v1592_v15, %v1543_v20  ;;  %v1645_v26 = vld [vmem:[#allocation5 + $0xe0] sm:$0xff]  ;;  %v1644_v27 = vld [vmem:[#allocation5 + $0xd8] sm:$0xff]  ;;  %1535 = vst.msk [vmem:[#allocation5 + $0xf0] sm:$0xff] %vm655_vm0, %v1531_v21  ;;  %1584 = vst.msk [vmem:[#allocation5 + $0x108] sm:$0xff] %vm655_vm0, %v1580_v28 }
 0x163   : > { %2292 = vmatprep.mubr.bf16.mxu0 %v1645_v26  ;;  %1567 = vst.msk [vmem:[#allocation5 + $0x100] sm:$0xff] %vm655_vm0, %v1563_v22  ;;  %1616 = vst.msk [vmem:[#allocation5 + $0x118] sm:$0xff] %vm655_vm0, %v1612_v29  ;;  %v1646_v30 = vld [vmem:[#allocation5 + $0xe8] sm:$0xff]  ;;  %v1641_v55 = vld [vmem:[#allocation5 + $0xc0] sm:$0xff] }
 0x164   : > { %1551 = vst.msk [vmem:[#allocation5 + $0xf8] sm:$0xff] %vm655_vm0, %v1547_v24  ;;  %1600 = vst.msk [vmem:[#allocation5 + $0x110] sm:$0xff] %vm655_vm0, %v1596_v25  ;;  %2293 = vmatmul.mubr.bf16.gmra.mrb[44].mxu0 %v1644_v27  ;;  %v1642_v50 = vld [vmem:[#allocation5 + $0xc8] sm:$0xff]  ;;  %v1643_v63 = vld [vmem:[#allocation5 + $0xd0] sm:$0xff] }
 0x165   : > { %2398 = vmatprep.mubr.bf16.mxu0 %v1622_v31  ;;  %v11952_v6 = vld [vmem:[%s16272_s22 + $0x8] sm:$0xff]   ;;  %v11957_v13 = vld [vmem:[%s16272_s22 + $0xd0] sm:$0xff]   ;;  %v11958_v15 = vld [vmem:[%s16272_s22 + $0x58] sm:$0xff]  }
 0x166   : > { %v11959_v14 = vld [vmem:[%s16272_s22 + $0x90] sm:$0xff]   ;;  %v11960_v16 = vld [vmem:[%s16272_s22 + $0x18] sm:$0xff]   ;;  %v11964_v20 = vld [vmem:[%s16272_s22 + $0x20] sm:$0xff]  }
 0x167   : > { %v11961_v17 = vld [vmem:[%s16272_s22 + $0xd8] sm:$0xff]   ;;  %v11965_v21 = vld [vmem:[%s16272_s22 + $0xe0] sm:$0xff]   ;;  %v11966_v24 = vld [vmem:[%s16272_s22 + $0x68] sm:$0xff]  }
 0x168   : > { %v11963_v18 = vld [vmem:[%s16272_s22 + $0x98] sm:$0xff]   ;;  %v11967_v22 = vld [vmem:[%s16272_s22 + $0xa0] sm:$0xff]   ;;  %v11968_v25 = vld [vmem:[%s16272_s22 + $0x28] sm:$0xff]  }
 0x169   : > { %v1647_v34 = vld [vmem:[#allocation5 + $0xf0] sm:$0xff]  ;;  %v1650_v61 = vld [vmem:[#allocation5 + $0x108] sm:$0xff]  ;;  %v11969_v26 = vld [vmem:[%s16272_s22 + $0xe8] sm:$0xff]  }
 0x16a   : > { %2357 = vmatprep.mubr.bf16.mxu1 %v1647_v34  ;;  %v1649_v49 = vld [vmem:[#allocation5 + $0x100] sm:$0xff]  ;;  %v1652_v0 = vld [vmem:[#allocation5 + $0x118] sm:$0xff] }
 0x16b   : > { %2358 = vmatmul.mubr.bf16.gmra.mrb[12].mxu1 %v1646_v30  ;;  %v1648_v54 = vld [vmem:[#allocation5 + $0xf8] sm:$0xff]  ;;  %v1651_v58 = vld [vmem:[#allocation5 + $0x110] sm:$0xff]  ;;  %v11970_v28 = vld [vmem:[%s16272_s22 + $0x70] sm:$0xff]  }
 0x16c   : > { %2399 = vmatmul.mubr.bf16.vlgmr.msra.gmra.mrb[48].mxu0 %v1621_v35  ;;  %2463 = vmatprep.mubr.bf16.mxu1 %v1624_v40  ;;  %v11971_v27 = vld [vmem:[%s16272_s22 + $0xa8] sm:$0xff]   ;;  %v11972_v29 = vld [vmem:[%s16272_s22 + $0x30] sm:$0xff]   ;;  %v11974_v35 = vld [vmem:[%s16272_s22 + $0x78] sm:$0xff]  }
 0x16d   : > { %11649 = vmatpush3.bf16.msra.mxu0 %v13773_v23  ;;  %2406 = vmatprep.mubr.bf16.mxu0 %v1631_v32  ;;  %v11944_v23 = vld [vmem:[%s16270_s23 + $0x228] sm:$0xff]   ;;  %v11973_v31 = vld [vmem:[%s16272_s22 + $0xf0] sm:$0xff]   ;;  %v11977_v30 = vld [vmem:[%s16272_s22 + $0xf8] sm:$0xff]   ;;  %s11019_s23 = sshll.u32 %s13080_s3, 4 }
 0x16e   : > { %11650 = vmatprep.subr.bf16.mxu0 %v11938_v39  ;;  %v11975_v34 = vld [vmem:[%s16272_s22 + $0xb0] sm:$0xff]   ;;  %v11978_v32 = vld [vmem:[%s16272_s22 + $0xb8] sm:$0xff]   ;;  %v11979_v40 = vld [vmem:[%s16272_s22 + $0x140] sm:$0xff]   ;;  %s16178_s27 = scalar_lea.hbm %s16241_s21, %s11019_s23 }
 0x171   : > { %11651 = vmatpush3.bf16.msra.mxu0 %v11938_v39  ;;  %v11976_v39 = vld [vmem:[%s16272_s22 + $0x38] sm:$0xff]  }
 0x172   : > { %11652 = vmatprep.subr.bf16.mxu0 %v11941_v41 }
 0x173   : > { %2464 = vmatmul.mubr.bf16.vlgmr.msra.gmra.mrb[16].mxu1 %v1623_v46 }
 0x174   : > { %2407 = vmatmul.mubr.bf16.gmra.mrb[52].mxu0 %v1630_v45  ;;  %2471 = vmatprep.mubr.bf16.mxu1 %v1633_v48 }
 0x175   : > { %11653 = vmatpush3.bf16.msra.mxu0 %v11941_v41  ;;  %2414 = vmatprep.mubr.bf16.mxu0 %v1640_v47  ;;  %v11981_v41 = vld [vmem:[%s16272_s22 + $0x1c0] sm:$0xff]  }
 0x176   : > { %11654 = vmatprep.subr.bf16.mxu0 %v11942_v42  ;;  %11216 = vmatpush3.bf16.msra.mxu1 %v11948_v1 }
 0x177   : > { %11217 = vmatprep.subr.bf16.mxu1 %v11950_v5 }
 0x179   : > { %11655 = vmatpush3.bf16.msra.mxu0 %v11942_v42 }
 0x17a   : > { %11656 = vmatprep.subr.bf16.mxu0 %v11943_v36  ;;  %11218 = vmatpush3.bf16.msra.mxu1 %v11952_v6 }
 0x17b   : > { %2472 = vmatmul.mubr.bf16.gmra.mrb[20].mxu1 %v1632_v38  ;;  %11219 = vmatprep.subr.bf16.mxu1 %v11954_v9 }
 0x17c   : > { %2415 = vmatmul.mubr.bf16.gmra.mrb[56].mxu0 %v1639_v37  ;;  %2479 = vmatprep.mubr.bf16.mxu1 %v1642_v50 }
 0x17d   : > { %11657 = vmatpush3.bf16.msra.mxu0 %v11943_v36  ;;  %2422 = vmatprep.mubr.bf16.mxu0 %v1649_v49 }
 0x17e   : > { %11658 = vmatprep.subr.bf16.mxu0 %v11944_v23  ;;  %11220 = vmatpush3.bf16.msra.mxu1 %v11956_v10 }
 0x17f   : > { %11221 = vmatprep.subr.bf16.mxu1 %v11958_v15 }
 0x181   : > { %11659 = vmatpush3.bf16.msra.mxu0 %v11944_v23  ;;  %v10210_v23 = vld [vmem:[%s16273_s0] ss:$0 sm:$0xff]  ;;  %s10034_s0 = sshll.u32 %s648_s24, 4  ;;  %s16180_s0 = int_to_ptr.vmem [resolvable:$true] %s10034_s0 }
 0x182   : > { %11660 = vmatprep.subr.bf16.mxu0 %v11945_v52  ;;  %11222 = vmatpush3.bf16.msra.mxu1 %v11960_v16  ;;  %s12880_s3 = scalar_lea.vmem %s16180_s0, 16  ;;  %p12887_p0 = scmp.lt.s32.totalorder %s16180_s0, %s12885_s26 }
 0x183   : > { %2480 = vmatmul.mubr.bf16.gmra.mrb[24].mxu1 %v1641_v55  ;;  %11223 = vmatprep.subr.bf16.mxu1 %v11962_v19  ;;  %p12881_p11 = scmp.ne.s32.totalorder %s16180_s0, %s12880_s3  ;;  %p12888_p1 = scmp.lt.s32.totalorder %s12886_s1, %s12880_s3 }
 0x184   : > { %2423 = vmatmul.mubr.bf16.gmra.mrb[60].mxu0 %v1648_v54  ;;  %2487 = vmatprep.mubr.bf16.mxu1 %v1651_v58 }
 0x185   : > { %11661 = vmatpush3.bf16.msra.mxu0 %v11945_v52  ;;  %11664 = vmatprep.mubr.bf16.mxu0 %v1625_v59  ;;  %p12882_p12 = pnand %p12881_p11, %p13097_p5  ;;  %p12889_p2 = por %p12888_p1, %p12887_p0 }
 0x186   : > { %11662 = vmatprep.subr.bf16.mxu0 %v11946_v56  ;;  %11224 = vmatpush3.bf16.msra.mxu1 %v11964_v20 }
 0x187   : > { %11225 = vmatprep.subr.bf16.mxu1 %v11966_v24  ;;  %p12883_p13 = pneg %p12882_p12 }
 0x189   : > { %11663 = vmatpush3.bf16.msra.mxu0 %v11946_v56  ;;  %p12890_p3 = pnand %p12889_p2, %p12883_p13 }
 0x18a   : > { %11255 = vmatprep.subr.bf16.mxu0 %v11949_v2  ;;  %11226 = vmatpush3.bf16.msra.mxu1 %v11968_v25 }
 0x18b   : > { %2488 = vmatmul.mubr.bf16.gmra.mrb[28].mxu1 %v1650_v61  ;;  %11227 = vmatprep.subr.bf16.mxu1 %v11970_v28 }
 0x18c   : > { %11665 = vmatmul.mubr.bf16.vlgmr.msra.gmra.mrb[64].mxu0 %v1634_v62 }
 0x18d   : > { %11668 = vmatprep.mubr.bf16.mxu0 %v1643_v63  ;;  %11256 = vmatpush3.bf16.msra.mxu0 %v11951_v3 }
 0x18e   : > { %11257 = vmatprep.subr.bf16.mxu0 %v11953_v7  ;;  %11228 = vmatpush3.bf16.msra.mxu1 %v11972_v29 }
 0x18f   : > { %11229 = vmatprep.subr.bf16.mxu1 %v11974_v35 }
 0x191   : > { %11258 = vmatpush3.bf16.msra.mxu0 %v11955_v8 }
 0x192   : > { %11259 = vmatprep.subr.bf16.mxu0 %v11957_v13  ;;  %11230 = vmatpush3.bf16.msra.mxu1 %v11976_v39 }
 0x193   : > { %11295 = vmatprep.subr.bf16.mxu1 %v11979_v40 }
 0x194   : > { %11669 = vmatmul.mubr.bf16.gmra.mrb[68].mxu0 %v1652_v0 }
 0x195   : > { %11260 = vmatpush3.bf16.msra.mxu0 %v11959_v14 }
 0x196   : > { %11261 = vmatprep.subr.bf16.mxu0 %v11961_v17 }
 0x199   : > { %11262 = vmatpush3.bf16.msra.mxu0 %v11963_v18 }
 0x19a   : > { %11263 = vmatprep.subr.bf16.mxu0 %v11965_v21 }
 0x19d   : > { %11264 = vmatpush3.bf16.msra.mxu0 %v11967_v22 }
 0x19e   : > { %11265 = vmatprep.subr.bf16.mxu0 %v11969_v26 }
 0x1a1   : > { %11266 = vmatpush3.bf16.msra.mxu0 %v11971_v27 }
 0x1a2   : > { %11267 = vmatprep.subr.bf16.mxu0 %v11973_v31 }
 0x1a5   : > { %11268 = vmatpush3.bf16.msra.mxu0 %v11975_v34 }
 0x1a6   : > { %11269 = vmatprep.subr.bf16.mxu0 %v11977_v30 }
 0x1a9   : > { %11270 = vmatpush3.bf16.msra.mxu0 %v11978_v32 }
 0x1aa   : > { %11335 = vmatprep.subr.bf16.mxu0 %v11981_v41 }
 0x204   : > { %v11059_v42 = vpop.f32.mrb[32].mxu0 }
 0x205   : > { %v11060_v45 = vpop.f32.mrb[33].mxu0 }
 0x206   : > { %v11061_v46 = vadd.f32 %v11060_v45, %v11059_v42  ;;  %v11062_v47 = vpop.f32.mrb[34].mxu0 }
 0x207   : > { %v11063_v48 = vpop.f32.mrb[35].mxu0 }
 0x208   : > { %v11064_v36 = vadd.f32 %v11063_v48, %v11062_v47  ;;  %v2271_v49 = vadd.f32 %v11061_v46, %v10210_v23 }
 0x20a   : > { %v2274_v54 = vadd.f32 %v11064_v36, %v10210_v23 }
 0x210   : > { %v11099_v37 = vpop.f32.mrb[0].mxu1 }
 0x211   : > { %v11100_v38 = vpop.f32.mrb[1].mxu1 }
 0x212   : > { %v11101_v50 = vadd.f32 %v11100_v38, %v11099_v37  ;;  %v11102_v52 = vpop.f32.mrb[2].mxu1 }
 0x213   : > { %v11103_v56 = vpop.f32.mrb[3].mxu1 }
 0x214   : > { %v2336_v55 = vadd.f32 %v11101_v50, %v2271_v49  ;;  %v11104_v58 = vadd.f32 %v11103_v56, %v11102_v52 }
 0x216   : > { %v2339_v59 = vadd.f32 %v11104_v58, %v2274_v54 }
 0x217   : > { %v11065_v61 = vpop.f32.mrb[36].mxu0 }
 0x218   : > { %v11066_v62 = vpop.f32.mrb[37].mxu0 }
 0x219   : > { %v11067_v63 = vadd.f32 %v11066_v62, %v11065_v61  ;;  %v11068_v0 = vpop.f32.mrb[38].mxu0 }
 0x21a   : > { %v11069_v57 = vpop.f32.mrb[39].mxu0 }
 0x21b   : > { %v11070_v1 = vadd.f32 %v11069_v57, %v11068_v0  ;;  %v2279_v5 = vadd.f32 %v11067_v63, %v10210_v23 }
 0x21c   : > { %v11105_v2 = vpop.f32.mrb[4].mxu1 }
 0x21d   : > { %v11106_v3 = vpop.f32.mrb[5].mxu1  ;;  %v2282_v9 = vadd.f32 %v11070_v1, %v10210_v23 }
 0x21e   : > { %v11107_v6 = vadd.f32 %v11106_v3, %v11105_v2  ;;  %v11108_v7 = vpop.f32.mrb[6].mxu1 }
 0x21f   : > { %v11109_v8 = vpop.f32.mrb[7].mxu1 }
 0x220   : > { %v2344_v10 = vadd.f32 %v11107_v6, %v2279_v5  ;;  %v11110_v13 = vadd.f32 %v11109_v8, %v11108_v7 }
 0x222   : > { %v2347_v14 = vadd.f32 %v11110_v13, %v2282_v9 }
 0x229   : > { %v11071_v15 = vpop.f32.mrb[40].mxu0 }
 0x22a   : > { %v11072_v16 = vpop.f32.mrb[41].mxu0 }
 0x22b   : > { %v11073_v17 = vadd.f32 %v11072_v16, %v11071_v15  ;;  %v11074_v18 = vpop.f32.mrb[42].mxu0 }
 0x22c   : > { %v11075_v19 = vpop.f32.mrb[43].mxu0 }
 0x22d   : > { %v11076_v20 = vadd.f32 %v11075_v19, %v11074_v18  ;;  %v11111_v21 = vpop.f32.mrb[8].mxu1  ;;  %v2287_v24 = vadd.f32 %v11073_v17, %v10210_v23 }
 0x22e   : > { %v11112_v22 = vpop.f32.mrb[9].mxu1 }
 0x22f   : > { %v11113_v25 = vadd.f32 %v11112_v22, %v11111_v21  ;;  %v11114_v26 = vpop.f32.mrb[10].mxu1  ;;  %v2290_v28 = vadd.f32 %v11076_v20, %v10210_v23 }
 0x230   : > { %v11115_v27 = vpop.f32.mrb[11].mxu1 }
 0x231   : > { %v2352_v29 = vadd.f32 %v11113_v25, %v2287_v24  ;;  %v11116_v31 = vadd.f32 %v11115_v27, %v11114_v26 }
 0x233   : > { %v2355_v34 = vadd.f32 %v11116_v31, %v2290_v28 }
 0x237   : > { %v11077_v35 = vpop.f32.mrb[44].mxu0 }
 0x238   : > { %v11078_v39 = vpop.f32.mrb[45].mxu0 }
 0x239   : > { %v11079_v30 = vadd.f32 %v11078_v39, %v11077_v35  ;;  %v11080_v32 = vpop.f32.mrb[46].mxu0 }
 0x23a   : > { %v11081_v40 = vpop.f32.mrb[47].mxu0 }
 0x23b   : > { %v11082_v41 = vadd.f32 %v11081_v40, %v11080_v32  ;;  %v2295_v48 = vadd.f32 %v11079_v30, %v10210_v23 }
 0x23d   : > { %v2298_v50 = vadd.f32 %v11082_v41, %v10210_v23 }
 0x23e   : > { %v11117_v42 = vpop.f32.mrb[12].mxu1 }
 0x23f   : > { %v11139_v45 = vpop.f32.mrb[48].mxu0  ;;  %v11118_v46 = vpop.f32.mrb[13].mxu1 }
 0x240   : > { %v11140_v47 = vpop.f32.mrb[49].mxu0  ;;  %v11119_v36 = vadd.f32 %v11118_v46, %v11117_v42  ;;  %v11120_v38 = vpop.f32.mrb[14].mxu1 }
 0x241   : > { %v11141_v37 = vadd.f32 %v11140_v47, %v11139_v45  ;;  %v11142_v49 = vpop.f32.mrb[50].mxu0  ;;  %v11121_v52 = vpop.f32.mrb[15].mxu1 }
 0x242   : > { %v11143_v56 = vpop.f32.mrb[51].mxu0  ;;  %v2360_v54 = vadd.f32 %v11119_v36, %v2295_v48  ;;  %v11122_v61 = vadd.f32 %v11121_v52, %v11120_v38 }
 0x243   : > { %v2401_v58 = vadd.f32 %v11141_v37, %v2336_v55  ;;  %v11144_v62 = vadd.f32 %v11143_v56, %v11142_v49 }
 0x244   : > { %v2363_v63 = vadd.f32 %v11122_v61, %v2298_v50 }
 0x245   : > { %v2404_v0 = vadd.f32 %v11144_v62, %v2339_v59 }
 0x246   : > { %v11179_v1 = vpop.f32.mrb[16].mxu1 }
 0x247   : > { %v11145_v57 = vpop.f32.mrb[52].mxu0  ;;  %v11180_v3 = vpop.f32.mrb[17].mxu1 }
 0x248   : > { %v11146_v2 = vpop.f32.mrb[53].mxu0  ;;  %v11181_v6 = vadd.f32 %v11180_v3, %v11179_v1  ;;  %v11182_v8 = vpop.f32.mrb[18].mxu1 }
 0x249   : > { %v11147_v5 = vadd.f32 %v11146_v2, %v11145_v57  ;;  %v11148_v7 = vpop.f32.mrb[54].mxu0  ;;  %v11183_v13 = vpop.f32.mrb[19].mxu1 }
 0x24a   : > { %v11149_v9 = vpop.f32.mrb[55].mxu0  ;;  %v11184_v16 = vadd.f32 %v11183_v13, %v11182_v8  ;;  %v2466_v17 = vadd.f32 %v11181_v6, %v2401_v58 }
 0x24b   : > { %v2409_v15 = vadd.f32 %v11147_v5, %v2344_v10  ;;  %v11150_v23 = vadd.f32 %v11149_v9, %v11148_v7 }
 0x24c   : > { %v2469_v55 = vadd.f32 %v11184_v16, %v2404_v0 }
 0x24d   : > { %v2412_v18 = vadd.f32 %v11150_v23, %v2347_v14 }
 0x24e   : > { %v11185_v20 = vpop.f32.mrb[20].mxu1 }
 0x24f   : > { %v11151_v19 = vpop.f32.mrb[56].mxu0  ;;  %v11186_v59 = vpop.f32.mrb[21].mxu1 }
 0x250   : > { %v11152_v21 = vpop.f32.mrb[57].mxu0  ;;  %v11187_v24 = vadd.f32 %v11186_v59, %v11185_v20  ;;  %v11188_v26 = vpop.f32.mrb[22].mxu1  ;;  %v2578_v59 = vld [vmem:[#allocation4] sm:$0xff] }
 0x251   : > { %v11153_v22 = vadd.f32 %v11152_v21, %v11151_v19  ;;  %v11154_v25 = vpop.f32.mrb[58].mxu0  ;;  %v11189_v28 = vpop.f32.mrb[23].mxu1 }
 0x252   : > { %v11155_v27 = vpop.f32.mrb[59].mxu0  ;;  %v11190_v39 = vadd.f32 %v11189_v28, %v11188_v26  ;;  %v2474_v30 = vadd.f32 %v11187_v24, %v2409_v15  ;;  %v2594_v26 = vld [vmem:[#allocation4 + $0x1] sm:$0xff] }
 0x253   : > { %v2417_v31 = vadd.f32 %v11153_v22, %v2352_v29  ;;  %v11156_v35 = vadd.f32 %v11155_v27, %v11154_v25  ;;  %v2610_v22 = vld [vmem:[#allocation4 + $0x2] sm:$0xff] }
 0x254   : > { %v2477_v32 = vadd.f32 %v11190_v39, %v2412_v18 }
 0x255   : > { %v2420_v10 = vadd.f32 %v11156_v35, %v2355_v34 }
 0x256   : > { %v11191_v41 = vpop.f32.mrb[24].mxu1 }
 0x257   : > { %v11157_v40 = vpop.f32.mrb[60].mxu0  ;;  %v11192_v42 = vpop.f32.mrb[25].mxu1 }
 0x258   : > { %v11158_v14 = vpop.f32.mrb[61].mxu0  ;;  %v11193_v46 = vadd.f32 %v11192_v42, %v11191_v41  ;;  %v11194_v48 = vpop.f32.mrb[26].mxu1 }
 0x259   : > { %v11159_v45 = vadd.f32 %v11158_v14, %v11157_v40  ;;  %v11160_v47 = vpop.f32.mrb[62].mxu0  ;;  %v11195_v37 = vpop.f32.mrb[27].mxu1 }
 0x25a   : > { %v11161_v36 = vpop.f32.mrb[63].mxu0  ;;  %v11196_v50 = vadd.f32 %v11195_v37, %v11194_v48  ;;  %v2482_v52 = vadd.f32 %v11193_v46, %v2417_v31 }
 0x25b   : > { %v2425_v38 = vadd.f32 %v11159_v45, %v2360_v54  ;;  %v11162_v49 = vadd.f32 %v11161_v36, %v11160_v47 }
 0x25c   : > { %v2485_v56 = vadd.f32 %v11196_v50, %v2420_v10 }
 0x25d   : > { %v2428_v29 = vadd.f32 %v11162_v49, %v2363_v63 }
 0x25e   : > { %v11197_v58 = vpop.f32.mrb[28].mxu1 }
 0x25f   : > { %v11666_v61 = vpop.f32.mrb[64].mxu0  ;;  %v11198_v62 = vpop.f32.mrb[29].mxu1 }
 0x260   : > { %v2539_v34 = vadd.f32 %v11666_v61, %v2474_v30  ;;  %v2530_v0 = vpop.f32.mrb[65].mxu0  ;;  %v11199_v57 = vadd.f32 %v11198_v62, %v11197_v58  ;;  %v11200_v2 = vpop.f32.mrb[30].mxu1 }
 0x261   : > { %v2531_v1 = vadd.f32 %v2530_v0, %v2466_v17  ;;  %v11667_v3 = vpop.f32.mrb[66].mxu0  ;;  %v11201_v7 = vpop.f32.mrb[31].mxu1  ;;  %v2698_v0 = vld [vmem:[#allocation4 + $0x91] sm:$0xff] }
 0x262   : > { %v2563_v5 = vmax.f32 %v2539_v34, 0.0  ;;  %v2542_v6 = vadd.f32 %v11667_v3, %v2477_v32  ;;  %v2533_v8 = vpop.f32.mrb[67].mxu0  ;;  %v11202_v54 = vadd.f32 %v11201_v7, %v11200_v2  ;;  %v2490_v15 = vadd.f32 %v11199_v57, %v2425_v38  ;;  %v2682_v3 = vld [vmem:[#allocation4 + $0x90] sm:$0xff] }
 0x263   : > { %v2561_v9 = vmax.f32 %v2531_v1, 0.0  ;;  %v2534_v13 = vadd.f32 %v2533_v8, %v2469_v55 }
 0x264   : > { %2572 = vst.msk [vmem:[#allocation4 + $0x31] sm:$0xff] %vm655_vm0, %v2563_v5  ;;  %v2564_v63 = vmax.f32 %v2542_v6, 0.0  ;;  %v2493_v16 = vadd.f32 %v11202_v54, %v2428_v29  ;;  %v2714_v5 = vld [vmem:[#allocation4 + $0x92] sm:$0xff] }
 0x265   : > { %2570 = vst.msk [vmem:[#allocation4 + $0x11] sm:$0xff] %vm655_vm0, %v2561_v9  ;;  %v2562_v23 = vmax.f32 %v2534_v13, 0.0  ;;  %v11980_v9 = vld [vmem:[%s16272_s22 + $0x100] sm:$0xff]  }
 0x266   : > { %2573 = vst.msk [vmem:[#allocation4 + $0x41] sm:$0xff] %vm655_vm0, %v2564_v63 }
 0x267   : > { %2571 = vst.msk [vmem:[#allocation4 + $0x21] sm:$0xff] %vm655_vm0, %v2562_v23  ;;  %v11670_v17 = vpop.f32.mrb[68].mxu0 }
 0x268   : > { %v2555_v18 = vadd.f32 %v11670_v17, %v2490_v15  ;;  %v2546_v19 = vpop.f32.mrb[69].mxu0 }
 0x269   : > { %v2547_v20 = vadd.f32 %v2546_v19, %v2482_v52  ;;  %v11671_v21 = vpop.f32.mrb[70].mxu0 }
 0x26a   : > { %v2567_v55 = vmax.f32 %v2555_v18, 0.0  ;;  %v2558_v24 = vadd.f32 %v11671_v21, %v2493_v16  ;;  %v2549_v25 = vpop.f32.mrb[71].mxu0 }
 0x26b   : > { %v2581_v27 = vld [vmem:[#allocation4 + $0x30] sm:$0xff]  ;;  %v2565_v35 = vmax.f32 %v2547_v20, 0.0  ;;  %v2550_v39 = vadd.f32 %v2549_v25, %v2485_v56  ;;  %v11982_v25 = vld [vmem:[%s16272_s22 + $0x148] sm:$0xff]  }
 0x26c   : > { %v2597_v28 = vld [vmem:[#allocation4 + $0x31] sm:$0xff]  ;;  %2576 = vst.msk [vmem:[#allocation4 + $0x71] sm:$0xff] %vm655_vm0, %v2567_v55  ;;  %v2568_v40 = vmax.f32 %v2558_v24, 0.0 }
 0x26d   : > { %v2613_v31 = vld [vmem:[#allocation4 + $0x32] sm:$0xff]  ;;  %v2582_v42 = vld [vmem:[#allocation4 + $0x40] sm:$0xff]  ;;  %2574 = vst.msk [vmem:[#allocation4 + $0x51] sm:$0xff] %vm655_vm0, %v2565_v35  ;;  %v2566_v47 = vmax.f32 %v2550_v39, 0.0 }
 0x26e   : > { %v2579_v30 = vld [vmem:[#allocation4 + $0x10] sm:$0xff]  ;;  %v2598_v45 = vld [vmem:[#allocation4 + $0x41] sm:$0xff]  ;;  %2577 = vst.msk [vmem:[#allocation4 + $0x81] sm:$0xff] %vm655_vm0, %v2568_v40  ;;  %v2635_v49 = vpack.c.bf16 %v2582_v42, %v2581_v27 }
 0x26f   : > { %v2595_v10 = vld [vmem:[#allocation4 + $0x11] sm:$0xff]  ;;  %v2586_v41 = vpack.c.bf16 %v2579_v30, %v2578_v59  ;;  %v2614_v46 = vld [vmem:[#allocation4 + $0x42] sm:$0xff]  ;;  %v2651_v52 = vpack.c.bf16 %v2598_v45, %v2597_v28  ;;  %2575 = vst.msk [vmem:[#allocation4 + $0x61] sm:$0xff] %vm655_vm0, %v2566_v47 }
 0x270   : > { %v2611_v32 = vld [vmem:[#allocation4 + $0x12] sm:$0xff]  ;;  %v2602_v48 = vpack.c.bf16 %v2595_v10, %v2594_v26  ;;  %v2580_v36 = vld [vmem:[#allocation4 + $0x20] sm:$0xff]  ;;  %v2667_v50 = vpack.c.bf16 %v2614_v46, %v2613_v31  ;;  %2639 = vst.msk [vmem:[#allocation5 + $0x60] sm:$0xff] %vm655_vm0, %v2635_v49 }
 0x271   : > { %v2618_v14 = vpack.c.bf16 %v2611_v32, %v2610_v22  ;;  %v2596_v37 = vld [vmem:[#allocation4 + $0x21] sm:$0xff]  ;;  %2590 = vst.msk [vmem:[#allocation5] sm:$0xff] %vm655_vm0, %v2586_v41  ;;  %v2683_v56 = vpack.c.bf16 %v2581_v27, %v2580_v36  ;;  %v2634_v61 = vpack.c.bf16 %v2580_v36, %v2579_v30  ;;  %2655 = vst.msk [vmem:[#allocation5 + $0x68] sm:$0xff] %vm655_vm0, %v2651_v52  ;;  %v11983_v30 = vld [vmem:[%s16272_s22 + $0x180] sm:$0xff]  }
 0x272   : > { %v2612_v38 = vld [vmem:[#allocation4 + $0x22] sm:$0xff]  ;;  %v2650_v29 = vpack.c.bf16 %v2596_v37, %v2595_v10  ;;  %2606 = vst.msk [vmem:[#allocation5 + $0x8] sm:$0xff] %vm655_vm0, %v2602_v48  ;;  %v2603_v58 = vpack.c.bf16 %v2597_v28, %v2596_v37  ;;  %2671 = vst.msk [vmem:[#allocation5 + $0x70] sm:$0xff] %vm655_vm0, %v2667_v50  ;;  %v11987_v48 = vld [vmem:[%s16272_s22 + $0x188] sm:$0xff]  }
 0x273   : > { %2622 = vst.msk [vmem:[#allocation5 + $0x10] sm:$0xff] %vm655_vm0, %v2618_v14  ;;  %v2619_v34 = vpack.c.bf16 %v2613_v31, %v2612_v38  ;;  %v2666_v62 = vpack.c.bf16 %v2612_v38, %v2611_v32  ;;  %2687 = vst.msk [vmem:[#allocation5 + $0x30] sm:$0xff] %vm655_vm0, %v2683_v56  ;;  %v2585_v57 = vld [vmem:[#allocation4 + $0x70] sm:$0xff]  ;;  %v11985_v14 = vld [vmem:[%s16272_s22 + $0x1c8] sm:$0xff]  }
 0x274   : > { %2654 = vst.msk [vmem:[#allocation5 + $0x20] sm:$0xff] %vm655_vm0, %v2650_v29  ;;  %2607 = vst.msk [vmem:[#allocation5 + $0x50] sm:$0xff] %vm655_vm0, %v2603_v58  ;;  %v2601_v1 = vld [vmem:[#allocation4 + $0x71] sm:$0xff]  ;;  %v11986_v47 = vld [vmem:[%s16272_s22 + $0x150] sm:$0xff]  }
 0x275   : > { %2638 = vst.msk [vmem:[#allocation5 + $0x18] sm:$0xff] %vm655_vm0, %v2634_v61  ;;  %2591 = vst.msk [vmem:[#allocation5 + $0x48] sm:$0xff] %vm655_vm0, %v2683_v56  ;;  %v2617_v2 = vld [vmem:[#allocation4 + $0x72] sm:$0xff]  ;;  %v2633_v13 = vld [vmem:[#allocation4 + $0x80] sm:$0xff] }
 0x276   : > { %2703 = vst.msk [vmem:[#allocation5 + $0x38] sm:$0xff] %vm655_vm0, %v2603_v58  ;;  %2623 = vst.msk [vmem:[#allocation5 + $0x58] sm:$0xff] %vm655_vm0, %v2619_v34  ;;  %v2583_v6 = vld [vmem:[#allocation4 + $0x50] sm:$0xff]  ;;  %v2649_v15 = vld [vmem:[#allocation4 + $0x81] sm:$0xff]  ;;  %v2637_v20 = vpack.c.bf16 %v2633_v13, %v2585_v57  ;;  %v2686_v40 = vpack.c.bf16 %v2682_v3, %v2633_v13 }
 0x277   : > { %2670 = vst.msk [vmem:[#allocation5 + $0x28] sm:$0xff] %vm655_vm0, %v2666_v62  ;;  %2719 = vst.msk [vmem:[#allocation5 + $0x40] sm:$0xff] %vm655_vm0, %v2619_v34  ;;  %v2599_v7 = vld [vmem:[#allocation4 + $0x51] sm:$0xff]  ;;  %v2665_v63 = vld [vmem:[#allocation4 + $0x82] sm:$0xff]  ;;  %v2588_v16 = vpack.c.bf16 %v2583_v6, %v2582_v42  ;;  %v2702_v59 = vpack.c.bf16 %v2698_v0, %v2649_v15  ;;  %v2653_v22 = vpack.c.bf16 %v2649_v15, %v2601_v1 }
 0x278   : > { %v2615_v8 = vld [vmem:[#allocation4 + $0x52] sm:$0xff]  ;;  %v2604_v23 = vpack.c.bf16 %v2599_v7, %v2598_v45  ;;  %v2584_v17 = vld [vmem:[#allocation4 + $0x60] sm:$0xff]  ;;  %v2669_v21 = vpack.c.bf16 %v2665_v63, %v2617_v2  ;;  %2641 = vst.msk [vmem:[#allocation5 + $0xf0] sm:$0xff] %vm655_vm0, %v2637_v20  ;;  %v2718_v41 = vpack.c.bf16 %v2714_v5, %v2665_v63  ;;  %2690 = vst.msk [vmem:[#allocation5 + $0x108] sm:$0xff] %vm655_vm0, %v2686_v40 }
 0x279   : > { %v2716_v54 = vpack.c.bf16 %v2615_v8, %v2614_v46  ;;  %v2600_v18 = vld [vmem:[#allocation4 + $0x61] sm:$0xff]  ;;  %v2636_v26 = vpack.c.bf16 %v2584_v17, %v2583_v6  ;;  %2592 = vst.msk [vmem:[#allocation5 + $0x90] sm:$0xff] %vm655_vm0, %v2588_v16  ;;  %v2589_v28 = vpack.c.bf16 %v2585_v57, %v2584_v17  ;;  %2688 = vst.msk [vmem:[#allocation5 + $0x78] sm:$0xff] %vm655_vm0, %v2588_v16  ;;  %v11984_v45 = vld [vmem:[%s16272_s22 + $0x108] sm:$0xff]  }
 0x27a   : > { %v2616_v19 = vld [vmem:[#allocation4 + $0x62] sm:$0xff]  ;;  %2608 = vst.msk [vmem:[#allocation5 + $0x98] sm:$0xff] %vm655_vm0, %v2604_v23  ;;  %v2605_v27 = vpack.c.bf16 %v2601_v1, %v2600_v18  ;;  %2704 = vst.msk [vmem:[#allocation5 + $0x80] sm:$0xff] %vm655_vm0, %v2604_v23  ;;  %v2652_v32 = vpack.c.bf16 %v2600_v18, %v2599_v7  ;;  %v2725_v42 = vld [vmem:[#allocation5 + $0x10] sm:$0xff] }
 0x27b   : > { %2720 = vst.msk [vmem:[#allocation5 + $0x88] sm:$0xff] %vm655_vm0, %v2716_v54  ;;  %v2724_v55 = vld [vmem:[#allocation5 + $0x8] sm:$0xff]  ;;  %v2723_v24 = vld [vmem:[#allocation5] sm:$0xff]  ;;  %2624 = vst.msk [vmem:[#allocation5 + $0xa0] sm:$0xff] %vm655_vm0, %v2716_v54  ;;  %v2621_v31 = vpack.c.bf16 %v2617_v2, %v2616_v19  ;;  %v2668_v10 = vpack.c.bf16 %v2616_v19, %v2615_v8 }
 0x27c   : > { %3374 = vmatprep.mubr.bf16.mxu1 %v2724_v55  ;;  %v2733_v35 = vld [vmem:[#allocation5 + $0x50] sm:$0xff]  ;;  %v2726_v39 = vld [vmem:[#allocation5 + $0x18] sm:$0xff]  ;;  %2673 = vst.msk [vmem:[#allocation5 + $0x100] sm:$0xff] %vm655_vm0, %v2669_v21  ;;  %2706 = vst.msk [vmem:[#allocation5 + $0x110] sm:$0xff] %vm655_vm0, %v2702_v59 }
 0x27d   : > { %2657 = vst.msk [vmem:[#allocation5 + $0xf8] sm:$0xff] %vm655_vm0, %v2653_v22  ;;  %3375 = vmatmul.mubr.bf16.vlgmr.msra.gmra.mrb[32].mxu1 %v2723_v24  ;;  %3439 = vmatprep.mubr.bf16.mxu0 %v2726_v39  ;;  %2640 = vst.msk [vmem:[#allocation5 + $0xa8] sm:$0xff] %vm655_vm0, %v2636_v26  ;;  %v2735_v46 = vld [vmem:[#allocation5 + $0x60] sm:$0xff]  ;;  %v11990_v38 = vld [vmem:[%s16272_s22 + $0x158] sm:$0xff]  }
 0x27e   : > { %2609 = vst.msk [vmem:[#allocation5 + $0xe0] sm:$0xff] %vm655_vm0, %v2605_v27  ;;  %2593 = vst.msk [vmem:[#allocation5 + $0xd8] sm:$0xff] %vm655_vm0, %v2589_v28  ;;  %11296 = vmatpush3.bf16.msra.mxu1 %v11980_v9  ;;  %3382 = vmatprep.mubr.bf16.mxu1 %v2733_v35  ;;  %v11989_v36 = vld [vmem:[%s16272_s22 + $0x1d0] sm:$0xff]   ;;  %v2732_v49 = vld [vmem:[#allocation5 + $0x48] sm:$0xff] }
 0x27f   : > { %2625 = vst.msk [vmem:[#allocation5 + $0xe8] sm:$0xff] %vm655_vm0, %v2621_v31  ;;  %2705 = vst.msk [vmem:[#allocation5 + $0xc8] sm:$0xff] %vm655_vm0, %v2605_v27  ;;  %3440 = vmatmul.mubr.bf16.vlgmr.msra.gmra.mrb[72].mxu0 %v2725_v42  ;;  %11297 = vmatprep.subr.bf16.mxu1 %v11982_v25  ;;  %v11988_v37 = vld [vmem:[%s16272_s22 + $0x110] sm:$0xff]   ;;  %v11993_v29 = vld [vmem:[%s16272_s22 + $0x1d8] sm:$0xff]  }
 0x280   : > { %2689 = vst.msk [vmem:[#allocation5 + $0xc0] sm:$0xff] %vm655_vm0, %v2589_v28  ;;  %2721 = vst.msk [vmem:[#allocation5 + $0xd0] sm:$0xff] %vm655_vm0, %v2621_v31  ;;  %3447 = vmatprep.mubr.bf16.mxu0 %v2735_v46  ;;  %11336 = vmatpush3.bf16.msra.mxu0 %v11983_v30  ;;  %v11991_v50 = vld [vmem:[%s16272_s22 + $0x190] sm:$0xff]   ;;  %v2734_v56 = vld [vmem:[#allocation5 + $0x58] sm:$0xff] }
 0x281   : > { %2672 = vst.msk [vmem:[#allocation5 + $0xb8] sm:$0xff] %vm655_vm0, %v2668_v10  ;;  %2656 = vst.msk [vmem:[#allocation5 + $0xb0] sm:$0xff] %vm655_vm0, %v2652_v32  ;;  %11337 = vmatprep.subr.bf16.mxu0 %v11985_v14  ;;  %v2742_v52 = vld [vmem:[#allocation5 + $0x98] sm:$0xff]  ;;  %v11992_v58 = vld [vmem:[%s16272_s22 + $0x118] sm:$0xff]  }
 0x282   : > { %2722 = vst.msk [vmem:[#allocation5 + $0x118] sm:$0xff] %vm655_vm0, %v2718_v41  ;;  %11298 = vmatpush3.bf16.msra.mxu1 %v11984_v45  ;;  %v11994_v34 = vld [vmem:[%s16272_s22 + $0x160] sm:$0xff]   ;;  %v11995_v62 = vld [vmem:[%s16272_s22 + $0x198] sm:$0xff]   ;;  %v11998_v1 = vld [vmem:[%s16272_s22 + $0x168] sm:$0xff]  }
 0x283   : > { %11299 = vmatprep.subr.bf16.mxu1 %v11986_v47  ;;  %v11997_v0 = vld [vmem:[%s16272_s22 + $0x1e0] sm:$0xff]   ;;  %v12001_v6 = vld [vmem:[%s16272_s22 + $0x1e8] sm:$0xff]   ;;  %v2743_v7 = vld [vmem:[#allocation5 + $0xa0] sm:$0xff] }
 0x284   : > { %11338 = vmatpush3.bf16.msra.mxu0 %v11987_v48  ;;  %v2744_v61 = vld [vmem:[#allocation5 + $0xa8] sm:$0xff]  ;;  %v11996_v57 = vld [vmem:[%s16272_s22 + $0x120] sm:$0xff]   ;;  %v12000_v8 = vld [vmem:[%s16272_s22 + $0x128] sm:$0xff]  }
 0x285   : > { %3383 = vmatmul.mubr.bf16.gmra.mrb[36].mxu1 %v2732_v49  ;;  %11339 = vmatprep.subr.bf16.mxu0 %v11989_v36  ;;  %v2741_v2 = vld [vmem:[#allocation5 + $0x90] sm:$0xff]  ;;  %v2751_v5 = vld [vmem:[#allocation5 + $0xe0] sm:$0xff]  ;;  %v12003_v13 = vld [vmem:[%s16272_s22 + $0x1a8] sm:$0xff]  }
 0x286   : > { %11300 = vmatpush3.bf16.msra.mxu1 %v11988_v37  ;;  %3390 = vmatprep.mubr.bf16.mxu1 %v2742_v52  ;;  %v11999_v3 = vld [vmem:[%s16272_s22 + $0x1a0] sm:$0xff]   ;;  %v12002_v54 = vld [vmem:[%s16272_s22 + $0x170] sm:$0xff]   ;;  %v12006_v23 = vld [vmem:[%s16272_s22 + $0x178] sm:$0xff]  }
 0x287   : > { %3448 = vmatmul.mubr.bf16.gmra.mrb[76].mxu0 %v2734_v56  ;;  %11301 = vmatprep.subr.bf16.mxu1 %v11990_v38  ;;  %v2753_v9 = vld [vmem:[#allocation5 + $0xf0] sm:$0xff]  ;;  %v12005_v15 = vld [vmem:[%s16272_s22 + $0x1f0] sm:$0xff]   ;;  %v2750_v16 = vld [vmem:[#allocation5 + $0xd8] sm:$0xff] }
 0x288   : > { %3455 = vmatprep.mubr.bf16.mxu0 %v2744_v61  ;;  %11340 = vmatpush3.bf16.msra.mxu0 %v11991_v50  ;;  %v12004_v63 = vld [vmem:[%s16272_s22 + $0x130] sm:$0xff]   ;;  %v2728_v18 = vld [vmem:[#allocation5 + $0x28] sm:$0xff]  ;;  %v2730_v59 = vld [vmem:[#allocation5 + $0x38] sm:$0xff] }
 0x289   : > { %11341 = vmatprep.subr.bf16.mxu0 %v11993_v29  ;;  %v12007_v17 = vld [vmem:[%s16272_s22 + $0x1b0] sm:$0xff]   ;;  %v12009_v19 = vld [vmem:[%s16272_s22 + $0x1f8] sm:$0xff]   ;;  %v12011_v22 = vld [vmem:[%s16272_s22 + $0x200] sm:$0xff]  }
 0x28a   : > { %11302 = vmatpush3.bf16.msra.mxu1 %v11992_v58  ;;  %v2752_v20 = vld [vmem:[#allocation5 + $0xe8] sm:$0xff]  ;;  %v12012_v24 = vld [vmem:[%s16272_s22 + $0x208] sm:$0xff]   ;;  %v2727_v25 = vld [vmem:[#allocation5 + $0x20] sm:$0xff] }
 0x28b   : > { %11303 = vmatprep.subr.bf16.mxu1 %v11994_v34  ;;  %v12008_v21 = vld [vmem:[%s16272_s22 + $0x138] sm:$0xff]   ;;  %v2737_v26 = vld [vmem:[#allocation5 + $0x70] sm:$0xff]  ;;  %v2739_v28 = vld [vmem:[#allocation5 + $0x80] sm:$0xff] }
 0x28c   : > { %11342 = vmatpush3.bf16.msra.mxu0 %v11995_v62  ;;  %v12010_v55 = vld [vmem:[%s16272_s22 + $0x1b8] sm:$0xff]   ;;  %v2729_v27 = vld [vmem:[#allocation5 + $0x30] sm:$0xff]  ;;  %v12013_v31 = vld [vmem:[%s16272_s22 + $0x210] sm:$0xff]  }
 0x28d   : > { %3391 = vmatmul.mubr.bf16.gmra.mrb[40].mxu1 %v2741_v2  ;;  %11343 = vmatprep.subr.bf16.mxu0 %v11997_v0  ;;  %v12014_v35 = vld [vmem:[%s16272_s22 + $0x218] sm:$0xff]   ;;  %v2746_v30 = vld [vmem:[#allocation5 + $0xb8] sm:$0xff]  ;;  %v12015_v40 = vld [vmem:[%s16272_s22 + $0x220] sm:$0xff]  }
 0x28e   : > { %11304 = vmatpush3.bf16.msra.mxu1 %v11996_v57  ;;  %3398 = vmatprep.mubr.bf16.mxu1 %v2751_v5  ;;  %v2736_v39 = vld [vmem:[#allocation5 + $0x68] sm:$0xff]  ;;  %v2738_v10 = vld [vmem:[#allocation5 + $0x78] sm:$0xff]  ;;  %v2745_v14 = vld [vmem:[#allocation5 + $0xb0] sm:$0xff] }
 0x28f   : > { %3456 = vmatmul.mubr.bf16.gmra.mrb[80].mxu0 %v2743_v7  ;;  %11305 = vmatprep.subr.bf16.mxu1 %v11998_v1  ;;  %v2748_v32 = vld [vmem:[#allocation5 + $0xc8] sm:$0xff]  ;;  %v12016_v41 = vld [vmem:[%s16272_s22 + $0x228] sm:$0xff]   ;;  %v2755_v42 = vld [vmem:[#allocation5 + $0x100] sm:$0xff] }
 0x290   : > { %3463 = vmatprep.mubr.bf16.mxu0 %v2753_v9  ;;  %11344 = vmatpush3.bf16.msra.mxu0 %v11999_v3  ;;  %v2747_v45 = vld [vmem:[#allocation5 + $0xc0] sm:$0xff]  ;;  %v2757_v46 = vld [vmem:[#allocation5 + $0x110] sm:$0xff]  ;;  %v12018_v48 = vld [vmem:[%s16272_s22 + $0x238] sm:$0xff]  }
 0x291   : > { %11345 = vmatprep.subr.bf16.mxu0 %v12001_v6  ;;  %v12017_v47 = vld [vmem:[%s16272_s22 + $0x230] sm:$0xff]   ;;  %v2754_v36 = vld [vmem:[#allocation5 + $0xf8] sm:$0xff]  ;;  %v2756_v38 = vld [vmem:[#allocation5 + $0x108] sm:$0xff]  ;;  %s10022_s22 = scalar_lea.sflag [#allocation13], %s647_s30 }
 0x292   : > { %11306 = vmatpush3.bf16.msra.mxu1 %v12000_v8  ;;  %v2731_v37 = vld [vmem:[#allocation5 + $0x40] sm:$0xff]  ;;  %v2740_v49 = vld [vmem:[#allocation5 + $0x88] sm:$0xff]  ;;  %v2749_v50 = vld [vmem:[#allocation5 + $0xd0] sm:$0xff] }
 0x293   : > { %11307 = vmatprep.subr.bf16.mxu1 %v12002_v54  ;;  %v2758_v52 = vld [vmem:[#allocation5 + $0x118] sm:$0xff]  ;;  %v12019_v29 = vld [vmem:[%s16227_s7 + $0xc0] sm:$0xff]   ;;  %v12027_v1 = vld [vmem:[%s16227_s7 + $0xd0] sm:$0xff]  }
 0x294   : > { %11346 = vmatpush3.bf16.msra.mxu0 %v12003_v13  ;;  %v12020_v56 = vld [vmem:[%s16227_s7 + $0x40] sm:$0xff]   ;;  %v12023_v34 = vld [vmem:[%s16227_s7 + $0xc8] sm:$0xff]   ;;  %v12028_v2 = vld [vmem:[%s16227_s7 + $0x50] sm:$0xff]  }
 0x295   : > { %3399 = vmatmul.mubr.bf16.gmra.mrb[44].mxu1 %v2750_v16  ;;  %11347 = vmatprep.subr.bf16.mxu0 %v12005_v15  ;;  %v12021_v58 = vld [vmem:[%s16227_s7 + $0x80] sm:$0xff]   ;;  %v12024_v62 = vld [vmem:[%s16227_s7 + $0x48] sm:$0xff]   ;;  %v12029_v3 = vld [vmem:[%s16227_s7 + $0x90] sm:$0xff]  }
 0x296   : > { %11308 = vmatpush3.bf16.msra.mxu1 %v12004_v63  ;;  %3504 = vmatprep.mubr.bf16.mxu1 %v2728_v18  ;;  %v12022_v61 = vld [vmem:[%s16227_s7] sm:$0xff]   ;;  %v12025_v0 = vld [vmem:[%s16227_s7 + $0x88] sm:$0xff]   ;;  %v12030_v5 = vld [vmem:[%s16227_s7 + $0x10] sm:$0xff]  }
 0x297   : > { %3464 = vmatmul.mubr.bf16.gmra.mrb[84].mxu0 %v2752_v20  ;;  %11309 = vmatprep.subr.bf16.mxu1 %v12006_v23  ;;  %v12026_v57 = vld [vmem:[%s16227_s7 + $0x8] sm:$0xff]   ;;  %v12031_v6 = vld [vmem:[%s16227_s7 + $0xd8] sm:$0xff]   ;;  %v12035_v54 = vld [vmem:[%s16227_s7 + $0xe0] sm:$0xff]  }
 0x298   : > { %11348 = vmatpush3.bf16.msra.mxu0 %v12007_v17  ;;  %3569 = vmatprep.mubr.bf16.mxu0 %v2730_v59  ;;  %v12032_v7 = vld [vmem:[%s16227_s7 + $0x58] sm:$0xff]   ;;  %v12036_v13 = vld [vmem:[%s16227_s7 + $0x60] sm:$0xff]   ;;  %v12039_v23 = vld [vmem:[%s16227_s7 + $0xe8] sm:$0xff]  }
 0x299   : > { %11349 = vmatprep.subr.bf16.mxu0 %v12009_v19  ;;  %v12033_v8 = vld [vmem:[%s16227_s7 + $0x98] sm:$0xff]   ;;  %v12037_v15 = vld [vmem:[%s16227_s7 + $0xa0] sm:$0xff]   ;;  %v12040_v16 = vld [vmem:[%s16227_s7 + $0x68] sm:$0xff]  }
 0x29a   : > { %11310 = vmatpush3.bf16.msra.mxu1 %v12008_v21  ;;  %v12034_v9 = vld [vmem:[%s16227_s7 + $0x18] sm:$0xff]   ;;  %v12038_v63 = vld [vmem:[%s16227_s7 + $0x20] sm:$0xff]   ;;  %v12041_v17 = vld [vmem:[%s16227_s7 + $0xa8] sm:$0xff]  }
 0x29b   : > { %11672 = vmatprep.subr.bf16.mxu1 %v12011_v22  ;;  %v12042_v18 = vld [vmem:[%s16227_s7 + $0x28] sm:$0xff]   ;;  %v12043_v19 = vld [vmem:[%s16227_s7 + $0xf0] sm:$0xff]  }
 0x29c   : > { %11350 = vmatpush3.bf16.msra.mxu0 %v12010_v55  ;;  %v12044_v20 = vld [vmem:[%s16227_s7 + $0x70] sm:$0xff]   ;;  %v12048_v55 = vld [vmem:[%s16227_s7 + $0x78] sm:$0xff]  }
 0x29d   : > { %3505 = vmatmul.mubr.bf16.vlgmr.msra.gmra.mrb[48].mxu1 %v2727_v25  ;;  %11387 = vmatprep.subr.bf16.mxu0 %v12020_v56  ;;  %v12045_v21 = vld [vmem:[%s16227_s7 + $0xb0] sm:$0xff]   ;;  %v12050_v25 = vld [vmem:[%s16227_s7 + $0x38] sm:$0xff]  }
 0x29e   : > { %11673 = vmatpush3.bf16.msra.mxu1 %v12011_v22  ;;  %3512 = vmatprep.mubr.bf16.mxu1 %v2737_v26  ;;  %v12046_v59 = vld [vmem:[%s16227_s7 + $0x30] sm:$0xff]   ;;  %v12047_v22 = vld [vmem:[%s16227_s7 + $0xf8] sm:$0xff]   ;;  %v12051_v26 = vld [vmem:[%s16227_s7 + $0x1c0] sm:$0xff]  }
 0x29f   : > { %3570 = vmatmul.mubr.bf16.vlgmr.msra.gmra.mrb[88].mxu0 %v2729_v27  ;;  %11674 = vmatprep.subr.bf16.mxu1 %v12012_v24  ;;  %v12052_v27 = vld [vmem:[%s16227_s7 + $0x140] sm:$0xff]  }
 0x2a0   : > { %3577 = vmatprep.mubr.bf16.mxu0 %v2739_v28  ;;  %11388 = vmatpush3.bf16.msra.mxu0 %v12022_v61 }
 0x2a1   : > { %11389 = vmatprep.subr.bf16.mxu0 %v12024_v62 }
 0x2a2   : > { %11675 = vmatpush3.bf16.msra.mxu1 %v12012_v24  ;;  %v12049_v24 = vld [vmem:[%s16227_s7 + $0xb8] sm:$0xff]  }
 0x2a3   : > { %11676 = vmatprep.subr.bf16.mxu1 %v12013_v31 }
 0x2a4   : > { %11390 = vmatpush3.bf16.msra.mxu0 %v12026_v57 }
 0x2a5   : > { %3513 = vmatmul.mubr.bf16.gmra.mrb[52].mxu1 %v2736_v39  ;;  %11391 = vmatprep.subr.bf16.mxu0 %v12028_v2 }
 0x2a6   : > { %11677 = vmatpush3.bf16.msra.mxu1 %v12013_v31  ;;  %3520 = vmatprep.mubr.bf16.mxu1 %v2746_v30  ;;  %v10283_v31 = vld [vmem:[%s16226_s6] ss:$0 sm:$0xff] }
 0x2a7   : > { %3578 = vmatmul.mubr.bf16.gmra.mrb[92].mxu0 %v2738_v10  ;;  %11678 = vmatprep.subr.bf16.mxu1 %v12014_v35 }
 0x2a8   : > { %3585 = vmatprep.mubr.bf16.mxu0 %v2748_v32  ;;  %11392 = vmatpush3.bf16.msra.mxu0 %v12030_v5 }
 0x2a9   : > { %11393 = vmatprep.subr.bf16.mxu0 %v12032_v7 }
 0x2aa   : > { %11679 = vmatpush3.bf16.msra.mxu1 %v12014_v35 }
 0x2ab   : > { %11680 = vmatprep.subr.bf16.mxu1 %v12015_v40 }
 0x2ac   : > { %11394 = vmatpush3.bf16.msra.mxu0 %v12034_v9 }
 0x2ad   : > { %3521 = vmatmul.mubr.bf16.gmra.mrb[56].mxu1 %v2745_v14  ;;  %11395 = vmatprep.subr.bf16.mxu0 %v12036_v13 }
 0x2ae   : > { %11681 = vmatpush3.bf16.msra.mxu1 %v12015_v40  ;;  %3528 = vmatprep.mubr.bf16.mxu1 %v2755_v42 }
 0x2af   : > { %3586 = vmatmul.mubr.bf16.gmra.mrb[96].mxu0 %v2747_v45  ;;  %11682 = vmatprep.subr.bf16.mxu1 %v12016_v41 }
 0x2b0   : > { %3593 = vmatprep.mubr.bf16.mxu0 %v2757_v46  ;;  %11396 = vmatpush3.bf16.msra.mxu0 %v12038_v63 }
 0x2b1   : > { %11397 = vmatprep.subr.bf16.mxu0 %v12040_v16 }
 0x2b2   : > { %11683 = vmatpush3.bf16.msra.mxu1 %v12016_v41 }
 0x2b3   : > { %11684 = vmatprep.subr.bf16.mxu1 %v12017_v47 }
 0x2b4   : > { %11398 = vmatpush3.bf16.msra.mxu0 %v12042_v18 }
 0x2b5   : > { %3529 = vmatmul.mubr.bf16.gmra.mrb[60].mxu1 %v2754_v36  ;;  %11399 = vmatprep.subr.bf16.mxu0 %v12044_v20 }
 0x2b6   : > { %11685 = vmatpush3.bf16.msra.mxu1 %v12017_v47  ;;  %11688 = vmatprep.mubr.bf16.mxu1 %v2731_v37 }
 0x2b7   : > { %3594 = vmatmul.mubr.bf16.gmra.mrb[100].mxu0 %v2756_v38  ;;  %11686 = vmatprep.subr.bf16.mxu1 %v12018_v48 }
 0x2b8   : > { %11400 = vmatpush3.bf16.msra.mxu0 %v12046_v59 }
 0x2b9   : > { %11401 = vmatprep.subr.bf16.mxu0 %v12048_v55 }
 0x2ba   : > { %11687 = vmatpush3.bf16.msra.mxu1 %v12018_v48 }
 0x2bb   : > { %11409 = vmatprep.subr.bf16.mxu1 %v12019_v29 }
 0x2bc   : > { %11402 = vmatpush3.bf16.msra.mxu0 %v12050_v25 }
 0x2bd   : > { %11689 = vmatmul.mubr.bf16.vlgmr.msra.gmra.mrb[64].mxu1 %v2740_v49  ;;  %11431 = vmatprep.subr.bf16.mxu0 %v12052_v27 }
 0x2be   : > { %11692 = vmatprep.mubr.bf16.mxu1 %v2749_v50  ;;  %11410 = vmatpush3.bf16.msra.mxu1 %v12021_v58 }
 0x2bf   : > { %11411 = vmatprep.subr.bf16.mxu1 %v12023_v34 }
 0x2c2   : > { %11412 = vmatpush3.bf16.msra.mxu1 %v12025_v0 }
 0x2c3   : > { %11413 = vmatprep.subr.bf16.mxu1 %v12027_v1 }
 0x2c5   : > { %11693 = vmatmul.mubr.bf16.gmra.mrb[68].mxu1 %v2758_v52 }
 0x2c6   : > { %11414 = vmatpush3.bf16.msra.mxu1 %v12029_v3 }
 0x2c7   : > { %11415 = vmatprep.subr.bf16.mxu1 %v12031_v6 }
 0x2ca   : > { %11416 = vmatpush3.bf16.msra.mxu1 %v12033_v8 }
 0x2cb   : > { %11417 = vmatprep.subr.bf16.mxu1 %v12035_v54 }
 0x2ce   : > { %11418 = vmatpush3.bf16.msra.mxu1 %v12037_v15 }
 0x2cf   : > { %11419 = vmatprep.subr.bf16.mxu1 %v12039_v23 }
 0x2d2   : > { %11420 = vmatpush3.bf16.msra.mxu1 %v12041_v17 }
 0x2d3   : > { %11421 = vmatprep.subr.bf16.mxu1 %v12043_v19 }
 0x2d6   : > { %11422 = vmatpush3.bf16.msra.mxu1 %v12045_v21 }
 0x2d7   : > { %11423 = vmatprep.subr.bf16.mxu1 %v12047_v22 }
 0x2da   : > { %11424 = vmatpush3.bf16.msra.mxu1 %v12049_v24 }
 0x2db   : > { %11453 = vmatprep.subr.bf16.mxu1 %v12051_v26 }
 0x350   : > { %v11231_v28 = vpop.f32.mrb[32].mxu1 }
 0x351   : > { %v11232_v35 = vpop.f32.mrb[33].mxu1 }
 0x352   : > { %v11233_v39 = vadd.f32 %v11232_v35, %v11231_v28  ;;  %v11234_v30 = vpop.f32.mrb[34].mxu1  ;;  %v11271_v10 = vpop.f32.mrb[72].mxu0 }
 0x353   : > { %v11235_v32 = vpop.f32.mrb[35].mxu1  ;;  %v11272_v40 = vpop.f32.mrb[73].mxu0 }
 0x354   : > { %v3377_v41 = vadd.f32 %v11233_v39, %v10283_v31  ;;  %v11236_v14 = vadd.f32 %v11235_v32, %v11234_v30  ;;  %v11273_v42 = vadd.f32 %v11272_v40, %v11271_v10  ;;  %v11274_v45 = vpop.f32.mrb[74].mxu0 }
 0x355   : > { %v11275_v46 = vpop.f32.mrb[75].mxu0 }
 0x356   : > { %v3380_v47 = vadd.f32 %v11236_v14, %v10283_v31  ;;  %v3442_v48 = vadd.f32 %v11273_v42, %v3377_v41  ;;  %v11276_v36 = vadd.f32 %v11275_v46, %v11274_v45 }
 0x358   : > { %v3445_v37 = vadd.f32 %v11276_v36, %v3380_v47  ;;  %v11237_v38 = vpop.f32.mrb[36].mxu1 }
 0x359   : > { %v11238_v49 = vpop.f32.mrb[37].mxu1 }
 0x35a   : > { %v11239_v50 = vadd.f32 %v11238_v49, %v11237_v38  ;;  %v11240_v52 = vpop.f32.mrb[38].mxu1  ;;  %v11277_v29 = vpop.f32.mrb[76].mxu0 }
 0x35b   : > { %v11241_v56 = vpop.f32.mrb[39].mxu1  ;;  %v11278_v58 = vpop.f32.mrb[77].mxu0 }
 0x35c   : > { %v3385_v61 = vadd.f32 %v11239_v50, %v10283_v31  ;;  %v11242_v34 = vadd.f32 %v11241_v56, %v11240_v52  ;;  %v11279_v62 = vadd.f32 %v11278_v58, %v11277_v29  ;;  %v11280_v0 = vpop.f32.mrb[78].mxu0 }
 0x35d   : > { %v11281_v57 = vpop.f32.mrb[79].mxu0 }
 0x35e   : > { %v3388_v1 = vadd.f32 %v11242_v34, %v10283_v31  ;;  %v3450_v2 = vadd.f32 %v11279_v62, %v3385_v61  ;;  %v11282_v3 = vadd.f32 %v11281_v57, %v11280_v0 }
 0x360   : > { %v3453_v5 = vadd.f32 %v11282_v3, %v3388_v1  ;;  %v11243_v6 = vpop.f32.mrb[40].mxu1 }
 0x361   : > { %v11244_v7 = vpop.f32.mrb[41].mxu1 }
 0x362   : > { %v11245_v8 = vadd.f32 %v11244_v7, %v11243_v6  ;;  %v11246_v9 = vpop.f32.mrb[42].mxu1  ;;  %v11283_v54 = vpop.f32.mrb[80].mxu0 }
 0x363   : > { %v11247_v13 = vpop.f32.mrb[43].mxu1  ;;  %v11284_v15 = vpop.f32.mrb[81].mxu0 }
 0x364   : > { %v3393_v63 = vadd.f32 %v11245_v8, %v10283_v31  ;;  %v11248_v23 = vadd.f32 %v11247_v13, %v11246_v9  ;;  %v11285_v16 = vadd.f32 %v11284_v15, %v11283_v54  ;;  %v11286_v17 = vpop.f32.mrb[82].mxu0 }
 0x365   : > { %v11287_v18 = vpop.f32.mrb[83].mxu0 }
 0x366   : > { %v3396_v19 = vadd.f32 %v11248_v23, %v10283_v31  ;;  %v3458_v20 = vadd.f32 %v11285_v16, %v3393_v63  ;;  %v11288_v21 = vadd.f32 %v11287_v18, %v11286_v17 }
 0x368   : > { %v3461_v59 = vadd.f32 %v11288_v21, %v3396_v19  ;;  %v11249_v22 = vpop.f32.mrb[44].mxu1 }
 0x369   : > { %v11250_v55 = vpop.f32.mrb[45].mxu1 }
 0x36a   : > { %v11251_v24 = vadd.f32 %v11250_v55, %v11249_v22  ;;  %v11252_v25 = vpop.f32.mrb[46].mxu1  ;;  %v11289_v26 = vpop.f32.mrb[84].mxu0 }
 0x36b   : > { %v11253_v27 = vpop.f32.mrb[47].mxu1  ;;  %v11290_v28 = vpop.f32.mrb[85].mxu0 }
 0x36c   : > { %v3401_v35 = vadd.f32 %v11251_v24, %v10283_v31  ;;  %v11254_v39 = vadd.f32 %v11253_v27, %v11252_v25  ;;  %v11291_v30 = vadd.f32 %v11290_v28, %v11289_v26  ;;  %v11292_v10 = vpop.f32.mrb[86].mxu0 }
 0x36d   : > { %v11293_v32 = vpop.f32.mrb[87].mxu0 }
 0x36e   : > { %v3404_v40 = vadd.f32 %v11254_v39, %v10283_v31  ;;  %v3466_v41 = vadd.f32 %v11291_v30, %v3401_v35  ;;  %v11294_v14 = vadd.f32 %v11293_v32, %v11292_v10 }
 0x370   : > { %v3469_v42 = vadd.f32 %v11294_v14, %v3404_v40  ;;  %v11311_v45 = vpop.f32.mrb[48].mxu1 }
 0x371   : > { %v11312_v46 = vpop.f32.mrb[49].mxu1 }
 0x372   : > { %v11313_v47 = vadd.f32 %v11312_v46, %v11311_v45  ;;  %v11314_v36 = vpop.f32.mrb[50].mxu1  ;;  %v11351_v38 = vpop.f32.mrb[88].mxu0 }
 0x373   : > { %v11315_v49 = vpop.f32.mrb[51].mxu1  ;;  %v11352_v50 = vpop.f32.mrb[89].mxu0 }
 0x374   : > { %v3507_v52 = vadd.f32 %v11313_v47, %v3442_v48  ;;  %v11316_v29 = vadd.f32 %v11315_v49, %v11314_v36  ;;  %v11353_v56 = vadd.f32 %v11352_v50, %v11351_v38  ;;  %v11354_v58 = vpop.f32.mrb[90].mxu0 }
 0x375   : > { %v11355_v61 = vpop.f32.mrb[91].mxu0 }
 0x376   : > { %v3510_v34 = vadd.f32 %v11316_v29, %v3445_v37  ;;  %v11356_v62 = vadd.f32 %v11355_v61, %v11354_v58  ;;  %v3572_v0 = vadd.f32 %v11353_v56, %v3507_v52 }
 0x378   : > { %v11317_v57 = vpop.f32.mrb[52].mxu1  ;;  %v3575_v31 = vadd.f32 %v11356_v62, %v3510_v34 }
 0x379   : > { %v11318_v1 = vpop.f32.mrb[53].mxu1 }
 0x37a   : > { %v11319_v3 = vadd.f32 %v11318_v1, %v11317_v57  ;;  %v11320_v6 = vpop.f32.mrb[54].mxu1  ;;  %v11357_v7 = vpop.f32.mrb[92].mxu0 }
 0x37b   : > { %v11321_v8 = vpop.f32.mrb[55].mxu1  ;;  %v11358_v9 = vpop.f32.mrb[93].mxu0 }
 0x37c   : > { %v3515_v54 = vadd.f32 %v11319_v3, %v3450_v2  ;;  %v11322_v13 = vadd.f32 %v11321_v8, %v11320_v6  ;;  %v11359_v15 = vadd.f32 %v11358_v9, %v11357_v7  ;;  %v11360_v63 = vpop.f32.mrb[94].mxu0 }
 0x37d   : > { %v11361_v48 = vpop.f32.mrb[95].mxu0 }
 0x37e   : > { %v3518_v23 = vadd.f32 %v11322_v13, %v3453_v5  ;;  %v11362_v16 = vadd.f32 %v11361_v48, %v11360_v63  ;;  %v3580_v17 = vadd.f32 %v11359_v15, %v3515_v54 }
 0x380   : > { %v11323_v18 = vpop.f32.mrb[56].mxu1  ;;  %v3583_v37 = vadd.f32 %v11362_v16, %v3518_v23 }
 0x381   : > { %v11324_v19 = vpop.f32.mrb[57].mxu1 }
 0x382   : > { %v11325_v21 = vadd.f32 %v11324_v19, %v11323_v18  ;;  %v11326_v22 = vpop.f32.mrb[58].mxu1  ;;  %v11363_v55 = vpop.f32.mrb[96].mxu0 }
 0x383   : > { %v11327_v24 = vpop.f32.mrb[59].mxu1  ;;  %v11364_v25 = vpop.f32.mrb[97].mxu0 }
 0x384   : > { %v3523_v26 = vadd.f32 %v11325_v21, %v3458_v20  ;;  %v11328_v27 = vadd.f32 %v11327_v24, %v11326_v22  ;;  %v11365_v28 = vadd.f32 %v11364_v25, %v11363_v55  ;;  %v11366_v35 = vpop.f32.mrb[98].mxu0 }
 0x385   : > { %v11367_v2 = vpop.f32.mrb[99].mxu0 }
 0x386   : > { %v3526_v39 = vadd.f32 %v11328_v27, %v3461_v59  ;;  %v11368_v30 = vadd.f32 %v11367_v2, %v11366_v35  ;;  %v3588_v10 = vadd.f32 %v11365_v28, %v3523_v26  ;;  %v3692_v26 = vld [vmem:[#allocation6] ss:$2 sm:$0xf] }
 0x388   : > { %v11329_v32 = vpop.f32.mrb[60].mxu1  ;;  %v3591_v5 = vadd.f32 %v11368_v30, %v3526_v39  ;;  %v3710_v39 = vld [vmem:[#allocation6 + $0x1] ss:$2 sm:$0xf] }
 0x389   : > { %v11330_v40 = vpop.f32.mrb[61].mxu1 }
 0x38a   : > { %v11331_v14 = vadd.f32 %v11330_v40, %v11329_v32  ;;  %v11332_v45 = vpop.f32.mrb[62].mxu1  ;;  %v11369_v46 = vpop.f32.mrb[100].mxu0 }
 0x38b   : > { %v11333_v47 = vpop.f32.mrb[63].mxu1  ;;  %v11370_v36 = vpop.f32.mrb[101].mxu0 }
 0x38c   : > { %v3531_v38 = vadd.f32 %v11331_v14, %v3466_v41  ;;  %v11334_v49 = vadd.f32 %v11333_v47, %v11332_v45  ;;  %v11371_v50 = vadd.f32 %v11370_v36, %v11369_v46  ;;  %v11372_v52 = vpop.f32.mrb[102].mxu0 }
 0x38d   : > { %v11373_v20 = vpop.f32.mrb[103].mxu0 }
 0x38e   : > { %v3534_v29 = vadd.f32 %v11334_v49, %v3469_v42  ;;  %v11374_v56 = vadd.f32 %v11373_v20, %v11372_v52  ;;  %v3596_v58 = vadd.f32 %v11371_v50, %v3531_v38 }
 0x390   : > { %v11690_v61 = vpop.f32.mrb[64].mxu1  ;;  %v3599_v59 = vadd.f32 %v11374_v56, %v3534_v29 }
 0x391   : > { %v3645_v34 = vadd.f32 %v11690_v61, %v3580_v17  ;;  %v3636_v62 = vpop.f32.mrb[65].mxu1 }
 0x392   : > { %v3637_v57 = vadd.f32 %v3636_v62, %v3572_v0  ;;  %v11691_v1 = vpop.f32.mrb[66].mxu1 }
 0x393   : > { %v3669_v3 = vadd.f32 %v3645_v34, %v13625_v12  ;;  %v3648_v6 = vadd.f32 %v11691_v1, %v3583_v37  ;;  %v3639_v7 = vpop.f32.mrb[67].mxu1 }
 0x394   : > { %v3667_v8 = vadd.f32 %v3637_v57, %v13582_v60  ;;  %v3640_v41 = vadd.f32 %v3639_v7, %v3575_v31 }
 0x395   : > { %v3677_v9 = vmax.f32 %v3669_v3, 0.0  ;;  %v3670_v54 = vadd.f32 %v3648_v6, %v13649_v44 }
 0x396   : > { %v3675_v13 = vmax.f32 %v3667_v8, 0.0  ;;  %v3668_v42 = vadd.f32 %v3640_v41, %v13599_v33 }
 0x397   : > { %3686 = vst.msk [vmem:[#allocation6 + $0x31] sm:$0xff] %vm655_vm0, %v3677_v9  ;;  %v3678_v15 = vmax.f32 %v3670_v54, 0.0 }
 0x398   : > { %3684 = vst.msk [vmem:[#allocation6 + $0x11] sm:$0xff] %vm655_vm0, %v3675_v13  ;;  %v3676_v0 = vmax.f32 %v3668_v42, 0.0  ;;  %v11694_v63 = vpop.f32.mrb[68].mxu1 }
 0x399   : > { %3687 = vst.msk [vmem:[#allocation6 + $0x41] sm:$0xff] %vm655_vm0, %v3678_v15  ;;  %v3661_v12 = vadd.f32 %v11694_v63, %v3596_v58  ;;  %v3652_v48 = vpop.f32.mrb[69].mxu1 }
 0x39a   : > { %3685 = vst.msk [vmem:[#allocation6 + $0x21] sm:$0xff] %vm655_vm0, %v3676_v0  ;;  %v3653_v60 = vadd.f32 %v3652_v48, %v3588_v10  ;;  %v11695_v31 = vpop.f32.mrb[70].mxu1 }
 0x39b   : > { %v3673_v44 = vadd.f32 %v3661_v12, %v13794_v51  ;;  %v3664_v23 = vadd.f32 %v11695_v31, %v3599_v59  ;;  %v3655_v16 = vpop.f32.mrb[71].mxu1 }
 0x39c   : > { %v3671_v33 = vadd.f32 %v3653_v60, %v13734_v53  ;;  %v3656_v17 = vadd.f32 %v3655_v16, %v3591_v5 }
 0x39d   : > { %v3681_v18 = vmax.f32 %v3673_v44, 0.0  ;;  %v3674_v37 = vadd.f32 %v3664_v23, %v13810_v4  ;;  %v3728_v4 = vld [vmem:[#allocation6 + $0x2] ss:$2 sm:$0xf] }
 0x39e   : > { %v3679_v19 = vmax.f32 %v3671_v33, 0.0  ;;  %v3672_v21 = vadd.f32 %v3656_v17, %v13757_v11  ;;  %v3747_v24 = vld [vmem:[#allocation6 + $0x30] ss:$2 sm:$0xf] }
 0x39f   : > { %3690 = vst.msk [vmem:[#allocation6 + $0x71] sm:$0xff] %vm655_vm0, %v3681_v18  ;;  %v3682_v22 = vmax.f32 %v3674_v37, 0.0  ;;  %v3745_v51 = vld [vmem:[#allocation6 + $0x10] ss:$2 sm:$0xf] }
 0x3a0   : > { %3688 = vst.msk [vmem:[#allocation6 + $0x51] sm:$0xff] %vm655_vm0, %v3679_v19  ;;  %v3680_v55 = vmax.f32 %v3672_v21, 0.0  ;;  %v3781_v53 = vld [vmem:[#allocation6 + $0x12] ss:$2 sm:$0xf]  ;;  %v3756_v40 = vcombine.low %v3745_v51, %v3747_v24 }
 0x3a1   : > { %3691 = vst.msk [vmem:[#allocation6 + $0x81] sm:$0xff] %vm655_vm0, %v3682_v22  ;;  %v3783_v25 = vld [vmem:[#allocation6 + $0x32] ss:$2 sm:$0xf] }
 0x3a2   : > { %3689 = vst.msk [vmem:[#allocation6 + $0x61] sm:$0xff] %vm655_vm0, %v3680_v55  ;;  %v3694_v27 = vld [vmem:[#allocation6 + $0x20] ss:$2 sm:$0xf]  ;;  %v3792_v46 = vcombine.low %v3781_v53, %v3783_v25  ;;  %v12053_v24 = vld [vmem:[%s16227_s7 + $0x180] sm:$0xff]  }
 0x3a3   : > { %v3730_v28 = vld [vmem:[#allocation6 + $0x22] ss:$2 sm:$0xf]  ;;  %v3712_v30 = vld [vmem:[#allocation6 + $0x21] ss:$2 sm:$0xf]  ;;  %v3703_v34 = vcombine.low %v3692_v26, %v3694_v27 }
 0x3a4   : > { %v3817_v10 = vld [vmem:[#allocation6 + $0x21] ss:$2 sm:$0xf]  ;;  %v3799_v36 = vld [vmem:[#allocation6 + $0x20] ss:$2 sm:$0xf]  ;;  %v3739_v62 = vcombine.low %v3728_v4, %v3730_v28  ;;  %v3721_v8 = vcombine.low %v3710_v39, %v3712_v30 }
 0x3a5   : > { %v3819_v32 = vld [vmem:[#allocation6 + $0x41] ss:$2 sm:$0xf]  ;;  %v3801_v38 = vld [vmem:[#allocation6 + $0x40] ss:$2 sm:$0xf] }
 0x3a6   : > { %v3751_v35 = vld [vmem:[#allocation6 + $0x70] ss:$2 sm:$0xf]  ;;  %v3696_v49 = vld [vmem:[#allocation6 + $0x40] ss:$2 sm:$0xf]  ;;  %v3828_v9 = vcombine.low %v3817_v10, %v3819_v32  ;;  %v3810_v15 = vcombine.low %v3799_v36, %v3801_v38 }
 0x3a7   : > { %v3787_v11 = vld [vmem:[#allocation6 + $0x72] ss:$2 sm:$0xf]  ;;  %v3732_v50 = vld [vmem:[#allocation6 + $0x42] ss:$2 sm:$0xf] }
 0x3a8   : > { %v3749_v2 = vld [vmem:[#allocation6 + $0x50] ss:$2 sm:$0xf]  ;;  %v3823_v45 = vld [vmem:[#allocation6 + $0x81] ss:$2 sm:$0xf] }
 0x3a9   : > { %v3785_v5 = vld [vmem:[#allocation6 + $0x52] ss:$2 sm:$0xf]  ;;  %v3757_v14 = vcombine.low %v3749_v2, %v3751_v35  ;;  %v3805_v52 = vld [vmem:[#allocation6 + $0x80] ss:$2 sm:$0xf] }
 0x3aa   : > { %v3793_v47 = vcombine.low %v3785_v5, %v3787_v11  ;;  %v3763_v20 = vld [vmem:[#allocation6 + $0x11] ss:$2 sm:$0xf]  ;;  %v3714_v56 = vld [vmem:[#allocation6 + $0x41] ss:$2 sm:$0xf] }
 0x3ab   : > { %v3760_v29 = vpack.c.bf16 %v3757_v14, %v3756_v40  ;;  %v3765_v61 = vld [vmem:[#allocation6 + $0x31] ss:$2 sm:$0xf]  ;;  %v3698_v57 = vld [vmem:[#allocation6 + $0x60] ss:$2 sm:$0xf] }
 0x3ac   : > { %v3796_v58 = vpack.c.bf16 %v3793_v47, %v3792_v46  ;;  %v3767_v59 = vld [vmem:[#allocation6 + $0x51] ss:$2 sm:$0xf]  ;;  %v3734_v1 = vld [vmem:[#allocation6 + $0x62] ss:$2 sm:$0xf]  ;;  %v3704_v3 = vcombine.low %v3696_v49, %v3698_v57  ;;  %v3774_v63 = vcombine.low %v3763_v20, %v3765_v61 }
 0x3ad   : > { %v3740_v6 = vcombine.low %v3732_v50, %v3734_v1  ;;  %3761 = vst.msk [vmem:[#allocation8 + $0x18] sm:$0xff] %vm655_vm0, %v3760_v29  ;;  %v3716_v7 = vld [vmem:[#allocation6 + $0x61] ss:$2 sm:$0xf]  ;;  %v12054_v53 = vld [vmem:[%s16227_s7 + $0x100] sm:$0xff]   ;;  %v12055_v27 = vld [vmem:[%s16227_s7 + $0x1c8] sm:$0xff]  }
 0x3ae   : > { %v3821_v41 = vld [vmem:[#allocation6 + $0x61] ss:$2 sm:$0xf]  ;;  %3797 = vst.msk [vmem:[#allocation8 + $0x28] sm:$0xff] %vm655_vm0, %v3796_v58  ;;  %v3722_v54 = vcombine.low %v3714_v56, %v3716_v7  ;;  %v3707_v48 = vpack.c.bf16 %v3704_v3, %v3703_v34  ;;  %v12056_v35 = vld [vmem:[%s16227_s7 + $0x148] sm:$0xff]   ;;  %v12063_v5 = vld [vmem:[%s16227_s7 + $0x1d8] sm:$0xff]  }
 0x3af   : > { %v3829_v13 = vcombine.low %v3821_v41, %v3823_v45  ;;  %v3803_v42 = vld [vmem:[#allocation6 + $0x60] ss:$2 sm:$0xf]  ;;  %v3769_v0 = vld [vmem:[#allocation6 + $0x71] ss:$2 sm:$0xf]  ;;  %v3743_v12 = vpack.c.bf16 %v3740_v6, %v3739_v62 }
 0x3b0   : > { %v3811_v60 = vcombine.low %v3803_v42, %v3805_v52  ;;  %v3775_v31 = vcombine.low %v3767_v59, %v3769_v0  ;;  %v3835_v44 = vld [vmem:[#allocation6 + $0x22] ss:$2 sm:$0xf]  ;;  %v3725_v16 = vpack.c.bf16 %v3722_v54, %v3721_v8  ;;  %3708 = vst.msk [vmem:[#allocation8] sm:$0xff] %vm655_vm0, %v3707_v48  ;;  %v12057_v11 = vld [vmem:[%s16227_s7 + $0x188] sm:$0xff]   ;;  %v12067_v46 = vld [vmem:[%s16227_s7 + $0x1e0] sm:$0xff]  }
 0x3b1   : > { %v3837_v23 = vld [vmem:[#allocation6 + $0x42] ss:$2 sm:$0xf]  ;;  %v3832_v33 = vpack.c.bf16 %v3829_v13, %v3828_v9  ;;  %3744 = vst.msk [vmem:[#allocation8 + $0x10] sm:$0xff] %vm655_vm0, %v3743_v12  ;;  %v12058_v30 = vld [vmem:[%s16227_s7 + $0x108] sm:$0xff]   ;;  %v12068_v36 = vld [vmem:[%s16227_s7 + $0x160] sm:$0xff]  }
 0x3b2   : > { %v3839_v17 = vld [vmem:[#allocation6 + $0x62] ss:$2 sm:$0xf]  ;;  %v3814_v37 = vpack.c.bf16 %v3811_v60, %v3810_v15  ;;  %v3778_v19 = vpack.c.bf16 %v3775_v31, %v3774_v63  ;;  %v3846_v21 = vcombine.low %v3835_v44, %v3837_v23  ;;  %3726 = vst.msk [vmem:[#allocation8 + $0x8] sm:$0xff] %vm655_vm0, %v3725_v16  ;;  %v12069_v38 = vld [vmem:[%s16227_s7 + $0x1a0] sm:$0xff]   ;;  %v12071_v49 = vld [vmem:[%s16227_s7 + $0x1e8] sm:$0xff]  }
 0x3b3   : > { %v3841_v18 = vld [vmem:[#allocation6 + $0x82] ss:$2 sm:$0xf]  ;;  %3833 = vst.msk [vmem:[#allocation8 + $0x38] sm:$0xff] %vm655_vm0, %v3832_v33  ;;  %v12070_v50 = vld [vmem:[%s16227_s7 + $0x120] sm:$0xff]   ;;  %v12072_v52 = vld [vmem:[%s16227_s7 + $0x168] sm:$0xff]  }
 0x3b4   : > { %v3847_v22 = vcombine.low %v3839_v17, %v3841_v18  ;;  %3815 = vst.msk [vmem:[#allocation8 + $0x30] sm:$0xff] %vm655_vm0, %v3814_v37  ;;  %3779 = vst.msk [vmem:[#allocation8 + $0x20] sm:$0xff] %vm655_vm0, %v3778_v19  ;;  %v3855_v51 = vld [vmem:[#allocation8 + $0x18] sm:$0xff]  ;;  %v12059_v39 = vld [vmem:[%s16227_s7 + $0x1d0] sm:$0xff]  }
 0x3b5   : > { %4517 = vmatprep.mubr.bf16.mxu1 %v3855_v51  ;;  %v3857_v2 = vld [vmem:[#allocation8 + $0x28] sm:$0xff]  ;;  %v12060_v10 = vld [vmem:[%s16227_s7 + $0x150] sm:$0xff]   ;;  %v12064_v14 = vld [vmem:[%s16227_s7 + $0x158] sm:$0xff]  }
 0x3b6   : > { %v3850_v55 = vpack.c.bf16 %v3847_v22, %v3846_v21  ;;  %v12061_v32 = vld [vmem:[%s16227_s7 + $0x190] sm:$0xff]   ;;  %v12065_v45 = vld [vmem:[%s16227_s7 + $0x198] sm:$0xff]   ;;  %v12073_v20 = vld [vmem:[%s16227_s7 + $0x1a8] sm:$0xff]  }
 0x3b7   : > { %v3852_v26 = vld [vmem:[#allocation8] sm:$0xff]  ;;  %v12062_v40 = vld [vmem:[%s16227_s7 + $0x110] sm:$0xff]   ;;  %v12066_v47 = vld [vmem:[%s16227_s7 + $0x118] sm:$0xff]  }
 0x3b8   : > { %3851 = vst.msk [vmem:[#allocation8 + $0x40] sm:$0xff] %vm655_vm0, %v3850_v55  ;;  %v3854_v25 = vld [vmem:[#allocation8 + $0x10] sm:$0xff]  ;;  %v12074_v56 = vld [vmem:[%s16227_s7 + $0x128] sm:$0xff]   ;;  %v12079_v59 = vld [vmem:[%s16227_s7 + $0x1f8] sm:$0xff]  }
 0x3b9   : > { %v3853_v4 = vld [vmem:[#allocation8 + $0x8] sm:$0xff]  ;;  %4518 = vmatmul.mubr.bf16.vlgmr.msra.gmra.mrb[72].mxu1 %v3854_v25  ;;  %v12075_v29 = vld [vmem:[%s16227_s7 + $0x1f0] sm:$0xff]   ;;  %v12080_v62 = vld [vmem:[%s16227_s7 + $0x178] sm:$0xff]  }
 0x3ba   : > { %v3859_v28 = vld [vmem:[#allocation8 + $0x38] sm:$0xff]  ;;  %4476 = vmatprep.mubr.bf16.mxu0 %v3853_v4  ;;  %11454 = vmatpush3.bf16.msra.mxu1 %v12053_v24  ;;  %v12076_v58 = vld [vmem:[%s16227_s7 + $0x170] sm:$0xff]   ;;  %v12083_v6 = vld [vmem:[%s16227_s7 + $0x200] sm:$0xff]  }
 0x3bb   : > { %4477 = vmatmul.mubr.bf16.vlgmr.msra.gmra.mrb[104].mxu0 %v3852_v26  ;;  %4599 = vmatprep.mubr.bf16.mxu1 %v3859_v28  ;;  %v12077_v61 = vld [vmem:[%s16227_s7 + $0x1b0] sm:$0xff]   ;;  %v12081_v57 = vld [vmem:[%s16227_s7 + $0x1b8] sm:$0xff]   ;;  %v3856_v8 = vld [vmem:[#allocation8 + $0x20] sm:$0xff] }
 0x3bc   : > { %11432 = vmatpush3.bf16.msra.mxu0 %v12054_v53  ;;  %4558 = vmatprep.mubr.bf16.mxu0 %v3857_v2  ;;  %v12078_v34 = vld [vmem:[%s16227_s7 + $0x130] sm:$0xff]   ;;  %v12082_v1 = vld [vmem:[%s16227_s7 + $0x138] sm:$0xff]   ;;  %v12084_v41 = vld [vmem:[%s16227_s7 + $0x208] sm:$0xff]  }
 0x3bd   : > { %11455 = vmatprep.subr.bf16.mxu1 %v12055_v27  ;;  %11433 = vmatprep.subr.bf16.mxu0 %v12056_v35  ;;  %v3858_v3 = vld [vmem:[#allocation8 + $0x30] sm:$0xff]  ;;  %v14334_v7 = vld [vmem:[#allocation10] sm:$0xff]  ;;  %v12087_v13 = vld [vmem:[%s16227_s7 + $0x220] sm:$0xff]  }
 0x3be   : > { %11456 = vmatpush3.bf16.msra.mxu1 %v12057_v11  ;;  %v12085_v9 = vld [vmem:[%s16227_s7 + $0x210] sm:$0xff]   ;;  %v12086_v54 = vld [vmem:[%s16227_s7 + $0x218] sm:$0xff]   ;;  %v12088_v42 = vld [vmem:[%s16227_s7 + $0x228] sm:$0xff]  }
 0x3bf   : > { %11457 = vmatprep.subr.bf16.mxu1 %v12059_v39  ;;  %v12089_v15 = vld [vmem:[%s16227_s7 + $0x230] sm:$0xff]   ;;  %v12090_v0 = vld [vmem:[%s16227_s7 + $0x238] sm:$0xff]   ;;  %v3860_v63 = vld [vmem:[#allocation8 + $0x40] sm:$0xff] }
 0x3c0   : > { %11434 = vmatpush3.bf16.msra.mxu0 %v12058_v30  ;;  %v12091_v12 = vld [vmem:[%s16229_s9 + $0x40] sm:$0xff]   ;;  %v12095_v44 = vld [vmem:[%s16229_s9 + $0x48] sm:$0xff]   ;;  %v12117_v17 = vld [vmem:[%s16229_s9 + $0x50] sm:$0xff]  }
 0x3c1   : > { %11435 = vmatprep.subr.bf16.mxu0 %v12060_v10  ;;  %v12092_v48 = vld [vmem:[%s16229_s9] sm:$0xff]   ;;  %v12102_v23 = vld [vmem:[%s16229_s9 + $0x8] sm:$0xff]   ;;  %v12118_v18 = vld [vmem:[%s16229_s9 + $0x10] sm:$0xff]  }
 0x3c2   : > { %11458 = vmatpush3.bf16.msra.mxu1 %v12061_v32  ;;  %v12093_v60 = vld [vmem:[%s16229_s9 + $0xc0] sm:$0xff]   ;;  %v12103_v16 = vld [vmem:[%s16229_s9 + $0xc8] sm:$0xff]   ;;  %v12119_v37 = vld [vmem:[%s16229_s9 + $0xd0] sm:$0xff]  }
 0x3c3   : > { %11459 = vmatprep.subr.bf16.mxu1 %v12063_v5  ;;  %v12094_v31 = vld [vmem:[%s16229_s9 + $0x80] sm:$0xff]   ;;  %v12116_v33 = vld [vmem:[%s16229_s9 + $0x88] sm:$0xff]   ;;  %v12120_v19 = vld [vmem:[%s16229_s9 + $0x90] sm:$0xff]  }
 0x3c4   : > { %11436 = vmatpush3.bf16.msra.mxu0 %v12062_v40  ;;  %v12121_v21 = vld [vmem:[%s16229_s9 + $0x58] sm:$0xff]   ;;  %v12125_v24 = vld [vmem:[%s16229_s9 + $0x60] sm:$0xff]   ;;  %v12129_v27 = vld [vmem:[%s16229_s9 + $0x68] sm:$0xff]  }
 0x3c5   : > { %11437 = vmatprep.subr.bf16.mxu0 %v12064_v14  ;;  %v12122_v22 = vld [vmem:[%s16229_s9 + $0x18] sm:$0xff]   ;;  %v12126_v53 = vld [vmem:[%s16229_s9 + $0x20] sm:$0xff]   ;;  %v12130_v4 = vld [vmem:[%s16229_s9 + $0x28] sm:$0xff]  }
 0x3c6   : > { %11460 = vmatpush3.bf16.msra.mxu1 %v12065_v45  ;;  %v12123_v55 = vld [vmem:[%s16229_s9 + $0xd8] sm:$0xff]   ;;  %v12127_v25 = vld [vmem:[%s16229_s9 + $0xe0] sm:$0xff]   ;;  %v12131_v28 = vld [vmem:[%s16229_s9 + $0xe8] sm:$0xff]  }
 0x3c7   : > { %11461 = vmatprep.subr.bf16.mxu1 %v12067_v46  ;;  %v12124_v51 = vld [vmem:[%s16229_s9 + $0x98] sm:$0xff]   ;;  %v12128_v26 = vld [vmem:[%s16229_s9 + $0xa0] sm:$0xff]   ;;  %v12132_v35 = vld [vmem:[%s16229_s9 + $0xa8] sm:$0xff]  }
 0x3c8   : > { %11438 = vmatpush3.bf16.msra.mxu0 %v12066_v47  ;;  %v12133_v11 = vld [vmem:[%s16229_s9 + $0x70] sm:$0xff]   ;;  %v12137_v10 = vld [vmem:[%s16229_s9 + $0x78] sm:$0xff]   ;;  %v12141_v14 = vld [vmem:[%s16229_s9 + $0x140] sm:$0xff]  }
 0x3c9   : > { %11439 = vmatprep.subr.bf16.mxu0 %v12068_v36  ;;  %v12134_v2 = vld [vmem:[%s16229_s9 + $0x30] sm:$0xff]   ;;  %v12138_v32 = vld [vmem:[%s16229_s9 + $0x38] sm:$0xff]   ;;  %v12143_v45 = vld [vmem:[%s16229_s9 + $0x1c0] sm:$0xff]  }
 0x3ca   : > { %11462 = vmatpush3.bf16.msra.mxu1 %v12069_v38  ;;  %v12135_v39 = vld [vmem:[%s16229_s9 + $0xf0] sm:$0xff]   ;;  %v12139_v5 = vld [vmem:[%s16229_s9 + $0xf8] sm:$0xff]  }
 0x3cb   : > { %11463 = vmatprep.subr.bf16.mxu1 %v12071_v49  ;;  %v12136_v30 = vld [vmem:[%s16229_s9 + $0xb0] sm:$0xff]   ;;  %v12140_v40 = vld [vmem:[%s16229_s9 + $0xb8] sm:$0xff]  }
 0x3cc   : > { %11440 = vmatpush3.bf16.msra.mxu0 %v12070_v50  ;;  %v10356_v50 = vld [vmem:[%s16228_s8] ss:$0 sm:$0xff] }
 0x3cd   : > { %11441 = vmatprep.subr.bf16.mxu0 %v12072_v52 }
 0x3ce   : > { %11464 = vmatpush3.bf16.msra.mxu1 %v12073_v20 }
 0x3cf   : > { %11465 = vmatprep.subr.bf16.mxu1 %v12075_v29 }
 0x3d0   : > { %11442 = vmatpush3.bf16.msra.mxu0 %v12074_v56 }
 0x3d1   : > { %11443 = vmatprep.subr.bf16.mxu0 %v12076_v58 }
 0x3d2   : > { %11466 = vmatpush3.bf16.msra.mxu1 %v12077_v61 }
 0x3d3   : > { %11467 = vmatprep.subr.bf16.mxu1 %v12079_v59 }
 0x3d4   : > { %11444 = vmatpush3.bf16.msra.mxu0 %v12078_v34 }
 0x3d5   : > { %11445 = vmatprep.subr.bf16.mxu0 %v12080_v62 }
 0x3d6   : > { %11468 = vmatpush3.bf16.msra.mxu1 %v12081_v57 }
 0x3d7   : > { %11484 = vmatprep.subr.bf16.mxu1 %v12091_v12 }
 0x3d8   : > { %11446 = vmatpush3.bf16.msra.mxu0 %v12082_v1 }
 0x3d9   : > { %4600 = vmatmul.mubr.bf16.vlgmr.msra.gmra.mrb[76].mxu1 %v3858_v3  ;;  %11696 = vmatprep.subr.bf16.mxu0 %v14334_v7 }
 0x3da   : > { %11485 = vmatpush3.bf16.msra.mxu1 %v12092_v48 }
 0x3db   : > { %4559 = vmatmul.mubr.bf16.vlgmr.msra.gmra.mrb[108].mxu0 %v3856_v8  ;;  %11486 = vmatprep.subr.bf16.mxu1 %v12095_v44 }
 0x3dc   : > { %11697 = vmatpush3.bf16.msra.mxu0 %v12083_v6  ;;  %11712 = vmatprep.mubr.msk.bf16.mxu0 %vm12946_vm2, %v14334_v7 }
 0x3dd   : > { %11698 = vmatprep.subr.bf16.mxu0 %v14334_v7 }
 0x3de   : > { %11487 = vmatpush3.bf16.msra.mxu1 %v12102_v23 }
 0x3df   : > { %11488 = vmatprep.subr.bf16.mxu1 %v12117_v17 }
 0x3e0   : > { %11699 = vmatpush3.bf16.msra.mxu0 %v12084_v41 }
 0x3e1   : > { %11700 = vmatprep.subr.bf16.mxu0 %v14334_v7 }
 0x3e2   : > { %11489 = vmatpush3.bf16.msra.mxu1 %v12118_v18 }
 0x3e3   : > { %11490 = vmatprep.subr.bf16.mxu1 %v12121_v21 }
 0x3e4   : > { %11701 = vmatpush3.bf16.msra.mxu0 %v12085_v9 }
 0x3e5   : > { %11702 = vmatprep.subr.bf16.mxu0 %v14334_v7 }
 0x3e6   : > { %11491 = vmatpush3.bf16.msra.mxu1 %v12122_v22 }
 0x3e7   : > { %11492 = vmatprep.subr.bf16.mxu1 %v12125_v24 }
 0x3e8   : > { %11703 = vmatpush3.bf16.msra.mxu0 %v12086_v54 }
 0x3e9   : > { %11704 = vmatprep.subr.bf16.mxu0 %v14334_v7 }
 0x3ea   : > { %11493 = vmatpush3.bf16.msra.mxu1 %v12126_v53 }
 0x3eb   : > { %11494 = vmatprep.subr.bf16.mxu1 %v12129_v27 }
 0x3ec   : > { %11705 = vmatpush3.bf16.msra.mxu0 %v12087_v13 }
 0x3ed   : > { %11706 = vmatprep.subr.bf16.mxu0 %v14334_v7 }
 0x3ee   : > { %11495 = vmatpush3.bf16.msra.mxu1 %v12130_v4  ;;  %v12142_v4 = vld [vmem:[%s16229_s9 + $0x100] sm:$0xff]  }
 0x3ef   : > { %11496 = vmatprep.subr.bf16.mxu1 %v12133_v11 }
 0x3f0   : > { %11707 = vmatpush3.bf16.msra.mxu0 %v12088_v42 }
 0x3f1   : > { %11708 = vmatprep.subr.bf16.mxu0 %v14334_v7 }
 0x3f2   : > { %11497 = vmatpush3.bf16.msra.mxu1 %v12134_v2  ;;  %v12145_v2 = vld [vmem:[%s16229_s9 + $0x148] sm:$0xff]  }
 0x3f3   : > { %11498 = vmatprep.subr.bf16.mxu1 %v12137_v10 }
 0x3f4   : > { %11709 = vmatpush3.bf16.msra.mxu0 %v12089_v15 }
 0x3f5   : > { %11710 = vmatprep.subr.bf16.mxu0 %v14334_v7 }
 0x3f6   : > { %11499 = vmatpush3.bf16.msra.mxu1 %v12138_v32  ;;  %v12144_v32 = vld [vmem:[%s16229_s9 + $0x180] sm:$0xff]  }
 0x3f7   : > { %11528 = vmatprep.subr.bf16.mxu1 %v12141_v14  ;;  %v12147_v14 = vld [vmem:[%s16229_s9 + $0x1c8] sm:$0xff]  }
 0x3f8   : > { %11711 = vmatpush3.bf16.msra.mxu0 %v12090_v0 }
 0x3f9   : > { %11506 = vmatprep.subr.bf16.mxu0 %v12093_v60 }
 0x3fb   : > { %11713 = vmatmul.mubr.bf16.vlgmr.msra.gmra.mrb[112].mxu0 %v3860_v63 }
 0x3fc   : > { %11507 = vmatpush3.bf16.msra.mxu0 %v12094_v31 }
 0x3fd   : > { %11508 = vmatprep.subr.bf16.mxu0 %v12103_v16 }
 0x400   : > { %11509 = vmatpush3.bf16.msra.mxu0 %v12116_v33 }
 0x401   : > { %11510 = vmatprep.subr.bf16.mxu0 %v12119_v37 }
 0x404   : > { %11511 = vmatpush3.bf16.msra.mxu0 %v12120_v19 }
 0x405   : > { %11512 = vmatprep.subr.bf16.mxu0 %v12123_v55 }
 0x408   : > { %11513 = vmatpush3.bf16.msra.mxu0 %v12124_v51 }
 0x409   : > { %11514 = vmatprep.subr.bf16.mxu0 %v12127_v25 }
 0x40c   : > { %11515 = vmatpush3.bf16.msra.mxu0 %v12128_v26 }
 0x40d   : > { %11516 = vmatprep.subr.bf16.mxu0 %v12131_v28 }
 0x410   : > { %11517 = vmatpush3.bf16.msra.mxu0 %v12132_v35 }
 0x411   : > { %11518 = vmatprep.subr.bf16.mxu0 %v12135_v39 }
 0x414   : > { %11519 = vmatpush3.bf16.msra.mxu0 %v12136_v30 }
 0x415   : > { %11520 = vmatprep.subr.bf16.mxu0 %v12139_v5 }
 0x418   : > { %11521 = vmatpush3.bf16.msra.mxu0 %v12140_v40 }
 0x419   : > { %11550 = vmatprep.subr.bf16.mxu0 %v12143_v45 }
 0x48c   : > { %v11425_v46 = vpop.f32.mrb[72].mxu1 }
 0x48d   : > { %v11426_v47 = vpop.f32.mrb[73].mxu1 }
 0x48e   : > { %v11403_v36 = vpop.f32.mrb[104].mxu0  ;;  %v11427_v38 = vadd.f32 %v11426_v47, %v11425_v46  ;;  %v11428_v49 = vpop.f32.mrb[74].mxu1  ;;  %v12146_v47 = vld [vmem:[%s16229_s9 + $0x108] sm:$0xff]  }
 0x48f   : > { %v11404_v52 = vpop.f32.mrb[105].mxu0  ;;  %v11429_v20 = vpop.f32.mrb[75].mxu1 }
 0x490   : > { %v11405_v29 = vadd.f32 %v11404_v52, %v11403_v36  ;;  %v11406_v56 = vpop.f32.mrb[106].mxu0  ;;  %v11430_v58 = vadd.f32 %v11429_v20, %v11428_v49  ;;  %v12148_v20 = vld [vmem:[%s16229_s9 + $0x188] sm:$0xff]  }
 0x491   : > { %v11407_v61 = vpop.f32.mrb[107].mxu0 }
 0x492   : > { %v4479_v59 = vadd.f32 %v11405_v29, %v10356_v50  ;;  %v11408_v34 = vadd.f32 %v11407_v61, %v11406_v56  ;;  %v12151_v56 = vld [vmem:[%s16229_s9 + $0x1d0] sm:$0xff]  }
 0x494   : > { %v4482_v62 = vadd.f32 %v11408_v34, %v10356_v50  ;;  %v4520_v57 = vadd.f32 %v11427_v38, %v4479_v59  ;;  %v12149_v38 = vld [vmem:[%s16229_s9 + $0x150] sm:$0xff]  }
 0x496   : > { %v4523_v1 = vadd.f32 %v11430_v58, %v4482_v62 }
 0x4ac   : > { %v11469_v3 = vpop.f32.mrb[76].mxu1 }
 0x4ad   : > { %v11470_v6 = vpop.f32.mrb[77].mxu1 }
 0x4ae   : > { %v11447_v8 = vpop.f32.mrb[108].mxu0  ;;  %v11471_v41 = vadd.f32 %v11470_v6, %v11469_v3  ;;  %v11472_v9 = vpop.f32.mrb[78].mxu1  ;;  %v12153_v3 = vld [vmem:[%s16229_s9 + $0x158] sm:$0xff]   ;;  %v12152_v6 = vld [vmem:[%s16229_s9 + $0x190] sm:$0xff]  }
 0x4af   : > { %v11448_v54 = vpop.f32.mrb[109].mxu0  ;;  %v11473_v13 = vpop.f32.mrb[79].mxu1 }
 0x4b0   : > { %v11449_v42 = vadd.f32 %v11448_v54, %v11447_v8  ;;  %v11450_v15 = vpop.f32.mrb[110].mxu0  ;;  %v11474_v0 = vadd.f32 %v11473_v13, %v11472_v9  ;;  %v12155_v8 = vld [vmem:[%s16229_s9 + $0x1d8] sm:$0xff]   ;;  %v12157_v9 = vld [vmem:[%s16229_s9 + $0x160] sm:$0xff]  }
 0x4b1   : > { %v11451_v63 = vpop.f32.mrb[111].mxu0  ;;  %v12156_v54 = vld [vmem:[%s16229_s9 + $0x198] sm:$0xff]   ;;  %v12159_v13 = vld [vmem:[%s16229_s9 + $0x1e0] sm:$0xff]  }
 0x4b2   : > { %v4561_v12 = vadd.f32 %v11449_v42, %v4520_v57  ;;  %v11452_v48 = vadd.f32 %v11451_v63, %v11450_v15  ;;  %v12150_v57 = vld [vmem:[%s16229_s9 + $0x110] sm:$0xff]   ;;  %v12158_v42 = vld [vmem:[%s16229_s9 + $0x120] sm:$0xff]   ;;  %v12161_v15 = vld [vmem:[%s16229_s9 + $0x168] sm:$0xff]  }
 0x4b3   : > { %v12163_v63 = vld [vmem:[%s16229_s9 + $0x1e8] sm:$0xff]  }
 0x4b4   : > { %v4564_v60 = vadd.f32 %v11452_v48, %v4523_v1  ;;  %v4602_v31 = vadd.f32 %v11471_v41, %v4561_v12  ;;  %v12154_v41 = vld [vmem:[%s16229_s9 + $0x118] sm:$0xff]   ;;  %v12162_v12 = vld [vmem:[%s16229_s9 + $0x128] sm:$0xff]   ;;  %v12165_v48 = vld [vmem:[%s16229_s9 + $0x170] sm:$0xff]  }
 0x4b6   : > { %v4605_v44 = vadd.f32 %v11474_v0, %v4564_v60  ;;  %v12160_v0 = vld [vmem:[%s16229_s9 + $0x1a0] sm:$0xff]   ;;  %v12164_v60 = vld [vmem:[%s16229_s9 + $0x1a8] sm:$0xff]  }
 0x4ce   : > { %v4642_v23 = vpop.f32.mrb[112].mxu0 }
 0x4cf   : > { %v4643_v16 = vadd.f32 %v4642_v23, %v4602_v31  ;;  %v11714_v33 = vpop.f32.mrb[113].mxu0  ;;  %v12167_v31 = vld [vmem:[%s16229_s9 + $0x1f0] sm:$0xff]   ;;  %v12169_v23 = vld [vmem:[%s16229_s9 + $0x178] sm:$0xff]  }
 0x4d0   : > { %v4645_v17 = vpop.f32.mrb[114].mxu0  ;;  %v12171_v33 = vld [vmem:[%s16229_s9 + $0x1f8] sm:$0xff]  }
 0x4d1   : > { %v4649_v18 = vmax.f32 %v4643_v16, 0.0  ;;  %v4646_v37 = vadd.f32 %v4645_v17, %v4605_v44  ;;  %v11715_v19 = vpop.f32.mrb[115].mxu0  ;;  %v12166_v44 = vld [vmem:[%s16229_s9 + $0x130] sm:$0xff]   ;;  %v12170_v17 = vld [vmem:[%s16229_s9 + $0x138] sm:$0xff]  }
 0x4d2   : > { %v12168_v16 = vld [vmem:[%s16229_s9 + $0x1b0] sm:$0xff]   ;;  %v12174_v19 = vld [vmem:[%s16229_s9 + $0x208] sm:$0xff]  }
 0x4d3   : > { %v4653_v21 = vcombine.high %v4649_v18, %v4649_v18  ;;  %4658 = vst [vmem:[#allocation7 + $0x9] sm:$0xf] %v4649_v18  ;;  %v4650_v22 = vmax.f32 %v4646_v37, 0.0  ;;  %v12172_v18 = vld [vmem:[%s16229_s9 + $0x1b8] sm:$0xff]   ;;  %v12173_v37 = vld [vmem:[%s16229_s9 + $0x200] sm:$0xff]  }
 0x4d5   : > { %4659 = vst [vmem:[#allocation7 + $0x11] sm:$0xf] %v4653_v21  ;;  %v4654_v55 = vcombine.high %v4650_v22, %v4650_v22  ;;  %4660 = vst [vmem:[#allocation7 + $0x19] sm:$0xf] %v4650_v22  ;;  %v12175_v21 = vld [vmem:[%s16229_s9 + $0x210] sm:$0xff]   ;;  %v12176_v22 = vld [vmem:[%s16229_s9 + $0x218] sm:$0xff]  }
 0x4d7   : > { %4661 = vst [vmem:[#allocation7 + $0x21] sm:$0xf] %v4654_v55  ;;  %v12177_v55 = vld [vmem:[%s16229_s9 + $0x220] sm:$0xff]  }
 0x4da   : > { %v12096_v51 = vld [vmem:[#allocation7] ss:$8 sps:$4 sm:$0xff]  }
 0x4db   : > { %v12097_v24 = vld [vmem:[#allocation7 + $0x1] ss:$8 sps:$4 sm:$0xff]  }
 0x4dc   : > { %v12098_v53 = vld [vmem:[#allocation7 + $0x2] ss:$8 sps:$4 sm:$0xff]   ;;  %v12104_v25 = vld [vmem:[#allocation7 + $0x10] ss:$8 sps:$4 sm:$0xff]  }
 0x4dd   : > { %v12099_v26 = vld [vmem:[#allocation7 + $0x8] ss:$8 sps:$4 sm:$0xff]   ;;  %v4674_v35 = vpack.c.bf16 %v12104_v25, %v12096_v51  ;;  %v12178_v51 = vld [vmem:[%s16229_s9 + $0x228] sm:$0xff]  }
 0x4de   : > { %v12105_v27 = vld [vmem:[#allocation7 + $0x11] ss:$8 sps:$4 sm:$0xff]   ;;  %v12111_v52 = vld [vmem:[#allocation7 + $0x20] ss:$8 sps:$4 sm:$0xff]  }
 0x4df   : > { %v12100_v28 = vld [vmem:[#allocation7 + $0x9] ss:$8 sps:$4 sm:$0xff]   ;;  %v4688_v30 = vpack.c.bf16 %v12105_v27, %v12097_v24  ;;  %v12107_v10 = vld [vmem:[#allocation7 + $0x18] ss:$8 sps:$4 sm:$0xff]   ;;  %4675 = vst [vmem:[#allocation8] sm:$0xff] %v4674_v35 }
 0x4e0   : > { %v12106_v11 = vld [vmem:[#allocation7 + $0x12] ss:$8 sps:$4 sm:$0xff]   ;;  %v4716_v45 = vpack.c.bf16 %v12107_v10, %v12099_v26  ;;  %v12113_v61 = vld [vmem:[#allocation7 + $0x21] ss:$8 sps:$4 sm:$0xff]  }
 0x4e1   : > { %v12101_v39 = vld [vmem:[#allocation7 + $0xa] ss:$8 sps:$4 sm:$0xff]   ;;  %v4702_v5 = vpack.c.bf16 %v12106_v11, %v12098_v53  ;;  %v12108_v40 = vld [vmem:[#allocation7 + $0x19] ss:$8 sps:$4 sm:$0xff]   ;;  %4689 = vst [vmem:[#allocation8 + $0x8] sm:$0xff] %v4688_v30  ;;  %5413 = vmatprep.mubr.bf16.mxu1 %v4688_v30 }
 0x4e2   : > { %v12109_v46 = vld [vmem:[#allocation7 + $0x1a] ss:$8 sps:$4 sm:$0xff]   ;;  %v14487_v36 = vpack.c.bf16 %v12108_v40, %v12100_v28  ;;  %5414 = vmatmul.mubr.bf16.vlgmr.msra.gmra.mrb[80].mxu1 %v4674_v35  ;;  %4717 = vst [vmem:[#allocation8 + $0x18] sm:$0xff] %v4716_v45  ;;  %5454 = vmatprep.mubr.bf16.mxu0 %v4716_v45  ;;  %v12180_v53 = vld [vmem:[%s16229_s9 + $0x238] sm:$0xff]   ;;  %v12181_v25 = vld [vmem:[%s16231_s11] sm:$0xff]  }
 0x4e3   : > { %4703 = vst [vmem:[#allocation8 + $0x10] sm:$0xff] %v4702_v5  ;;  %v4744_v49 = vpack.c.bf16 %v12109_v46, %v12101_v39  ;;  %v12110_v50 = vld [vmem:[#allocation7 + $0x10] ss:$8 sps:$4 sm:$0xff]   ;;  %11529 = vmatpush3.bf16.msra.mxu1 %v12142_v4  ;;  %5455 = vmatmul.mubr.bf16.vlgmr.msra.gmra.mrb[116].mxu0 %v4702_v5  ;;  %v12115_v34 = vld [vmem:[#allocation7 + $0x22] ss:$8 sps:$4 sm:$0xff]  }
 0x4e4   : > { %v12112_v29 = vld [vmem:[#allocation7 + $0x11] ss:$8 sps:$4 sm:$0xff]   ;;  %4731 = vst [vmem:[#allocation8 + $0x20] sm:$0xff] %v14487_v36  ;;  %11530 = vmatprep.subr.bf16.mxu1 %v12145_v2  ;;  %v14499_v58 = vpack.c.bf16 %v12111_v52, %v12110_v50  ;;  %11551 = vmatpush3.bf16.msra.mxu0 %v12144_v32  ;;  %v12179_v24 = vld [vmem:[%s16229_s9 + $0x230] sm:$0xff]   ;;  %v12184_v11 = vld [vmem:[%s16231_s11 + $0x18] sm:$0xff]  }
 0x4e5   : > { %4745 = vst [vmem:[#allocation8 + $0x28] sm:$0xff] %v4744_v49  ;;  %5495 = vmatprep.mubr.bf16.mxu1 %v4744_v49  ;;  %v12114_v59 = vld [vmem:[#allocation7 + $0x12] ss:$8 sps:$4 sm:$0xff]   ;;  %11552 = vmatprep.subr.bf16.mxu0 %v12147_v14  ;;  %v4773_v62 = vpack.c.bf16 %v12113_v61, %v12112_v29  ;;  %v12183_v27 = vld [vmem:[%s16231_s11 + $0x10] sm:$0xff]  }
 0x4e6   : > { %4760 = vst [vmem:[#allocation8 + $0x30] sm:$0xff] %v14499_v58  ;;  %v14505_v1 = vpack.c.bf16 %v12115_v34, %v12114_v59  ;;  %v12182_v26 = vld [vmem:[%s16231_s11 + $0x8] sm:$0xff]   ;;  %v5588_v4 = vld [vmem:[#allocation6 + $0x51] ss:$2 sm:$0xf] }
 0x4e7   : > { %11531 = vmatpush3.bf16.msra.mxu1 %v12146_v47  ;;  %4774 = vst [vmem:[#allocation8 + $0x38] sm:$0xff] %v4773_v62  ;;  %5536 = vmatprep.mubr.bf16.mxu0 %v4773_v62  ;;  %v5589_v28 = vld [vmem:[#allocation6 + $0x71] ss:$2 sm:$0xf]  ;;  %v12190_v40 = vld [vmem:[%s16233_s13 + $0x14] ss:$8 sps:$4 sm:$0xff]  }
 0x4e8   : > { %11532 = vmatprep.subr.bf16.mxu1 %v12149_v38  ;;  %11553 = vmatpush3.bf16.msra.mxu0 %v12148_v20  ;;  %4788 = vst [vmem:[#allocation8 + $0x40] sm:$0xff] %v14505_v1  ;;  %v5586_v35 = vld [vmem:[#allocation6 + $0x11] ss:$2 sm:$0xf]  ;;  %v5595_v39 = vcombine.low %v5588_v4, %v5589_v28  ;;  %v12196_v46 = vld [vmem:[%s16233_s13 + $0x34] ss:$8 sps:$4 sm:$0xff]  }
 0x4e9   : > { %11554 = vmatprep.subr.bf16.mxu0 %v12151_v56  ;;  %v5587_v2 = vld [vmem:[#allocation6 + $0x31] ss:$2 sm:$0xf]  ;;  %v12194_v47 = vld [vmem:[%s16233_s13 + $0x30] ss:$8 sps:$4 sm:$0xff]  }
 0x4ea   : > { %v5594_v30 = vcombine.low %v5586_v35, %v5587_v2  ;;  %v12185_v32 = vld [vmem:[%s16233_s13] ss:$8 sps:$4 sm:$0xff]   ;;  %v12187_v5 = vld [vmem:[%s16233_s13 + $0x4] ss:$8 sps:$4 sm:$0xff]   ;;  %v12202_v49 = vld [vmem:[%s16233_s13 + $0x54] ss:$8 sps:$4 sm:$0xff]  }
 0x4eb   : > { %11533 = vmatpush3.bf16.msra.mxu1 %v12150_v57  ;;  %v12193_v14 = vld [vmem:[%s16233_s13 + $0x24] ss:$8 sps:$4 sm:$0xff]   ;;  %v12191_v45 = vld [vmem:[%s16233_s13 + $0x20] ss:$8 sps:$4 sm:$0xff]   ;;  %v12200_v50 = vld [vmem:[%s16233_s13 + $0x50] ss:$8 sps:$4 sm:$0xff]  }
 0x4ec   : > { %11534 = vmatprep.subr.bf16.mxu1 %v12153_v3  ;;  %11555 = vmatpush3.bf16.msra.mxu0 %v12152_v6  ;;  %v5598_v10 = vpack.c.bf16 %v5595_v39, %v5594_v30  ;;  %v12197_v38 = vld [vmem:[%s16233_s13 + $0x40] ss:$8 sps:$4 sm:$0xff]   ;;  %v12205_v52 = vld [vmem:[%s16233_s13 + $0x64] ss:$8 sps:$4 sm:$0xff]   ;;  %v12208_v29 = vld [vmem:[%s16233_s13 + $0x74] ss:$8 sps:$4 sm:$0xff]  }
 0x4ed   : > { %11556 = vmatprep.subr.bf16.mxu0 %v12155_v8  ;;  %v12203_v20 = vld [vmem:[%s16233_s13 + $0x60] ss:$8 sps:$4 sm:$0xff]   ;;  %v12206_v56 = vld [vmem:[%s16233_s13 + $0x70] ss:$8 sps:$4 sm:$0xff]   ;;  %v12214_v59 = vld [vmem:[%s16233_s13 + $0x94] ss:$8 sps:$4 sm:$0xff]  }
 0x4ee   : > { %v12209_v61 = vld [vmem:[%s16233_s13 + $0x80] ss:$8 sps:$4 sm:$0xff]   ;;  %v12212_v34 = vld [vmem:[%s16233_s13 + $0x90] ss:$8 sps:$4 sm:$0xff]   ;;  %v12217_v62 = vld [vmem:[%s16233_s13 + $0xa4] ss:$8 sps:$4 sm:$0xff]  }
 0x4ef   : > { %11535 = vmatpush3.bf16.msra.mxu1 %v12154_v41  ;;  %v12215_v57 = vld [vmem:[%s16233_s13 + $0xa0] ss:$8 sps:$4 sm:$0xff]   ;;  %v12218_v3 = vld [vmem:[%s16233_s13 + $0xb0] ss:$8 sps:$4 sm:$0xff]   ;;  %v12223_v6 = vld [vmem:[%s16233_s13 + $0xc4] ss:$8 sps:$4 sm:$0xff]  }
 0x4f0   : > { %11536 = vmatprep.subr.bf16.mxu1 %v12157_v9  ;;  %11557 = vmatpush3.bf16.msra.mxu0 %v12156_v54  ;;  %v12221_v8 = vld [vmem:[%s16233_s13 + $0xc0] ss:$8 sps:$4 sm:$0xff]   ;;  %v12226_v41 = vld [vmem:[%s16233_s13 + $0xd4] ss:$8 sps:$4 sm:$0xff]   ;;  %v12224_v9 = vld [vmem:[%s16233_s13 + $0xd0] ss:$8 sps:$4 sm:$0xff]  }
 0x4f1   : > { %11558 = vmatprep.subr.bf16.mxu0 %v12159_v13  ;;  %v12229_v54 = vld [vmem:[%s16233_s13 + $0xe4] ss:$8 sps:$4 sm:$0xff]   ;;  %v12227_v13 = vld [vmem:[%s16233_s13 + $0xe0] ss:$8 sps:$4 sm:$0xff]  }
 0x4f3   : > { %11537 = vmatpush3.bf16.msra.mxu1 %v12158_v42  ;;  %v12232_v42 = vld [vmem:[%s16233_s13 + $0xf4] ss:$8 sps:$4 sm:$0xff]  }
 0x4f4   : > { %11538 = vmatprep.subr.bf16.mxu1 %v12161_v15  ;;  %11559 = vmatpush3.bf16.msra.mxu0 %v12160_v0  ;;  %v12230_v15 = vld [vmem:[%s16233_s13 + $0xf0] ss:$8 sps:$4 sm:$0xff]   ;;  %v12235_v0 = vld [vmem:[%s16233_s13 + $0x104] ss:$8 sps:$4 sm:$0xff]  }
 0x4f5   : > { %11560 = vmatprep.subr.bf16.mxu0 %v12163_v63 }
 0x4f7   : > { %11539 = vmatpush3.bf16.msra.mxu1 %v12162_v12  ;;  %v10429_v12 = vld [vmem:[%s16230_s10] ss:$0 sm:$0xff] }
 0x4f8   : > { %11540 = vmatprep.subr.bf16.mxu1 %v12165_v48  ;;  %11561 = vmatpush3.bf16.msra.mxu0 %v12164_v60 }
 0x4f9   : > { %11562 = vmatprep.subr.bf16.mxu0 %v12167_v31 }
 0x4fb   : > { %11541 = vmatpush3.bf16.msra.mxu1 %v12166_v44 }
 0x4fc   : > { %11542 = vmatprep.subr.bf16.mxu1 %v12169_v23  ;;  %11563 = vmatpush3.bf16.msra.mxu0 %v12168_v16 }
 0x4fd   : > { %11564 = vmatprep.subr.bf16.mxu0 %v12171_v33 }
 0x4ff   : > { %11543 = vmatpush3.bf16.msra.mxu1 %v12170_v17 }
 0x500   : > { %11716 = vmatprep.subr.bf16.mxu1 %v14334_v7  ;;  %11565 = vmatpush3.bf16.msra.mxu0 %v12172_v18 }
 0x501   : > { %6780 = vmatprep.subr.bf16.mxu0 %v12187_v5 }
 0x502   : > { %5496 = vmatmul.mubr.bf16.vlgmr.msra.gmra.mrb[84].mxu1 %v14487_v36  ;;  %v12199_v36 = vld [vmem:[%s16233_s13 + $0x44] ss:$8 sps:$4 sm:$0xff]  }
 0x503   : > { %11717 = vmatpush3.bf16.msra.mxu1 %v12173_v37  ;;  %11732 = vmatprep.mubr.msk.bf16.mxu1 %vm12946_vm2, %v14334_v7 }
 0x504   : > { %5537 = vmatmul.mubr.bf16.vlgmr.msra.gmra.mrb[120].mxu0 %v14499_v58  ;;  %11718 = vmatprep.subr.bf16.mxu1 %v14334_v7  ;;  %v12211_v58 = vld [vmem:[%s16233_s13 + $0x84] ss:$8 sps:$4 sm:$0xff]  }
 0x505   : > { %6781 = vmatpush1.bf16.msra.mxu0 %v12185_v32 }
 0x506   : > { %6782 = vmatprep.subr.bf16.mxu0 %v12190_v40 }
 0x507   : > { %11719 = vmatpush3.bf16.msra.mxu1 %v12174_v19 }
 0x508   : > { %11720 = vmatprep.subr.bf16.mxu1 %v14334_v7 }
 0x50b   : > { %11721 = vmatpush3.bf16.msra.mxu1 %v12175_v21 }
 0x50c   : > { %11722 = vmatprep.subr.bf16.mxu1 %v14334_v7 }
 0x50f   : > { %11723 = vmatpush3.bf16.msra.mxu1 %v12176_v22 }
 0x510   : > { %11724 = vmatprep.subr.bf16.mxu1 %v14334_v7 }
 0x513   : > { %11725 = vmatpush3.bf16.msra.mxu1 %v12177_v55 }
 0x514   : > { %11726 = vmatprep.subr.bf16.mxu1 %v14334_v7 }
 0x517   : > { %11727 = vmatpush3.bf16.msra.mxu1 %v12178_v51 }
 0x518   : > { %11728 = vmatprep.subr.bf16.mxu1 %v14334_v7 }
 0x51b   : > { %11729 = vmatpush3.bf16.msra.mxu1 %v12179_v24 }
 0x51c   : > { %11730 = vmatprep.subr.bf16.mxu1 %v14334_v7 }
 0x51f   : > { %11731 = vmatpush3.bf16.msra.mxu1 %v12180_v53 }
 0x520   : > { %11736 = vmatprep.subr.bf16.mxu1 %v14334_v7 }
 0x522   : > { %11733 = vmatmul.mubr.bf16.vlgmr.msra.gmra.mrb[88].mxu1 %v14505_v1  ;;  %v12220_v1 = vld [vmem:[%s16233_s13 + $0xb4] ss:$8 sps:$4 sm:$0xff]  }
 0x523   : > { %11737 = vmatpush3.bf16.msra.mxu1 %v12181_v25  ;;  %11744 = vmatprep.mubr.msk.bf16.mxu1 %vm12946_vm2, %v14334_v7 }
 0x524   : > { %11738 = vmatprep.subr.bf16.mxu1 %v14334_v7 }
 0x527   : > { %11739 = vmatpush3.bf16.msra.mxu1 %v12182_v26 }
 0x528   : > { %11740 = vmatprep.subr.bf16.mxu1 %v14334_v7 }
 0x52b   : > { %11741 = vmatpush3.bf16.msra.mxu1 %v12183_v27 }
 0x52c   : > { %11742 = vmatprep.subr.bf16.mxu1 %v14334_v7  ;;  %v12188_v7 = vld [vmem:[%s16233_s13 + $0x10] ss:$8 sps:$4 sm:$0xff]  }
 0x52d   : > { %6783 = vmatpush1.bf16.msra.mxu0 %v12188_v7  ;;  %v10502_v7 = vld [vmem:[%s16232_s12] ss:$0 sm:$0xff] }
 0x52e   : > { %6784 = vmatprep.subr.bf16.mxu0 %v12193_v14 }
 0x52f   : > { %11743 = vmatpush3.bf16.msra.mxu1 %v12184_v11 }
 0x531   : > { %6785 = vmatpush1.bf16.msra.mxu0 %v12191_v45 }
 0x532   : > { %11745 = vmatmul.mubr.msk.bf16.vlgmr.msra.gmra.mrb[88].mxu1 %vm655_vm0, %v5598_v10  ;;  %6786 = vmatprep.subr.bf16.mxu0 %v12196_v46 }
 0x535   : > { %6787 = vmatpush1.bf16.msra.mxu0 %v12194_v47 }
 0x536   : > { %6788 = vmatprep.subr.bf16.mxu0 %v12199_v36 }
 0x539   : > { %6789 = vmatpush1.bf16.msra.mxu0 %v12197_v38 }
 0x53a   : > { %6790 = vmatprep.subr.bf16.mxu0 %v12202_v49 }
 0x53d   : > { %6791 = vmatpush1.bf16.msra.mxu0 %v12200_v50 }
 0x53e   : > { %6792 = vmatprep.subr.bf16.mxu0 %v12205_v52 }
 0x541   : > { %6793 = vmatpush1.bf16.msra.mxu0 %v12203_v20 }
 0x542   : > { %6794 = vmatprep.subr.bf16.mxu0 %v12208_v29  ;;  %v12947_v29 = vmov 1983009808  }
 0x545   : > { %6795 = vmatpush1.bf16.msra.mxu0 %v12206_v56  ;;  %v5704_v56 = vunpack.c.l.s4 %v12947_v29  ;;  %v12240_v29 = vld [vmem:[%s16233_s13 + $0x120] ss:$8 sps:$4 sm:$0xff]  }
 0x546   : > { %6796 = vmatprep.subr.bf16.mxu0 %v12211_v58  ;;  %v5706_v58 = vlaneseq }
 0x549   : > { %6797 = vmatpush1.bf16.msra.mxu0 %v12209_v61 }
 0x54a   : > { %6798 = vmatprep.subr.bf16.mxu0 %v12214_v59 }
 0x54d   : > { %6799 = vmatpush1.bf16.msra.mxu0 %v12212_v34  ;;  %v5705_v34 = vunpack.c.0.s8 %v5704_v56  ;;  %v12245_v56 = vld [vmem:[%s16233_s13 + $0x134] ss:$8 sps:$4 sm:$0xff]  }
 0x54e   : > { %6800 = vmatprep.subr.bf16.mxu0 %v12217_v62  ;;  %v14732_v62 = vshrl.u32 %v5706_v58, 7  ;;  %v12243_v58 = vld [vmem:[%s16233_s13 + $0x130] ss:$8 sps:$4 sm:$0xff]  }
 0x551   : > { %6801 = vmatpush1.bf16.msra.mxu0 %v12215_v57  ;;  %v5697_v57 = vld [vmem:[#allocation9] ss:$2 sm:$0x3] }
 0x552   : > { %6802 = vmatprep.subr.bf16.mxu0 %v12220_v1  ;;  %v5714_v1 = vld [vmem:[#allocation9 + $0x1] ss:$2 sm:$0x3] }
 0x555   : > { %6803 = vmatpush1.bf16.msra.mxu0 %v12218_v3  ;;  %v14735_v3 = vsub.s32 %v5705_v34, %v14732_v62  ;;  %v12251_v34 = vld [vmem:[%s16233_s13 + $0x154] ss:$8 sps:$4 sm:$0xff]  }
 0x556   : > { %6804 = vmatprep.subr.bf16.mxu0 %v12223_v6  ;;  %v5731_v6 = vld [vmem:[#allocation9 + $0x2] ss:$2 sm:$0x3] }
 0x559   : > { %6805 = vmatpush1.bf16.msra.mxu0 %v12221_v8 }
 0x55a   : > { %6806 = vmatprep.subr.bf16.mxu0 %v12226_v41 }
 0x55d   : > { %6807 = vmatpush1.bf16.msra.mxu0 %v12224_v9 }
 0x55e   : > { %6808 = vmatprep.subr.bf16.mxu0 %v12229_v54 }
 0x561   : > { %6809 = vmatpush1.bf16.msra.mxu0 %v12227_v13 }
 0x562   : > { %6810 = vmatprep.subr.bf16.mxu0 %v12232_v42 }
 0x565   : > { %6811 = vmatpush1.bf16.msra.mxu0 %v12230_v15 }
 0x566   : > { %6821 = vmatprep.subr.bf16.mxu0 %v12235_v0 }
 0x5b5   : > { %v11500_v63 = vpop.f32.mrb[80].mxu1 }
 0x5b6   : > { %v11501_v48 = vpop.f32.mrb[81].mxu1  ;;  %v11522_v44 = vpop.f32.mrb[116].mxu0 }
 0x5b7   : > { %v11502_v60 = vadd.f32 %v11501_v48, %v11500_v63  ;;  %v11503_v31 = vpop.f32.mrb[82].mxu1  ;;  %v11523_v16 = vpop.f32.mrb[117].mxu0 }
 0x5b8   : > { %v11504_v23 = vpop.f32.mrb[83].mxu1  ;;  %v11524_v18 = vadd.f32 %v11523_v16, %v11522_v44  ;;  %v11525_v37 = vpop.f32.mrb[118].mxu0 }
 0x5b9   : > { %v5416_v33 = vadd.f32 %v11502_v60, %v10429_v12  ;;  %v11505_v17 = vadd.f32 %v11504_v23, %v11503_v31  ;;  %v11526_v19 = vpop.f32.mrb[119].mxu0 }
 0x5ba   : > { %v11527_v55 = vadd.f32 %v11526_v19, %v11525_v37 }
 0x5bb   : > { %v5419_v21 = vadd.f32 %v11505_v17, %v10429_v12  ;;  %v5457_v22 = vadd.f32 %v11524_v18, %v5416_v33 }
 0x5bd   : > { %v5460_v51 = vadd.f32 %v11527_v55, %v5419_v21 }
 0x5d5   : > { %v11544_v24 = vpop.f32.mrb[84].mxu1 }
 0x5d6   : > { %v11545_v53 = vpop.f32.mrb[85].mxu1 }
 0x5d7   : > { %v11546_v25 = vadd.f32 %v11545_v53, %v11544_v24  ;;  %v11547_v26 = vpop.f32.mrb[86].mxu1  ;;  %v11566_v27 = vpop.f32.mrb[120].mxu0 }
 0x5d8   : > { %v11548_v4 = vpop.f32.mrb[87].mxu1  ;;  %v11567_v28 = vpop.f32.mrb[121].mxu0 }
 0x5d9   : > { %v5498_v35 = vadd.f32 %v11546_v25, %v5457_v22  ;;  %v11549_v11 = vadd.f32 %v11548_v4, %v11547_v26  ;;  %v11568_v2 = vadd.f32 %v11567_v28, %v11566_v27  ;;  %v11569_v39 = vpop.f32.mrb[122].mxu0 }
 0x5da   : > { %v11570_v30 = vpop.f32.mrb[123].mxu0 }
 0x5db   : > { %v5501_v10 = vadd.f32 %v11549_v11, %v5460_v51  ;;  %v5539_v32 = vadd.f32 %v11568_v2, %v5498_v35  ;;  %v11571_v5 = vadd.f32 %v11570_v30, %v11569_v39 }
 0x5dd   : > { %v5542_v40 = vadd.f32 %v11571_v5, %v5501_v10  ;;  %v11748_v14 = vadd.f32 %v10502_v7, %v5539_v32 }
 0x5df   : > { %v11750_v36 = vadd.f32 %v10502_v7, %v5542_v40 }
 0x605   : > { %v5675_v45 = vpop.f32.mrb[88].mxu1 }
 0x606   : > { %v11749_v46 = vadd.f32 %v11748_v14, %v5675_v45  ;;  %v11746_v47 = vpop.f32.mrb[89].mxu1 }
 0x607   : > { %v5678_v38 = vpop.f32.mrb[90].mxu1 }
 0x608   : > { %v5684_v49 = vmax.f32 %v11749_v46, 0.0  ;;  %v11751_v50 = vadd.f32 %v11750_v36, %v5678_v38  ;;  %v11747_v52 = vpop.f32.mrb[91].mxu1  ;;  %v12233_v36 = vld [vmem:[%s16233_s13 + $0x100] ss:$8 sps:$4 sm:$0xff]  }
 0x609   : > { %v12237_v52 = vld [vmem:[%s16233_s13 + $0x110] ss:$8 sps:$4 sm:$0xff]  }
 0x60a   : > { %v5688_v20 = vcombine.high %v5684_v49, %v5684_v49  ;;  %5693 = vst [vmem:[#allocation9 + $0x9] sm:$0xf] %v5684_v49  ;;  %v5685_v61 = vmax.f32 %v11751_v50, 0.0  ;;  %v12239_v49 = vld [vmem:[%s16233_s13 + $0x114] ss:$8 sps:$4 sm:$0xff]  }
 0x60c   : > { %5694 = vst [vmem:[#allocation9 + $0x11] sm:$0xf] %v5688_v20  ;;  %v5689_v59 = vcombine.high %v5685_v61, %v5685_v61  ;;  %5695 = vst [vmem:[#allocation9 + $0x19] sm:$0xf] %v5685_v61  ;;  %v12242_v20 = vld [vmem:[%s16233_s13 + $0x124] ss:$8 sps:$4 sm:$0xff]  }
 0x60d   : > { %v12248_v61 = vld [vmem:[%s16233_s13 + $0x144] ss:$8 sps:$4 sm:$0xff]  }
 0x60e   : > { %5696 = vst [vmem:[#allocation9 + $0x21] sm:$0xf] %v5689_v59  ;;  %v12246_v59 = vld [vmem:[%s16233_s13 + $0x140] ss:$8 sps:$4 sm:$0xff]  }
 0x611   : > { %v5747_v42 = vld [vmem:[#allocation9 + $0x8] ss:$2 sm:$0x3]  ;;  %v5764_v15 = vld [vmem:[#allocation9 + $0x9] ss:$2 sm:$0x3] }
 0x612   : > { %v5781_v63 = vld [vmem:[#allocation9 + $0xa] ss:$2 sm:$0x3] }
 0x613   : > { %v5699_v8 = vld [vmem:[#allocation9 + $0x10] ss:$2 sm:$0x3]  ;;  %v5716_v41 = vld [vmem:[#allocation9 + $0x11] ss:$2 sm:$0x3] }
 0x614   : > { %v5702_v9 = vcombine.low %v5697_v57, %v5699_v8  ;;  %v5719_v54 = vcombine.low %v5714_v1, %v5716_v41  ;;  %v5733_v13 = vld [vmem:[#allocation9 + $0x12] ss:$2 sm:$0x3]  ;;  %v5815_v31 = vld [vmem:[#allocation9 + $0x11] ss:$2 sm:$0x3] }
 0x615   : > { %v5736_v0 = vcombine.low %v5731_v6, %v5733_v13  ;;  %v5798_v12 = vld [vmem:[#allocation9 + $0x10] ss:$2 sm:$0x3]  ;;  %v5749_v44 = vld [vmem:[#allocation9 + $0x18] ss:$2 sm:$0x3] }
 0x616   : > { %v5709_v48 = vrot.slane %v5702_v9, %v14735_v3  ;;  %v5726_v60 = vrot.slane %v5719_v54, %v14735_v3  ;;  %v5766_v23 = vld [vmem:[#allocation9 + $0x19] ss:$2 sm:$0x3]  ;;  %v5752_v33 = vcombine.low %v5747_v42, %v5749_v44  ;;  %v5783_v18 = vld [vmem:[#allocation9 + $0x1a] ss:$2 sm:$0x3] }
 0x617   : > { %v5743_v16 = vrot.slane %v5736_v0, %v14735_v3  ;;  %v5769_v17 = vcombine.low %v5764_v15, %v5766_v23  ;;  %v5800_v37 = vld [vmem:[#allocation9 + $0x20] ss:$2 sm:$0x3]  ;;  %v5786_v22 = vcombine.low %v5781_v63, %v5783_v18  ;;  %v5817_v51 = vld [vmem:[#allocation9 + $0x21] ss:$2 sm:$0x3] }
 0x618   : > { %v5711_v19 = vpack.c.bf16 %v5709_v48, %v5709_v48  ;;  %v5728_v21 = vpack.c.bf16 %v5726_v60, %v5726_v60  ;;  %v5803_v55 = vcombine.low %v5798_v12, %v5800_v37  ;;  %v5834_v24 = vld [vmem:[#allocation9 + $0x22] ss:$2 sm:$0x3]  ;;  %v5832_v25 = vld [vmem:[#allocation9 + $0x12] ss:$2 sm:$0x3]  ;;  %v5759_v26 = vrot.slane %v5752_v33, %v14735_v3 }
 0x619   : > { %v5745_v53 = vpack.c.bf16 %v5743_v16, %v5743_v16  ;;  %v5776_v27 = vrot.slane %v5769_v17, %v14735_v3  ;;  %v5820_v4 = vcombine.low %v5815_v31, %v5817_v51  ;;  %v5793_v28 = vrot.slane %v5786_v22, %v14735_v3  ;;  %v12249_v57 = vld [vmem:[%s16233_s13 + $0x150] ss:$8 sps:$4 sm:$0xff]   ;;  %v12254_v1 = vld [vmem:[%s16233_s13 + $0x164] ss:$8 sps:$4 sm:$0xff]   ;;  %v12252_v6 = vld [vmem:[%s16233_s13 + $0x160] ss:$8 sps:$4 sm:$0xff]  }
 0x61a   : > { %5712 = vst [vmem:[#allocation11] sm:$0x3] %v5711_v19  ;;  %5729 = vst [vmem:[#allocation11 + $0x2] sm:$0x3] %v5728_v21  ;;  %v5810_v35 = vrot.slane %v5803_v55, %v14735_v3  ;;  %v5837_v11 = vcombine.low %v5832_v25, %v5834_v24  ;;  %v5761_v2 = vpack.c.bf16 %v5759_v26, %v5759_v26  ;;  %v12257_v8 = vld [vmem:[%s16233_s13 + $0x174] ss:$8 sps:$4 sm:$0xff]  }
 0x61b   : > { %5746 = vst [vmem:[#allocation11 + $0x4] sm:$0x3] %v5745_v53  ;;  %v5778_v39 = vpack.c.bf16 %v5776_v27, %v5776_v27  ;;  %v5827_v30 = vrot.slane %v5820_v4, %v14735_v3  ;;  %v5795_v10 = vpack.c.bf16 %v5793_v28, %v5793_v28  ;;  %v12255_v41 = vld [vmem:[%s16233_s13 + $0x170] ss:$8 sps:$4 sm:$0xff]   ;;  %v12260_v9 = vld [vmem:[%s16233_s13 + $0x184] ss:$8 sps:$4 sm:$0xff]  }
 0x61c   : > { %v5812_v32 = vpack.c.bf16 %v5810_v35, %v5810_v35  ;;  %v5844_v5 = vrot.slane %v5837_v11, %v14735_v3  ;;  %5762 = vst [vmem:[#allocation11 + $0x6] sm:$0x3] %v5761_v2  ;;  %v12258_v54 = vld [vmem:[%s16233_s13 + $0x180] ss:$8 sps:$4 sm:$0xff]   ;;  %v12263_v13 = vld [vmem:[%s16233_s13 + $0x194] ss:$8 sps:$4 sm:$0xff]  }
 0x61d   : > { %5779 = vst [vmem:[#allocation11 + $0x8] sm:$0x3] %v5778_v39  ;;  %v5829_v40 = vpack.c.bf16 %v5827_v30, %v5827_v30  ;;  %5796 = vst [vmem:[#allocation11 + $0xa] sm:$0x3] %v5795_v10  ;;  %v12261_v42 = vld [vmem:[%s16233_s13 + $0x190] ss:$8 sps:$4 sm:$0xff]  }
 0x61e   : > { %5813 = vst [vmem:[#allocation11 + $0xc] sm:$0x3] %v5812_v32  ;;  %v5846_v7 = vpack.c.bf16 %v5844_v5, %v5844_v5  ;;  %v12266_v15 = vld [vmem:[%s16233_s13 + $0x1a4] ss:$8 sps:$4 sm:$0xff]   ;;  %v12264_v0 = vld [vmem:[%s16233_s13 + $0x1a0] ss:$8 sps:$4 sm:$0xff]  }
 0x61f   : > { %5830 = vst [vmem:[#allocation11 + $0xe] sm:$0x3] %v5829_v40  ;;  %v12269_v63 = vld [vmem:[%s16233_s13 + $0x1b4] ss:$8 sps:$4 sm:$0xff]   ;;  %v12267_v12 = vld [vmem:[%s16233_s13 + $0x1b0] ss:$8 sps:$4 sm:$0xff]  }
 0x620   : > { %5847 = vst [vmem:[#allocation11 + $0x10] sm:$0x3] %v5846_v7  ;;  %v12272_v48 = vld [vmem:[%s16233_s13 + $0x1c4] ss:$8 sps:$4 sm:$0xff]   ;;  %v12270_v60 = vld [vmem:[%s16233_s13 + $0x1c0] ss:$8 sps:$4 sm:$0xff]  }
 0x621   : > { %v12275_v31 = vld [vmem:[%s16233_s13 + $0x1d4] ss:$8 sps:$4 sm:$0xff]   ;;  %v12273_v44 = vld [vmem:[%s16233_s13 + $0x1d0] ss:$8 sps:$4 sm:$0xff]   ;;  %v12278_v23 = vld [vmem:[%s16233_s13 + $0x1e4] ss:$8 sps:$4 sm:$0xff]  }
 0x622   : > { %v12276_v16 = vld [vmem:[%s16233_s13 + $0x1e0] ss:$8 sps:$4 sm:$0xff]   ;;  %v12281_v33 = vld [vmem:[%s16233_s13 + $0x1f4] ss:$8 sps:$4 sm:$0xff]   ;;  %v12279_v18 = vld [vmem:[%s16233_s13 + $0x1f0] ss:$8 sps:$4 sm:$0xff]  }
 0x623   : > { %v5848_v14 = vld [vmem:[#allocation11] sm:$0xff]  ;;  %v12284_v37 = vld [vmem:[%s16233_s13 + $0x204] ss:$8 sps:$4 sm:$0xff]   ;;  %v12282_v21 = vld [vmem:[%s16233_s13 + $0x200] ss:$8 sps:$4 sm:$0xff]  }
 0x624   : > { %v6017_v45 = vrot.slane %v5848_v14, %v14735_v3  ;;  %v6010_v46 = vcombine.high %v5848_v14, %v5848_v14  ;;  %v12287_v22 = vld [vmem:[%s16233_s13 + $0x214] ss:$8 sps:$4 sm:$0xff]   ;;  %v12285_v51 = vld [vmem:[%s16233_s13 + $0x210] ss:$8 sps:$4 sm:$0xff]   ;;  %v12290_v24 = vld [vmem:[%s16233_s13 + $0x224] ss:$8 sps:$4 sm:$0xff]  }
 0x625   : > { %v12288_v53 = vld [vmem:[%s16233_s13 + $0x220] ss:$8 sps:$4 sm:$0xff]   ;;  %v12293_v25 = vld [vmem:[%s16233_s13 + $0x234] ss:$8 sps:$4 sm:$0xff]   ;;  %v12291_v26 = vld [vmem:[%s16233_s13 + $0x230] ss:$8 sps:$4 sm:$0xff]  }
 0x626   : > { %v6025_v47 = vcombine.high %v6017_v45, %v6017_v45  ;;  %v14751_v38 = vrot.slane %v6010_v46, %v14735_v3  ;;  %v14842_v17 = vld [vmem:[#allocation11 + $0x8] sm:$0xff]  ;;  %v12299_v28 = vld [vmem:[%s16233_s13 + $0x254] ss:$8 sps:$4 sm:$0xff]   ;;  %v12297_v35 = vld [vmem:[%s16233_s13 + $0x250] ss:$8 sps:$4 sm:$0xff]  }
 0x627   : > { %v14852_v19 = vrot.slane %v14842_v17, %v14735_v3  ;;  %v12296_v27 = vld [vmem:[%s16233_s13 + $0x244] ss:$8 sps:$4 sm:$0xff]   ;;  %v12294_v4 = vld [vmem:[%s16233_s13 + $0x240] ss:$8 sps:$4 sm:$0xff]   ;;  %v12305_v39 = vld [vmem:[%s16233_s13 + $0x274] ss:$8 sps:$4 sm:$0xff]  }
 0x628   : > { %6812 = vmatprep.mubr.bf16.mxu0 %v6025_v47  ;;  %v6026_v50 = vcombine.high %v14751_v38, %v14751_v38  ;;  %v12302_v11 = vld [vmem:[%s16233_s13 + $0x264] ss:$8 sps:$4 sm:$0xff]   ;;  %v12300_v2 = vld [vmem:[%s16233_s13 + $0x260] ss:$8 sps:$4 sm:$0xff]   ;;  %v12303_v30 = vld [vmem:[%s16233_s13 + $0x270] ss:$8 sps:$4 sm:$0xff]  }
 0x629   : > { %6813 = vmatmul.mubr.bf16.vlgmr.msra.gmra.mrb[124].mxu0 %v6017_v45  ;;  %v6042_v55 = vcombine.high %v14852_v19, %v14852_v19  ;;  %v12308_v10 = vld [vmem:[%s16233_s13 + $0x284] ss:$8 sps:$4 sm:$0xff]   ;;  %v12306_v32 = vld [vmem:[%s16233_s13 + $0x280] ss:$8 sps:$4 sm:$0xff]   ;;  %v12311_v5 = vld [vmem:[%s16233_s13 + $0x294] ss:$8 sps:$4 sm:$0xff]  }
 0x62a   : > { %6822 = vmatpush1.bf16.msra.mxu0 %v12233_v36  ;;  %6853 = vmatprep.mubr.bf16.mxu0 %v6026_v50  ;;  %v12403_v40 = vld [vmem:[%s16235_s15 + $0x200] ss:$8 sps:$4 sm:$0xff]   ;;  %v12405_v7 = vld [vmem:[%s16235_s15 + $0x204] ss:$8 sps:$4 sm:$0xff]   ;;  %v12309_v14 = vld [vmem:[%s16233_s13 + $0x290] ss:$8 sps:$4 sm:$0xff]  }
 0x62b   : > { %6823 = vmatprep.subr.bf16.mxu0 %v12239_v49  ;;  %v12411_v45 = vld [vmem:[%s16235_s15 + $0x214] ss:$8 sps:$4 sm:$0xff]   ;;  %v12314_v46 = vld [vmem:[%s16233_s13 + $0x2a4] ss:$8 sps:$4 sm:$0xff]   ;;  %9376 = vmatprep.subr.bf16.mxu1 %v12405_v7  ;;  %v12409_v47 = vld [vmem:[%s16235_s15 + $0x210] ss:$8 sps:$4 sm:$0xff]  }
 0x62c   : > { %9377 = vmatpush1.bf16.msra.mxu1 %v12403_v40  ;;  %v12312_v36 = vld [vmem:[%s16233_s13 + $0x2a0] ss:$8 sps:$4 sm:$0xff]   ;;  %v12317_v49 = vld [vmem:[%s16233_s13 + $0x2b4] ss:$8 sps:$4 sm:$0xff]   ;;  %v12382_v40 = vld [vmem:[%s16233_s13 + $0x410] ss:$8 sps:$4 sm:$0xff]  }
 0x62d   : > { %9378 = vmatprep.subr.bf16.mxu1 %v12411_v45  ;;  %v12415_v50 = vld [vmem:[%s16235_s15 + $0x220] ss:$8 sps:$4 sm:$0xff]   ;;  %v12387_v7 = vld [vmem:[%s16233_s13 + $0x424] ss:$8 sps:$4 sm:$0xff]   ;;  %v12390_v45 = vld [vmem:[%s16233_s13 + $0x434] ss:$8 sps:$4 sm:$0xff]  }
 0x62e   : > { %6824 = vmatpush1.bf16.msra.mxu0 %v12237_v52  ;;  %v12315_v52 = vld [vmem:[%s16233_s13 + $0x2b0] ss:$8 sps:$4 sm:$0xff]  }
 0x62f   : > { %6825 = vmatprep.subr.bf16.mxu0 %v12242_v20  ;;  %v12423_v20 = vld [vmem:[%s16235_s15 + $0x234] ss:$8 sps:$4 sm:$0xff]  }
 0x630   : > { %9379 = vmatpush1.bf16.msra.mxu1 %v12409_v47  ;;  %v12393_v47 = vld [vmem:[%s16233_s13 + $0x444] ss:$8 sps:$4 sm:$0xff]  }
 0x632   : > { %6826 = vmatpush1.bf16.msra.mxu0 %v12240_v29  ;;  %v12320_v29 = vld [vmem:[%s16233_s13 + $0x2c4] ss:$8 sps:$4 sm:$0xff]  }
 0x633   : > { %6827 = vmatprep.subr.bf16.mxu0 %v12245_v56  ;;  %v12421_v56 = vld [vmem:[%s16235_s15 + $0x230] ss:$8 sps:$4 sm:$0xff]  }
 0x636   : > { %6828 = vmatpush1.bf16.msra.mxu0 %v12243_v58  ;;  %v12318_v58 = vld [vmem:[%s16233_s13 + $0x2c0] ss:$8 sps:$4 sm:$0xff]  }
 0x637   : > { %6829 = vmatprep.subr.bf16.mxu0 %v12248_v61  ;;  %v12429_v61 = vld [vmem:[%s16235_s15 + $0x244] ss:$8 sps:$4 sm:$0xff]  }
 0x63a   : > { %6830 = vmatpush1.bf16.msra.mxu0 %v12246_v59  ;;  %v12323_v59 = vld [vmem:[%s16233_s13 + $0x2d4] ss:$8 sps:$4 sm:$0xff]  }
 0x63b   : > { %6831 = vmatprep.subr.bf16.mxu0 %v12251_v34  ;;  %v12427_v34 = vld [vmem:[%s16235_s15 + $0x240] ss:$8 sps:$4 sm:$0xff]  }
 0x63e   : > { %6832 = vmatpush1.bf16.msra.mxu0 %v12249_v57  ;;  %v12321_v57 = vld [vmem:[%s16233_s13 + $0x2d0] ss:$8 sps:$4 sm:$0xff]  }
 0x63f   : > { %6833 = vmatprep.subr.bf16.mxu0 %v12254_v1  ;;  %v12326_v1 = vld [vmem:[%s16233_s13 + $0x2e4] ss:$8 sps:$4 sm:$0xff]  }
 0x642   : > { %6834 = vmatpush1.bf16.msra.mxu0 %v12252_v6  ;;  %v12324_v6 = vld [vmem:[%s16233_s13 + $0x2e0] ss:$8 sps:$4 sm:$0xff]  }
 0x643   : > { %6835 = vmatprep.subr.bf16.mxu0 %v12257_v8  ;;  %v12329_v8 = vld [vmem:[%s16233_s13 + $0x2f4] ss:$8 sps:$4 sm:$0xff]  }
 0x646   : > { %6836 = vmatpush1.bf16.msra.mxu0 %v12255_v41  ;;  %v6027_v41 = vcombine.high %v14842_v17, %v14842_v17  ;;  %v12351_v17 = vld [vmem:[%s16233_s13 + $0x364] ss:$8 sps:$4 sm:$0xff]  }
 0x647   : > { %6837 = vmatprep.subr.bf16.mxu0 %v12260_v9  ;;  %v12327_v9 = vld [vmem:[%s16233_s13 + $0x2f0] ss:$8 sps:$4 sm:$0xff]  }
 0x64a   : > { %6838 = vmatpush1.bf16.msra.mxu0 %v12258_v54  ;;  %v12332_v54 = vld [vmem:[%s16233_s13 + $0x304] ss:$8 sps:$4 sm:$0xff]  }
 0x64b   : > { %6839 = vmatprep.subr.bf16.mxu0 %v12263_v13  ;;  %v14986_v13 = vrot.slane %v6027_v41, %v14735_v3  ;;  %v12432_v41 = vld [vmem:[%s16235_s15 + $0x44] ss:$8 sps:$4 sm:$0xff]  }
 0x64e   : > { %6840 = vmatpush1.bf16.msra.mxu0 %v12261_v42  ;;  %v12330_v42 = vld [vmem:[%s16233_s13 + $0x300] ss:$8 sps:$4 sm:$0xff]  }
 0x64f   : > { %6841 = vmatprep.subr.bf16.mxu0 %v12266_v15  ;;  %v12336_v15 = vld [vmem:[%s16233_s13 + $0x314] ss:$8 sps:$4 sm:$0xff]  }
 0x652   : > { %6842 = vmatpush1.bf16.msra.mxu0 %v12264_v0  ;;  %v6043_v0 = vcombine.high %v14986_v13, %v14986_v13 }
 0x653   : > { %6843 = vmatprep.subr.bf16.mxu0 %v12269_v63  ;;  %v12334_v63 = vld [vmem:[%s16233_s13 + $0x310] ss:$8 sps:$4 sm:$0xff]  }
 0x656   : > { %6844 = vmatpush1.bf16.msra.mxu0 %v12267_v12  ;;  %v12339_v12 = vld [vmem:[%s16233_s13 + $0x324] ss:$8 sps:$4 sm:$0xff]  }
 0x657   : > { %6845 = vmatprep.subr.bf16.mxu0 %v12272_v48  ;;  %v12337_v48 = vld [vmem:[%s16233_s13 + $0x320] ss:$8 sps:$4 sm:$0xff]  }
 0x65a   : > { %6846 = vmatpush1.bf16.msra.mxu0 %v12270_v60  ;;  %v12342_v60 = vld [vmem:[%s16233_s13 + $0x334] ss:$8 sps:$4 sm:$0xff]  }
 0x65b   : > { %6847 = vmatprep.subr.bf16.mxu0 %v12275_v31  ;;  %v12340_v31 = vld [vmem:[%s16233_s13 + $0x330] ss:$8 sps:$4 sm:$0xff]  }
 0x65e   : > { %6848 = vmatpush1.bf16.msra.mxu0 %v12273_v44  ;;  %v12345_v44 = vld [vmem:[%s16233_s13 + $0x344] ss:$8 sps:$4 sm:$0xff]  }
 0x65f   : > { %6849 = vmatprep.subr.bf16.mxu0 %v12278_v23  ;;  %v12343_v23 = vld [vmem:[%s16233_s13 + $0x340] ss:$8 sps:$4 sm:$0xff]  }
 0x662   : > { %6850 = vmatpush1.bf16.msra.mxu0 %v12276_v16  ;;  %v12348_v16 = vld [vmem:[%s16233_s13 + $0x354] ss:$8 sps:$4 sm:$0xff]  }
 0x663   : > { %6851 = vmatprep.subr.bf16.mxu0 %v12281_v33  ;;  %v12346_v33 = vld [vmem:[%s16233_s13 + $0x350] ss:$8 sps:$4 sm:$0xff]  }
 0x666   : > { %6852 = vmatpush1.bf16.msra.mxu0 %v12279_v18  ;;  %v12349_v18 = vld [vmem:[%s16233_s13 + $0x360] ss:$8 sps:$4 sm:$0xff]  }
 0x667   : > { %6862 = vmatprep.subr.bf16.mxu0 %v12284_v37  ;;  %v12354_v37 = vld [vmem:[%s16233_s13 + $0x374] ss:$8 sps:$4 sm:$0xff]  }
 0x669   : > { %6854 = vmatmul.mubr.bf16.vlgmr.msra.gmra.mrb[124].mxu0 %v14751_v38  ;;  %v12417_v38 = vld [vmem:[%s16235_s15 + $0x224] ss:$8 sps:$4 sm:$0xff]  }
 0x66a   : > { %6863 = vmatpush1.bf16.msra.mxu0 %v12282_v21  ;;  %6894 = vmatprep.mubr.bf16.mxu0 %v6042_v55  ;;  %v12357_v21 = vld [vmem:[%s16233_s13 + $0x384] ss:$8 sps:$4 sm:$0xff]   ;;  %v12360_v55 = vld [vmem:[%s16233_s13 + $0x394] ss:$8 sps:$4 sm:$0xff]  }
 0x66b   : > { %6864 = vmatprep.subr.bf16.mxu0 %v12287_v22  ;;  %9380 = vmatprep.subr.bf16.mxu1 %v12417_v38  ;;  %v12355_v22 = vld [vmem:[%s16233_s13 + $0x380] ss:$8 sps:$4 sm:$0xff]   ;;  %v12396_v38 = vld [vmem:[%s16233_s13 + $0x454] ss:$8 sps:$4 sm:$0xff]  }
 0x66c   : > { %9381 = vmatpush1.bf16.msra.mxu1 %v12415_v50  ;;  %v12399_v50 = vld [vmem:[%s16233_s13 + $0x464] ss:$8 sps:$4 sm:$0xff]  }
 0x66d   : > { %9382 = vmatprep.subr.bf16.mxu1 %v12423_v20  ;;  %v12402_v20 = vld [vmem:[%s16233_s13 + $0x474] ss:$8 sps:$4 sm:$0xff]  }
 0x66e   : > { %6865 = vmatpush1.bf16.msra.mxu0 %v12285_v51  ;;  %v12358_v51 = vld [vmem:[%s16233_s13 + $0x390] ss:$8 sps:$4 sm:$0xff]  }
 0x66f   : > { %6866 = vmatprep.subr.bf16.mxu0 %v12290_v24  ;;  %v12363_v24 = vld [vmem:[%s16233_s13 + $0x3a4] ss:$8 sps:$4 sm:$0xff]  }
 0x670   : > { %9383 = vmatpush1.bf16.msra.mxu1 %v12421_v56  ;;  %v12408_v56 = vld [vmem:[%s16235_s15 + $0x4] ss:$8 sps:$4 sm:$0xff]  }
 0x671   : > { %9384 = vmatprep.subr.bf16.mxu1 %v12429_v61  ;;  %v12414_v61 = vld [vmem:[%s16235_s15 + $0x14] ss:$8 sps:$4 sm:$0xff]  }
 0x672   : > { %6867 = vmatpush1.bf16.msra.mxu0 %v12288_v53  ;;  %v12361_v53 = vld [vmem:[%s16233_s13 + $0x3a0] ss:$8 sps:$4 sm:$0xff]  }
 0x673   : > { %6868 = vmatprep.subr.bf16.mxu0 %v12293_v25  ;;  %v12366_v25 = vld [vmem:[%s16233_s13 + $0x3b4] ss:$8 sps:$4 sm:$0xff]  }
 0x674   : > { %9385 = vmatpush1.bf16.msra.mxu1 %v12427_v34  ;;  %v12412_v34 = vld [vmem:[%s16235_s15 + $0x10] ss:$8 sps:$4 sm:$0xff]  }
 0x676   : > { %6869 = vmatpush1.bf16.msra.mxu0 %v12291_v26  ;;  %v12364_v26 = vld [vmem:[%s16233_s13 + $0x3b0] ss:$8 sps:$4 sm:$0xff]  }
 0x677   : > { %6870 = vmatprep.subr.bf16.mxu0 %v12296_v27  ;;  %v12369_v27 = vld [vmem:[%s16233_s13 + $0x3c4] ss:$8 sps:$4 sm:$0xff]  }
 0x67a   : > { %6871 = vmatpush1.bf16.msra.mxu0 %v12294_v4  ;;  %v12367_v4 = vld [vmem:[%s16233_s13 + $0x3c0] ss:$8 sps:$4 sm:$0xff]  }
 0x67b   : > { %6872 = vmatprep.subr.bf16.mxu0 %v12299_v28  ;;  %v12372_v28 = vld [vmem:[%s16233_s13 + $0x3d4] ss:$8 sps:$4 sm:$0xff]  }
 0x67e   : > { %6873 = vmatpush1.bf16.msra.mxu0 %v12297_v35  ;;  %v12370_v35 = vld [vmem:[%s16233_s13 + $0x3d0] ss:$8 sps:$4 sm:$0xff]  }
 0x67f   : > { %6874 = vmatprep.subr.bf16.mxu0 %v12302_v11  ;;  %v12375_v11 = vld [vmem:[%s16233_s13 + $0x3e4] ss:$8 sps:$4 sm:$0xff]  }
 0x682   : > { %6875 = vmatpush1.bf16.msra.mxu0 %v12300_v2  ;;  %v12373_v2 = vld [vmem:[%s16233_s13 + $0x3e0] ss:$8 sps:$4 sm:$0xff]  }
 0x683   : > { %6876 = vmatprep.subr.bf16.mxu0 %v12305_v39  ;;  %v12378_v39 = vld [vmem:[%s16233_s13 + $0x3f4] ss:$8 sps:$4 sm:$0xff]  }
 0x686   : > { %6877 = vmatpush1.bf16.msra.mxu0 %v12303_v30  ;;  %v12376_v30 = vld [vmem:[%s16233_s13 + $0x3f0] ss:$8 sps:$4 sm:$0xff]  }
 0x687   : > { %6878 = vmatprep.subr.bf16.mxu0 %v12308_v10  ;;  %v12381_v10 = vld [vmem:[%s16233_s13 + $0x404] ss:$8 sps:$4 sm:$0xff]  }
 0x68a   : > { %6879 = vmatpush1.bf16.msra.mxu0 %v12306_v32  ;;  %v12379_v32 = vld [vmem:[%s16233_s13 + $0x400] ss:$8 sps:$4 sm:$0xff]  }
 0x68b   : > { %6880 = vmatprep.subr.bf16.mxu0 %v12311_v5  ;;  %v12384_v5 = vld [vmem:[%s16233_s13 + $0x414] ss:$8 sps:$4 sm:$0xff]  }
 0x68e   : > { %6881 = vmatpush1.bf16.msra.mxu0 %v12309_v14  ;;  %v12385_v14 = vld [vmem:[%s16233_s13 + $0x420] ss:$8 sps:$4 sm:$0xff]  }
 0x68f   : > { %6882 = vmatprep.subr.bf16.mxu0 %v12314_v46  ;;  %v12388_v46 = vld [vmem:[%s16233_s13 + $0x430] ss:$8 sps:$4 sm:$0xff]  }
 0x692   : > { %6883 = vmatpush1.bf16.msra.mxu0 %v12312_v36  ;;  %v12391_v36 = vld [vmem:[%s16233_s13 + $0x440] ss:$8 sps:$4 sm:$0xff]  }
 0x693   : > { %6884 = vmatprep.subr.bf16.mxu0 %v12317_v49  ;;  %v12394_v49 = vld [vmem:[%s16233_s13 + $0x450] ss:$8 sps:$4 sm:$0xff]  }
 0x696   : > { %6885 = vmatpush1.bf16.msra.mxu0 %v12315_v52  ;;  %v12397_v52 = vld [vmem:[%s16233_s13 + $0x460] ss:$8 sps:$4 sm:$0xff]  }
 0x697   : > { %6886 = vmatprep.subr.bf16.mxu0 %v12320_v29  ;;  %v12400_v29 = vld [vmem:[%s16233_s13 + $0x470] ss:$8 sps:$4 sm:$0xff]  }
 0x69a   : > { %6887 = vmatpush1.bf16.msra.mxu0 %v12318_v58  ;;  %v12406_v58 = vld [vmem:[%s16235_s15] ss:$8 sps:$4 sm:$0xff]  }
 0x69b   : > { %6888 = vmatprep.subr.bf16.mxu0 %v12323_v59  ;;  %v10508_v59 = vld.sshfl [vmem:[#allocation11 + $0x10] sm:$0x3 pattern:$0x76325410] }
 0x69e   : > { %6889 = vmatpush1.bf16.msra.mxu0 %v12321_v57  ;;  %v12420_v57 = vld [vmem:[%s16235_s15 + $0x24] ss:$8 sps:$4 sm:$0xff]  }
 0x69f   : > { %6890 = vmatprep.subr.bf16.mxu0 %v12326_v1  ;;  %v12418_v1 = vld [vmem:[%s16235_s15 + $0x20] ss:$8 sps:$4 sm:$0xff]  }
 0x6a2   : > { %6891 = vmatpush1.bf16.msra.mxu0 %v12324_v6  ;;  %v12426_v6 = vld [vmem:[%s16235_s15 + $0x34] ss:$8 sps:$4 sm:$0xff]  }
 0x6a3   : > { %6892 = vmatprep.subr.bf16.mxu0 %v12329_v8  ;;  %v12424_v8 = vld [vmem:[%s16235_s15 + $0x30] ss:$8 sps:$4 sm:$0xff]  }
 0x6a6   : > { %6893 = vmatpush1.bf16.msra.mxu0 %v12327_v9  ;;  %v12430_v9 = vld [vmem:[%s16235_s15 + $0x40] ss:$8 sps:$4 sm:$0xff]  }
 0x6a7   : > { %6903 = vmatprep.subr.bf16.mxu0 %v12332_v54  ;;  %v12433_v54 = vld [vmem:[%s16235_s15 + $0x250] ss:$8 sps:$4 sm:$0xff]  }
 0x6a9   : > { %6895 = vmatmul.mubr.bf16.vlgmr.msra.gmra.mrb[124].mxu0 %v14852_v19  ;;  %v12352_v19 = vld [vmem:[%s16233_s13 + $0x370] ss:$8 sps:$4 sm:$0xff]  }
 0x6aa   : > { %6904 = vmatpush1.bf16.msra.mxu0 %v12330_v42  ;;  %6935 = vmatprep.mubr.bf16.mxu0 %v6043_v0  ;;  %v12438_v42 = vld [vmem:[%s16235_s15 + $0x54] ss:$8 sps:$4 sm:$0xff]   ;;  %v12441_v0 = vld [vmem:[%s16235_s15 + $0x264] ss:$8 sps:$4 sm:$0xff]  }
 0x6ab   : > { %6905 = vmatprep.subr.bf16.mxu0 %v12336_v15  ;;  %v12436_v15 = vld [vmem:[%s16235_s15 + $0x50] ss:$8 sps:$4 sm:$0xff]  }
 0x6ae   : > { %6906 = vmatpush1.bf16.msra.mxu0 %v12334_v63  ;;  %v12439_v63 = vld [vmem:[%s16235_s15 + $0x260] ss:$8 sps:$4 sm:$0xff]  }
 0x6af   : > { %6907 = vmatprep.subr.bf16.mxu0 %v12339_v12  ;;  %v12444_v12 = vld [vmem:[%s16235_s15 + $0x64] ss:$8 sps:$4 sm:$0xff]  }
 0x6b2   : > { %6908 = vmatpush1.bf16.msra.mxu0 %v12337_v48  ;;  %v12442_v48 = vld [vmem:[%s16235_s15 + $0x60] ss:$8 sps:$4 sm:$0xff]  }
 0x6b3   : > { %6909 = vmatprep.subr.bf16.mxu0 %v12342_v60  ;;  %v12447_v60 = vld [vmem:[%s16235_s15 + $0x274] ss:$8 sps:$4 sm:$0xff]  }
 0x6b6   : > { %6910 = vmatpush1.bf16.msra.mxu0 %v12340_v31  ;;  %v12445_v31 = vld [vmem:[%s16235_s15 + $0x270] ss:$8 sps:$4 sm:$0xff]  }
 0x6b7   : > { %6911 = vmatprep.subr.bf16.mxu0 %v12345_v44  ;;  %v12450_v44 = vld [vmem:[%s16235_s15 + $0x74] ss:$8 sps:$4 sm:$0xff]  }
 0x6ba   : > { %6912 = vmatpush1.bf16.msra.mxu0 %v12343_v23  ;;  %v12448_v23 = vld [vmem:[%s16235_s15 + $0x70] ss:$8 sps:$4 sm:$0xff]  }
 0x6bb   : > { %6913 = vmatprep.subr.bf16.mxu0 %v12348_v16  ;;  %v12453_v16 = vld [vmem:[%s16235_s15 + $0x284] ss:$8 sps:$4 sm:$0xff]  }
 0x6be   : > { %6914 = vmatpush1.bf16.msra.mxu0 %v12346_v33  ;;  %v12451_v33 = vld [vmem:[%s16235_s15 + $0x280] ss:$8 sps:$4 sm:$0xff]  }
 0x6bf   : > { %6915 = vmatprep.subr.bf16.mxu0 %v12351_v17  ;;  %v12456_v17 = vld [vmem:[%s16235_s15 + $0x84] ss:$8 sps:$4 sm:$0xff]  }
 0x6c2   : > { %6916 = vmatpush1.bf16.msra.mxu0 %v12349_v18  ;;  %v12454_v18 = vld [vmem:[%s16235_s15 + $0x80] ss:$8 sps:$4 sm:$0xff]  }
 0x6c3   : > { %6917 = vmatprep.subr.bf16.mxu0 %v12354_v37  ;;  %v12459_v37 = vld [vmem:[%s16235_s15 + $0x294] ss:$8 sps:$4 sm:$0xff]  }
 0x6c6   : > { %6918 = vmatpush1.bf16.msra.mxu0 %v12352_v19  ;;  %v12457_v19 = vld [vmem:[%s16235_s15 + $0x290] ss:$8 sps:$4 sm:$0xff]  }
 0x6c7   : > { %6919 = vmatprep.subr.bf16.mxu0 %v12357_v21  ;;  %v12462_v21 = vld [vmem:[%s16235_s15 + $0x94] ss:$8 sps:$4 sm:$0xff]  }
 0x6ca   : > { %6920 = vmatpush1.bf16.msra.mxu0 %v12355_v22  ;;  %v12460_v22 = vld [vmem:[%s16235_s15 + $0x90] ss:$8 sps:$4 sm:$0xff]  }
 0x6cb   : > { %6921 = vmatprep.subr.bf16.mxu0 %v12360_v55  ;;  %v12465_v55 = vld [vmem:[%s16235_s15 + $0x2a4] ss:$8 sps:$4 sm:$0xff]  }
 0x6ce   : > { %6922 = vmatpush1.bf16.msra.mxu0 %v12358_v51  ;;  %v12463_v51 = vld [vmem:[%s16235_s15 + $0x2a0] ss:$8 sps:$4 sm:$0xff]  }
 0x6cf   : > { %6923 = vmatprep.subr.bf16.mxu0 %v12363_v24  ;;  %v12468_v24 = vld [vmem:[%s16235_s15 + $0xa4] ss:$8 sps:$4 sm:$0xff]  }
 0x6d2   : > { %6924 = vmatpush1.bf16.msra.mxu0 %v12361_v53  ;;  %v12466_v53 = vld [vmem:[%s16235_s15 + $0xa0] ss:$8 sps:$4 sm:$0xff]  }
 0x6d3   : > { %6925 = vmatprep.subr.bf16.mxu0 %v12366_v25  ;;  %v12469_v25 = vld [vmem:[%s16235_s15 + $0x2b0] ss:$8 sps:$4 sm:$0xff]  }
 0x6d6   : > { %6926 = vmatpush1.bf16.msra.mxu0 %v12364_v26  ;;  %v12471_v26 = vld [vmem:[%s16235_s15 + $0x2b4] ss:$8 sps:$4 sm:$0xff]  }
 0x6d7   : > { %6927 = vmatprep.subr.bf16.mxu0 %v12369_v27  ;;  %v12474_v27 = vld [vmem:[%s16235_s15 + $0xb4] ss:$8 sps:$4 sm:$0xff]  }
 0x6da   : > { %6928 = vmatpush1.bf16.msra.mxu0 %v12367_v4  ;;  %v12472_v4 = vld [vmem:[%s16235_s15 + $0xb0] ss:$8 sps:$4 sm:$0xff]  }
 0x6db   : > { %6929 = vmatprep.subr.bf16.mxu0 %v12372_v28  ;;  %v12477_v28 = vld [vmem:[%s16235_s15 + $0x2c4] ss:$8 sps:$4 sm:$0xff]  }
 0x6de   : > { %6930 = vmatpush1.bf16.msra.mxu0 %v12370_v35  ;;  %v12475_v35 = vld [vmem:[%s16235_s15 + $0x2c0] ss:$8 sps:$4 sm:$0xff]  }
 0x6df   : > { %6931 = vmatprep.subr.bf16.mxu0 %v12375_v11  ;;  %v12480_v11 = vld [vmem:[%s16235_s15 + $0xc4] ss:$8 sps:$4 sm:$0xff]  }
 0x6e2   : > { %6932 = vmatpush1.bf16.msra.mxu0 %v12373_v2  ;;  %v12478_v2 = vld [vmem:[%s16235_s15 + $0xc0] ss:$8 sps:$4 sm:$0xff]  }
 0x6e3   : > { %6933 = vmatprep.subr.bf16.mxu0 %v12378_v39  ;;  %v12483_v39 = vld [vmem:[%s16235_s15 + $0x2d4] ss:$8 sps:$4 sm:$0xff]  }
 0x6e6   : > { %6934 = vmatpush1.bf16.msra.mxu0 %v12376_v30  ;;  %v12486_v30 = vld [vmem:[%s16235_s15 + $0xd4] ss:$8 sps:$4 sm:$0xff]  }
 0x6e7   : > { %6944 = vmatprep.subr.bf16.mxu0 %v12381_v10  ;;  %v12481_v10 = vld [vmem:[%s16235_s15 + $0x2d0] ss:$8 sps:$4 sm:$0xff]  }
 0x6e9   : > { %6936 = vmatmul.mubr.bf16.vlgmr.msra.gmra.mrb[124].mxu0 %v14986_v13  ;;  %v12435_v13 = vld [vmem:[%s16235_s15 + $0x254] ss:$8 sps:$4 sm:$0xff]  }
 0x6ea   : > { %6945 = vmatpush1.bf16.msra.mxu0 %v12379_v32  ;;  %6976 = vmatprep.mubr.bf16.mxu0 %v12945_v43  ;;  %v12489_v32 = vld [vmem:[%s16235_s15 + $0x2e4] ss:$8 sps:$4 sm:$0xff]  }
 0x6eb   : > { %6946 = vmatprep.subr.bf16.mxu0 %v12384_v5  ;;  %9386 = vmatprep.subr.bf16.mxu1 %v12435_v13  ;;  %v12484_v5 = vld [vmem:[%s16235_s15 + $0xd0] ss:$8 sps:$4 sm:$0xff]  }
 0x6ec   : > { %9387 = vmatpush1.bf16.msra.mxu1 %v12433_v54 }
 0x6ed   : > { %9388 = vmatprep.subr.bf16.mxu1 %v12441_v0  ;;  %v10688_v0 = vld.sshfl [vmem:[#allocation10 + $0x18] sm:$0x5a pattern:$0x76325410] }
 0x6ee   : > { %6947 = vmatpush1.bf16.msra.mxu0 %v12382_v40  ;;  %v12492_v40 = vld [vmem:[%s16235_s15 + $0xe4] ss:$8 sps:$4 sm:$0xff]  }
 0x6ef   : > { %6948 = vmatprep.subr.bf16.mxu0 %v12387_v7  ;;  %v12487_v7 = vld [vmem:[%s16235_s15 + $0x2e0] ss:$8 sps:$4 sm:$0xff]  }
 0x6f0   : > { %9389 = vmatpush1.bf16.msra.mxu1 %v12439_v63 }
 0x6f1   : > { %9390 = vmatprep.subr.bf16.mxu1 %v12447_v60  ;;  %v10653_v60 = vld.sshfl [vmem:[#allocation10] sm:$0xf pattern:$0x76325410] }
 0x6f2   : > { %6949 = vmatpush1.bf16.msra.mxu0 %v12385_v14  ;;  %v12495_v14 = vld [vmem:[%s16235_s15 + $0x2f4] ss:$8 sps:$4 sm:$0xff]  }
 0x6f3   : > { %6950 = vmatprep.subr.bf16.mxu0 %v12390_v45  ;;  %v12490_v45 = vld [vmem:[%s16235_s15 + $0xe0] ss:$8 sps:$4 sm:$0xff]  }
 0x6f4   : > { %9391 = vmatpush1.bf16.msra.mxu1 %v12445_v31 }
 0x6f5   : > { %9392 = vmatprep.subr.bf16.mxu1 %v12453_v16  ;;  %v10684_v16 = vld.sshfl [vmem:[#allocation10 + $0x18] sm:$0xf pattern:$0x76325410] }
 0x6f6   : > { %6951 = vmatpush1.bf16.msra.mxu0 %v12388_v46  ;;  %v12498_v46 = vld [vmem:[%s16235_s15 + $0xf4] ss:$8 sps:$4 sm:$0xff]  }
 0x6f7   : > { %6952 = vmatprep.subr.bf16.mxu0 %v12393_v47  ;;  %v12493_v47 = vld [vmem:[%s16235_s15 + $0x2f0] ss:$8 sps:$4 sm:$0xff]  }
 0x6f8   : > { %9393 = vmatpush1.bf16.msra.mxu1 %v12451_v33  ;;  %v10690_v33 = vrot.slane %v10688_v0, 9 }
 0x6f9   : > { %9394 = vmatprep.subr.bf16.mxu1 %v12459_v37 }
 0x6fa   : > { %6953 = vmatpush1.bf16.msra.mxu0 %v12391_v36  ;;  %v12501_v36 = vld [vmem:[%s16235_s15 + $0x304] ss:$8 sps:$4 sm:$0xff]  }
 0x6fb   : > { %6954 = vmatprep.subr.bf16.mxu0 %v12396_v38  ;;  %v12496_v38 = vld [vmem:[%s16235_s15 + $0xf0] ss:$8 sps:$4 sm:$0xff]  }
 0x6fc   : > { %9395 = vmatpush1.bf16.msra.mxu1 %v12457_v19 }
 0x6fd   : > { %9396 = vmatprep.subr.bf16.mxu1 %v12465_v55 }
 0x6fe   : > { %6955 = vmatpush1.bf16.msra.mxu0 %v12394_v49  ;;  %v12505_v49 = vld [vmem:[%s16235_s15 + $0x104] ss:$8 sps:$4 sm:$0xff]  }
 0x6ff   : > { %6956 = vmatprep.subr.bf16.mxu0 %v12399_v50  ;;  %v15303_v50 = vsub.s32 0, %v14732_v62 }
 0x700   : > { %9397 = vmatpush1.bf16.msra.mxu1 %v12463_v51 }
 0x701   : > { %9398 = vmatprep.subr.bf16.mxu1 %v12471_v26 }
 0x702   : > { %6957 = vmatpush1.bf16.msra.mxu0 %v12397_v52  ;;  %v5995_v52 = vld [vmem:[%s16234_s14] sm:$0x3] }
 0x703   : > { %6958 = vmatprep.subr.bf16.mxu0 %v12402_v20  ;;  %v15309_v20 = vsub.s32 1, %v14732_v62  ;;  %v10657_v62 = vld.sshfl [vmem:[#allocation10] sm:$0x5a pattern:$0x76325410] }
 0x704   : > { %9399 = vmatpush1.bf16.msra.mxu1 %v12469_v25  ;;  %v10659_v31 = vrot.slane %v10657_v62, 9 }
 0x705   : > { %9400 = vmatprep.subr.bf16.mxu1 %v12477_v28 }
 0x706   : > { %6959 = vmatpush1.bf16.msra.mxu0 %v12400_v29  ;;  %v6000_v29 = vrot.slane %v5995_v52, %v15303_v50 }
 0x707   : > { %9294 = vmatprep.subr.bf16.mxu0 %v12408_v56  ;;  %v6004_v56 = vrot.slane %v5995_v52, %v15309_v20 }
 0x708   : > { %9401 = vmatpush1.bf16.msra.mxu1 %v12475_v35 }
 0x709   : > { %6977 = vmatmul.mubr.bf16.vlgmr.msra.gmra.mrb[124].mxu0 %v10508_v59  ;;  %9402 = vmatprep.subr.bf16.mxu1 %v12483_v39 }
 0x70a   : > { %9295 = vmatpush1.bf16.msra.mxu0 %v12406_v58 }
 0x70b   : > { %9296 = vmatprep.subr.bf16.mxu0 %v12414_v61 }
 0x70c   : > { %9403 = vmatpush1.bf16.msra.mxu1 %v12481_v10 }
 0x70d   : > { %9404 = vmatprep.subr.bf16.mxu1 %v12489_v32 }
 0x70e   : > { %9297 = vmatpush1.bf16.msra.mxu0 %v12412_v34 }
 0x70f   : > { %9298 = vmatprep.subr.bf16.mxu0 %v12420_v57 }
 0x710   : > { %9405 = vmatpush1.bf16.msra.mxu1 %v12487_v7 }
 0x711   : > { %9406 = vmatprep.subr.bf16.mxu1 %v12495_v14 }
 0x712   : > { %9299 = vmatpush1.bf16.msra.mxu0 %v12418_v1 }
 0x713   : > { %9300 = vmatprep.subr.bf16.mxu0 %v12426_v6 }
 0x714   : > { %9407 = vmatpush1.bf16.msra.mxu1 %v12493_v47 }
 0x715   : > { %9417 = vmatprep.subr.bf16.mxu1 %v12501_v36 }
 0x716   : > { %9301 = vmatpush1.bf16.msra.mxu0 %v12424_v8 }
 0x717   : > { %9302 = vmatprep.subr.bf16.mxu0 %v12432_v41 }
 0x71a   : > { %9303 = vmatpush1.bf16.msra.mxu0 %v12430_v9 }
 0x71b   : > { %9304 = vmatprep.subr.bf16.mxu0 %v12438_v42 }
 0x71e   : > { %9305 = vmatpush1.bf16.msra.mxu0 %v12436_v15 }
 0x71f   : > { %9306 = vmatprep.subr.bf16.mxu0 %v12444_v12  ;;  %v7073_v12 = vcombine.high %v10657_v62, %v10657_v62 }
 0x722   : > { %9307 = vmatpush1.bf16.msra.mxu0 %v12442_v48  ;;  %v7371_v48 = vcombine.high %v10688_v0, %v10688_v0 }
 0x723   : > { %9308 = vmatprep.subr.bf16.mxu0 %v12450_v44  ;;  %v7091_v44 = vrot.slane %v7073_v12, 7 }
 0x726   : > { %9309 = vmatpush1.bf16.msra.mxu0 %v12448_v23  ;;  %v10663_v23 = vld.sshfl [vmem:[#allocation10] sm:$0xf0 pattern:$0x76325410] }
 0x727   : > { %9310 = vmatprep.subr.bf16.mxu0 %v12456_v17  ;;  %v7378_v17 = vrot.slane %v7371_v48, 7 }
 0x729   : > { %v7379_v26 = vsel %vm15316_vm9, %v10690_v33, %v7378_v17  ;;  %v12499_v17 = vld [vmem:[%s16235_s15 + $0x300] ss:$8 sps:$4 sm:$0xff]  }
 0x72a   : > { %9311 = vmatpush1.bf16.msra.mxu0 %v12454_v18 }
 0x72b   : > { %9312 = vmatprep.subr.bf16.mxu0 %v12462_v21 }
 0x72e   : > { %9313 = vmatpush1.bf16.msra.mxu0 %v12460_v22 }
 0x72f   : > { %9314 = vmatprep.subr.bf16.mxu0 %v12468_v24  ;;  %v7092_v24 = vsel %vm15316_vm9, %v10659_v31, %v7091_v44 }
 0x732   : > { %9315 = vmatpush1.bf16.msra.mxu0 %v12466_v53 }
 0x733   : > { %9316 = vmatprep.subr.bf16.mxu0 %v12474_v27  ;;  %v10694_v27 = vld.sshfl [vmem:[#allocation10 + $0x18] sm:$0xf0 pattern:$0x76325410] }
 0x736   : > { %9317 = vmatpush1.bf16.msra.mxu0 %v12472_v4 }
 0x737   : > { %9318 = vmatprep.subr.bf16.mxu0 %v12480_v11 }
 0x73a   : > { %9319 = vmatpush1.bf16.msra.mxu0 %v12478_v2 }
 0x73b   : > { %9320 = vmatprep.subr.bf16.mxu0 %v12486_v30 }
 0x73e   : > { %9321 = vmatpush1.bf16.msra.mxu0 %v12484_v5 }
 0x73f   : > { %9322 = vmatprep.subr.bf16.mxu0 %v12492_v40 }
 0x742   : > { %9323 = vmatpush1.bf16.msra.mxu0 %v12490_v45 }
 0x743   : > { %9324 = vmatprep.subr.bf16.mxu0 %v12498_v46 }
 0x746   : > { %9325 = vmatpush1.bf16.msra.mxu0 %v12496_v38 }
 0x747   : > { %9335 = vmatprep.subr.bf16.mxu0 %v12505_v49 }
 0x7dc   : > { %v6978_v58 = vpop.f32.mrb[124].mxu0 }
 0x7dd   : > { %v11752_v61 = vadd.f32 %v6978_v58, %v6000_v29  ;;  %v6980_v59 = vpop.f32.mrb[125].mxu0 }
 0x7de   : > { %v11753_v34 = vadd.f32 %v6980_v59, %v6004_v56  ;;  %v6982_v57 = vpop.f32.mrb[126].mxu0 }
 0x7df   : > { %v6985_v1 = vmax.f32 %v11752_v61, 0.0  ;;  %v6983_v6 = vpop.f32.mrb[127].mxu0 }
 0x7e0   : > { %v6986_v8 = vmax.f32 %v11753_v34, 0.0 }
 0x7e2   : > { %v6989_v41 = vcombine.low %v6985_v1, %v6986_v8 }
 0x7e4   : > { %v6996_v9 = vrot.slane %v6989_v41, %v14735_v3 }
 0x7e6   : > { %v6997_v54 = vcombine.high %v6996_v9, %v6996_v9  ;;  %v7004_v13 = vrot.slane %v6996_v9, %v14735_v3 }
 0x7e8   : > { %v7011_v42 = vrot.slane %v6997_v54, %v14735_v3  ;;  %v7012_v15 = vrot.slane %v7004_v13, 7 }
 0x7ea   : > { %v7013_v63 = vrot.slane %v7011_v42, 7  ;;  %7017 = vst [vmem:[#allocation10 + $0x8] sm:$0x66] %v7012_v15 }
 0x7ec   : > { %7018 = vst [vmem:[#allocation10 + $0x10] sm:$0x66] %v7013_v63 }
 0x7f1   : > { %v10654_v18 = vld.sshfl [vmem:[#allocation10 + $0x8] sm:$0xf pattern:$0x76325410] }
 0x7f2   : > { %v7037_v19 = vcombine.low %v10653_v60, %v10654_v18  ;;  %v10658_v21 = vld.sshfl [vmem:[#allocation10 + $0x8] sm:$0x5a pattern:$0x76325410] }
 0x7f3   : > { %v7081_v22 = vcombine.high %v10658_v21, %v10658_v21  ;;  %v10664_v55 = vld.sshfl [vmem:[#allocation10 + $0x8] sm:$0xf0 pattern:$0x76325410]  ;;  %v10660_v4 = vrot.slane %v10658_v21, 9 }
 0x7f4   : > { %v7044_v51 = vrot.slane %v7037_v19, %v14735_v3  ;;  %v10665_v53 = vcombine.high %v10663_v23, %v10664_v55  ;;  %v10669_v25 = vld.sshfl [vmem:[#allocation10 + $0x10] sm:$0xf pattern:$0x76325410]  ;;  %v12508_v21 = vld [vmem:[%s16235_s15 + $0x314] ss:$8 sps:$4 sm:$0xff]  }
 0x7f5   : > { %v7095_v28 = vrot.slane %v7081_v22, 7  ;;  %v7185_v35 = vcombine.low %v10654_v18, %v10669_v25  ;;  %v10673_v11 = vld.sshfl [vmem:[#allocation10 + $0x10] sm:$0x5a pattern:$0x76325410]  ;;  %v7327_v2 = vcombine.low %v10669_v25, %v10684_v16 }
 0x7f6   : > { %v7045_v39 = vcombine.high %v7044_v51, %v7044_v51  ;;  %v7149_v30 = vrot.slane %v10665_v53, %v14735_v3  ;;  %v7229_v10 = vcombine.high %v10673_v11, %v10673_v11  ;;  %v10675_v32 = vrot.slane %v10673_v11, 9  ;;  %v10679_v5 = vld.sshfl [vmem:[#allocation10 + $0x10] sm:$0xf0 pattern:$0x76325410] }
 0x7f7   : > { %v7096_v40 = vsel %vm15316_vm9, %v10660_v4, %v7095_v28  ;;  %v7192_v7 = vrot.slane %v7185_v35, %v14735_v3  ;;  %v10680_v14 = vcombine.high %v10664_v55, %v10679_v5  ;;  %v7334_v45 = vrot.slane %v7327_v2, %v14735_v3  ;;  %v10693_v49 = vld.sshfl [vmem:[#allocation10 + $0x10] sm:$0xf0 pattern:$0x76325410]  ;;  %v12506_v25 = vld [vmem:[%s16235_s15 + $0x310] ss:$8 sps:$4 sm:$0xff]  }
 0x7f8   : > { %v10655_v46 = vpack.c.bf16 %v7045_v39, %v7044_v51  ;;  %v7097_v47 = vcombine.low %v7092_v24, %v7096_v40  ;;  %v7150_v36 = vcombine.high %v7149_v30, %v7149_v30  ;;  %v7236_v38 = vrot.slane %v7229_v10, 7  ;;  %v12503_v24 = vld [vmem:[%s16235_s15 + $0x100] ss:$8 sps:$4 sm:$0xff]   ;;  %v12515_v4 = vld [vmem:[%s16235_s15 + $0x324] ss:$8 sps:$4 sm:$0xff]  }
 0x7f9   : > { %v7193_v52 = vcombine.high %v7192_v7, %v7192_v7  ;;  %v7290_v29 = vrot.slane %v10680_v14, %v14735_v3  ;;  %v7335_v56 = vcombine.high %v7334_v45, %v7334_v45  ;;  %v10695_v58 = vcombine.high %v10693_v49, %v10694_v27  ;;  %v12510_v28 = vld [vmem:[%s16235_s15 + $0x110] ss:$8 sps:$4 sm:$0xff]   ;;  %v12513_v35 = vld [vmem:[%s16235_s15 + $0x320] ss:$8 sps:$4 sm:$0xff]   ;;  %v12518_v11 = vld [vmem:[%s16235_s15 + $0x124] ss:$8 sps:$4 sm:$0xff]  }
 0x7fa   : > { %v10666_v61 = vpack.c.bf16 %v7150_v36, %v7149_v30  ;;  %10656 = vst.sshfl [vmem:[#allocation11] sm:$0x33 pattern:$0x76325410] %v10655_v46  ;;  %v7104_v59 = vrot.slane %v7097_v47, %v14735_v3  ;;  %v7237_v34 = vsel %vm15316_vm9, %v10675_v32, %v7236_v38  ;;  %v12521_v2 = vld [vmem:[%s16235_s15 + $0x334] ss:$8 sps:$4 sm:$0xff]  }
 0x7fb   : > { %v10670_v57 = vpack.c.bf16 %v7193_v52, %v7192_v7  ;;  %v7238_v1 = vcombine.low %v7096_v40, %v7237_v34  ;;  %v7291_v6 = vcombine.high %v7290_v29, %v7290_v29  ;;  %v10685_v8 = vpack.c.bf16 %v7335_v56, %v7334_v45  ;;  %v12516_v39 = vld [vmem:[%s16235_s15 + $0x120] ss:$8 sps:$4 sm:$0xff]   ;;  %v12519_v30 = vld [vmem:[%s16235_s15 + $0x330] ss:$8 sps:$4 sm:$0xff]   ;;  %v12524_v10 = vld [vmem:[%s16235_s15 + $0x134] ss:$8 sps:$4 sm:$0xff]  }
 0x7fc   : > { %10667 = vst.sshfl [vmem:[#allocation11 + $0x8] sm:$0x33 pattern:$0x76325410] %v10666_v61  ;;  %v7105_v41 = vcombine.high %v7104_v59, %v7104_v59  ;;  %v7380_v9 = vcombine.low %v7237_v34, %v7379_v26  ;;  %v7432_v54 = vrot.slane %v10695_v58, %v14735_v3  ;;  %v12512_v26 = vld [vmem:[%s16235_s15 + $0x114] ss:$8 sps:$4 sm:$0xff]  }
 0x7fd   : > { %10671 = vst.sshfl [vmem:[#allocation11 + $0xc] sm:$0x33 pattern:$0x76325410] %v10670_v57  ;;  %v7245_v13 = vrot.slane %v7238_v1, %v14735_v3  ;;  %v10681_v62 = vpack.c.bf16 %v7291_v6, %v7290_v29  ;;  %v12527_v32 = vld [vmem:[%s16235_s15 + $0x344] ss:$8 sps:$4 sm:$0xff]  }
 0x7fe   : > { %10686 = vst.sshfl [vmem:[#allocation11 + $0x18] sm:$0x33 pattern:$0x76325410] %v10685_v8  ;;  %v10661_v42 = vpack.c.bf16 %v7105_v41, %v7104_v59  ;;  %v7387_v15 = vrot.slane %v7380_v9, %v14735_v3  ;;  %v7433_v0 = vcombine.high %v7432_v54, %v7432_v54  ;;  %v12522_v5 = vld [vmem:[%s16235_s15 + $0x130] ss:$8 sps:$4 sm:$0xff]  }
 0x7ff   : > { %v7246_v63 = vcombine.high %v7245_v13, %v7245_v13  ;;  %10682 = vst.sshfl [vmem:[#allocation11 + $0x14] sm:$0x33 pattern:$0x76325410] %v10681_v62  ;;  %v12525_v40 = vld [vmem:[%s16235_s15 + $0x340] ss:$8 sps:$4 sm:$0xff]  }
 0x800   : > { %10662 = vst.sshfl [vmem:[#allocation11 + $0x4] sm:$0x33 pattern:$0x76325410] %v10661_v42  ;;  %v7388_v12 = vcombine.high %v7387_v15, %v7387_v15  ;;  %v10696_v48 = vpack.c.bf16 %v7433_v0, %v7432_v54  ;;  %v12530_v7 = vld [vmem:[%s16235_s15 + $0x144] ss:$8 sps:$4 sm:$0xff]  }
 0x801   : > { %v10676_v60 = vpack.c.bf16 %v7246_v63, %v7245_v13  ;;  %v12533_v14 = vld [vmem:[%s16235_s15 + $0x354] ss:$8 sps:$4 sm:$0xff]   ;;  %v12528_v45 = vld [vmem:[%s16235_s15 + $0x140] ss:$8 sps:$4 sm:$0xff]   ;;  %v12531_v46 = vld [vmem:[%s16235_s15 + $0x350] ss:$8 sps:$4 sm:$0xff]  }
 0x802   : > { %v10691_v31 = vpack.c.bf16 %v7388_v12, %v7387_v15  ;;  %10697 = vst.sshfl [vmem:[#allocation11 + $0x20] sm:$0x33 pattern:$0x76325410] %v10696_v48  ;;  %v12536_v47 = vld [vmem:[%s16235_s15 + $0x154] ss:$8 sps:$4 sm:$0xff]  }
 0x803   : > { %10677 = vst.sshfl [vmem:[#allocation11 + $0x10] sm:$0x33 pattern:$0x76325410] %v10676_v60  ;;  %v12539_v36 = vld [vmem:[%s16235_s15 + $0x364] ss:$8 sps:$4 sm:$0xff]  }
 0x804   : > { %v7451_v44 = vld [vmem:[#allocation11 + $0x8] sm:$0xff]  ;;  %10692 = vst.sshfl [vmem:[#allocation11 + $0x1c] sm:$0x33 pattern:$0x76325410] %v10691_v31 }
 0x805   : > { %v7784_v23 = vrot.slane %v7451_v44, %v14735_v3  ;;  %v7777_v16 = vcombine.high %v7451_v44, %v7451_v44  ;;  %v12534_v38 = vld [vmem:[%s16235_s15 + $0x150] ss:$8 sps:$4 sm:$0xff]   ;;  %v12537_v49 = vld [vmem:[%s16235_s15 + $0x360] ss:$8 sps:$4 sm:$0xff]   ;;  %v12542_v52 = vld [vmem:[%s16235_s15 + $0x164] ss:$8 sps:$4 sm:$0xff]  }
 0x806   : > { %v12545_v29 = vld [vmem:[%s16235_s15 + $0x374] ss:$8 sps:$4 sm:$0xff]   ;;  %v12540_v56 = vld [vmem:[%s16235_s15 + $0x160] ss:$8 sps:$4 sm:$0xff]   ;;  %v12543_v58 = vld [vmem:[%s16235_s15 + $0x370] ss:$8 sps:$4 sm:$0xff]  }
 0x807   : > { %v7792_v33 = vcombine.high %v7784_v23, %v7784_v23  ;;  %v15342_v18 = vrot.slane %v7777_v16, %v14735_v3  ;;  %v7450_v37 = vld [vmem:[#allocation11] sm:$0xff]  ;;  %v12551_v59 = vld [vmem:[%s16235_s15 + $0x384] ss:$8 sps:$4 sm:$0xff]   ;;  %v12549_v57 = vld [vmem:[%s16235_s15 + $0x380] ss:$8 sps:$4 sm:$0xff]  }
 0x808   : > { %v7767_v19 = vrot.slane %v7450_v37, %v14735_v3  ;;  %v7760_v22 = vcombine.high %v7450_v37, %v7450_v37  ;;  %v12548_v61 = vld [vmem:[%s16235_s15 + $0x174] ss:$8 sps:$4 sm:$0xff]   ;;  %v12546_v34 = vld [vmem:[%s16235_s15 + $0x170] ss:$8 sps:$4 sm:$0xff]   ;;  %v12554_v1 = vld [vmem:[%s16235_s15 + $0x184] ss:$8 sps:$4 sm:$0xff]  }
 0x809   : > { %9408 = vmatprep.mubr.bf16.mxu1 %v7792_v33  ;;  %v7793_v55 = vcombine.high %v15342_v18, %v15342_v18  ;;  %v12557_v6 = vld [vmem:[%s16235_s15 + $0x394] ss:$8 sps:$4 sm:$0xff]   ;;  %v12552_v8 = vld [vmem:[%s16235_s15 + $0x180] ss:$8 sps:$4 sm:$0xff]   ;;  %v12555_v41 = vld [vmem:[%s16235_s15 + $0x390] ss:$8 sps:$4 sm:$0xff]  }
 0x80a   : > { %9409 = vmatmul.mubr.bf16.vlgmr.msra.gmra.mrb[92].mxu1 %v7784_v23  ;;  %v7775_v51 = vcombine.high %v7767_v19, %v7767_v19  ;;  %v15354_v53 = vrot.slane %v7760_v22, %v14735_v3  ;;  %v12560_v9 = vld [vmem:[%s16235_s15 + $0x194] ss:$8 sps:$4 sm:$0xff]   ;;  %v12563_v54 = vld [vmem:[%s16235_s15 + $0x3a4] ss:$8 sps:$4 sm:$0xff]   ;;  %v12558_v13 = vld [vmem:[%s16235_s15 + $0x190] ss:$8 sps:$4 sm:$0xff]  }
 0x80b   : > { %9418 = vmatpush1.bf16.msra.mxu1 %v12499_v17  ;;  %9449 = vmatprep.mubr.bf16.mxu1 %v7793_v55  ;;  %v12561_v62 = vld [vmem:[%s16235_s15 + $0x3a0] ss:$8 sps:$4 sm:$0xff]   ;;  %v12566_v42 = vld [vmem:[%s16235_s15 + $0x1a4] ss:$8 sps:$4 sm:$0xff]   ;;  %v12569_v15 = vld [vmem:[%s16235_s15 + $0x3b4] ss:$8 sps:$4 sm:$0xff]  }
 0x80c   : > { %9326 = vmatprep.mubr.bf16.mxu0 %v7775_v51  ;;  %9419 = vmatprep.subr.bf16.mxu1 %v12508_v21  ;;  %v7776_v27 = vcombine.high %v15354_v53, %v15354_v53  ;;  %v12564_v0 = vld [vmem:[%s16235_s15 + $0x1a0] ss:$8 sps:$4 sm:$0xff]   ;;  %v12567_v63 = vld [vmem:[%s16235_s15 + $0x3b0] ss:$8 sps:$4 sm:$0xff]   ;;  %v12572_v12 = vld [vmem:[%s16235_s15 + $0x1b4] ss:$8 sps:$4 sm:$0xff]  }
 0x80d   : > { %9327 = vmatmul.mubr.bf16.vlgmr.msra.gmra.mrb[128].mxu0 %v7767_v19  ;;  %v12575_v48 = vld [vmem:[%s16235_s15 + $0x3c4] ss:$8 sps:$4 sm:$0xff]   ;;  %v12570_v60 = vld [vmem:[%s16235_s15 + $0x1b0] ss:$8 sps:$4 sm:$0xff]   ;;  %v12573_v31 = vld [vmem:[%s16235_s15 + $0x3c0] ss:$8 sps:$4 sm:$0xff]  }
 0x80e   : > { %9336 = vmatpush1.bf16.msra.mxu0 %v12503_v24  ;;  %9367 = vmatprep.mubr.bf16.mxu0 %v7776_v27  ;;  %v12578_v44 = vld [vmem:[%s16235_s15 + $0x1c4] ss:$8 sps:$4 sm:$0xff]   ;;  %v12581_v23 = vld [vmem:[%s16235_s15 + $0x3d4] ss:$8 sps:$4 sm:$0xff]   ;;  %v12576_v16 = vld [vmem:[%s16235_s15 + $0x1c0] ss:$8 sps:$4 sm:$0xff]  }
 0x80f   : > { %9420 = vmatpush1.bf16.msra.mxu1 %v12506_v25  ;;  %9337 = vmatprep.subr.bf16.mxu0 %v12512_v26  ;;  %v12579_v33 = vld [vmem:[%s16235_s15 + $0x3d0] ss:$8 sps:$4 sm:$0xff]   ;;  %v12584_v17 = vld [vmem:[%s16235_s15 + $0x1d4] ss:$8 sps:$4 sm:$0xff]   ;;  %v12587_v37 = vld [vmem:[%s16235_s15 + $0x3e4] ss:$8 sps:$4 sm:$0xff]  }
 0x810   : > { %9421 = vmatprep.subr.bf16.mxu1 %v12515_v4  ;;  %v12582_v19 = vld [vmem:[%s16235_s15 + $0x1d0] ss:$8 sps:$4 sm:$0xff]   ;;  %v12585_v21 = vld [vmem:[%s16235_s15 + $0x3e0] ss:$8 sps:$4 sm:$0xff]   ;;  %v12590_v22 = vld [vmem:[%s16235_s15 + $0x1e4] ss:$8 sps:$4 sm:$0xff]  }
 0x811   : > { %v12593_v55 = vld [vmem:[%s16235_s15 + $0x3f4] ss:$8 sps:$4 sm:$0xff]   ;;  %v12588_v51 = vld [vmem:[%s16235_s15 + $0x1e0] ss:$8 sps:$4 sm:$0xff]   ;;  %v12591_v25 = vld [vmem:[%s16235_s15 + $0x3f0] ss:$8 sps:$4 sm:$0xff]  }
 0x812   : > { %9338 = vmatpush1.bf16.msra.mxu0 %v12510_v28  ;;  %v15526_v24 = vld [vmem:[#allocation11 + $0x10] sm:$0xff]  ;;  %v12596_v26 = vld [vmem:[%s16235_s15 + $0x1f4] ss:$8 sps:$4 sm:$0xff]   ;;  %v12594_v28 = vld [vmem:[%s16235_s15 + $0x1f0] ss:$8 sps:$4 sm:$0xff]  }
 0x813   : > { %9422 = vmatpush1.bf16.msra.mxu1 %v12513_v35  ;;  %9339 = vmatprep.subr.bf16.mxu0 %v12518_v11  ;;  %v12599_v27 = vld [vmem:[%s16235_s15 + $0x404] ss:$8 sps:$4 sm:$0xff]   ;;  %v15539_v4 = vrot.slane %v15526_v24, %v14735_v3  ;;  %v12597_v35 = vld [vmem:[%s16235_s15 + $0x400] ss:$8 sps:$4 sm:$0xff]   ;;  %v12602_v11 = vld [vmem:[%s16235_s15 + $0x414] ss:$8 sps:$4 sm:$0xff]  }
 0x814   : > { %9423 = vmatprep.subr.bf16.mxu1 %v12521_v2 }
 0x815   : > { %v7809_v2 = vcombine.high %v15539_v4, %v15539_v4 }
 0x816   : > { %9340 = vmatpush1.bf16.msra.mxu0 %v12516_v39  ;;  %v12600_v39 = vld [vmem:[%s16235_s15 + $0x410] ss:$8 sps:$4 sm:$0xff]  }
 0x817   : > { %9424 = vmatpush1.bf16.msra.mxu1 %v12519_v30  ;;  %9341 = vmatprep.subr.bf16.mxu0 %v12524_v10  ;;  %v12605_v30 = vld [vmem:[%s16235_s15 + $0x424] ss:$8 sps:$4 sm:$0xff]   ;;  %v12603_v10 = vld [vmem:[%s16235_s15 + $0x420] ss:$8 sps:$4 sm:$0xff]  }
 0x818   : > { %9425 = vmatprep.subr.bf16.mxu1 %v12527_v32  ;;  %v12606_v32 = vld [vmem:[%s16235_s15 + $0x430] ss:$8 sps:$4 sm:$0xff]  }
 0x81a   : > { %9342 = vmatpush1.bf16.msra.mxu0 %v12522_v5  ;;  %v12609_v5 = vld [vmem:[%s16235_s15 + $0x440] ss:$8 sps:$4 sm:$0xff]  }
 0x81b   : > { %9426 = vmatpush1.bf16.msra.mxu1 %v12525_v40  ;;  %9343 = vmatprep.subr.bf16.mxu0 %v12530_v7  ;;  %v12614_v40 = vld [vmem:[%s16235_s15 + $0x454] ss:$8 sps:$4 sm:$0xff]   ;;  %v12612_v7 = vld [vmem:[%s16235_s15 + $0x450] ss:$8 sps:$4 sm:$0xff]  }
 0x81c   : > { %9427 = vmatprep.subr.bf16.mxu1 %v12533_v14  ;;  %v12617_v14 = vld [vmem:[%s16235_s15 + $0x464] ss:$8 sps:$4 sm:$0xff]  }
 0x81e   : > { %9344 = vmatpush1.bf16.msra.mxu0 %v12528_v45  ;;  %v12615_v45 = vld [vmem:[%s16235_s15 + $0x460] ss:$8 sps:$4 sm:$0xff]  }
 0x81f   : > { %9428 = vmatpush1.bf16.msra.mxu1 %v12531_v46  ;;  %9345 = vmatprep.subr.bf16.mxu0 %v12536_v47  ;;  %v12620_v46 = vld [vmem:[%s16235_s15 + $0x474] ss:$8 sps:$4 sm:$0xff]   ;;  %v12618_v47 = vld [vmem:[%s16235_s15 + $0x470] ss:$8 sps:$4 sm:$0xff]  }
 0x820   : > { %9429 = vmatprep.subr.bf16.mxu1 %v12539_v36  ;;  %v12623_v36 = vld [vmem:[%s16235_s15 + $0x484] ss:$8 sps:$4 sm:$0xff]  }
 0x822   : > { %9346 = vmatpush1.bf16.msra.mxu0 %v12534_v38  ;;  %v12621_v38 = vld [vmem:[%s16235_s15 + $0x480] ss:$8 sps:$4 sm:$0xff]  }
 0x823   : > { %9430 = vmatpush1.bf16.msra.mxu1 %v12537_v49  ;;  %9347 = vmatprep.subr.bf16.mxu0 %v12542_v52  ;;  %v12626_v49 = vld [vmem:[%s16235_s15 + $0x494] ss:$8 sps:$4 sm:$0xff]   ;;  %v12624_v52 = vld [vmem:[%s16235_s15 + $0x490] ss:$8 sps:$4 sm:$0xff]  }
 0x824   : > { %9431 = vmatprep.subr.bf16.mxu1 %v12545_v29  ;;  %v12629_v29 = vld [vmem:[%s16235_s15 + $0x4a4] ss:$8 sps:$4 sm:$0xff]  }
 0x826   : > { %9348 = vmatpush1.bf16.msra.mxu0 %v12540_v56  ;;  %v12627_v56 = vld [vmem:[%s16235_s15 + $0x4a0] ss:$8 sps:$4 sm:$0xff]  }
 0x827   : > { %9432 = vmatpush1.bf16.msra.mxu1 %v12543_v58  ;;  %9349 = vmatprep.subr.bf16.mxu0 %v12548_v61  ;;  %v12632_v58 = vld [vmem:[%s16235_s15 + $0x4b4] ss:$8 sps:$4 sm:$0xff]   ;;  %v12630_v61 = vld [vmem:[%s16235_s15 + $0x4b0] ss:$8 sps:$4 sm:$0xff]  }
 0x828   : > { %9433 = vmatprep.subr.bf16.mxu1 %v12551_v59  ;;  %v12635_v59 = vld [vmem:[%s16235_s15 + $0x4c4] ss:$8 sps:$4 sm:$0xff]  }
 0x82a   : > { %9350 = vmatpush1.bf16.msra.mxu0 %v12546_v34  ;;  %v12633_v34 = vld [vmem:[%s16235_s15 + $0x4c0] ss:$8 sps:$4 sm:$0xff]  }
 0x82b   : > { %9434 = vmatpush1.bf16.msra.mxu1 %v12549_v57  ;;  %9351 = vmatprep.subr.bf16.mxu0 %v12554_v1  ;;  %v12638_v57 = vld [vmem:[%s16235_s15 + $0x4d4] ss:$8 sps:$4 sm:$0xff]   ;;  %v12636_v1 = vld [vmem:[%s16235_s15 + $0x4d0] ss:$8 sps:$4 sm:$0xff]  }
 0x82c   : > { %9435 = vmatprep.subr.bf16.mxu1 %v12557_v6  ;;  %v12641_v6 = vld [vmem:[%s16235_s15 + $0x4e4] ss:$8 sps:$4 sm:$0xff]  }
 0x82e   : > { %9352 = vmatpush1.bf16.msra.mxu0 %v12552_v8  ;;  %v12639_v8 = vld [vmem:[%s16235_s15 + $0x4e0] ss:$8 sps:$4 sm:$0xff]  }
 0x82f   : > { %9436 = vmatpush1.bf16.msra.mxu1 %v12555_v41  ;;  %9353 = vmatprep.subr.bf16.mxu0 %v12560_v9  ;;  %v12644_v41 = vld [vmem:[%s16235_s15 + $0x4f4] ss:$8 sps:$4 sm:$0xff]   ;;  %v7794_v9 = vcombine.high %v15526_v24, %v15526_v24  ;;  %v12673_v24 = vld [vmem:[%s16235_s15 + $0x590] ss:$8 sps:$4 sm:$0xff]  }
 0x830   : > { %9437 = vmatprep.subr.bf16.mxu1 %v12563_v54  ;;  %v12642_v54 = vld [vmem:[%s16235_s15 + $0x4f0] ss:$8 sps:$4 sm:$0xff]  }
 0x832   : > { %9354 = vmatpush1.bf16.msra.mxu0 %v12558_v13  ;;  %v12647_v13 = vld [vmem:[%s16235_s15 + $0x504] ss:$8 sps:$4 sm:$0xff]  }
 0x833   : > { %9438 = vmatpush1.bf16.msra.mxu1 %v12561_v62  ;;  %9355 = vmatprep.subr.bf16.mxu0 %v12566_v42  ;;  %v15647_v62 = vrot.slane %v7794_v9, %v14735_v3  ;;  %v12645_v42 = vld [vmem:[%s16235_s15 + $0x500] ss:$8 sps:$4 sm:$0xff]  }
 0x834   : > { %9439 = vmatprep.subr.bf16.mxu1 %v12569_v15  ;;  %v12651_v15 = vld [vmem:[%s16235_s15 + $0x514] ss:$8 sps:$4 sm:$0xff]   ;;  %v12724_v9 = vld [vmem:[%s16235_s15 + $0x6a0] ss:$8 sps:$4 sm:$0xff]  }
 0x836   : > { %9356 = vmatpush1.bf16.msra.mxu0 %v12564_v0  ;;  %v7810_v0 = vcombine.high %v15647_v62, %v15647_v62 }
 0x837   : > { %9440 = vmatpush1.bf16.msra.mxu1 %v12567_v63  ;;  %9357 = vmatprep.subr.bf16.mxu0 %v12572_v12  ;;  %v12649_v63 = vld [vmem:[%s16235_s15 + $0x510] ss:$8 sps:$4 sm:$0xff]   ;;  %v12654_v12 = vld [vmem:[%s16235_s15 + $0x524] ss:$8 sps:$4 sm:$0xff]  }
 0x838   : > { %9441 = vmatprep.subr.bf16.mxu1 %v12575_v48  ;;  %v12652_v48 = vld [vmem:[%s16235_s15 + $0x520] ss:$8 sps:$4 sm:$0xff]  }
 0x83a   : > { %9358 = vmatpush1.bf16.msra.mxu0 %v12570_v60  ;;  %v12657_v60 = vld [vmem:[%s16235_s15 + $0x534] ss:$8 sps:$4 sm:$0xff]  }
 0x83b   : > { %9442 = vmatpush1.bf16.msra.mxu1 %v12573_v31  ;;  %9359 = vmatprep.subr.bf16.mxu0 %v12578_v44  ;;  %v12655_v31 = vld [vmem:[%s16235_s15 + $0x530] ss:$8 sps:$4 sm:$0xff]   ;;  %v12660_v44 = vld [vmem:[%s16235_s15 + $0x544] ss:$8 sps:$4 sm:$0xff]  }
 0x83c   : > { %9443 = vmatprep.subr.bf16.mxu1 %v12581_v23  ;;  %v12658_v23 = vld [vmem:[%s16235_s15 + $0x540] ss:$8 sps:$4 sm:$0xff]  }
 0x83e   : > { %9360 = vmatpush1.bf16.msra.mxu0 %v12576_v16  ;;  %v12663_v16 = vld [vmem:[%s16235_s15 + $0x554] ss:$8 sps:$4 sm:$0xff]  }
 0x83f   : > { %9444 = vmatpush1.bf16.msra.mxu1 %v12579_v33  ;;  %9361 = vmatprep.subr.bf16.mxu0 %v12584_v17  ;;  %v12661_v33 = vld [vmem:[%s16235_s15 + $0x550] ss:$8 sps:$4 sm:$0xff]   ;;  %v12666_v17 = vld [vmem:[%s16235_s15 + $0x564] ss:$8 sps:$4 sm:$0xff]  }
 0x840   : > { %9445 = vmatprep.subr.bf16.mxu1 %v12587_v37  ;;  %v12664_v37 = vld [vmem:[%s16235_s15 + $0x560] ss:$8 sps:$4 sm:$0xff]  }
 0x842   : > { %9362 = vmatpush1.bf16.msra.mxu0 %v12582_v19  ;;  %v12669_v19 = vld [vmem:[%s16235_s15 + $0x574] ss:$8 sps:$4 sm:$0xff]  }
 0x843   : > { %9446 = vmatpush1.bf16.msra.mxu1 %v12585_v21  ;;  %9363 = vmatprep.subr.bf16.mxu0 %v12590_v22  ;;  %v12667_v21 = vld [vmem:[%s16235_s15 + $0x570] ss:$8 sps:$4 sm:$0xff]   ;;  %v12672_v22 = vld [vmem:[%s16235_s15 + $0x584] ss:$8 sps:$4 sm:$0xff]  }
 0x844   : > { %9447 = vmatprep.subr.bf16.mxu1 %v12593_v55  ;;  %v12670_v55 = vld [vmem:[%s16235_s15 + $0x580] ss:$8 sps:$4 sm:$0xff]  }
 0x846   : > { %9364 = vmatpush1.bf16.msra.mxu0 %v12588_v51  ;;  %v12675_v51 = vld [vmem:[%s16235_s15 + $0x594] ss:$8 sps:$4 sm:$0xff]  }
 0x847   : > { %9448 = vmatpush1.bf16.msra.mxu1 %v12591_v25  ;;  %9365 = vmatprep.subr.bf16.mxu0 %v12596_v26  ;;  %v12678_v25 = vld [vmem:[%s16235_s15 + $0x5a4] ss:$8 sps:$4 sm:$0xff]   ;;  %v12676_v26 = vld [vmem:[%s16235_s15 + $0x5a0] ss:$8 sps:$4 sm:$0xff]  }
 0x848   : > { %9458 = vmatprep.subr.bf16.mxu1 %v12599_v27  ;;  %v12681_v27 = vld [vmem:[%s16235_s15 + $0x5b4] ss:$8 sps:$4 sm:$0xff]  }
 0x84a   : > { %9366 = vmatpush1.bf16.msra.mxu0 %v12594_v28  ;;  %9450 = vmatmul.mubr.bf16.vlgmr.msra.gmra.mrb[92].mxu1 %v15342_v18  ;;  %v12608_v18 = vld [vmem:[%s16235_s15 + $0x434] ss:$8 sps:$4 sm:$0xff]   ;;  %v12684_v28 = vld [vmem:[%s16235_s15 + $0x5c4] ss:$8 sps:$4 sm:$0xff]  }
 0x84b   : > { %9459 = vmatpush1.bf16.msra.mxu1 %v12597_v35  ;;  %9490 = vmatprep.mubr.bf16.mxu1 %v7809_v2  ;;  %v12682_v35 = vld [vmem:[%s16235_s15 + $0x5c0] ss:$8 sps:$4 sm:$0xff]   ;;  %v12685_v2 = vld [vmem:[%s16235_s15 + $0x5d0] ss:$8 sps:$4 sm:$0xff]  }
 0x84c   : > { %9460 = vmatprep.subr.bf16.mxu1 %v12602_v11  ;;  %v12687_v11 = vld [vmem:[%s16235_s15 + $0x5d4] ss:$8 sps:$4 sm:$0xff]  }
 0x84d   : > { %9368 = vmatmul.mubr.bf16.vlgmr.msra.gmra.mrb[128].mxu0 %v15354_v53  ;;  %v12611_v53 = vld [vmem:[%s16235_s15 + $0x444] ss:$8 sps:$4 sm:$0xff]  }
 0x84f   : > { %9461 = vmatpush1.bf16.msra.mxu1 %v12600_v39  ;;  %v12690_v39 = vld [vmem:[%s16235_s15 + $0x5e4] ss:$8 sps:$4 sm:$0xff]  }
 0x850   : > { %9462 = vmatprep.subr.bf16.mxu1 %v12605_v30  ;;  %v12688_v30 = vld [vmem:[%s16235_s15 + $0x5e0] ss:$8 sps:$4 sm:$0xff]  }
 0x853   : > { %9463 = vmatpush1.bf16.msra.mxu1 %v12603_v10  ;;  %v12693_v10 = vld [vmem:[%s16235_s15 + $0x5f4] ss:$8 sps:$4 sm:$0xff]  }
 0x854   : > { %9464 = vmatprep.subr.bf16.mxu1 %v12608_v18  ;;  %v15742_v18 = vld [vmem:[#allocation11 + $0x18] sm:$0xff] }
 0x857   : > { %9465 = vmatpush1.bf16.msra.mxu1 %v12606_v32  ;;  %v12691_v32 = vld [vmem:[%s16235_s15 + $0x5f0] ss:$8 sps:$4 sm:$0xff]  }
 0x858   : > { %9466 = vmatprep.subr.bf16.mxu1 %v12611_v53  ;;  %v12696_v53 = vld [vmem:[%s16235_s15 + $0x604] ss:$8 sps:$4 sm:$0xff]  }
 0x85b   : > { %9467 = vmatpush1.bf16.msra.mxu1 %v12609_v5  ;;  %v15752_v5 = vrot.slane %v15742_v18, %v14735_v3 }
 0x85c   : > { %9468 = vmatprep.subr.bf16.mxu1 %v12614_v40  ;;  %v12694_v40 = vld [vmem:[%s16235_s15 + $0x600] ss:$8 sps:$4 sm:$0xff]  }
 0x85f   : > { %9469 = vmatpush1.bf16.msra.mxu1 %v12612_v7  ;;  %v12699_v7 = vld [vmem:[%s16235_s15 + $0x614] ss:$8 sps:$4 sm:$0xff]  }
 0x860   : > { %9470 = vmatprep.subr.bf16.mxu1 %v12617_v14  ;;  %v7826_v14 = vcombine.high %v15752_v5, %v15752_v5 }
 0x863   : > { %9471 = vmatpush1.bf16.msra.mxu1 %v12615_v45  ;;  %v12697_v45 = vld [vmem:[%s16235_s15 + $0x610] ss:$8 sps:$4 sm:$0xff]  }
 0x864   : > { %9472 = vmatprep.subr.bf16.mxu1 %v12620_v46  ;;  %v12702_v46 = vld [vmem:[%s16235_s15 + $0x624] ss:$8 sps:$4 sm:$0xff]  }
 0x867   : > { %9473 = vmatpush1.bf16.msra.mxu1 %v12618_v47  ;;  %v12700_v47 = vld [vmem:[%s16235_s15 + $0x620] ss:$8 sps:$4 sm:$0xff]  }
 0x868   : > { %9474 = vmatprep.subr.bf16.mxu1 %v12623_v36  ;;  %v12705_v36 = vld [vmem:[%s16235_s15 + $0x634] ss:$8 sps:$4 sm:$0xff]  }
 0x86b   : > { %9475 = vmatpush1.bf16.msra.mxu1 %v12621_v38  ;;  %v12703_v38 = vld [vmem:[%s16235_s15 + $0x630] ss:$8 sps:$4 sm:$0xff]  }
 0x86c   : > { %9476 = vmatprep.subr.bf16.mxu1 %v12626_v49  ;;  %v12708_v49 = vld [vmem:[%s16235_s15 + $0x644] ss:$8 sps:$4 sm:$0xff]  }
 0x86f   : > { %9477 = vmatpush1.bf16.msra.mxu1 %v12624_v52  ;;  %v12706_v52 = vld [vmem:[%s16235_s15 + $0x640] ss:$8 sps:$4 sm:$0xff]  }
 0x870   : > { %9478 = vmatprep.subr.bf16.mxu1 %v12629_v29  ;;  %v12711_v29 = vld [vmem:[%s16235_s15 + $0x654] ss:$8 sps:$4 sm:$0xff]  }
 0x873   : > { %9479 = vmatpush1.bf16.msra.mxu1 %v12627_v56  ;;  %v12709_v56 = vld [vmem:[%s16235_s15 + $0x650] ss:$8 sps:$4 sm:$0xff]  }
 0x874   : > { %9480 = vmatprep.subr.bf16.mxu1 %v12632_v58  ;;  %v12714_v58 = vld [vmem:[%s16235_s15 + $0x664] ss:$8 sps:$4 sm:$0xff]  }
 0x877   : > { %9481 = vmatpush1.bf16.msra.mxu1 %v12630_v61  ;;  %v12712_v61 = vld [vmem:[%s16235_s15 + $0x660] ss:$8 sps:$4 sm:$0xff]  }
 0x878   : > { %9482 = vmatprep.subr.bf16.mxu1 %v12635_v59  ;;  %v12717_v59 = vld [vmem:[%s16235_s15 + $0x674] ss:$8 sps:$4 sm:$0xff]  }
 0x87b   : > { %9483 = vmatpush1.bf16.msra.mxu1 %v12633_v34  ;;  %v12715_v34 = vld [vmem:[%s16235_s15 + $0x670] ss:$8 sps:$4 sm:$0xff]  }
 0x87c   : > { %9484 = vmatprep.subr.bf16.mxu1 %v12638_v57  ;;  %v12720_v57 = vld [vmem:[%s16235_s15 + $0x684] ss:$8 sps:$4 sm:$0xff]  }
 0x87f   : > { %9485 = vmatpush1.bf16.msra.mxu1 %v12636_v1  ;;  %v12718_v1 = vld [vmem:[%s16235_s15 + $0x680] ss:$8 sps:$4 sm:$0xff]  }
 0x880   : > { %9486 = vmatprep.subr.bf16.mxu1 %v12641_v6  ;;  %v12723_v6 = vld [vmem:[%s16235_s15 + $0x694] ss:$8 sps:$4 sm:$0xff]  }
 0x883   : > { %9487 = vmatpush1.bf16.msra.mxu1 %v12639_v8  ;;  %v12721_v8 = vld [vmem:[%s16235_s15 + $0x690] ss:$8 sps:$4 sm:$0xff]  }
 0x884   : > { %9488 = vmatprep.subr.bf16.mxu1 %v12644_v41  ;;  %v12726_v41 = vld [vmem:[%s16235_s15 + $0x6a4] ss:$8 sps:$4 sm:$0xff]  }
 0x887   : > { %9489 = vmatpush1.bf16.msra.mxu1 %v12642_v54  ;;  %v12729_v54 = vld [vmem:[%s16235_s15 + $0x6b4] ss:$8 sps:$4 sm:$0xff]  }
 0x888   : > { %9499 = vmatprep.subr.bf16.mxu1 %v12647_v13  ;;  %v12727_v13 = vld [vmem:[%s16235_s15 + $0x6b0] ss:$8 sps:$4 sm:$0xff]  }
 0x88a   : > { %9491 = vmatmul.mubr.bf16.vlgmr.msra.gmra.mrb[92].mxu1 %v15539_v4  ;;  %v12679_v4 = vld [vmem:[%s16235_s15 + $0x5b0] ss:$8 sps:$4 sm:$0xff]  }
 0x88b   : > { %9500 = vmatpush1.bf16.msra.mxu1 %v12645_v42  ;;  %9531 = vmatprep.mubr.bf16.mxu1 %v7810_v0  ;;  %v12730_v42 = vld [vmem:[%s16235_s15 + $0x6c0] ss:$8 sps:$4 sm:$0xff]   ;;  %v12733_v0 = vld [vmem:[%s16235_s15 + $0x6d0] ss:$8 sps:$4 sm:$0xff]  }
 0x88c   : > { %9501 = vmatprep.subr.bf16.mxu1 %v12651_v15  ;;  %v12735_v15 = vld [vmem:[%s16235_s15 + $0x6d4] ss:$8 sps:$4 sm:$0xff]  }
 0x88f   : > { %9502 = vmatpush1.bf16.msra.mxu1 %v12649_v63  ;;  %v12738_v63 = vld [vmem:[%s16235_s15 + $0x6e4] ss:$8 sps:$4 sm:$0xff]  }
 0x890   : > { %9503 = vmatprep.subr.bf16.mxu1 %v12654_v12  ;;  %v12736_v12 = vld [vmem:[%s16235_s15 + $0x6e0] ss:$8 sps:$4 sm:$0xff]  }
 0x893   : > { %9504 = vmatpush1.bf16.msra.mxu1 %v12652_v48  ;;  %v12741_v48 = vld [vmem:[%s16235_s15 + $0x6f4] ss:$8 sps:$4 sm:$0xff]  }
 0x894   : > { %9505 = vmatprep.subr.bf16.mxu1 %v12657_v60  ;;  %v7811_v60 = vcombine.high %v15742_v18, %v15742_v18  ;;  %v12767_v18 = vld [vmem:[%s16235_s15 + $0x780] ss:$8 sps:$4 sm:$0xff]  }
 0x897   : > { %9506 = vmatpush1.bf16.msra.mxu1 %v12655_v31  ;;  %v12739_v31 = vld [vmem:[%s16235_s15 + $0x6f0] ss:$8 sps:$4 sm:$0xff]  }
 0x898   : > { %9507 = vmatprep.subr.bf16.mxu1 %v12660_v44  ;;  %v12744_v44 = vld [vmem:[%s16235_s15 + $0x704] ss:$8 sps:$4 sm:$0xff]  }
 0x89b   : > { %9508 = vmatpush1.bf16.msra.mxu1 %v12658_v23  ;;  %v15856_v23 = vrot.slane %v7811_v60, %v14735_v3  ;;  %v12814_v60 = vld [vmem:[%s16235_s15 + $0x874] ss:$8 sps:$4 sm:$0xff]  }
 0x89c   : > { %9509 = vmatprep.subr.bf16.mxu1 %v12663_v16  ;;  %v12742_v16 = vld [vmem:[%s16235_s15 + $0x700] ss:$8 sps:$4 sm:$0xff]  }
 0x89f   : > { %9510 = vmatpush1.bf16.msra.mxu1 %v12661_v33  ;;  %v12748_v33 = vld [vmem:[%s16235_s15 + $0x714] ss:$8 sps:$4 sm:$0xff]  }
 0x8a0   : > { %9511 = vmatprep.subr.bf16.mxu1 %v12666_v17  ;;  %v7827_v17 = vcombine.high %v15856_v23, %v15856_v23 }
 0x8a3   : > { %9512 = vmatpush1.bf16.msra.mxu1 %v12664_v37  ;;  %v12746_v37 = vld [vmem:[%s16235_s15 + $0x710] ss:$8 sps:$4 sm:$0xff]  }
 0x8a4   : > { %9513 = vmatprep.subr.bf16.mxu1 %v12669_v19  ;;  %v12751_v19 = vld [vmem:[%s16235_s15 + $0x724] ss:$8 sps:$4 sm:$0xff]  }
 0x8a7   : > { %9514 = vmatpush1.bf16.msra.mxu1 %v12667_v21  ;;  %v12749_v21 = vld [vmem:[%s16235_s15 + $0x720] ss:$8 sps:$4 sm:$0xff]  }
 0x8a8   : > { %9515 = vmatprep.subr.bf16.mxu1 %v12672_v22  ;;  %v12754_v22 = vld [vmem:[%s16235_s15 + $0x734] ss:$8 sps:$4 sm:$0xff]  }
 0x8ab   : > { %9516 = vmatpush1.bf16.msra.mxu1 %v12670_v55  ;;  %v12752_v55 = vld [vmem:[%s16235_s15 + $0x730] ss:$8 sps:$4 sm:$0xff]  }
 0x8ac   : > { %9517 = vmatprep.subr.bf16.mxu1 %v12675_v51  ;;  %v12757_v51 = vld [vmem:[%s16235_s15 + $0x744] ss:$8 sps:$4 sm:$0xff]  }
 0x8af   : > { %9518 = vmatpush1.bf16.msra.mxu1 %v12673_v24  ;;  %v12755_v24 = vld [vmem:[%s16235_s15 + $0x740] ss:$8 sps:$4 sm:$0xff]  }
 0x8b0   : > { %9519 = vmatprep.subr.bf16.mxu1 %v12678_v25  ;;  %v12760_v25 = vld [vmem:[%s16235_s15 + $0x754] ss:$8 sps:$4 sm:$0xff]  }
 0x8b3   : > { %9520 = vmatpush1.bf16.msra.mxu1 %v12676_v26  ;;  %v12758_v26 = vld [vmem:[%s16235_s15 + $0x750] ss:$8 sps:$4 sm:$0xff]  }
 0x8b4   : > { %9521 = vmatprep.subr.bf16.mxu1 %v12681_v27  ;;  %v12763_v27 = vld [vmem:[%s16235_s15 + $0x764] ss:$8 sps:$4 sm:$0xff]  }
 0x8b7   : > { %9522 = vmatpush1.bf16.msra.mxu1 %v12679_v4  ;;  %v12761_v4 = vld [vmem:[%s16235_s15 + $0x760] ss:$8 sps:$4 sm:$0xff]  }
 0x8b8   : > { %9523 = vmatprep.subr.bf16.mxu1 %v12684_v28 }
 0x8bb   : > { %9524 = vmatpush1.bf16.msra.mxu1 %v12682_v35  ;;  %v12766_v35 = vld [vmem:[%s16235_s15 + $0x774] ss:$8 sps:$4 sm:$0xff]  }
 0x8bc   : > { %9525 = vmatprep.subr.bf16.mxu1 %v12687_v11 }
 0x8bf   : > { %9526 = vmatpush1.bf16.msra.mxu1 %v12685_v2 }
 0x8c0   : > { %9527 = vmatprep.subr.bf16.mxu1 %v12690_v39 }
 0x8c3   : > { %9528 = vmatpush1.bf16.msra.mxu1 %v12688_v30  ;;  %v12764_v30 = vld [vmem:[%s16235_s15 + $0x770] ss:$8 sps:$4 sm:$0xff]  }
 0x8c4   : > { %9529 = vmatprep.subr.bf16.mxu1 %v12693_v10  ;;  %v12769_v10 = vld [vmem:[%s16235_s15 + $0x784] ss:$8 sps:$4 sm:$0xff]  }
 0x8c7   : > { %9530 = vmatpush1.bf16.msra.mxu1 %v12691_v32  ;;  %v12772_v32 = vld [vmem:[%s16235_s15 + $0x794] ss:$8 sps:$4 sm:$0xff]  }
 0x8c8   : > { %9540 = vmatprep.subr.bf16.mxu1 %v12696_v53  ;;  %v12863_v53 = vld [vmem:[%s16239_s19 + $0x40] sm:$0xff]  }
 0x8c9   : > { %11586 = vmatprep.subr.bf16.mxu0 %v12863_v53  ;;  %v12853_v53 = vld [vmem:[%s16237_s17 + $0x44] ss:$8 sps:$4 sm:$0xff]  }
 0x8ca   : > { %9532 = vmatmul.mubr.bf16.vlgmr.msra.gmra.mrb[92].mxu1 %v15647_v62  ;;  %v12732_v62 = vld [vmem:[%s16235_s15 + $0x6c4] ss:$8 sps:$4 sm:$0xff]  }
 0x8cb   : > { %9541 = vmatpush1.bf16.msra.mxu1 %v12694_v40  ;;  %9572 = vmatprep.mubr.bf16.mxu1 %v7826_v14  ;;  %v12865_v40 = vld [vmem:[%s16239_s19 + $0x48] sm:$0xff]  }
 0x8cc   : > { %9542 = vmatprep.subr.bf16.mxu1 %v12699_v7  ;;  %v12770_v7 = vld [vmem:[%s16235_s15 + $0x790] ss:$8 sps:$4 sm:$0xff]   ;;  %v12775_v14 = vld [vmem:[%s16235_s15 + $0x7a4] ss:$8 sps:$4 sm:$0xff]  }
 0x8cf   : > { %9543 = vmatpush1.bf16.msra.mxu1 %v12697_v45  ;;  %v12866_v45 = vld [vmem:[%s16239_s19 + $0x8] sm:$0xff]  }
 0x8d0   : > { %9544 = vmatprep.subr.bf16.mxu1 %v12702_v46  ;;  %v12773_v46 = vld [vmem:[%s16235_s15 + $0x7a0] ss:$8 sps:$4 sm:$0xff]  }
 0x8d3   : > { %9545 = vmatpush1.bf16.msra.mxu1 %v12700_v47  ;;  %v12778_v47 = vld [vmem:[%s16235_s15 + $0x7b4] ss:$8 sps:$4 sm:$0xff]  }
 0x8d4   : > { %9546 = vmatprep.subr.bf16.mxu1 %v12705_v36  ;;  %v12776_v36 = vld [vmem:[%s16235_s15 + $0x7b0] ss:$8 sps:$4 sm:$0xff]  }
 0x8d7   : > { %9547 = vmatpush1.bf16.msra.mxu1 %v12703_v38  ;;  %v12781_v38 = vld [vmem:[%s16235_s15 + $0x7c4] ss:$8 sps:$4 sm:$0xff]  }
 0x8d8   : > { %9548 = vmatprep.subr.bf16.mxu1 %v12708_v49  ;;  %v12779_v49 = vld [vmem:[%s16235_s15 + $0x7c0] ss:$8 sps:$4 sm:$0xff]  }
 0x8db   : > { %9549 = vmatpush1.bf16.msra.mxu1 %v12706_v52  ;;  %v12784_v52 = vld [vmem:[%s16235_s15 + $0x7d4] ss:$8 sps:$4 sm:$0xff]  }
 0x8dc   : > { %9550 = vmatprep.subr.bf16.mxu1 %v12711_v29  ;;  %v12782_v29 = vld [vmem:[%s16235_s15 + $0x7d0] ss:$8 sps:$4 sm:$0xff]  }
 0x8df   : > { %9551 = vmatpush1.bf16.msra.mxu1 %v12709_v56  ;;  %v12787_v56 = vld [vmem:[%s16235_s15 + $0x7e4] ss:$8 sps:$4 sm:$0xff]  }
 0x8e0   : > { %9552 = vmatprep.subr.bf16.mxu1 %v12714_v58  ;;  %v12785_v58 = vld [vmem:[%s16235_s15 + $0x7e0] ss:$8 sps:$4 sm:$0xff]  }
 0x8e3   : > { %9553 = vmatpush1.bf16.msra.mxu1 %v12712_v61  ;;  %v12790_v61 = vld [vmem:[%s16235_s15 + $0x7f4] ss:$8 sps:$4 sm:$0xff]  }
 0x8e4   : > { %9554 = vmatprep.subr.bf16.mxu1 %v12717_v59  ;;  %v12788_v59 = vld [vmem:[%s16235_s15 + $0x7f0] ss:$8 sps:$4 sm:$0xff]  }
 0x8e7   : > { %9555 = vmatpush1.bf16.msra.mxu1 %v12715_v34  ;;  %v12793_v34 = vld [vmem:[%s16235_s15 + $0x804] ss:$8 sps:$4 sm:$0xff]  }
 0x8e8   : > { %9556 = vmatprep.subr.bf16.mxu1 %v12720_v57  ;;  %v15973_v57 = vld.sshfl [vmem:[#allocation11 + $0x20] sm:$0x33 pattern:$0x76325410] }
 0x8eb   : > { %9557 = vmatpush1.bf16.msra.mxu1 %v12718_v1  ;;  %v12791_v1 = vld [vmem:[%s16235_s15 + $0x800] ss:$8 sps:$4 sm:$0xff]  }
 0x8ec   : > { %9558 = vmatprep.subr.bf16.mxu1 %v12723_v6  ;;  %v12796_v6 = vld [vmem:[%s16235_s15 + $0x814] ss:$8 sps:$4 sm:$0xff]  }
 0x8ef   : > { %9559 = vmatpush1.bf16.msra.mxu1 %v12721_v8  ;;  %v7835_v8 = vcombine.high %v15973_v57, %v15973_v57 }
 0x8f0   : > { %9560 = vmatprep.subr.bf16.mxu1 %v12726_v41  ;;  %v12794_v41 = vld [vmem:[%s16235_s15 + $0x810] ss:$8 sps:$4 sm:$0xff]  }
 0x8f3   : > { %9561 = vmatpush1.bf16.msra.mxu1 %v12724_v9  ;;  %v12799_v9 = vld [vmem:[%s16235_s15 + $0x824] ss:$8 sps:$4 sm:$0xff]  }
 0x8f4   : > { %9562 = vmatprep.subr.bf16.mxu1 %v12729_v54  ;;  %v12797_v54 = vld [vmem:[%s16235_s15 + $0x820] ss:$8 sps:$4 sm:$0xff]  }
 0x8f7   : > { %9563 = vmatpush1.bf16.msra.mxu1 %v12727_v13  ;;  %v12802_v13 = vld [vmem:[%s16235_s15 + $0x834] ss:$8 sps:$4 sm:$0xff]  }
 0x8f8   : > { %9564 = vmatprep.subr.bf16.mxu1 %v12732_v62  ;;  %v12800_v62 = vld [vmem:[%s16235_s15 + $0x830] ss:$8 sps:$4 sm:$0xff]  }
 0x8fb   : > { %9565 = vmatpush1.bf16.msra.mxu1 %v12730_v42  ;;  %v12805_v42 = vld [vmem:[%s16235_s15 + $0x844] ss:$8 sps:$4 sm:$0xff]  }
 0x8fc   : > { %9566 = vmatprep.subr.bf16.mxu1 %v12735_v15  ;;  %v12803_v15 = vld [vmem:[%s16235_s15 + $0x840] ss:$8 sps:$4 sm:$0xff]  }
 0x8ff   : > { %9567 = vmatpush1.bf16.msra.mxu1 %v12733_v0  ;;  %v12808_v0 = vld [vmem:[%s16235_s15 + $0x854] ss:$8 sps:$4 sm:$0xff]  }
 0x900   : > { %9568 = vmatprep.subr.bf16.mxu1 %v12738_v63  ;;  %v12806_v63 = vld [vmem:[%s16235_s15 + $0x850] ss:$8 sps:$4 sm:$0xff]  }
 0x903   : > { %9569 = vmatpush1.bf16.msra.mxu1 %v12736_v12  ;;  %v12811_v12 = vld [vmem:[%s16235_s15 + $0x864] ss:$8 sps:$4 sm:$0xff]  }
 0x904   : > { %9570 = vmatprep.subr.bf16.mxu1 %v12741_v48  ;;  %v12809_v48 = vld [vmem:[%s16235_s15 + $0x860] ss:$8 sps:$4 sm:$0xff]  }
 0x907   : > { %9571 = vmatpush1.bf16.msra.mxu1 %v12739_v31  ;;  %v12812_v31 = vld [vmem:[%s16235_s15 + $0x870] ss:$8 sps:$4 sm:$0xff]  }
 0x908   : > { %9581 = vmatprep.subr.bf16.mxu1 %v12744_v44  ;;  %v12817_v44 = vld [vmem:[%s16235_s15 + $0x884] ss:$8 sps:$4 sm:$0xff]  }
 0x90a   : > { %9573 = vmatmul.mubr.bf16.vlgmr.msra.gmra.mrb[92].mxu1 %v15752_v5  ;;  %v12864_v5 = vld [vmem:[%s16239_s19] sm:$0xff]  }
 0x90b   : > { %9582 = vmatpush1.bf16.msra.mxu1 %v12742_v16  ;;  %9613 = vmatprep.mubr.bf16.mxu1 %v7827_v17  ;;  %v12820_v16 = vld [vmem:[%s16235_s15 + $0x894] ss:$8 sps:$4 sm:$0xff]   ;;  %v12823_v17 = vld [vmem:[%s16235_s15 + $0x8a4] ss:$8 sps:$4 sm:$0xff]  }
 0x90c   : > { %9583 = vmatprep.subr.bf16.mxu1 %v12748_v33  ;;  %11587 = vmatpush3.bf16.msra.mxu0 %v12864_v5  ;;  %v12818_v33 = vld [vmem:[%s16235_s15 + $0x890] ss:$8 sps:$4 sm:$0xff]   ;;  %v12851_v5 = vld [vmem:[%s16237_s17 + $0x40] ss:$8 sps:$4 sm:$0xff]  }
 0x90d   : > { %11588 = vmatprep.subr.bf16.mxu0 %v12865_v40  ;;  %v12856_v40 = vld [vmem:[%s16237_s17 + $0x54] ss:$8 sps:$4 sm:$0xff]  }
 0x90f   : > { %9584 = vmatpush1.bf16.msra.mxu1 %v12746_v37  ;;  %v12821_v37 = vld [vmem:[%s16235_s15 + $0x8a0] ss:$8 sps:$4 sm:$0xff]  }
 0x910   : > { %9585 = vmatprep.subr.bf16.mxu1 %v12751_v19  ;;  %11589 = vmatpush3.bf16.msra.mxu0 %v12866_v45  ;;  %v12826_v19 = vld [vmem:[%s16235_s15 + $0x8b4] ss:$8 sps:$4 sm:$0xff]   ;;  %v9664_v45 = vld [vmem:[#allocation9 + $0x19] ss:$2 sm:$0x3] }
 0x913   : > { %9586 = vmatpush1.bf16.msra.mxu1 %v12749_v21  ;;  %v12824_v21 = vld [vmem:[%s16235_s15 + $0x8b0] ss:$8 sps:$4 sm:$0xff]  }
 0x914   : > { %9587 = vmatprep.subr.bf16.mxu1 %v12754_v22  ;;  %v12829_v22 = vld [vmem:[%s16235_s15 + $0x8c4] ss:$8 sps:$4 sm:$0xff]  }
 0x917   : > { %9588 = vmatpush1.bf16.msra.mxu1 %v12752_v55  ;;  %v12827_v55 = vld [vmem:[%s16235_s15 + $0x8c0] ss:$8 sps:$4 sm:$0xff]  }
 0x918   : > { %9589 = vmatprep.subr.bf16.mxu1 %v12757_v51  ;;  %v12832_v51 = vld [vmem:[%s16235_s15 + $0x8d4] ss:$8 sps:$4 sm:$0xff]  }
 0x91b   : > { %9590 = vmatpush1.bf16.msra.mxu1 %v12755_v24  ;;  %v12830_v24 = vld [vmem:[%s16235_s15 + $0x8d0] ss:$8 sps:$4 sm:$0xff]  }
 0x91c   : > { %9591 = vmatprep.subr.bf16.mxu1 %v12760_v25  ;;  %v12835_v25 = vld [vmem:[%s16235_s15 + $0x8e4] ss:$8 sps:$4 sm:$0xff]  }
 0x91f   : > { %9592 = vmatpush1.bf16.msra.mxu1 %v12758_v26  ;;  %v12833_v26 = vld [vmem:[%s16235_s15 + $0x8e0] ss:$8 sps:$4 sm:$0xff]  }
 0x920   : > { %v15900_v28 = vpop.f32.mrb[128].mxu0  ;;  %9593 = vmatprep.subr.bf16.mxu1 %v12763_v27  ;;  %v12838_v27 = vld [vmem:[%s16235_s15 + $0x8f4] ss:$8 sps:$4 sm:$0xff]  }
 0x921   : > { %v15905_v11 = vpop.f32.mrb[129].mxu0 }
 0x922   : > { %v9373_v2 = vpop.f32.mrb[130].mxu0 }
 0x923   : > { %v9374_v39 = vpop.f32.mrb[131].mxu0  ;;  %9594 = vmatpush1.bf16.msra.mxu1 %v12761_v4  ;;  %v12836_v4 = vld [vmem:[%s16235_s15 + $0x8f0] ss:$8 sps:$4 sm:$0xff]   ;;  %v12839_v2 = vld [vmem:[%s16237_s17] ss:$8 sps:$4 sm:$0xff]  }
 0x924   : > { %9595 = vmatprep.subr.bf16.mxu1 %v12766_v35  ;;  %v12841_v35 = vld [vmem:[%s16237_s17 + $0x4] ss:$8 sps:$4 sm:$0xff]   ;;  %v12844_v39 = vld [vmem:[%s16237_s17 + $0x14] ss:$8 sps:$4 sm:$0xff]  }
 0x927   : > { %9596 = vmatpush1.bf16.msra.mxu1 %v12764_v30  ;;  %v12842_v30 = vld [vmem:[%s16237_s17 + $0x10] ss:$8 sps:$4 sm:$0xff]  }
 0x928   : > { %9597 = vmatprep.subr.bf16.mxu1 %v12769_v10  ;;  %v12847_v10 = vld [vmem:[%s16237_s17 + $0x24] ss:$8 sps:$4 sm:$0xff]  }
 0x92b   : > { %9598 = vmatpush1.bf16.msra.mxu1 %v12767_v18  ;;  %v12845_v18 = vld [vmem:[%s16237_s17 + $0x20] ss:$8 sps:$4 sm:$0xff]  }
 0x92c   : > { %9599 = vmatprep.subr.bf16.mxu1 %v12772_v32  ;;  %v12850_v32 = vld [vmem:[%s16237_s17 + $0x34] ss:$8 sps:$4 sm:$0xff]  }
 0x92f   : > { %9600 = vmatpush1.bf16.msra.mxu1 %v12770_v7  ;;  %v12854_v7 = vld [vmem:[%s16237_s17 + $0x50] ss:$8 sps:$4 sm:$0xff]  }
 0x930   : > { %9601 = vmatprep.subr.bf16.mxu1 %v12775_v14  ;;  %v12859_v14 = vld [vmem:[%s16237_s17 + $0x64] ss:$8 sps:$4 sm:$0xff]  }
 0x933   : > { %9602 = vmatpush1.bf16.msra.mxu1 %v12773_v46  ;;  %v12857_v46 = vld [vmem:[%s16237_s17 + $0x60] ss:$8 sps:$4 sm:$0xff]  }
 0x934   : > { %9603 = vmatprep.subr.bf16.mxu1 %v12778_v47  ;;  %v9663_v47 = vld [vmem:[#allocation9 + $0x9] ss:$2 sm:$0x3] }
 0x937   : > { %9604 = vmatpush1.bf16.msra.mxu1 %v12776_v36  ;;  %v12862_v36 = vld [vmem:[%s16237_s17 + $0x74] ss:$8 sps:$4 sm:$0xff]  }
 0x938   : > { %9605 = vmatprep.subr.bf16.mxu1 %v12781_v38  ;;  %v9667_v38 = vcombine.low %v9663_v47, %v9664_v45 }
 0x93b   : > { %9606 = vmatpush1.bf16.msra.mxu1 %v12779_v49  ;;  %v12860_v49 = vld [vmem:[%s16237_s17 + $0x70] ss:$8 sps:$4 sm:$0xff]  }
 0x93c   : > { %9607 = vmatprep.subr.bf16.mxu1 %v12784_v52  ;;  %v9674_v52 = vrot.slane %v9667_v38, %v14735_v3  ;;  %v12870_v3 = vld [vmem:[%s16239_s19 + $0x18] sm:$0xff]  }
 0x93f   : > { %9608 = vmatpush1.bf16.msra.mxu1 %v12782_v29  ;;  %v9676_v29 = vpack.c.bf16 %v9674_v52, %v9674_v52 }
 0x940   : > { %9609 = vmatprep.subr.bf16.mxu1 %v12787_v56  ;;  %v12867_v56 = vld [vmem:[%s16239_s19 + $0x50] sm:$0xff]  }
 0x941   : > { %11590 = vmatprep.subr.bf16.mxu0 %v12867_v56 }
 0x943   : > { %9610 = vmatpush1.bf16.msra.mxu1 %v12785_v58  ;;  %v12868_v58 = vld [vmem:[%s16239_s19 + $0x10] sm:$0xff]  }
 0x944   : > { %9611 = vmatprep.subr.bf16.mxu1 %v12790_v61  ;;  %11591 = vmatpush3.bf16.msra.mxu0 %v12868_v58  ;;  %v12869_v61 = vld [vmem:[%s16239_s19 + $0x58] sm:$0xff]  }
 0x945   : > { %11592 = vmatprep.subr.bf16.mxu0 %v12869_v61 }
 0x947   : > { %9612 = vmatpush1.bf16.msra.mxu1 %v12788_v59  ;;  %v12871_v59 = vld [vmem:[%s16239_s19 + $0x60] sm:$0xff]  }
 0x948   : > { %9622 = vmatprep.subr.bf16.mxu1 %v12793_v34  ;;  %11593 = vmatpush3.bf16.msra.mxu0 %v12870_v3  ;;  %v12872_v34 = vld [vmem:[%s16239_s19 + $0x20] sm:$0xff]  }
 0x949   : > { %11594 = vmatprep.subr.bf16.mxu0 %v12871_v59 }
 0x94a   : > { %9614 = vmatmul.mubr.bf16.vlgmr.msra.gmra.mrb[92].mxu1 %v15856_v23  ;;  %v12815_v23 = vld [vmem:[%s16235_s15 + $0x880] ss:$8 sps:$4 sm:$0xff]  }
 0x94b   : > { %9623 = vmatpush1.bf16.msra.mxu1 %v12791_v1  ;;  %9654 = vmatprep.mubr.bf16.mxu1 %v7835_v8  ;;  %v12874_v1 = vld [vmem:[%s16239_s19 + $0x28] sm:$0xff]   ;;  %v12876_v8 = vld [vmem:[%s16239_s19 + $0x30] sm:$0xff]  }
 0x94c   : > { %9624 = vmatprep.subr.bf16.mxu1 %v12796_v6  ;;  %11595 = vmatpush3.bf16.msra.mxu0 %v12872_v34  ;;  %v12875_v6 = vld [vmem:[%s16239_s19 + $0x70] sm:$0xff]  }
 0x94f   : > { %9625 = vmatpush1.bf16.msra.mxu1 %v12794_v41  ;;  %v12877_v41 = vld [vmem:[%s16239_s19 + $0x78] sm:$0xff]  }
 0x950   : > { %9626 = vmatprep.subr.bf16.mxu1 %v12799_v9  ;;  %v12878_v9 = vld [vmem:[%s16239_s19 + $0x38] sm:$0xff]  }
 0x953   : > { %9627 = vmatpush1.bf16.msra.mxu1 %v12797_v54  ;;  %v7743_v54 = vld [vmem:[%s16236_s16] sm:$0x3] }
 0x954   : > { %9628 = vmatprep.subr.bf16.mxu1 %v12802_v13  ;;  %v7748_v13 = vrot.slane %v7743_v54, %v15303_v50 }
 0x957   : > { %9629 = vmatpush1.bf16.msra.mxu1 %v12800_v62  ;;  %v7752_v62 = vrot.slane %v7743_v54, %v15309_v20 }
 0x958   : > { %9630 = vmatprep.subr.bf16.mxu1 %v12805_v42  ;;  %v9693_v42 = vld [vmem:[%s16238_s18] sm:$0x3] }
 0x95b   : > { %9631 = vmatpush1.bf16.msra.mxu1 %v12803_v15  ;;  %v11754_v15 = vadd.f32 %v15900_v28, %v7748_v13 }
 0x95c   : > { %9632 = vmatprep.subr.bf16.mxu1 %v12808_v0  ;;  %v9698_v0 = vrot.slane %v9693_v42, %v15303_v50 }
 0x95f   : > { %9633 = vmatpush1.bf16.msra.mxu1 %v12806_v63  ;;  %v11757_v63 = vadd.f32 %v15905_v11, %v7752_v62 }
 0x960   : > { %9634 = vmatprep.subr.bf16.mxu1 %v12811_v12  ;;  %v9702_v12 = vrot.slane %v9693_v42, %v15309_v20 }
 0x963   : > { %9635 = vmatpush1.bf16.msra.mxu1 %v12809_v48  ;;  %v11755_v48 = vadd.f32 %v11754_v15, %v9698_v0 }
 0x964   : > { %9636 = vmatprep.subr.bf16.mxu1 %v12814_v60 }
 0x967   : > { %9637 = vmatpush1.bf16.msra.mxu1 %v12812_v31  ;;  %v11758_v31 = vadd.f32 %v11757_v63, %v9702_v12 }
 0x968   : > { %9638 = vmatprep.subr.bf16.mxu1 %v12817_v44 }
 0x96b   : > { %9639 = vmatpush1.bf16.msra.mxu1 %v12815_v23 }
 0x96c   : > { %9640 = vmatprep.subr.bf16.mxu1 %v12820_v16 }
 0x96f   : > { %9641 = vmatpush1.bf16.msra.mxu1 %v12818_v33 }
 0x970   : > { %9642 = vmatprep.subr.bf16.mxu1 %v12823_v17 }
 0x973   : > { %9643 = vmatpush1.bf16.msra.mxu1 %v12821_v37 }
 0x974   : > { %9644 = vmatprep.subr.bf16.mxu1 %v12826_v19 }
 0x977   : > { %9645 = vmatpush1.bf16.msra.mxu1 %v12824_v21 }
 0x978   : > { %9646 = vmatprep.subr.bf16.mxu1 %v12829_v22 }
 0x97b   : > { %9647 = vmatpush1.bf16.msra.mxu1 %v12827_v55 }
 0x97c   : > { %9648 = vmatprep.subr.bf16.mxu1 %v12832_v51 }
 0x97f   : > { %9649 = vmatpush1.bf16.msra.mxu1 %v12830_v24 }
 0x980   : > { %9650 = vmatprep.subr.bf16.mxu1 %v12835_v25 }
 0x983   : > { %9651 = vmatpush1.bf16.msra.mxu1 %v12833_v26 }
 0x984   : > { %9652 = vmatprep.subr.bf16.mxu1 %v12838_v27 }
 0x987   : > { %9653 = vmatpush1.bf16.msra.mxu1 %v12836_v4 }
 0x988   : > { %9785 = vmatprep.subr.bf16.mxu1 %v12841_v35 }
 0x98a   : > { %9655 = vmatmul.mubr.bf16.vlgmr.msra.gmra.mrb[92].mxu1 %v15973_v57  ;;  %v12873_v57 = vld [vmem:[%s16239_s19 + $0x68] sm:$0xff]  }
 0x98b   : > { %9786 = vmatpush1.bf16.msra.mxu1 %v12839_v2  ;;  %9817 = vmatprep.mubr.bf16.mxu1 %v12945_v43  ;;  %v12848_v43 = vld [vmem:[%s16237_s17 + $0x30] ss:$8 sps:$4 sm:$0xff]  }
 0x98c   : > { %9787 = vmatprep.subr.bf16.mxu1 %v12844_v39  ;;  %11596 = vmatprep.subr.bf16.mxu0 %v12873_v57 }
 0x98d   : > { %11597 = vmatpush3.bf16.msra.mxu0 %v12874_v1 }
 0x98e   : > { %11598 = vmatprep.subr.bf16.mxu0 %v12875_v6 }
 0x98f   : > { %9788 = vmatpush1.bf16.msra.mxu1 %v12842_v30 }
 0x990   : > { %9789 = vmatprep.subr.bf16.mxu1 %v12847_v10 }
 0x991   : > { %11599 = vmatpush3.bf16.msra.mxu0 %v12876_v8 }
 0x992   : > { %11600 = vmatprep.subr.bf16.mxu0 %v12877_v41 }
 0x993   : > { %9790 = vmatpush1.bf16.msra.mxu1 %v12845_v18 }
 0x994   : > { %9791 = vmatprep.subr.bf16.mxu1 %v12850_v32  ;;  %v9882_v32 = vld [vmem:[%s16240_s20] sm:$0x1] }
 0x995   : > { %11601 = vmatpush3.bf16.msra.mxu0 %v12878_v9 }
 0x997   : > { %9792 = vmatpush1.bf16.msra.mxu1 %v12848_v43 }
 0x998   : > { %9793 = vmatprep.subr.bf16.mxu1 %v12853_v53 }
 0x99b   : > { %9794 = vmatpush1.bf16.msra.mxu1 %v12851_v5 }
 0x99c   : > { %9795 = vmatprep.subr.bf16.mxu1 %v12856_v40 }
 0x99f   : > { %9796 = vmatpush1.bf16.msra.mxu1 %v12854_v7 }
 0x9a0   : > { %9797 = vmatprep.subr.bf16.mxu1 %v12859_v14 }
 0x9a3   : > { %9798 = vmatpush1.bf16.msra.mxu1 %v12857_v46 }
 0x9a4   : > { %9799 = vmatprep.subr.bf16.mxu1 %v12862_v36 }
 0x9a7   : > { %9800 = vmatpush1.bf16.msra.mxu1 %v12860_v49 }
 0x9aa   : > { %9818 = vmatmul.mubr.bf16.vlgmr.msra.gmra.mrb[92].mxu1 %v9676_v29 }
 0xa7d   : > { %v9819_v60 = vpop.f32.mrb[92].mxu1 }
 0xa7e   : > { %v11756_v44 = vadd.f32 %v11755_v48, %v9819_v60  ;;  %v9821_v23 = vpop.f32.mrb[93].mxu1 }
 0xa7f   : > { %v11759_v16 = vadd.f32 %v11758_v31, %v9821_v23  ;;  %v9823_v33 = vpop.f32.mrb[94].mxu1 }
 0xa80   : > { %v9828_v17 = vmax.f32 %v11756_v44, 0.0  ;;  %v9824_v37 = vpop.f32.mrb[95].mxu1 }
 0xa81   : > { %v9829_v19 = vmax.f32 %v11759_v16, 0.0 }
 0xa82   : > { %v9831_v21 = vsel %vm9830_vm10, %v9828_v17, 0.0 }
 0xa83   : > { %v9832_v22 = vrot.slane %v9831_v21, 4  ;;  %v9838_v28 = vsel %vm9830_vm10, %v9829_v19, 0.0 }
 0xa84   : > { %v9839_v55 = vrot.slane %v9838_v28, 4 }
 0xa85   : > { %v9833_v50 = vadd.f32 %v9832_v22, %v9831_v21 }
 0xa86   : > { %v9840_v11 = vadd.f32 %v9839_v55, %v9838_v28 }
 0xa87   : > { %v9834_v51 = vrot.slane %v9833_v50, 2 }
 0xa88   : > { %v9841_v20 = vrot.slane %v9840_v11, 2 }
 0xa89   : > { %v9835_v24 = vadd.f32 %v9834_v51, %v9833_v50 }
 0xa8a   : > { %v9842_v25 = vadd.f32 %v9841_v20, %v9840_v11 }
 0xa8b   : > { %v9836_v26 = vrot.slane %v9835_v24, 1 }
 0xa8c   : > { %v9843_v27 = vrot.slane %v9842_v25, 1 }
 0xa8d   : > { %v9837_v4 = vadd.f32 %v9836_v26, %v9835_v24 }
 0xa8e   : > { %v9844_v35 = vadd.f32 %v9843_v27, %v9842_v25 }
 0xa8f   : > { %v9846_v2 = vmul.f32 0.25, %v9837_v4 }
 0xa90   : > { %v9847_v39 = vmul.f32 0.25, %v9844_v35 }
 0xa91   : > { %v9848_v10 = vpack.c.bf16 %v9846_v2, %v9846_v2 }
 0xa92   : > { %v9849_v30 = vpack.c.bf16 %v9847_v39, %v9847_v39 }
 0xa94   : > { %10011 = vmatprep.mubr.bf16.mxu0 %v9849_v30 }
 0xa95   : > { %10012 = vmatmul.mubr.bf16.vlgmr.msra.gmra.mrb[132].mxu0 %v9848_v10 }
 0xb68   : > { %v11602_v18 = vpop.f32.mrb[132].mxu0 }
 0xb69   : > { %v11603_v43 = vpop.f32.mrb[133].mxu0 }
 0xb6a   : > { %v11604_v53 = vadd.f32 %v11603_v43, %v11602_v18  ;;  %v11605_v5 = vpop.f32.mrb[134].mxu0 }
 0xb6b   : > { %v11606_v40 = vpop.f32.mrb[135].mxu0 }
 0xb6c   : > { %v10014_v7 = vadd.f32 %v11604_v53, %v9882_v32 }
 0xb6e   : > { %10020 = vst.msk [vmem:[%s648_s24] sm:$0x1] %vm10019_vm11, %v10014_v7 }
 0xb6f   : > { %12893 = shalt.err (!%p12890_p3)
}
 0xb70   : > { %s12894_s30 = scalar_lea.hbm %s16178_s27, 16  ;;  %s12898_s24 = scalar_lea.hbm %s16241_s21, 32 }
 0xb71   : > { %p12895_p4 = scmp.ne.s32.totalorder %s16178_s27, %s12894_s30  ;;  %p12899_p9 = scmp.lt.u32.totalorder %s16178_s27, %s16241_s21 }
 0xb72   : > { %p12900_p10 = scmp.lt.u32.totalorder %s12898_s24, %s12894_s30  ;;  %p12902_p12 = scmp.lt.u32.totalorder %s12894_s30, %s16178_s27 }
 0xb73   : > { %p12896_p7 = pnand %p12895_p4, %p13097_p5 }
 0xb74   : > { %p12901_p11 = por %p12900_p10, %p12899_p9 }
 0xb75   : > { %p12897_p8 = pneg %p12896_p7 }
 0xb76   : > { %p12903_p13 = por %p12902_p12, %p12901_p11 }
 0xb78   : > { %p12904_p0 = pnand %p12903_p13, %p12897_p8 }
 0xb7a   : > { %12907 = shalt.err (!%p12904_p0)
}
 0xb7b   : > { %11812 = dma.vmem_to_hbm [thread:$0]  (%p13097_p5), %s16180_s0, 16, %s16178_s27, %s10022_s22  }
 0xb7c PF: > { %s16276_s3 = sld [smem:[#allocation17_spill]]  ;;  %s16277_s4 = sld [smem:[#allocation15_spill]] }
 0xb82   : > { %p11818_p1 = scmp.ge.s32.totalorder %s16276_s3, 2  ;;  %s10046_s1 = sand.u32 1, %s16277_s4  }
 0xb83   : > { %s10047_s28 = scalar_lea.sflag [#allocation13], %s10046_s1 }
 0xb84   : > { %p11815_p2 = pnand %p11818_p1, %p13101_p6 }
 0xb86   : > { %12925 = dma.done.wait (!%p11815_p2), %s10047_s28, 16  }
 0xb87   : > { %12927 = vsyncadd (!%p11815_p2), %s10047_s28, 4294967280  ;;  %s16279_s27 = sld [smem:[#allocation18_spill]]  ;;  %s16280_s30 = sld [smem:[#allocation16_spill]] }
 0xb88   : > { %s16281_s26 = sld [smem:[#allocation19_spill]]  ;;  %s16282_s2 = smov %s12934_s25 }
 0xb8d   : > { %p31_p3 = scmp.ge.s32.totalorder %s16279_s27, 4   ;;  %s16283_s25 = smov %s16280_s30 }
 0xb8f   :  { %33 = sbr.rel (!%p31_p3) target bundleno = 10 (0xa), region = 270 }
 0xb96   :  { %10051 = vsyncpa [#allocation13], 1 }
 0xb97   :  { %10053 = vsyncpa [#allocation13 + $0x1], 1 }

</bundles_post_ra>
